<compile_context>
chip_gen: v7x
topology: tpu7x:2x2x1
jax: 0.10.0
libtpu: 0.0.40
codegen_flags: <defaults>
</compile_context>

<pallas_src>
import functools

import jax
import jax.numpy as jnp
from jax.experimental import pallas as pl
from jax.experimental.pallas import tpu as pltpu

LANE = 128
BN_EPS = 1e-5
BN_SCALE = (1.0 + BN_EPS) ** -0.5  # gamma=1, running_var=1 (inference-mode BN)


def _round_up(x, m):
    return (x + m - 1) // m * m


def _cpad(c):
    return _round_up(c, LANE)


def _pick_tm(m):
    # >=2 grid steps so the "parallel" axis can use both v7x TensorCores,
    # tiles <= ~512 rows (mem-bound sweet spot), multiple of 16 sublanes.
    steps = max(2, pl.cdiv(m, 512))
    return max(16, _round_up(pl.cdiv(m, steps), 16))


# ----------------------------- Pallas kernels ------------------------------ #

def _gemm_kernel(x_ref, w_ref, b_ref, o_ref):
    # relu(x @ w + bias); BN scale already folded into w.
    acc = jnp.dot(x_ref[...], w_ref[...], preferred_element_type=jnp.float32)
    acc = jnp.maximum(acc + b_ref[...], 0.0)
    o_ref[...] = acc.astype(o_ref.dtype)


def _gemm_residual_kernel(x_ref, w_ref, b_ref, id_ref, o_ref):
    # relu(x @ w + bias + identity)  -- fused SqnxtUnit epilogue.
    # (identity is already post-ReLU, so the extra ReLU of the PyTorch module
    #  is a no-op and is omitted.)
    acc = jnp.dot(x_ref[...], w_ref[...], preferred_element_type=jnp.float32)
    acc = acc + b_ref[...] + id_ref[...].astype(jnp.float32)
    o_ref[...] = jnp.maximum(acc, 0.0).astype(o_ref.dtype)


def _tap_gemm_kernel(x_ref, w_ref, b_ref, o_ref, *, taps, shift):
    # Fused im2col: out[r] = relu(sum_t x[r + t*shift] @ W_t + bias)
    # x_ref: (M + (taps-1)*shift, C), w_ref: (taps, C, Cout), o_ref: (M, Cout)
    m = o_ref.shape[0]
    acc = jnp.zeros(o_ref.shape, jnp.float32)
    for t in range(taps):  # static, tiny (3 taps)
        xt = x_ref[pl.ds(t * shift, m), :]
        acc = acc + jnp.dot(xt, w_ref[t], preferred_element_type=jnp.float32)
    acc = jnp.maximum(acc + b_ref[...], 0.0)
    o_ref[...] = acc.astype(o_ref.dtype)


# ------------------------------ Pallas wrappers ----------------------------- #

def fused_gemm(x, w, bias, identity=None):
    """relu(x @ w + bias [+ identity]).  x:(M,K) bf16, w:(K,N) bf16 (pre-padded,
    BN-folded), bias:(1,N) f32.  K and N are already multiples of 128."""
    m, k = x.shape
    n = w.shape[1]
    tm = _pick_tm(m)
    in_specs = [
        pl.BlockSpec((tm, k), lambda i: (i, 0)),
        pl.BlockSpec((k, n), lambda i: (0, 0)),
        pl.BlockSpec((1, n), lambda i: (0, 0)),
    ]
    args = [x, w, bias]
    if identity is None:
        kernel = _gemm_kernel
    else:
        kernel = _gemm_residual_kernel
        in_specs.append(pl.BlockSpec((tm, n), lambda i: (i, 0)))
        args.append(identity)
    return pl.pallas_call(
        kernel,
        out_shape=jax.ShapeDtypeStruct((m, n), jnp.bfloat16),
        grid=(pl.cdiv(m, tm),),
        in_specs=in_specs,
        out_specs=pl.BlockSpec((tm, n), lambda i: (i, 0)),
        compiler_params=pltpu.CompilerParams(dimension_semantics=("parallel",)),
    )(*args)


def conv1x1(x, p, *, stride=1, identity=None):
    """1x1 conv + BN + ReLU (optionally fused residual add) as a plain GEMM."""
    if stride != 1:
        x = x[:, ::stride, ::stride, :]
    n, h, w, c = x.shape
    cout = p["w"].shape[1]
    m = n * h * w
    xf = x.reshape(m, c)                                   # contiguous reshape
    idf = None if identity is None else identity.reshape(m, cout)
    y = fused_gemm(xf, p["w"], p["bias"], identity=idf)
    return y.reshape(n, h, w, cout)


def conv_spatial(x, p):
    """(1,k) / (k,1) conv, stride 1, 'same' padding: kernel taps are
    accumulated inside one Pallas kernel on the flat row-major layout
    (no im2col materialization)."""
    kh, kw = p["k"]
    ph, pw = p["pad"]
    n, h, w, c = x.shape
    cout = p["w"].shape[-1]
    if kh == 1:
        assert 2 * pw == kw - 1
        taps, shift = kw, 1
        xp = jnp.pad(x, ((0, 0), (0, 0), (pw, pw), (0, 0)))
    else:
        assert kw == 1 and 2 * ph == kh - 1
        taps, shift = kh, w
        xp = jnp.pad(x, ((0, 0), (ph, ph), (0, 0), (0, 0)))
    _, hp, wp, _ = xp.shape
    m = n * hp * wp
    ext = (taps - 1) * shift
    xf = jnp.pad(xp.reshape(m, c), ((0, ext), (0, 0)))     # a few zero rows

    y = pl.pallas_call(
        functools.partial(_tap_gemm_kernel, taps=taps, shift=shift),
        out_shape=jax.ShapeDtypeStruct((m, cout), jnp.bfloat16),
        grid=(1,),
        in_specs=[
            pl.BlockSpec((m + ext, c), lambda i: (0, 0)),
            pl.BlockSpec(p["w"].shape, lambda i: (0, 0, 0)),
            pl.BlockSpec((1, cout), lambda i: (0, 0)),
        ],
        out_specs=pl.BlockSpec((m, cout), lambda i: (0, 0)),
    )(xf, p["w"], p["bias"])

    y = y.reshape(n, hp, wp, cout)
    return y[:, :h, :w, :]      # drop the spatial-padding output positions


# ------------------------------- JAX glue ---------------------------------- #

def im2col(x, kh, kw, sh, sw, ph, pw):
    """Only used for the one-off 7x7/s2 init conv (3 input channels)."""
    n, h, w, c = x.shape
    xp = jnp.pad(x, ((0, 0), (ph, ph), (pw, pw), (0, 0)))
    hp, wp = h + 2 * ph, w + 2 * pw
    oh = (hp - kh) // sh + 1
    ow = (wp - kw) // sw + 1
    cols = []
    for i in range(kh):
        for j in range(kw):
            cols.append(xp[:, i:i + (oh - 1) * sh + 1:sh,
                           j:j + (ow - 1) * sw + 1:sw, :])
    patches = jnp.concatenate(cols, axis=-1)
    return patches.reshape(n * oh * ow, kh * kw * c), oh, ow


def init_conv(x, p):
    """SqnxtInitBlock conv: 7x7, stride 2, pad 1, + BN + ReLU."""
    kh, kw = p["k"]
    n = x.shape[0]
    patches, oh, ow = im2col(x, kh, kw, 2, 2, 1, 1)
    kdim = patches.shape[1]
    kpad = p["w"].shape[0]
    if kpad != kdim:  # one-time K alignment pad for this single layer
        patches = jnp.pad(patches, ((0, 0), (0, kpad - kdim)))
    y = fused_gemm(patches, p["w"], p["bias"])
    return y.reshape(n, oh, ow, p["w"].shape[1])


def maxpool_ceil(x, k=3, s=2):
    """MaxPool2d(kernel_size=k, stride=s, ceil_mode=True) on NHWC.
    # TODO(synk): could be fused into the init-conv epilogue / a Pallas kernel."""
    n, h, w, c = x.shape
    oh = -(-(h - k) // s) + 1
    ow = -(-(w - k) // s) + 1
    ph = max(0, (oh - 1) * s + k - h)
    pw = max(0, (ow - 1) * s + k - w)
    xp = jnp.pad(x, ((0, 0), (0, ph), (0, pw), (0, 0)),
                 constant_values=-jnp.inf)
    out = None
    for i in range(k):
        for j in range(k):
            v = xp[:, i:i + (oh - 1) * s + 1:s, j:j + (ow - 1) * s + 1:s, :]
            out = v if out is None else jnp.maximum(out, v)
    return out


# ------------------------------ parameters --------------------------------- #

def _kaiming_uniform(key, kh, kw, cin, cout):
    bound = (6.0 / (cin * kh * kw)) ** 0.5
    return jax.random.uniform(key, (kh, kw, cin, cout), jnp.float32, -bound, bound)


def make_conv1x1_params(key, cin, cout):
    w = _kaiming_uniform(key, 1, 1, cin, cout)[0, 0] * BN_SCALE      # BN folded
    wp = jnp.zeros((_cpad(cin), _cpad(cout)), jnp.float32).at[:cin, :cout].set(w)
    return {"w": wp.astype(jnp.bfloat16),
            "bias": jnp.zeros((1, _cpad(cout)), jnp.float32)}


def make_tap_conv_params(key, cin, cout, kh, kw, ph, pw):
    w = _kaiming_uniform(key, kh, kw, cin, cout).reshape(kh * kw, cin, cout)
    w = w * BN_SCALE
    taps = kh * kw
    wp = jnp.zeros((taps, _cpad(cin), _cpad(cout)),
                   jnp.float32).at[:, :cin, :cout].set(w)
    return {"w": wp.astype(jnp.bfloat16),
            "bias": jnp.zeros((1, _cpad(cout)), jnp.float32),
            "k": (kh, kw), "pad": (ph, pw)}


def make_im2col_conv_params(key, cin, cout, kh, kw):
    w = _kaiming_uniform(key, kh, kw, cin, cout).reshape(kh * kw * cin, cout)
    w = w * BN_SCALE
    kdim = kh * kw * cin
    kpad = _round_up(kdim, LANE)
    wp = jnp.zeros((kpad, _cpad(cout)), jnp.float32).at[:kdim, :cout].set(w)
    return {"w": wp.astype(jnp.bfloat16),
            "bias": jnp.zeros((1, _cpad(cout)), jnp.float32),
            "k": (kh, kw)}


def make_unit_params(key, cin, cout, stride):
    if stride == 2:
        rd, resize = 1, True
    elif cin > cout:
        rd, resize = 4, True
    else:
        rd, resize = 2, False
    ks = jax.random.split(key, 6)
    p = {
        "conv1": make_conv1x1_params(ks[0], cin, cin // rd),
        "conv2": make_conv1x1_params(ks[1], cin // rd, cin // (2 * rd)),
        "conv3": make_tap_conv_params(ks[2], cin // (2 * rd), cin // rd, 1, 3, 0, 1),
        "conv4": make_tap_conv_params(ks[3], cin // rd, cin // rd, 3, 1, 1, 0),
        "conv5": make_conv1x1_params(ks[4], cin // rd, cout),
        "stride": stride,
        "resize": resize,
    }
    if resize:
        p["identity_conv"] = make_conv1x1_params(ks[5], cin, cout)
    return p


def make_model_params(key, channels, init_block_channels, final_block_channels,
                      in_channels=3, num_classes=10):
    keys = iter(jax.random.split(key, 64))
    params = {"init_conv": make_im2col_conv_params(next(keys), in_channels,
                                                   init_block_channels, 7, 7)}
    cin = init_block_channels
    stages = []
    for i, cps in enumerate(channels):
        stage = []
        for j, cout in enumerate(cps):
            stride = 2 if (j == 0 and i != 0) else 1
            stage.append(make_unit_params(next(keys), cin, cout, stride))
            cin = cout
        stages.append(stage)
    params["stages"] = stages
    params["final_block"] = make_conv1x1_params(next(keys), cin,
                                                final_block_channels)
    cin = final_block_channels
    bound = 1.0 / (cin ** 0.5)
    kfw, kfb = jax.random.split(next(keys))
    fc_w = jax.random.uniform(kfw, (cin, num_classes), jnp.float32, -bound, bound)
    params["fc_w"] = jnp.zeros((_cpad(cin), num_classes),
                               jnp.float32).at[:cin].set(fc_w)
    params["fc_b"] = jax.random.uniform(kfb, (num_classes,), jnp.float32,
                                        -bound, bound)
    return params


# -------------------------------- forward ---------------------------------- #

def sqnxt_unit(x, p):
    s = p["stride"]
    if p["resize"]:
        identity = conv1x1(x, p["identity_conv"], stride=s)
    else:
        identity = x
    # (PyTorch applies ReLU to identity; it is already non-negative, so no-op.)
    y = conv1x1(x, p["conv1"], stride=s)
    y = conv1x1(y, p["conv2"])
    y = conv_spatial(y, p["conv3"])     # (1,3) conv
    y = conv_spatial(y, p["conv4"])     # (3,1) conv
    # conv5 + residual add + final ReLU fused into one GEMM epilogue.
    return conv1x1(y, p["conv5"], identity=identity)


def squeezenext_forward(x_nchw, params):
    x = jnp.transpose(x_nchw, (0, 2, 3, 1)).astype(jnp.bfloat16)  # NCHW -> NHWC
    x = init_conv(x, params["init_conv"])          # 7x7/s2/p1 + BN + ReLU
    x = maxpool_ceil(x, k=3, s=2)                  # 3x3/s2 ceil max-pool
    for stage in params["stages"]:
        for unit in stage:
            x = sqnxt_unit(x, unit)
    x = conv1x1(x, params["final_block"])
    # AvgPool2d(7, stride=1) on a 7x7 map == global mean, then flatten.
    assert x.shape[1] == 7 and x.shape[2] == 7
    pooled = jnp.mean(x.astype(jnp.float32), axis=(1, 2))          # (N, Cpad)
    # Tiny FC head: plain XLA dot (padded fc_w rows are zero).
    return pooled @ params["fc_w"] + params["fc_b"]


# --------------------------------- main ------------------------------------ #

if __name__ == "__main__":
    # Small SqueezeNext config: two stages of one unit each.
    # Spatial: 60 -> 28 (init conv) -> 14 (max-pool) -> 14 (stage1)
    #          -> 7 (stage2, stride 2) -> 7 (final block) -> 1 (avg-pool 7).
    channels = [[8], [16]]
    init_block_channels = 8
    final_block_channels = 32
    num_classes = 10

    params = make_model_params(jax.random.PRNGKey(0), channels,
                               init_block_channels, final_block_channels,
                               in_channels=3, num_classes=num_classes)
    x = jax.random.normal(jax.random.PRNGKey(1), (2, 3, 60, 60), jnp.float32)

    fwd = jax.jit(lambda inp: squeezenext_forward(inp, params))
    out = jax.block_until_ready(fwd(x))
    assert out.shape == (2, num_classes), out.shape
    assert bool(jnp.all(jnp.isfinite(out)))
    print("KERNEL_OK")
</pallas_src>

<mosaic_0001>
module attributes {stable_mosaic.version = 11 : i64} {
  func.func @_gemm_kernel(%arg0: i32, %arg1: memref<400x256xbf16, #tpu.memory_space<vmem>>, %arg2: memref<256x128xbf16, #tpu.memory_space<vmem>>, %arg3: memref<1x128xf32, #tpu.memory_space<vmem>>, %arg4: memref<400x128xbf16, #tpu.memory_space<vmem>>) attributes {dimension_semantics = [#tpu.dimension_semantics<parallel>], iteration_bounds = array<i64: 4>, scalar_prefetch = 0 : i64, scratch_operands = 0 : i64, tpu.core_type = #tpu.core_type<tc>, window_params = [{transform_indices = @transform_0, window_bounds = array<i64: 400, 256>}, {pipeline_mode = #tpu.pipeline_mode<synchronous>, transform_indices = @transform_1, window_bounds = array<i64: 256, 128>}, {pipeline_mode = #tpu.pipeline_mode<synchronous>, transform_indices = @transform_2, window_bounds = array<i64: 1, 128>}, {transform_indices = @transform_3, window_bounds = array<i64: 400, 128>}]} {
    %c0 = arith.constant 0 : index
    %c0_0 = arith.constant 0 : index
    %0 = vector.load %arg1[%c0, %c0_0] : memref<400x256xbf16, #tpu.memory_space<vmem>>, vector<400x256xbf16>
    %c0_1 = arith.constant 0 : index
    %c0_2 = arith.constant 0 : index
    %1 = vector.load %arg2[%c0_1, %c0_2] : memref<256x128xbf16, #tpu.memory_space<vmem>>, vector<256x128xbf16>
    %cst = arith.constant dense<0.000000e+00> : vector<400x128xf32>
    %2 = tpu.matmul %0, %1, %cst {dimension_numbers = #tpu.dot_dimension_numbers<[1], [0], [0], [1], [0, 0, 1, 1], [], []>} : vector<400x256xbf16>, vector<256x128xbf16>, vector<400x128xf32> -> vector<400x128xf32>
    %c0_3 = arith.constant 0 : index
    %c0_4 = arith.constant 0 : index
    %3 = vector.load %arg3[%c0_3, %c0_4] : memref<1x128xf32, #tpu.memory_space<vmem>>, vector<1x128xf32>
    %4 = vector.broadcast %3 : vector<1x128xf32> to vector<400x128xf32>
    %5 = arith.addf %2, %4 : vector<400x128xf32>
    %cst_5 = arith.constant 0.000000e+00 : f32
    %6 = vector.broadcast %cst_5 : f32 to vector<400x128xf32>
    %7 = arith.maximumf %5, %6 : vector<400x128xf32>
    %8 = arith.truncf %7 : vector<400x128xf32> to vector<400x128xbf16>
    %c0_6 = arith.constant 0 : index
    %c0_7 = arith.constant 0 : index
    %9 = vector.load %arg4[%c0_6, %c0_7] : memref<400x128xbf16, #tpu.memory_space<vmem>>, vector<400x128xbf16>
    tpu.vector_store %arg4[%c0_6, %c0_7], %8 {strides = array<i32>} : memref<400x128xbf16, #tpu.memory_space<vmem>>, vector<400x128xbf16>,
    return
  }
  func.func @transform_0(%arg0: i32) -> (i32, i32) {
    %c0_i32 = arith.constant 0 : i32
    %c0_i32_0 = arith.constant 0 : i32
    return %arg0, %c0_i32 : i32, i32
  }
  func.func @transform_1(%arg0: i32) -> (i32, i32) {
    %c0_i32 = arith.constant 0 : i32
    %c0_i32_0 = arith.constant 0 : i32
    %c0_i32_1 = arith.constant 0 : i32
    return %c0_i32, %c0_i32_0 : i32, i32
  }
  func.func @transform_2(%arg0: i32) -> (i32, i32) {
    %c0_i32 = arith.constant 0 : i32
    %c0_i32_0 = arith.constant 0 : i32
    %c0_i32_1 = arith.constant 0 : i32
    return %c0_i32, %c0_i32_0 : i32, i32
  }
  func.func @transform_3(%arg0: i32) -> (i32, i32) {
    %c0_i32 = arith.constant 0 : i32
    %c0_i32_0 = arith.constant 0 : i32
    return %arg0, %c0_i32 : i32, i32
  }
}

module attributes {stable_mosaic.version = 11 : i64} {
  func.func @_gemm_kernel(%arg0: i32, %arg1: memref<208x128xbf16, #tpu.memory_space<vmem>>, %arg2: memref<128x128xbf16, #tpu.memory_space<vmem>>, %arg3: memref<1x128xf32, #tpu.memory_space<vmem>>, %arg4: memref<208x128xbf16, #tpu.memory_space<vmem>>) attributes {dimension_semantics = [#tpu.dimension_semantics<parallel>], iteration_bounds = array<i64: 2>, scalar_prefetch = 0 : i64, scratch_operands = 0 : i64, tpu.core_type = #tpu.core_type<tc>, window_params = [{transform_indices = @transform_0, window_bounds = array<i64: 208, 128>}, {pipeline_mode = #tpu.pipeline_mode<synchronous>, transform_indices = @transform_1, window_bounds = array<i64: 128, 128>}, {pipeline_mode = #tpu.pipeline_mode<synchronous>, transform_indices = @transform_2, window_bounds = array<i64: 1, 128>}, {transform_indices = @transform_3, window_bounds = array<i64: 208, 128>}]} {
    %c0 = arith.constant 0 : index
    %c0_0 = arith.constant 0 : index
    %0 = vector.load %arg1[%c0, %c0_0] : memref<208x128xbf16, #tpu.memory_space<vmem>>, vector<208x128xbf16>
    %c0_1 = arith.constant 0 : index
    %c0_2 = arith.constant 0 : index
    %1 = vector.load %arg2[%c0_1, %c0_2] : memref<128x128xbf16, #tpu.memory_space<vmem>>, vector<128x128xbf16>
    %cst = arith.constant dense<0.000000e+00> : vector<208x128xf32>
    %2 = tpu.matmul %0, %1, %cst {dimension_numbers = #tpu.dot_dimension_numbers<[1], [0], [0], [1], [0, 0, 1, 1], [], []>} : vector<208x128xbf16>, vector<128x128xbf16>, vector<208x128xf32> -> vector<208x128xf32>
    %c0_3 = arith.constant 0 : index
    %c0_4 = arith.constant 0 : index
    %3 = vector.load %arg3[%c0_3, %c0_4] : memref<1x128xf32, #tpu.memory_space<vmem>>, vector<1x128xf32>
    %4 = vector.broadcast %3 : vector<1x128xf32> to vector<208x128xf32>
    %5 = arith.addf %2, %4 : vector<208x128xf32>
    %cst_5 = arith.constant 0.000000e+00 : f32
    %6 = vector.broadcast %cst_5 : f32 to vector<208x128xf32>
    %7 = arith.maximumf %5, %6 : vector<208x128xf32>
    %8 = arith.truncf %7 : vector<208x128xf32> to vector<208x128xbf16>
    %c0_6 = arith.constant 0 : index
    %c0_7 = arith.constant 0 : index
    %9 = vector.load %arg4[%c0_6, %c0_7] : memref<208x128xbf16, #tpu.memory_space<vmem>>, vector<208x128xbf16>
    tpu.vector_store %arg4[%c0_6, %c0_7], %8 {strides = array<i32>} : memref<208x128xbf16, #tpu.memory_space<vmem>>, vector<208x128xbf16>,
    return
  }
  func.func @transform_0(%arg0: i32) -> (i32, i32) {
    %c0_i32 = arith.constant 0 : i32
    %c0_i32_0 = arith.constant 0 : i32
    return %arg0, %c0_i32 : i32, i32
  }
  func.func @transform_1(%arg0: i32) -> (i32, i32) {
    %c0_i32 = arith.constant 0 : i32
    %c0_i32_0 = arith.constant 0 : i32
    %c0_i32_1 = arith.constant 0 : i32
    return %c0_i32, %c0_i32_0 : i32, i32
  }
  func.func @transform_2(%arg0: i32) -> (i32, i32) {
    %c0_i32 = arith.constant 0 : i32
    %c0_i32_0 = arith.constant 0 : i32
    %c0_i32_1 = arith.constant 0 : i32
    return %c0_i32, %c0_i32_0 : i32, i32
  }
  func.func @transform_3(%arg0: i32) -> (i32, i32) {
    %c0_i32 = arith.constant 0 : i32
    %c0_i32_0 = arith.constant 0 : i32
    return %arg0, %c0_i32 : i32, i32
  }
}

module attributes {stable_mosaic.version = 11 : i64} {
  func.func @_tap_gemm_kernel(%arg0: i32, %arg1: memref<450x128xbf16, #tpu.memory_space<vmem>>, %arg2: memref<3x128x128xbf16, #tpu.memory_space<vmem>>, %arg3: memref<1x128xf32, #tpu.memory_space<vmem>>, %arg4: memref<448x128xbf16, #tpu.memory_space<vmem>>) attributes {dimension_semantics = [#tpu.dimension_semantics<arbitrary>], iteration_bounds = array<i64: 1>, scalar_prefetch = 0 : i64, scratch_operands = 0 : i64, tpu.core_type = #tpu.core_type<tc>, window_params = [{pipeline_mode = #tpu.pipeline_mode<synchronous>, transform_indices = @transform_0, window_bounds = array<i64: 450, 128>}, {pipeline_mode = #tpu.pipeline_mode<synchronous>, transform_indices = @transform_1, window_bounds = array<i64: 3, 128, 128>}, {pipeline_mode = #tpu.pipeline_mode<synchronous>, transform_indices = @transform_2, window_bounds = array<i64: 1, 128>}, {pipeline_mode = #tpu.pipeline_mode<synchronous>, transform_indices = @transform_3, window_bounds = array<i64: 448, 128>}]} {
    %cst = arith.constant 0.000000e+00 : f32
    %0 = vector.broadcast %cst : f32 to vector<448x128xf32>
    %c0 = arith.constant 0 : index
    %c0_0 = arith.constant 0 : index
    %1 = vector.load %arg1[%c0, %c0_0] : memref<450x128xbf16, #tpu.memory_space<vmem>>, vector<448x128xbf16>
    %c0_1 = arith.constant 0 : index
    %c0_2 = arith.constant 0 : index
    %c0_3 = arith.constant 0 : index
    %2 = vector.load %arg2[%c0_1, %c0_2, %c0_3] : memref<3x128x128xbf16, #tpu.memory_space<vmem>>, vector<1x128x128xbf16>
    %3 = vector.shape_cast %2 : vector<1x128x128xbf16> to vector<128x128xbf16>
    %cst_4 = arith.constant dense<0.000000e+00> : vector<448x128xf32>
    %4 = tpu.matmul %1, %3, %cst_4 {dimension_numbers = #tpu.dot_dimension_numbers<[1], [0], [0], [1], [0, 0, 1, 1], [], []>} : vector<448x128xbf16>, vector<128x128xbf16>, vector<448x128xf32> -> vector<448x128xf32>
    %5 = arith.addf %0, %4 : vector<448x128xf32>
    %c1 = arith.constant 1 : index
    %c0_5 = arith.constant 0 : index
    %6 = vector.load %arg1[%c1, %c0_5] : memref<450x128xbf16, #tpu.memory_space<vmem>>, vector<448x128xbf16>
    %c1_6 = arith.constant 1 : index
    %c0_7 = arith.constant 0 : index
    %c0_8 = arith.constant 0 : index
    %7 = vector.load %arg2[%c1_6, %c0_7, %c0_8] : memref<3x128x128xbf16, #tpu.memory_space<vmem>>, vector<1x128x128xbf16>
    %8 = vector.shape_cast %7 : vector<1x128x128xbf16> to vector<128x128xbf16>
    %cst_9 = arith.constant dense<0.000000e+00> : vector<448x128xf32>
    %9 = tpu.matmul %6, %8, %cst_9 {dimension_numbers = #tpu.dot_dimension_numbers<[1], [0], [0], [1], [0, 0, 1, 1], [], []>} : vector<448x128xbf16>, vector<128x128xbf16>, vector<448x128xf32> -> vector<448x128xf32>
    %10 = arith.addf %5, %9 : vector<448x128xf32>
    %c2 = arith.constant 2 : index
    %c0_10 = arith.constant 0 : index
    %11 = vector.load %arg1[%c2, %c0_10] : memref<450x128xbf16, #tpu.memory_space<vmem>>, vector<448x128xbf16>
    %c2_11 = arith.constant 2 : index
    %c0_12 = arith.constant 0 : index
    %c0_13 = arith.constant 0 : index
    %12 = vector.load %arg2[%c2_11, %c0_12, %c0_13] : memref<3x128x128xbf16, #tpu.memory_space<vmem>>, vector<1x128x128xbf16>
    %13 = vector.shape_cast %12 : vector<1x128x128xbf16> to vector<128x128xbf16>
    %cst_14 = arith.constant dense<0.000000e+00> : vector<448x128xf32>
    %14 = tpu.matmul %11, %13, %cst_14 {dimension_numbers = #tpu.dot_dimension_numbers<[1], [0], [0], [1], [0, 0, 1, 1], [], []>} : vector<448x128xbf16>, vector<128x128xbf16>, vector<448x128xf32> -> vector<448x128xf32>
    %15 = arith.addf %10, %14 : vector<448x128xf32>
    %c0_15 = arith.constant 0 : index
    %c0_16 = arith.constant 0 : index
    %16 = vector.load %arg3[%c0_15, %c0_16] : memref<1x128xf32, #tpu.memory_space<vmem>>, vector<1x128xf32>
    %17 = vector.broadcast %16 : vector<1x128xf32> to vector<448x128xf32>
    %18 = arith.addf %15, %17 : vector<448x128xf32>
    %cst_17 = arith.constant 0.000000e+00 : f32
    %19 = vector.broadcast %cst_17 : f32 to vector<448x128xf32>
    %20 = arith.maximumf %18, %19 : vector<448x128xf32>
    %21 = arith.truncf %20 : vector<448x128xf32> to vector<448x128xbf16>
    %c0_18 = arith.constant 0 : index
    %c0_19 = arith.constant 0 : index
    %22 = vector.load %arg4[%c0_18, %c0_19] : memref<448x128xbf16, #tpu.memory_space<vmem>>, vector<448x128xbf16>
    tpu.vector_store %arg4[%c0_18, %c0_19], %21 {strides = array<i32>} : memref<448x128xbf16, #tpu.memory_space<vmem>>, vector<448x128xbf16>,
    return
  }
  func.func @transform_0(%arg0: i32) -> (i32, i32) {
    %c0_i32 = arith.constant 0 : i32
    %c0_i32_0 = arith.constant 0 : i32
    %c0_i32_1 = arith.constant 0 : i32
    return %c0_i32, %c0_i32_0 : i32, i32
  }
  func.func @transform_1(%arg0: i32) -> (i32, i32, i32) {
    %c0_i32 = arith.constant 0 : i32
    %c0_i32_0 = arith.constant 0 : i32
    %c0_i32_1 = arith.constant 0 : i32
    %c0_i32_2 = arith.constant 0 : i32
    return %c0_i32, %c0_i32_0, %c0_i32_1 : i32, i32, i32
  }
  func.func @transform_2(%arg0: i32) -> (i32, i32) {
    %c0_i32 = arith.constant 0 : i32
    %c0_i32_0 = arith.constant 0 : i32
    %c0_i32_1 = arith.constant 0 : i32
    return %c0_i32, %c0_i32_0 : i32, i32
  }
  func.func @transform_3(%arg0: i32) -> (i32, i32) {
    %c0_i32 = arith.constant 0 : i32
    %c0_i32_0 = arith.constant 0 : i32
    %c0_i32_1 = arith.constant 0 : i32
    return %c0_i32, %c0_i32_0 : i32, i32
  }
}

module attributes {stable_mosaic.version = 11 : i64} {
  func.func @_tap_gemm_kernel(%arg0: i32, %arg1: memref<476x128xbf16, #tpu.memory_space<vmem>>, %arg2: memref<3x128x128xbf16, #tpu.memory_space<vmem>>, %arg3: memref<1x128xf32, #tpu.memory_space<vmem>>, %arg4: memref<448x128xbf16, #tpu.memory_space<vmem>>) attributes {dimension_semantics = [#tpu.dimension_semantics<arbitrary>], iteration_bounds = array<i64: 1>, scalar_prefetch = 0 : i64, scratch_operands = 0 : i64, tpu.core_type = #tpu.core_type<tc>, window_params = [{pipeline_mode = #tpu.pipeline_mode<synchronous>, transform_indices = @transform_0, window_bounds = array<i64: 476, 128>}, {pipeline_mode = #tpu.pipeline_mode<synchronous>, transform_indices = @transform_1, window_bounds = array<i64: 3, 128, 128>}, {pipeline_mode = #tpu.pipeline_mode<synchronous>, transform_indices = @transform_2, window_bounds = array<i64: 1, 128>}, {pipeline_mode = #tpu.pipeline_mode<synchronous>, transform_indices = @transform_3, window_bounds = array<i64: 448, 128>}]} {
    %cst = arith.constant 0.000000e+00 : f32
    %0 = vector.broadcast %cst : f32 to vector<448x128xf32>
    %c0 = arith.constant 0 : index
    %c0_0 = arith.constant 0 : index
    %1 = vector.load %arg1[%c0, %c0_0] : memref<476x128xbf16, #tpu.memory_space<vmem>>, vector<448x128xbf16>
    %c0_1 = arith.constant 0 : index
    %c0_2 = arith.constant 0 : index
    %c0_3 = arith.constant 0 : index
    %2 = vector.load %arg2[%c0_1, %c0_2, %c0_3] : memref<3x128x128xbf16, #tpu.memory_space<vmem>>, vector<1x128x128xbf16>
    %3 = vector.shape_cast %2 : vector<1x128x128xbf16> to vector<128x128xbf16>
    %cst_4 = arith.constant dense<0.000000e+00> : vector<448x128xf32>
    %4 = tpu.matmul %1, %3, %cst_4 {dimension_numbers = #tpu.dot_dimension_numbers<[1], [0], [0], [1], [0, 0, 1, 1], [], []>} : vector<448x128xbf16>, vector<128x128xbf16>, vector<448x128xf32> -> vector<448x128xf32>
    %5 = arith.addf %0, %4 : vector<448x128xf32>
    %c14 = arith.constant 14 : index
    %c0_5 = arith.constant 0 : index
    %6 = vector.load %arg1[%c14, %c0_5] : memref<476x128xbf16, #tpu.memory_space<vmem>>, vector<448x128xbf16>
    %c1 = arith.constant 1 : index
    %c0_6 = arith.constant 0 : index
    %c0_7 = arith.constant 0 : index
    %7 = vector.load %arg2[%c1, %c0_6, %c0_7] : memref<3x128x128xbf16, #tpu.memory_space<vmem>>, vector<1x128x128xbf16>
    %8 = vector.shape_cast %7 : vector<1x128x128xbf16> to vector<128x128xbf16>
    %cst_8 = arith.constant dense<0.000000e+00> : vector<448x128xf32>
    %9 = tpu.matmul %6, %8, %cst_8 {dimension_numbers = #tpu.dot_dimension_numbers<[1], [0], [0], [1], [0, 0, 1, 1], [], []>} : vector<448x128xbf16>, vector<128x128xbf16>, vector<448x128xf32> -> vector<448x128xf32>
    %10 = arith.addf %5, %9 : vector<448x128xf32>
    %c28 = arith.constant 28 : index
    %c0_9 = arith.constant 0 : index
    %11 = vector.load %arg1[%c28, %c0_9] : memref<476x128xbf16, #tpu.memory_space<vmem>>, vector<448x128xbf16>
    %c2 = arith.constant 2 : index
    %c0_10 = arith.constant 0 : index
    %c0_11 = arith.constant 0 : index
    %12 = vector.load %arg2[%c2, %c0_10, %c0_11] : memref<3x128x128xbf16, #tpu.memory_space<vmem>>, vector<1x128x128xbf16>
    %13 = vector.shape_cast %12 : vector<1x128x128xbf16> to vector<128x128xbf16>
    %cst_12 = arith.constant dense<0.000000e+00> : vector<448x128xf32>
    %14 = tpu.matmul %11, %13, %cst_12 {dimension_numbers = #tpu.dot_dimension_numbers<[1], [0], [0], [1], [0, 0, 1, 1], [], []>} : vector<448x128xbf16>, vector<128x128xbf16>, vector<448x128xf32> -> vector<448x128xf32>
    %15 = arith.addf %10, %14 : vector<448x128xf32>
    %c0_13 = arith.constant 0 : index
    %c0_14 = arith.constant 0 : index
    %16 = vector.load %arg3[%c0_13, %c0_14] : memref<1x128xf32, #tpu.memory_space<vmem>>, vector<1x128xf32>
    %17 = vector.broadcast %16 : vector<1x128xf32> to vector<448x128xf32>
    %18 = arith.addf %15, %17 : vector<448x128xf32>
    %cst_15 = arith.constant 0.000000e+00 : f32
    %19 = vector.broadcast %cst_15 : f32 to vector<448x128xf32>
    %20 = arith.maximumf %18, %19 : vector<448x128xf32>
    %21 = arith.truncf %20 : vector<448x128xf32> to vector<448x128xbf16>
    %c0_16 = arith.constant 0 : index
    %c0_17 = arith.constant 0 : index
    %22 = vector.load %arg4[%c0_16, %c0_17] : memref<448x128xbf16, #tpu.memory_space<vmem>>, vector<448x128xbf16>
    tpu.vector_store %arg4[%c0_16, %c0_17], %21 {strides = array<i32>} : memref<448x128xbf16, #tpu.memory_space<vmem>>, vector<448x128xbf16>,
    return
  }
  func.func @transform_0(%arg0: i32) -> (i32, i32) {
    %c0_i32 = arith.constant 0 : i32
    %c0_i32_0 = arith.constant 0 : i32
    %c0_i32_1 = arith.constant 0 : i32
    return %c0_i32, %c0_i32_0 : i32, i32
  }
  func.func @transform_1(%arg0: i32) -> (i32, i32, i32) {
    %c0_i32 = arith.constant 0 : i32
    %c0_i32_0 = arith.constant 0 : i32
    %c0_i32_1 = arith.constant 0 : i32
    %c0_i32_2 = arith.constant 0 : i32
    return %c0_i32, %c0_i32_0, %c0_i32_1 : i32, i32, i32
  }
  func.func @transform_2(%arg0: i32) -> (i32, i32) {
    %c0_i32 = arith.constant 0 : i32
    %c0_i32_0 = arith.constant 0 : i32
    %c0_i32_1 = arith.constant 0 : i32
    return %c0_i32, %c0_i32_0 : i32, i32
  }
  func.func @transform_3(%arg0: i32) -> (i32, i32) {
    %c0_i32 = arith.constant 0 : i32
    %c0_i32_0 = arith.constant 0 : i32
    %c0_i32_1 = arith.constant 0 : i32
    return %c0_i32, %c0_i32_0 : i32, i32
  }
}

module attributes {stable_mosaic.version = 11 : i64} {
  func.func @_gemm_residual_kernel(%arg0: i32, %arg1: memref<208x128xbf16, #tpu.memory_space<vmem>>, %arg2: memref<128x128xbf16, #tpu.memory_space<vmem>>, %arg3: memref<1x128xf32, #tpu.memory_space<vmem>>, %arg4: memref<208x128xbf16, #tpu.memory_space<vmem>>, %arg5: memref<208x128xbf16, #tpu.memory_space<vmem>>) attributes {dimension_semantics = [#tpu.dimension_semantics<parallel>], iteration_bounds = array<i64: 2>, scalar_prefetch = 0 : i64, scratch_operands = 0 : i64, tpu.core_type = #tpu.core_type<tc>, window_params = [{transform_indices = @transform_0, window_bounds = array<i64: 208, 128>}, {pipeline_mode = #tpu.pipeline_mode<synchronous>, transform_indices = @transform_1, window_bounds = array<i64: 128, 128>}, {pipeline_mode = #tpu.pipeline_mode<synchronous>, transform_indices = @transform_2, window_bounds = array<i64: 1, 128>}, {transform_indices = @transform_3, window_bounds = array<i64: 208, 128>}, {transform_indices = @transform_4, window_bounds = array<i64: 208, 128>}]} {
    %c0 = arith.constant 0 : index
    %c0_0 = arith.constant 0 : index
    %0 = vector.load %arg1[%c0, %c0_0] : memref<208x128xbf16, #tpu.memory_space<vmem>>, vector<208x128xbf16>
    %c0_1 = arith.constant 0 : index
    %c0_2 = arith.constant 0 : index
    %1 = vector.load %arg2[%c0_1, %c0_2] : memref<128x128xbf16, #tpu.memory_space<vmem>>, vector<128x128xbf16>
    %cst = arith.constant dense<0.000000e+00> : vector<208x128xf32>
    %2 = tpu.matmul %0, %1, %cst {dimension_numbers = #tpu.dot_dimension_numbers<[1], [0], [0], [1], [0, 0, 1, 1], [], []>} : vector<208x128xbf16>, vector<128x128xbf16>, vector<208x128xf32> -> vector<208x128xf32>
    %c0_3 = arith.constant 0 : index
    %c0_4 = arith.constant 0 : index
    %3 = vector.load %arg3[%c0_3, %c0_4] : memref<1x128xf32, #tpu.memory_space<vmem>>, vector<1x128xf32>
    %4 = vector.broadcast %3 : vector<1x128xf32> to vector<208x128xf32>
    %5 = arith.addf %2, %4 : vector<208x128xf32>
    %c0_5 = arith.constant 0 : index
    %c0_6 = arith.constant 0 : index
    %6 = vector.load %arg4[%c0_5, %c0_6] : memref<208x128xbf16, #tpu.memory_space<vmem>>, vector<208x128xbf16>
    %7 = arith.extf %6 : vector<208x128xbf16> to vector<208x128xf32>
    %8 = arith.addf %5, %7 : vector<208x128xf32>
    %cst_7 = arith.constant 0.000000e+00 : f32
    %9 = vector.broadcast %cst_7 : f32 to vector<208x128xf32>
    %10 = arith.maximumf %8, %9 : vector<208x128xf32>
    %11 = arith.truncf %10 : vector<208x128xf32> to vector<208x128xbf16>
    %c0_8 = arith.constant 0 : index
    %c0_9 = arith.constant 0 : index
    %12 = vector.load %arg5[%c0_8, %c0_9] : memref<208x128xbf16, #tpu.memory_space<vmem>>, vector<208x128xbf16>
    tpu.vector_store %arg5[%c0_8, %c0_9], %11 {strides = array<i32>} : memref<208x128xbf16, #tpu.memory_space<vmem>>, vector<208x128xbf16>,
    return
  }
  func.func @transform_0(%arg0: i32) -> (i32, i32) {
    %c0_i32 = arith.constant 0 : i32
    %c0_i32_0 = arith.constant 0 : i32
    return %arg0, %c0_i32 : i32, i32
  }
  func.func @transform_1(%arg0: i32) -> (i32, i32) {
    %c0_i32 = arith.constant 0 : i32
    %c0_i32_0 = arith.constant 0 : i32
    %c0_i32_1 = arith.constant 0 : i32
    return %c0_i32, %c0_i32_0 : i32, i32
  }
  func.func @transform_2(%arg0: i32) -> (i32, i32) {
    %c0_i32 = arith.constant 0 : i32
    %c0_i32_0 = arith.constant 0 : i32
    %c0_i32_1 = arith.constant 0 : i32
    return %c0_i32, %c0_i32_0 : i32, i32
  }
  func.func @transform_3(%arg0: i32) -> (i32, i32) {
    %c0_i32 = arith.constant 0 : i32
    %c0_i32_0 = arith.constant 0 : i32
    return %arg0, %c0_i32 : i32, i32
  }
  func.func @transform_4(%arg0: i32) -> (i32, i32) {
    %c0_i32 = arith.constant 0 : i32
    %c0_i32_0 = arith.constant 0 : i32
    return %arg0, %c0_i32 : i32, i32
  }
}

module attributes {stable_mosaic.version = 11 : i64} {
  func.func @_gemm_kernel(%arg0: i32, %arg1: memref<64x128xbf16, #tpu.memory_space<vmem>>, %arg2: memref<128x128xbf16, #tpu.memory_space<vmem>>, %arg3: memref<1x128xf32, #tpu.memory_space<vmem>>, %arg4: memref<64x128xbf16, #tpu.memory_space<vmem>>) attributes {dimension_semantics = [#tpu.dimension_semantics<parallel>], iteration_bounds = array<i64: 2>, scalar_prefetch = 0 : i64, scratch_operands = 0 : i64, tpu.core_type = #tpu.core_type<tc>, window_params = [{transform_indices = @transform_0, window_bounds = array<i64: 64, 128>}, {pipeline_mode = #tpu.pipeline_mode<synchronous>, transform_indices = @transform_1, window_bounds = array<i64: 128, 128>}, {pipeline_mode = #tpu.pipeline_mode<synchronous>, transform_indices = @transform_2, window_bounds = array<i64: 1, 128>}, {transform_indices = @transform_3, window_bounds = array<i64: 64, 128>}]} {
    %c0 = arith.constant 0 : index
    %c0_0 = arith.constant 0 : index
    %0 = vector.load %arg1[%c0, %c0_0] : memref<64x128xbf16, #tpu.memory_space<vmem>>, vector<64x128xbf16>
    %c0_1 = arith.constant 0 : index
    %c0_2 = arith.constant 0 : index
    %1 = vector.load %arg2[%c0_1, %c0_2] : memref<128x128xbf16, #tpu.memory_space<vmem>>, vector<128x128xbf16>
    %cst = arith.constant dense<0.000000e+00> : vector<64x128xf32>
    %2 = tpu.matmul %0, %1, %cst {dimension_numbers = #tpu.dot_dimension_numbers<[1], [0], [0], [1], [0, 0, 1, 1], [], []>} : vector<64x128xbf16>, vector<128x128xbf16>, vector<64x128xf32> -> vector<64x128xf32>
    %c0_3 = arith.constant 0 : index
    %c0_4 = arith.constant 0 : index
    %3 = vector.load %arg3[%c0_3, %c0_4] : memref<1x128xf32, #tpu.memory_space<vmem>>, vector<1x128xf32>
    %4 = vector.broadcast %3 : vector<1x128xf32> to vector<64x128xf32>
    %5 = arith.addf %2, %4 : vector<64x128xf32>
    %cst_5 = arith.constant 0.000000e+00 : f32
    %6 = vector.broadcast %cst_5 : f32 to vector<64x128xf32>
    %7 = arith.maximumf %5, %6 : vector<64x128xf32>
    %8 = arith.truncf %7 : vector<64x128xf32> to vector<64x128xbf16>
    %c0_6 = arith.constant 0 : index
    %c0_7 = arith.constant 0 : index
    %9 = vector.load %arg4[%c0_6, %c0_7] : memref<64x128xbf16, #tpu.memory_space<vmem>>, vector<64x128xbf16>
    tpu.vector_store %arg4[%c0_6, %c0_7], %8 {strides = array<i32>} : memref<64x128xbf16, #tpu.memory_space<vmem>>, vector<64x128xbf16>,
    return
  }
  func.func @transform_0(%arg0: i32) -> (i32, i32) {
    %c0_i32 = arith.constant 0 : i32
    %c0_i32_0 = arith.constant 0 : i32
    return %arg0, %c0_i32 : i32, i32
  }
  func.func @transform_1(%arg0: i32) -> (i32, i32) {
    %c0_i32 = arith.constant 0 : i32
    %c0_i32_0 = arith.constant 0 : i32
    %c0_i32_1 = arith.constant 0 : i32
    return %c0_i32, %c0_i32_0 : i32, i32
  }
  func.func @transform_2(%arg0: i32) -> (i32, i32) {
    %c0_i32 = arith.constant 0 : i32
    %c0_i32_0 = arith.constant 0 : i32
    %c0_i32_1 = arith.constant 0 : i32
    return %c0_i32, %c0_i32_0 : i32, i32
  }
  func.func @transform_3(%arg0: i32) -> (i32, i32) {
    %c0_i32 = arith.constant 0 : i32
    %c0_i32_0 = arith.constant 0 : i32
    return %arg0, %c0_i32 : i32, i32
  }
}

module attributes {stable_mosaic.version = 11 : i64} {
  func.func @_tap_gemm_kernel(%arg0: i32, %arg1: memref<128x128xbf16, #tpu.memory_space<vmem>>, %arg2: memref<3x128x128xbf16, #tpu.memory_space<vmem>>, %arg3: memref<1x128xf32, #tpu.memory_space<vmem>>, %arg4: memref<126x128xbf16, #tpu.memory_space<vmem>>) attributes {dimension_semantics = [#tpu.dimension_semantics<arbitrary>], iteration_bounds = array<i64: 1>, scalar_prefetch = 0 : i64, scratch_operands = 0 : i64, tpu.core_type = #tpu.core_type<tc>, window_params = [{pipeline_mode = #tpu.pipeline_mode<synchronous>, transform_indices = @transform_0, window_bounds = array<i64: 128, 128>}, {pipeline_mode = #tpu.pipeline_mode<synchronous>, transform_indices = @transform_1, window_bounds = array<i64: 3, 128, 128>}, {pipeline_mode = #tpu.pipeline_mode<synchronous>, transform_indices = @transform_2, window_bounds = array<i64: 1, 128>}, {pipeline_mode = #tpu.pipeline_mode<synchronous>, transform_indices = @transform_3, window_bounds = array<i64: 126, 128>}]} {
    %cst = arith.constant 0.000000e+00 : f32
    %0 = vector.broadcast %cst : f32 to vector<126x128xf32>
    %c0 = arith.constant 0 : index
    %c0_0 = arith.constant 0 : index
    %1 = vector.load %arg1[%c0, %c0_0] : memref<128x128xbf16, #tpu.memory_space<vmem>>, vector<126x128xbf16>
    %c0_1 = arith.constant 0 : index
    %c0_2 = arith.constant 0 : index
    %c0_3 = arith.constant 0 : index
    %2 = vector.load %arg2[%c0_1, %c0_2, %c0_3] : memref<3x128x128xbf16, #tpu.memory_space<vmem>>, vector<1x128x128xbf16>
    %3 = vector.shape_cast %2 : vector<1x128x128xbf16> to vector<128x128xbf16>
    %cst_4 = arith.constant dense<0.000000e+00> : vector<126x128xf32>
    %4 = tpu.matmul %1, %3, %cst_4 {dimension_numbers = #tpu.dot_dimension_numbers<[1], [0], [0], [1], [0, 0, 1, 1], [], []>} : vector<126x128xbf16>, vector<128x128xbf16>, vector<126x128xf32> -> vector<126x128xf32>
    %5 = arith.addf %0, %4 : vector<126x128xf32>
    %c1 = arith.constant 1 : index
    %c0_5 = arith.constant 0 : index
    %6 = vector.load %arg1[%c1, %c0_5] : memref<128x128xbf16, #tpu.memory_space<vmem>>, vector<126x128xbf16>
    %c1_6 = arith.constant 1 : index
    %c0_7 = arith.constant 0 : index
    %c0_8 = arith.constant 0 : index
    %7 = vector.load %arg2[%c1_6, %c0_7, %c0_8] : memref<3x128x128xbf16, #tpu.memory_space<vmem>>, vector<1x128x128xbf16>
    %8 = vector.shape_cast %7 : vector<1x128x128xbf16> to vector<128x128xbf16>
    %cst_9 = arith.constant dense<0.000000e+00> : vector<126x128xf32>
    %9 = tpu.matmul %6, %8, %cst_9 {dimension_numbers = #tpu.dot_dimension_numbers<[1], [0], [0], [1], [0, 0, 1, 1], [], []>} : vector<126x128xbf16>, vector<128x128xbf16>, vector<126x128xf32> -> vector<126x128xf32>
    %10 = arith.addf %5, %9 : vector<126x128xf32>
    %c2 = arith.constant 2 : index
    %c0_10 = arith.constant 0 : index
    %11 = vector.load %arg1[%c2, %c0_10] : memref<128x128xbf16, #tpu.memory_space<vmem>>, vector<126x128xbf16>
    %c2_11 = arith.constant 2 : index
    %c0_12 = arith.constant 0 : index
    %c0_13 = arith.constant 0 : index
    %12 = vector.load %arg2[%c2_11, %c0_12, %c0_13] : memref<3x128x128xbf16, #tpu.memory_space<vmem>>, vector<1x128x128xbf16>
    %13 = vector.shape_cast %12 : vector<1x128x128xbf16> to vector<128x128xbf16>
    %cst_14 = arith.constant dense<0.000000e+00> : vector<126x128xf32>
    %14 = tpu.matmul %11, %13, %cst_14 {dimension_numbers = #tpu.dot_dimension_numbers<[1], [0], [0], [1], [0, 0, 1, 1], [], []>} : vector<126x128xbf16>, vector<128x128xbf16>, vector<126x128xf32> -> vector<126x128xf32>
    %15 = arith.addf %10, %14 : vector<126x128xf32>
    %c0_15 = arith.constant 0 : index
    %c0_16 = arith.constant 0 : index
    %16 = vector.load %arg3[%c0_15, %c0_16] : memref<1x128xf32, #tpu.memory_space<vmem>>, vector<1x128xf32>
    %17 = vector.broadcast %16 : vector<1x128xf32> to vector<126x128xf32>
    %18 = arith.addf %15, %17 : vector<126x128xf32>
    %cst_17 = arith.constant 0.000000e+00 : f32
    %19 = vector.broadcast %cst_17 : f32 to vector<126x128xf32>
    %20 = arith.maximumf %18, %19 : vector<126x128xf32>
    %21 = arith.truncf %20 : vector<126x128xf32> to vector<126x128xbf16>
    %c0_18 = arith.constant 0 : index
    %c0_19 = arith.constant 0 : index
    %22 = vector.load %arg4[%c0_18, %c0_19] : memref<126x128xbf16, #tpu.memory_space<vmem>>, vector<126x128xbf16>
    tpu.vector_store %arg4[%c0_18, %c0_19], %21 {strides = array<i32>} : memref<126x128xbf16, #tpu.memory_space<vmem>>, vector<126x128xbf16>,
    return
  }
  func.func @transform_0(%arg0: i32) -> (i32, i32) {
    %c0_i32 = arith.constant 0 : i32
    %c0_i32_0 = arith.constant 0 : i32
    %c0_i32_1 = arith.constant 0 : i32
    return %c0_i32, %c0_i32_0 : i32, i32
  }
  func.func @transform_1(%arg0: i32) -> (i32, i32, i32) {
    %c0_i32 = arith.constant 0 : i32
    %c0_i32_0 = arith.constant 0 : i32
    %c0_i32_1 = arith.constant 0 : i32
    %c0_i32_2 = arith.constant 0 : i32
    return %c0_i32, %c0_i32_0, %c0_i32_1 : i32, i32, i32
  }
  func.func @transform_2(%arg0: i32) -> (i32, i32) {
    %c0_i32 = arith.constant 0 : i32
    %c0_i32_0 = arith.constant 0 : i32
    %c0_i32_1 = arith.constant 0 : i32
    return %c0_i32, %c0_i32_0 : i32, i32
  }
  func.func @transform_3(%arg0: i32) -> (i32, i32) {
    %c0_i32 = arith.constant 0 : i32
    %c0_i32_0 = arith.constant 0 : i32
    %c0_i32_1 = arith.constant 0 : i32
    return %c0_i32, %c0_i32_0 : i32, i32
  }
}

module attributes {stable_mosaic.version = 11 : i64} {
  func.func @_tap_gemm_kernel(%arg0: i32, %arg1: memref<140x128xbf16, #tpu.memory_space<vmem>>, %arg2: memref<3x128x128xbf16, #tpu.memory_space<vmem>>, %arg3: memref<1x128xf32, #tpu.memory_space<vmem>>, %arg4: memref<126x128xbf16, #tpu.memory_space<vmem>>) attributes {dimension_semantics = [#tpu.dimension_semantics<arbitrary>], iteration_bounds = array<i64: 1>, scalar_prefetch = 0 : i64, scratch_operands = 0 : i64, tpu.core_type = #tpu.core_type<tc>, window_params = [{pipeline_mode = #tpu.pipeline_mode<synchronous>, transform_indices = @transform_0, window_bounds = array<i64: 140, 128>}, {pipeline_mode = #tpu.pipeline_mode<synchronous>, transform_indices = @transform_1, window_bounds = array<i64: 3, 128, 128>}, {pipeline_mode = #tpu.pipeline_mode<synchronous>, transform_indices = @transform_2, window_bounds = array<i64: 1, 128>}, {pipeline_mode = #tpu.pipeline_mode<synchronous>, transform_indices = @transform_3, window_bounds = array<i64: 126, 128>}]} {
    %cst = arith.constant 0.000000e+00 : f32
    %0 = vector.broadcast %cst : f32 to vector<126x128xf32>
    %c0 = arith.constant 0 : index
    %c0_0 = arith.constant 0 : index
    %1 = vector.load %arg1[%c0, %c0_0] : memref<140x128xbf16, #tpu.memory_space<vmem>>, vector<126x128xbf16>
    %c0_1 = arith.constant 0 : index
    %c0_2 = arith.constant 0 : index
    %c0_3 = arith.constant 0 : index
    %2 = vector.load %arg2[%c0_1, %c0_2, %c0_3] : memref<3x128x128xbf16, #tpu.memory_space<vmem>>, vector<1x128x128xbf16>
    %3 = vector.shape_cast %2 : vector<1x128x128xbf16> to vector<128x128xbf16>
    %cst_4 = arith.constant dense<0.000000e+00> : vector<126x128xf32>
    %4 = tpu.matmul %1, %3, %cst_4 {dimension_numbers = #tpu.dot_dimension_numbers<[1], [0], [0], [1], [0, 0, 1, 1], [], []>} : vector<126x128xbf16>, vector<128x128xbf16>, vector<126x128xf32> -> vector<126x128xf32>
    %5 = arith.addf %0, %4 : vector<126x128xf32>
    %c7 = arith.constant 7 : index
    %c0_5 = arith.constant 0 : index
    %6 = vector.load %arg1[%c7, %c0_5] : memref<140x128xbf16, #tpu.memory_space<vmem>>, vector<126x128xbf16>
    %c1 = arith.constant 1 : index
    %c0_6 = arith.constant 0 : index
    %c0_7 = arith.constant 0 : index
    %7 = vector.load %arg2[%c1, %c0_6, %c0_7] : memref<3x128x128xbf16, #tpu.memory_space<vmem>>, vector<1x128x128xbf16>
    %8 = vector.shape_cast %7 : vector<1x128x128xbf16> to vector<128x128xbf16>
    %cst_8 = arith.constant dense<0.000000e+00> : vector<126x128xf32>
    %9 = tpu.matmul %6, %8, %cst_8 {dimension_numbers = #tpu.dot_dimension_numbers<[1], [0], [0], [1], [0, 0, 1, 1], [], []>} : vector<126x128xbf16>, vector<128x128xbf16>, vector<126x128xf32> -> vector<126x128xf32>
    %10 = arith.addf %5, %9 : vector<126x128xf32>
    %c14 = arith.constant 14 : index
    %c0_9 = arith.constant 0 : index
    %11 = vector.load %arg1[%c14, %c0_9] : memref<140x128xbf16, #tpu.memory_space<vmem>>, vector<126x128xbf16>
    %c2 = arith.constant 2 : index
    %c0_10 = arith.constant 0 : index
    %c0_11 = arith.constant 0 : index
    %12 = vector.load %arg2[%c2, %c0_10, %c0_11] : memref<3x128x128xbf16, #tpu.memory_space<vmem>>, vector<1x128x128xbf16>
    %13 = vector.shape_cast %12 : vector<1x128x128xbf16> to vector<128x128xbf16>
    %cst_12 = arith.constant dense<0.000000e+00> : vector<126x128xf32>
    %14 = tpu.matmul %11, %13, %cst_12 {dimension_numbers = #tpu.dot_dimension_numbers<[1], [0], [0], [1], [0, 0, 1, 1], [], []>} : vector<126x128xbf16>, vector<128x128xbf16>, vector<126x128xf32> -> vector<126x128xf32>
    %15 = arith.addf %10, %14 : vector<126x128xf32>
    %c0_13 = arith.constant 0 : index
    %c0_14 = arith.constant 0 : index
    %16 = vector.load %arg3[%c0_13, %c0_14] : memref<1x128xf32, #tpu.memory_space<vmem>>, vector<1x128xf32>
    %17 = vector.broadcast %16 : vector<1x128xf32> to vector<126x128xf32>
    %18 = arith.addf %15, %17 : vector<126x128xf32>
    %cst_15 = arith.constant 0.000000e+00 : f32
    %19 = vector.broadcast %cst_15 : f32 to vector<126x128xf32>
    %20 = arith.maximumf %18, %19 : vector<126x128xf32>
    %21 = arith.truncf %20 : vector<126x128xf32> to vector<126x128xbf16>
    %c0_16 = arith.constant 0 : index
    %c0_17 = arith.constant 0 : index
    %22 = vector.load %arg4[%c0_16, %c0_17] : memref<126x128xbf16, #tpu.memory_space<vmem>>, vector<126x128xbf16>
    tpu.vector_store %arg4[%c0_16, %c0_17], %21 {strides = array<i32>} : memref<126x128xbf16, #tpu.memory_space<vmem>>, vector<126x128xbf16>,
    return
  }
  func.func @transform_0(%arg0: i32) -> (i32, i32) {
    %c0_i32 = arith.constant 0 : i32
    %c0_i32_0 = arith.constant 0 : i32
    %c0_i32_1 = arith.constant 0 : i32
    return %c0_i32, %c0_i32_0 : i32, i32
  }
  func.func @transform_1(%arg0: i32) -> (i32, i32, i32) {
    %c0_i32 = arith.constant 0 : i32
    %c0_i32_0 = arith.constant 0 : i32
    %c0_i32_1 = arith.constant 0 : i32
    %c0_i32_2 = arith.constant 0 : i32
    return %c0_i32, %c0_i32_0, %c0_i32_1 : i32, i32, i32
  }
  func.func @transform_2(%arg0: i32) -> (i32, i32) {
    %c0_i32 = arith.constant 0 : i32
    %c0_i32_0 = arith.constant 0 : i32
    %c0_i32_1 = arith.constant 0 : i32
    return %c0_i32, %c0_i32_0 : i32, i32
  }
  func.func @transform_3(%arg0: i32) -> (i32, i32) {
    %c0_i32 = arith.constant 0 : i32
    %c0_i32_0 = arith.constant 0 : i32
    %c0_i32_1 = arith.constant 0 : i32
    return %c0_i32, %c0_i32_0 : i32, i32
  }
}

module attributes {stable_mosaic.version = 11 : i64} {
  func.func @_gemm_residual_kernel(%arg0: i32, %arg1: memref<64x128xbf16, #tpu.memory_space<vmem>>, %arg2: memref<128x128xbf16, #tpu.memory_space<vmem>>, %arg3: memref<1x128xf32, #tpu.memory_space<vmem>>, %arg4: memref<64x128xbf16, #tpu.memory_space<vmem>>, %arg5: memref<64x128xbf16, #tpu.memory_space<vmem>>) attributes {dimension_semantics = [#tpu.dimension_semantics<parallel>], iteration_bounds = array<i64: 2>, scalar_prefetch = 0 : i64, scratch_operands = 0 : i64, tpu.core_type = #tpu.core_type<tc>, window_params = [{transform_indices = @transform_0, window_bounds = array<i64: 64, 128>}, {pipeline_mode = #tpu.pipeline_mode<synchronous>, transform_indices = @transform_1, window_bounds = array<i64: 128, 128>}, {pipeline_mode = #tpu.pipeline_mode<synchronous>, transform_indices = @transform_2, window_bounds = array<i64: 1, 128>}, {transform_indices = @transform_3, window_bounds = array<i64: 64, 128>}, {transform_indices = @transform_4, window_bounds = array<i64: 64, 128>}]} {
    %c0 = arith.constant 0 : index
    %c0_0 = arith.constant 0 : index
    %0 = vector.load %arg1[%c0, %c0_0] : memref<64x128xbf16, #tpu.memory_space<vmem>>, vector<64x128xbf16>
    %c0_1 = arith.constant 0 : index
    %c0_2 = arith.constant 0 : index
    %1 = vector.load %arg2[%c0_1, %c0_2] : memref<128x128xbf16, #tpu.memory_space<vmem>>, vector<128x128xbf16>
    %cst = arith.constant dense<0.000000e+00> : vector<64x128xf32>
    %2 = tpu.matmul %0, %1, %cst {dimension_numbers = #tpu.dot_dimension_numbers<[1], [0], [0], [1], [0, 0, 1, 1], [], []>} : vector<64x128xbf16>, vector<128x128xbf16>, vector<64x128xf32> -> vector<64x128xf32>
    %c0_3 = arith.constant 0 : index
    %c0_4 = arith.constant 0 : index
    %3 = vector.load %arg3[%c0_3, %c0_4] : memref<1x128xf32, #tpu.memory_space<vmem>>, vector<1x128xf32>
    %4 = vector.broadcast %3 : vector<1x128xf32> to vector<64x128xf32>
    %5 = arith.addf %2, %4 : vector<64x128xf32>
    %c0_5 = arith.constant 0 : index
    %c0_6 = arith.constant 0 : index
    %6 = vector.load %arg4[%c0_5, %c0_6] : memref<64x128xbf16, #tpu.memory_space<vmem>>, vector<64x128xbf16>
    %7 = arith.extf %6 : vector<64x128xbf16> to vector<64x128xf32>
    %8 = arith.addf %5, %7 : vector<64x128xf32>
    %cst_7 = arith.constant 0.000000e+00 : f32
    %9 = vector.broadcast %cst_7 : f32 to vector<64x128xf32>
    %10 = arith.maximumf %8, %9 : vector<64x128xf32>
    %11 = arith.truncf %10 : vector<64x128xf32> to vector<64x128xbf16>
    %c0_8 = arith.constant 0 : index
    %c0_9 = arith.constant 0 : index
    %12 = vector.load %arg5[%c0_8, %c0_9] : memref<64x128xbf16, #tpu.memory_space<vmem>>, vector<64x128xbf16>
    tpu.vector_store %arg5[%c0_8, %c0_9], %11 {strides = array<i32>} : memref<64x128xbf16, #tpu.memory_space<vmem>>, vector<64x128xbf16>,
    return
  }
  func.func @transform_0(%arg0: i32) -> (i32, i32) {
    %c0_i32 = arith.constant 0 : i32
    %c0_i32_0 = arith.constant 0 : i32
    return %arg0, %c0_i32 : i32, i32
  }
  func.func @transform_1(%arg0: i32) -> (i32, i32) {
    %c0_i32 = arith.constant 0 : i32
    %c0_i32_0 = arith.constant 0 : i32
    %c0_i32_1 = arith.constant 0 : i32
    return %c0_i32, %c0_i32_0 : i32, i32
  }
  func.func @transform_2(%arg0: i32) -> (i32, i32) {
    %c0_i32 = arith.constant 0 : i32
    %c0_i32_0 = arith.constant 0 : i32
    %c0_i32_1 = arith.constant 0 : i32
    return %c0_i32, %c0_i32_0 : i32, i32
  }
  func.func @transform_3(%arg0: i32) -> (i32, i32) {
    %c0_i32 = arith.constant 0 : i32
    %c0_i32_0 = arith.constant 0 : i32
    return %arg0, %c0_i32 : i32, i32
  }
  func.func @transform_4(%arg0: i32) -> (i32, i32) {
    %c0_i32 = arith.constant 0 : i32
    %c0_i32_0 = arith.constant 0 : i32
    return %arg0, %c0_i32 : i32, i32
  }
}

</mosaic_0001>

<bundles_post_ra>
// kernel: _lambda_.13
= control target key start
LH: loop header
LB: loop body
LE: loop exit
PB: predicated region body
PF: predicated region fallthrough
CT: control target
= control target key end

     0   :  { %s2244_s12 = smov 0   ;;  %s2246_s13 = smov 0   ;;  %s2662_s0 = inlined_call_operand.vmem [shape: bf16[1568,256], index: 0, kind: input, shape index: {}]   ;;  %s2663_s1 = inlined_call_operand.vmem [shape: bf16[256,128], index: 1, kind: input, shape index: {}]   ;;  %s2664_s2 = inlined_call_operand.vmem [shape: f32[1,128], index: 2, kind: input, shape index: {}]   ;;  %s2665_s3 = inlined_call_operand.vmem [shape: bf16[1568,128], index: 3, kind: output, shape index: {}]  }
   0x1   :  { %s2248_s14 = smov 0  }
   0x2 LB: > { %s2257_s15 = sadd.s32 4294967295, %s2189_s14   ;;  %s2259_s16 = sadd.s32 1, %s2189_s14   ;;  %s2189_s14 = sphi %s2248_s14, %s2672_s14   ;;  %s2185_s13 = sphi %s2246_s13, %s2671_s13   ;;  %s2181_s12 = sphi %s2244_s12, %s2670_s12  }
   0x3   : > { %s85_s17 = ssub.s32 %s2189_s14, %s2259_s16  ;;  %s88_s18 = sadd.s32 1, %s2185_s13 }
   0x4   : > { %p86_p0 = scmp.eq.s32.totalorder %s85_s17, 0  ;;  %p98_p1 = scmp.ne.s32.totalorder %s2185_s13, %s2181_s12 }
   0x5   : > { %p99_p2 = scmp.eq.s32.totalorder %s2257_s15, 3  ;;  %p1584_p3 = scmp.ge.s32.totalorder %s2189_s14, 1 }
   0x6   : > { %s2267_s19 = scalar_select %p86_p0, %s2185_s13, %s88_s18  }
   0x7   : > { %p2269_p4 = por %p99_p2, %p98_p1  ;;  %p149_p5 = scmp.lt.s32.totalorder %s2189_s14, 5 }
   0x9   : > { %p150_p6 = pnand %p1584_p3, %p149_p5 }
   0xa   : > { %v2040_v0 = vld [vmem:[%s2663_s1] sm:$0xff] (!%p150_p6)   ;;  %v2223_v1 = vmov (!%p150_p6), 0   ;;  %s2279_s23 = smul.u32 (!%p150_p6), 50, %s2257_s15  ;;  %v2041_v2 = vld [vmem:[%s2663_s1 + $0x8] sm:$0xff] (!%p150_p6)   ;;  %v2042_v3 = vld [vmem:[%s2663_s1 + $0x10] sm:$0xff] (!%p150_p6)   ;;  %s175_s21 = sand.u32 (!%p150_p6), 1, %s2181_s12  }
   0xb   : > { %153 = sbr.rel (%p150_p6) target bundleno = 487 (0x1e7), region = 32  ;;  %636 = vmatprep.subr.bf16.mxu0 (!%p150_p6), %v2223_v1  ;;  %1917 = vmatprep.subr.bf16.mxu1 (!%p150_p6), %v2223_v1  ;;  %v2043_v4 = vld [vmem:[%s2663_s1 + $0x18] sm:$0xff] (!%p150_p6)   ;;  %v2044_v5 = vld [vmem:[%s2663_s1 + $0x20] sm:$0xff] (!%p150_p6)   ;;  %v2045_v7 = vld [vmem:[%s2663_s1 + $0x28] sm:$0xff] (!%p150_p6)  }
   0xc   : > { %637 = vmatpush1.bf16.msra.mxu0 (!%p150_p6), %v2040_v0  ;;  %1933 = vmatpush1.bf16.msra.mxu1 (!%p150_p6), %v2040_v0  ;;  %p184_p7 = scmp.lt.s32.totalorder (!%p150_p6), %s2279_s23, 195  ;;  %v2046_v9 = vld [vmem:[%s2663_s1 + $0x30] sm:$0xff] (!%p150_p6)   ;;  %v2047_v10 = vld [vmem:[%s2663_s1 + $0x38] sm:$0xff] (!%p150_p6)   ;;  %v2048_v11 = vld [vmem:[%s2663_s1 + $0x40] sm:$0xff] (!%p150_p6)   ;;  %s1949_s22 = smul.u32 (!%p150_p6), 200, %s175_s21 }
   0xd   : > { %638 = vmatprep.subr.bf16.mxu0 (!%p150_p6), %v2223_v1  ;;  %1918 = vmatprep.subr.bf16.mxu1 (!%p150_p6), %v2223_v1  ;;  %v2049_v12 = vld [vmem:[%s2663_s1 + $0x48] sm:$0xff] (!%p150_p6)   ;;  %v2050_v13 = vld [vmem:[%s2663_s1 + $0x50] sm:$0xff] (!%p150_p6)   ;;  %v2051_v14 = vld [vmem:[%s2663_s1 + $0x58] sm:$0xff] (!%p150_p6)  }
   0xe   : > { %v2052_v15 = vld [vmem:[%s2663_s1 + $0x60] sm:$0xff] (!%p150_p6)   ;;  %v2053_v16 = vld [vmem:[%s2663_s1 + $0x68] sm:$0xff] (!%p150_p6)   ;;  %v2054_v17 = vld [vmem:[%s2663_s1 + $0x70] sm:$0xff] (!%p150_p6)   ;;  %s2423_s12 = scalar_lea.vmem (!%p150_p6), [#allocation2], %s1949_s22  }
   0xf   : > { %v2055_v18 = vld [vmem:[%s2663_s1 + $0x78] sm:$0xff] (!%p150_p6)  }
  0x10   : > { %639 = vmatpush1.bf16.msra.mxu0 (!%p150_p6), %v2041_v2  ;;  %1934 = vmatpush1.bf16.msra.mxu1 (!%p150_p6), %v2041_v2 }
  0x11   : > { %640 = vmatprep.subr.bf16.mxu0 (!%p150_p6), %v2223_v1  ;;  %1919 = vmatprep.subr.bf16.mxu1 (!%p150_p6), %v2223_v1 }
  0x12   : > { %s185_s28 = scalar_select %p184_p7, %s2279_s23, 195 }
  0x13   : > { %s1767_s24 = smul.u32 (%p2269_p4), 200, %s2257_s15 }
  0x14   : > { %641 = vmatpush1.bf16.msra.mxu0 %v2042_v3  ;;  %1935 = vmatpush1.bf16.msra.mxu1 %v2042_v3  ;;  %s1716_s4 = sshll.u32 %s185_s28, 3  ;;  %v2416_v3 = vld [vmem:[%s2664_s2] ss:$0 sm:$0xff] }
  0x15   : > { %642 = vmatprep.subr.bf16.mxu0 %v2223_v1  ;;  %1920 = vmatprep.subr.bf16.mxu1 %v2223_v1  ;;  %s2304_s9 = scalar_lea.vmem %s2662_s0, %s1716_s4  ;;  %s2503_s27 = scalar_lea.vmem (%p2269_p4), %s2665_s3, %s1767_s24  }
  0x16   : > { %v2058_v6 = vld [vmem:[%s2304_s9 + $0x4] ss:$8 sps:$4 sm:$0xff]   ;;  %v2061_v8 = vld [vmem:[%s2304_s9 + $0xd4] ss:$8 sps:$4 sm:$0xff]   ;;  %v2056_v19 = vld [vmem:[%s2304_s9] ss:$8 sps:$4 sm:$0xff]  }
  0x17   : > { %668 = vmatprep.mubr.bf16.mxu0 %v2058_v6  ;;  %772 = vmatprep.mubr.bf16.mxu1 %v2061_v8  ;;  %v2059_v20 = vld [vmem:[%s2304_s9 + $0xd0] ss:$8 sps:$4 sm:$0xff]   ;;  %v2062_v21 = vld [vmem:[%s2304_s9 + $0x14] ss:$8 sps:$4 sm:$0xff]   ;;  %v2065_v22 = vld [vmem:[%s2304_s9 + $0xe4] ss:$8 sps:$4 sm:$0xff]  }
  0x18   : > { %643 = vmatpush1.bf16.msra.mxu0 %v2043_v4  ;;  %1936 = vmatpush1.bf16.msra.mxu1 %v2043_v4  ;;  %v2064_v23 = vld [vmem:[%s2304_s9 + $0x10] ss:$8 sps:$4 sm:$0xff]   ;;  %v2067_v24 = vld [vmem:[%s2304_s9 + $0xe0] ss:$8 sps:$4 sm:$0xff]   ;;  %v2068_v25 = vld [vmem:[%s2304_s9 + $0x24] ss:$8 sps:$4 sm:$0xff]  }
  0x19   : > { %644 = vmatprep.subr.bf16.mxu0 %v2223_v1  ;;  %1921 = vmatprep.subr.bf16.mxu1 %v2223_v1  ;;  %v2071_v26 = vld [vmem:[%s2304_s9 + $0xf4] ss:$8 sps:$4 sm:$0xff]   ;;  %v2070_v27 = vld [vmem:[%s2304_s9 + $0x20] ss:$8 sps:$4 sm:$0xff]   ;;  %v2073_v28 = vld [vmem:[%s2304_s9 + $0xf0] ss:$8 sps:$4 sm:$0xff]  }
  0x1a   : > { %v2074_v29 = vld [vmem:[%s2304_s9 + $0x34] ss:$8 sps:$4 sm:$0xff]   ;;  %v2077_v30 = vld [vmem:[%s2304_s9 + $0x104] ss:$8 sps:$4 sm:$0xff]   ;;  %v2076_v31 = vld [vmem:[%s2304_s9 + $0x30] ss:$8 sps:$4 sm:$0xff]  }
  0x1b   : > { %v2079_v32 = vld [vmem:[%s2304_s9 + $0x100] ss:$8 sps:$4 sm:$0xff]   ;;  %v2080_v33 = vld [vmem:[%s2304_s9 + $0x44] ss:$8 sps:$4 sm:$0xff]   ;;  %v2083_v34 = vld [vmem:[%s2304_s9 + $0x114] ss:$8 sps:$4 sm:$0xff]  }
  0x1c   : > { %645 = vmatpush1.bf16.msra.mxu0 %v2044_v5  ;;  %1937 = vmatpush1.bf16.msra.mxu1 %v2044_v5  ;;  %v2082_v35 = vld [vmem:[%s2304_s9 + $0x40] ss:$8 sps:$4 sm:$0xff]   ;;  %v2085_v36 = vld [vmem:[%s2304_s9 + $0x110] ss:$8 sps:$4 sm:$0xff]   ;;  %v2086_v37 = vld [vmem:[%s2304_s9 + $0x54] ss:$8 sps:$4 sm:$0xff]  }
  0x1d   : > { %646 = vmatprep.subr.bf16.mxu0 %v2223_v1  ;;  %1922 = vmatprep.subr.bf16.mxu1 %v2223_v1  ;;  %v2089_v38 = vld [vmem:[%s2304_s9 + $0x124] ss:$8 sps:$4 sm:$0xff]   ;;  %v2088_v39 = vld [vmem:[%s2304_s9 + $0x50] ss:$8 sps:$4 sm:$0xff]   ;;  %v2091_v40 = vld [vmem:[%s2304_s9 + $0x120] ss:$8 sps:$4 sm:$0xff]  }
  0x1e   : > { %v2092_v41 = vld [vmem:[%s2304_s9 + $0x64] ss:$8 sps:$4 sm:$0xff]   ;;  %v2095_v42 = vld [vmem:[%s2304_s9 + $0x134] ss:$8 sps:$4 sm:$0xff]   ;;  %v2094_v43 = vld [vmem:[%s2304_s9 + $0x60] ss:$8 sps:$4 sm:$0xff]  }
  0x1f   : > { %v2097_v44 = vld [vmem:[%s2304_s9 + $0x130] ss:$8 sps:$4 sm:$0xff]   ;;  %v2098_v45 = vld [vmem:[%s2304_s9 + $0x74] ss:$8 sps:$4 sm:$0xff]   ;;  %v2101_v46 = vld [vmem:[%s2304_s9 + $0x144] ss:$8 sps:$4 sm:$0xff]  }
  0x20   : > { %647 = vmatpush1.bf16.msra.mxu0 %v2045_v7  ;;  %1938 = vmatpush1.bf16.msra.mxu1 %v2045_v7  ;;  %v2100_v47 = vld [vmem:[%s2304_s9 + $0x70] ss:$8 sps:$4 sm:$0xff]   ;;  %v2103_v48 = vld [vmem:[%s2304_s9 + $0x140] ss:$8 sps:$4 sm:$0xff]   ;;  %v2104_v49 = vld [vmem:[%s2304_s9 + $0x84] ss:$8 sps:$4 sm:$0xff]  }
  0x21   : > { %648 = vmatprep.subr.bf16.mxu0 %v2223_v1  ;;  %1923 = vmatprep.subr.bf16.mxu1 %v2223_v1  ;;  %v2107_v50 = vld [vmem:[%s2304_s9 + $0x154] ss:$8 sps:$4 sm:$0xff]   ;;  %v2106_v51 = vld [vmem:[%s2304_s9 + $0x80] ss:$8 sps:$4 sm:$0xff]   ;;  %v2109_v52 = vld [vmem:[%s2304_s9 + $0x150] ss:$8 sps:$4 sm:$0xff]  }
  0x22   : > { %v2110_v53 = vld [vmem:[%s2304_s9 + $0x94] ss:$8 sps:$4 sm:$0xff]   ;;  %v2113_v54 = vld [vmem:[%s2304_s9 + $0x164] ss:$8 sps:$4 sm:$0xff]   ;;  %v2112_v55 = vld [vmem:[%s2304_s9 + $0x90] ss:$8 sps:$4 sm:$0xff]  }
  0x23   : > { %v2115_v56 = vld [vmem:[%s2304_s9 + $0x160] ss:$8 sps:$4 sm:$0xff]   ;;  %v2116_v57 = vld [vmem:[%s2304_s9 + $0xa4] ss:$8 sps:$4 sm:$0xff]   ;;  %v2119_v58 = vld [vmem:[%s2304_s9 + $0x174] ss:$8 sps:$4 sm:$0xff]  }
  0x24   : > { %649 = vmatpush1.bf16.msra.mxu0 %v2046_v9  ;;  %1939 = vmatpush1.bf16.msra.mxu1 %v2046_v9  ;;  %v2118_v59 = vld [vmem:[%s2304_s9 + $0xa0] ss:$8 sps:$4 sm:$0xff]   ;;  %v2121_v60 = vld [vmem:[%s2304_s9 + $0x170] ss:$8 sps:$4 sm:$0xff]   ;;  %v2122_v61 = vld [vmem:[%s2304_s9 + $0xb4] ss:$8 sps:$4 sm:$0xff]  }
  0x25   : > { %650 = vmatprep.subr.bf16.mxu0 %v2223_v1  ;;  %1924 = vmatprep.subr.bf16.mxu1 %v2223_v1  ;;  %v2125_v62 = vld [vmem:[%s2304_s9 + $0x184] ss:$8 sps:$4 sm:$0xff]   ;;  %v2124_v63 = vld [vmem:[%s2304_s9 + $0xb0] ss:$8 sps:$4 sm:$0xff]   ;;  %v2127_v0 = vld [vmem:[%s2304_s9 + $0x180] ss:$8 sps:$4 sm:$0xff]  }
  0x26   : > { %v2130_v2 = vld [vmem:[%s2304_s9 + $0xc0] ss:$8 sps:$4 sm:$0xff]  }
  0x28   : > { %651 = vmatpush1.bf16.msra.mxu0 %v2047_v10  ;;  %1940 = vmatpush1.bf16.msra.mxu1 %v2047_v10 }
  0x29   : > { %652 = vmatprep.subr.bf16.mxu0 %v2223_v1  ;;  %1925 = vmatprep.subr.bf16.mxu1 %v2223_v1 }
  0x2c   : > { %653 = vmatpush1.bf16.msra.mxu0 %v2048_v11  ;;  %1941 = vmatpush1.bf16.msra.mxu1 %v2048_v11 }
  0x2d   : > { %654 = vmatprep.subr.bf16.mxu0 %v2223_v1  ;;  %1926 = vmatprep.subr.bf16.mxu1 %v2223_v1 }
  0x30   : > { %655 = vmatpush1.bf16.msra.mxu0 %v2049_v12  ;;  %1942 = vmatpush1.bf16.msra.mxu1 %v2049_v12 }
  0x31   : > { %656 = vmatprep.subr.bf16.mxu0 %v2223_v1  ;;  %1927 = vmatprep.subr.bf16.mxu1 %v2223_v1 }
  0x34   : > { %657 = vmatpush1.bf16.msra.mxu0 %v2050_v13  ;;  %1943 = vmatpush1.bf16.msra.mxu1 %v2050_v13 }
  0x35   : > { %658 = vmatprep.subr.bf16.mxu0 %v2223_v1  ;;  %1928 = vmatprep.subr.bf16.mxu1 %v2223_v1 }
  0x38   : > { %659 = vmatpush1.bf16.msra.mxu0 %v2051_v14  ;;  %1944 = vmatpush1.bf16.msra.mxu1 %v2051_v14 }
  0x39   : > { %660 = vmatprep.subr.bf16.mxu0 %v2223_v1  ;;  %1929 = vmatprep.subr.bf16.mxu1 %v2223_v1 }
  0x3c   : > { %661 = vmatpush1.bf16.msra.mxu0 %v2052_v15  ;;  %1945 = vmatpush1.bf16.msra.mxu1 %v2052_v15 }
  0x3d   : > { %662 = vmatprep.subr.bf16.mxu0 %v2223_v1  ;;  %1930 = vmatprep.subr.bf16.mxu1 %v2223_v1 }
  0x40   : > { %663 = vmatpush1.bf16.msra.mxu0 %v2053_v16  ;;  %1946 = vmatpush1.bf16.msra.mxu1 %v2053_v16 }
  0x41   : > { %664 = vmatprep.subr.bf16.mxu0 %v2223_v1  ;;  %1931 = vmatprep.subr.bf16.mxu1 %v2223_v1 }
  0x44   : > { %665 = vmatpush1.bf16.msra.mxu0 %v2054_v17  ;;  %1947 = vmatpush1.bf16.msra.mxu1 %v2054_v17 }
  0x45   : > { %666 = vmatprep.subr.bf16.mxu0 %v2223_v1  ;;  %1932 = vmatprep.subr.bf16.mxu1 %v2223_v1  ;;  %v2128_v1 = vld [vmem:[%s2304_s9 + $0xc4] ss:$8 sps:$4 sm:$0xff]   ;;  %s1177_s9 = ssub.s32 (%p2269_p4), 196, %s2279_s23 }
  0x46   : > { %p1178_p8 = scmp.lt.s32.totalorder (%p2269_p4), %s1177_s9, 50 }
  0x48   : > { %667 = vmatpush1.bf16.msra.mxu0 %v2055_v18  ;;  %1948 = vmatpush1.bf16.msra.mxu1 %v2055_v18 }
  0x4b   : > { %669 = vmatmul.mubr.bf16.vlgmr.msra.gmra.mrb[0].mxu0 %v2056_v19  ;;  %773 = vmatmul.mubr.bf16.vlgmr.msra.gmra.mrb[0].mxu1 %v2059_v20 }
  0x4c   : > { %676 = vmatprep.mubr.bf16.mxu0 %v2062_v21  ;;  %780 = vmatprep.mubr.bf16.mxu1 %v2065_v22 }
  0x53   : > { %677 = vmatmul.mubr.bf16.gmra.mrb[4].mxu0 %v2064_v23  ;;  %781 = vmatmul.mubr.bf16.gmra.mrb[4].mxu1 %v2067_v24 }
  0x54   : > { %684 = vmatprep.mubr.bf16.mxu0 %v2068_v25  ;;  %788 = vmatprep.mubr.bf16.mxu1 %v2071_v26 }
  0x5b   : > { %685 = vmatmul.mubr.bf16.gmra.mrb[8].mxu0 %v2070_v27  ;;  %789 = vmatmul.mubr.bf16.gmra.mrb[8].mxu1 %v2073_v28 }
  0x5c   : > { %692 = vmatprep.mubr.bf16.mxu0 %v2074_v29  ;;  %796 = vmatprep.mubr.bf16.mxu1 %v2077_v30 }
  0x63   : > { %693 = vmatmul.mubr.bf16.gmra.mrb[12].mxu0 %v2076_v31  ;;  %797 = vmatmul.mubr.bf16.gmra.mrb[12].mxu1 %v2079_v32 }
  0x64   : > { %700 = vmatprep.mubr.bf16.mxu0 %v2080_v33  ;;  %804 = vmatprep.mubr.bf16.mxu1 %v2083_v34 }
  0x6b   : > { %701 = vmatmul.mubr.bf16.gmra.mrb[16].mxu0 %v2082_v35  ;;  %805 = vmatmul.mubr.bf16.gmra.mrb[16].mxu1 %v2085_v36 }
  0x6c   : > { %708 = vmatprep.mubr.bf16.mxu0 %v2086_v37  ;;  %812 = vmatprep.mubr.bf16.mxu1 %v2089_v38 }
  0x73   : > { %709 = vmatmul.mubr.bf16.gmra.mrb[20].mxu0 %v2088_v39  ;;  %813 = vmatmul.mubr.bf16.gmra.mrb[20].mxu1 %v2091_v40 }
  0x74   : > { %716 = vmatprep.mubr.bf16.mxu0 %v2092_v41  ;;  %820 = vmatprep.mubr.bf16.mxu1 %v2095_v42 }
  0x7b   : > { %717 = vmatmul.mubr.bf16.gmra.mrb[24].mxu0 %v2094_v43  ;;  %821 = vmatmul.mubr.bf16.gmra.mrb[24].mxu1 %v2097_v44 }
  0x7c   : > { %724 = vmatprep.mubr.bf16.mxu0 %v2098_v45  ;;  %828 = vmatprep.mubr.bf16.mxu1 %v2101_v46 }
  0x83   : > { %725 = vmatmul.mubr.bf16.gmra.mrb[28].mxu0 %v2100_v47  ;;  %829 = vmatmul.mubr.bf16.gmra.mrb[28].mxu1 %v2103_v48 }
  0x84   : > { %732 = vmatprep.mubr.bf16.mxu0 %v2104_v49  ;;  %836 = vmatprep.mubr.bf16.mxu1 %v2107_v50 }
  0x8b   : > { %733 = vmatmul.mubr.bf16.gmra.mrb[32].mxu0 %v2106_v51  ;;  %837 = vmatmul.mubr.bf16.gmra.mrb[32].mxu1 %v2109_v52 }
  0x8c   : > { %740 = vmatprep.mubr.bf16.mxu0 %v2110_v53  ;;  %844 = vmatprep.mubr.bf16.mxu1 %v2113_v54 }
  0x93   : > { %741 = vmatmul.mubr.bf16.gmra.mrb[36].mxu0 %v2112_v55  ;;  %845 = vmatmul.mubr.bf16.gmra.mrb[36].mxu1 %v2115_v56 }
  0x94   : > { %748 = vmatprep.mubr.bf16.mxu0 %v2116_v57  ;;  %852 = vmatprep.mubr.bf16.mxu1 %v2119_v58 }
  0x9b   : > { %749 = vmatmul.mubr.bf16.gmra.mrb[40].mxu0 %v2118_v59  ;;  %853 = vmatmul.mubr.bf16.gmra.mrb[40].mxu1 %v2121_v60 }
  0x9c   : > { %756 = vmatprep.mubr.bf16.mxu0 %v2122_v61  ;;  %860 = vmatprep.mubr.bf16.mxu1 %v2125_v62 }
  0xa3   : > { %757 = vmatmul.mubr.bf16.gmra.mrb[44].mxu0 %v2124_v63  ;;  %861 = vmatmul.mubr.bf16.gmra.mrb[44].mxu1 %v2127_v0 }
  0xa4   : > { %764 = vmatprep.mubr.bf16.mxu0 %v2128_v1 }
  0xab   : > { %765 = vmatmul.mubr.bf16.gmra.mrb[48].mxu0 %v2130_v2 }
 0x11e   : > { %v670_v4 = vpop.f32.mrb[0].mxu0  ;;  %v774_v5 = vpop.f32.mrb[0].mxu1 }
 0x11f   : > { %v671_v6 = vadd.f32 %v2416_v3, %v670_v4  ;;  %v672_v7 = vpop.f32.mrb[1].mxu0  ;;  %v775_v8 = vadd.f32 %v2416_v3, %v774_v5  ;;  %v776_v9 = vpop.f32.mrb[1].mxu1 }
 0x120   : > { %v673_v10 = vpop.f32.mrb[2].mxu0  ;;  %v777_v11 = vpop.f32.mrb[2].mxu1 }
 0x121   : > { %v674_v12 = vadd.f32 %v2416_v3, %v673_v10  ;;  %v675_v13 = vpop.f32.mrb[3].mxu0  ;;  %v895_v14 = vmax.f32 %v775_v8, 0.0  ;;  %v778_v15 = vadd.f32 %v2416_v3, %v777_v11  ;;  %v779_v16 = vpop.f32.mrb[3].mxu1  ;;  %v869_v17 = vmax.f32 %v671_v6, 0.0 }
 0x123   : > { %v870_v18 = vmax.f32 %v674_v12, 0.0  ;;  %v896_v19 = vmax.f32 %v778_v15, 0.0 }
 0x125   : > { %v1771_v20 = vpack.c.bf16 %v870_v18, %v869_v17  ;;  %v1836_v21 = vpack.c.bf16 %v896_v19, %v895_v14 }
 0x126   : > { %v678_v22 = vpop.f32.mrb[4].mxu0  ;;  %v782_v23 = vpop.f32.mrb[4].mxu1 }
 0x127   : > { %1772 = vst [vmem:[%s2423_s12] sm:$0xff] %v1771_v20   ;;  %1905 = vst [vmem:[%s2423_s12 + $0x68] sm:$0xff] %v1836_v21   ;;  %v679_v24 = vadd.f32 %v2416_v3, %v678_v22  ;;  %v680_v25 = vpop.f32.mrb[5].mxu0  ;;  %v783_v26 = vadd.f32 %v2416_v3, %v782_v23  ;;  %v784_v27 = vpop.f32.mrb[5].mxu1 }
 0x128   : > { %v681_v28 = vpop.f32.mrb[6].mxu0  ;;  %v785_v29 = vpop.f32.mrb[6].mxu1 }
 0x129   : > { %v682_v30 = vadd.f32 %v2416_v3, %v681_v28  ;;  %v683_v31 = vpop.f32.mrb[7].mxu0  ;;  %v897_v32 = vmax.f32 %v783_v26, 0.0  ;;  %v786_v33 = vadd.f32 %v2416_v3, %v785_v29  ;;  %v787_v34 = vpop.f32.mrb[7].mxu1  ;;  %v871_v35 = vmax.f32 %v679_v24, 0.0 }
 0x12b   : > { %v872_v36 = vmax.f32 %v682_v30, 0.0  ;;  %v898_v37 = vmax.f32 %v786_v33, 0.0 }
 0x12d   : > { %v1776_v38 = vpack.c.bf16 %v872_v36, %v871_v35  ;;  %v1841_v39 = vpack.c.bf16 %v898_v37, %v897_v32 }
 0x12e   : > { %v686_v40 = vpop.f32.mrb[8].mxu0  ;;  %v790_v41 = vpop.f32.mrb[8].mxu1 }
 0x12f   : > { %1893 = vst [vmem:[%s2423_s12 + $0x8] sm:$0xff] %v1776_v38   ;;  %1906 = vst [vmem:[%s2423_s12 + $0x70] sm:$0xff] %v1841_v39   ;;  %v687_v42 = vadd.f32 %v2416_v3, %v686_v40  ;;  %v688_v43 = vpop.f32.mrb[9].mxu0  ;;  %v791_v44 = vadd.f32 %v2416_v3, %v790_v41  ;;  %v792_v45 = vpop.f32.mrb[9].mxu1 }
 0x130   : > { %v689_v46 = vpop.f32.mrb[10].mxu0  ;;  %v793_v47 = vpop.f32.mrb[10].mxu1 }
 0x131   : > { %v690_v48 = vadd.f32 %v2416_v3, %v689_v46  ;;  %v691_v49 = vpop.f32.mrb[11].mxu0  ;;  %v899_v50 = vmax.f32 %v791_v44, 0.0  ;;  %v794_v51 = vadd.f32 %v2416_v3, %v793_v47  ;;  %v795_v52 = vpop.f32.mrb[11].mxu1  ;;  %v873_v53 = vmax.f32 %v687_v42, 0.0 }
 0x133   : > { %v874_v54 = vmax.f32 %v690_v48, 0.0  ;;  %v900_v55 = vmax.f32 %v794_v51, 0.0 }
 0x135   : > { %v1781_v56 = vpack.c.bf16 %v874_v54, %v873_v53  ;;  %v1846_v57 = vpack.c.bf16 %v900_v55, %v899_v50 }
 0x136   : > { %v694_v58 = vpop.f32.mrb[12].mxu0  ;;  %v798_v59 = vpop.f32.mrb[12].mxu1 }
 0x137   : > { %1894 = vst [vmem:[%s2423_s12 + $0x10] sm:$0xff] %v1781_v56   ;;  %1907 = vst [vmem:[%s2423_s12 + $0x78] sm:$0xff] %v1846_v57   ;;  %v695_v60 = vadd.f32 %v2416_v3, %v694_v58  ;;  %v696_v61 = vpop.f32.mrb[13].mxu0  ;;  %v799_v62 = vadd.f32 %v2416_v3, %v798_v59  ;;  %v800_v63 = vpop.f32.mrb[13].mxu1 }
 0x138   : > { %v697_v0 = vpop.f32.mrb[14].mxu0  ;;  %v801_v1 = vpop.f32.mrb[14].mxu1 }
 0x139   : > { %v698_v2 = vadd.f32 %v2416_v3, %v697_v0  ;;  %v699_v4 = vpop.f32.mrb[15].mxu0  ;;  %v901_v5 = vmax.f32 %v799_v62, 0.0  ;;  %v802_v6 = vadd.f32 %v2416_v3, %v801_v1  ;;  %v803_v7 = vpop.f32.mrb[15].mxu1  ;;  %v875_v8 = vmax.f32 %v695_v60, 0.0 }
 0x13b   : > { %v876_v9 = vmax.f32 %v698_v2, 0.0  ;;  %v902_v10 = vmax.f32 %v802_v6, 0.0 }
 0x13d   : > { %v1786_v11 = vpack.c.bf16 %v876_v9, %v875_v8  ;;  %v1851_v12 = vpack.c.bf16 %v902_v10, %v901_v5 }
 0x13e   : > { %v702_v13 = vpop.f32.mrb[16].mxu0  ;;  %v806_v14 = vpop.f32.mrb[16].mxu1 }
 0x13f   : > { %1895 = vst [vmem:[%s2423_s12 + $0x18] sm:$0xff] %v1786_v11   ;;  %1908 = vst [vmem:[%s2423_s12 + $0x80] sm:$0xff] %v1851_v12   ;;  %v703_v15 = vadd.f32 %v2416_v3, %v702_v13  ;;  %v704_v16 = vpop.f32.mrb[17].mxu0  ;;  %v807_v17 = vadd.f32 %v2416_v3, %v806_v14  ;;  %v808_v18 = vpop.f32.mrb[17].mxu1 }
 0x140   : > { %v705_v19 = vpop.f32.mrb[18].mxu0  ;;  %v809_v20 = vpop.f32.mrb[18].mxu1 }
 0x141   : > { %v706_v21 = vadd.f32 %v2416_v3, %v705_v19  ;;  %v707_v22 = vpop.f32.mrb[19].mxu0  ;;  %v903_v23 = vmax.f32 %v807_v17, 0.0  ;;  %v810_v24 = vadd.f32 %v2416_v3, %v809_v20  ;;  %v811_v25 = vpop.f32.mrb[19].mxu1  ;;  %v877_v26 = vmax.f32 %v703_v15, 0.0 }
 0x143   : > { %v878_v27 = vmax.f32 %v706_v21, 0.0  ;;  %v904_v28 = vmax.f32 %v810_v24, 0.0 }
 0x145   : > { %v1791_v29 = vpack.c.bf16 %v878_v27, %v877_v26  ;;  %v1856_v30 = vpack.c.bf16 %v904_v28, %v903_v23 }
 0x146   : > { %v710_v31 = vpop.f32.mrb[20].mxu0  ;;  %v814_v32 = vpop.f32.mrb[20].mxu1 }
 0x147   : > { %1896 = vst [vmem:[%s2423_s12 + $0x20] sm:$0xff] %v1791_v29   ;;  %1909 = vst [vmem:[%s2423_s12 + $0x88] sm:$0xff] %v1856_v30   ;;  %v711_v33 = vadd.f32 %v2416_v3, %v710_v31  ;;  %v712_v34 = vpop.f32.mrb[21].mxu0  ;;  %v815_v35 = vadd.f32 %v2416_v3, %v814_v32  ;;  %v816_v36 = vpop.f32.mrb[21].mxu1 }
 0x148   : > { %v713_v37 = vpop.f32.mrb[22].mxu0  ;;  %v817_v38 = vpop.f32.mrb[22].mxu1 }
 0x149   : > { %v714_v39 = vadd.f32 %v2416_v3, %v713_v37  ;;  %v715_v40 = vpop.f32.mrb[23].mxu0  ;;  %v905_v41 = vmax.f32 %v815_v35, 0.0  ;;  %v818_v42 = vadd.f32 %v2416_v3, %v817_v38  ;;  %v819_v43 = vpop.f32.mrb[23].mxu1  ;;  %v879_v44 = vmax.f32 %v711_v33, 0.0 }
 0x14b   : > { %v880_v45 = vmax.f32 %v714_v39, 0.0  ;;  %v906_v46 = vmax.f32 %v818_v42, 0.0 }
 0x14d   : > { %v1796_v47 = vpack.c.bf16 %v880_v45, %v879_v44  ;;  %v1861_v48 = vpack.c.bf16 %v906_v46, %v905_v41 }
 0x14e   : > { %v718_v49 = vpop.f32.mrb[24].mxu0  ;;  %v822_v50 = vpop.f32.mrb[24].mxu1 }
 0x14f   : > { %1897 = vst [vmem:[%s2423_s12 + $0x28] sm:$0xff] %v1796_v47   ;;  %1910 = vst [vmem:[%s2423_s12 + $0x90] sm:$0xff] %v1861_v48   ;;  %v719_v51 = vadd.f32 %v2416_v3, %v718_v49  ;;  %v720_v52 = vpop.f32.mrb[25].mxu0  ;;  %v823_v53 = vadd.f32 %v2416_v3, %v822_v50  ;;  %v824_v54 = vpop.f32.mrb[25].mxu1 }
 0x150   : > { %v721_v55 = vpop.f32.mrb[26].mxu0  ;;  %v825_v56 = vpop.f32.mrb[26].mxu1 }
 0x151   : > { %v722_v57 = vadd.f32 %v2416_v3, %v721_v55  ;;  %v723_v58 = vpop.f32.mrb[27].mxu0  ;;  %v907_v59 = vmax.f32 %v823_v53, 0.0  ;;  %v826_v60 = vadd.f32 %v2416_v3, %v825_v56  ;;  %v827_v61 = vpop.f32.mrb[27].mxu1  ;;  %v881_v62 = vmax.f32 %v719_v51, 0.0 }
 0x153   : > { %v882_v63 = vmax.f32 %v722_v57, 0.0  ;;  %v908_v0 = vmax.f32 %v826_v60, 0.0 }
 0x155   : > { %v1801_v1 = vpack.c.bf16 %v882_v63, %v881_v62  ;;  %v1866_v2 = vpack.c.bf16 %v908_v0, %v907_v59 }
 0x156   : > { %v726_v4 = vpop.f32.mrb[28].mxu0  ;;  %v830_v5 = vpop.f32.mrb[28].mxu1 }
 0x157   : > { %1898 = vst [vmem:[%s2423_s12 + $0x30] sm:$0xff] %v1801_v1   ;;  %1911 = vst [vmem:[%s2423_s12 + $0x98] sm:$0xff] %v1866_v2   ;;  %v727_v6 = vadd.f32 %v2416_v3, %v726_v4  ;;  %v728_v7 = vpop.f32.mrb[29].mxu0  ;;  %v831_v8 = vadd.f32 %v2416_v3, %v830_v5  ;;  %v832_v9 = vpop.f32.mrb[29].mxu1 }
 0x158   : > { %v729_v10 = vpop.f32.mrb[30].mxu0  ;;  %v833_v11 = vpop.f32.mrb[30].mxu1 }
 0x159   : > { %v730_v12 = vadd.f32 %v2416_v3, %v729_v10  ;;  %v731_v13 = vpop.f32.mrb[31].mxu0  ;;  %v909_v14 = vmax.f32 %v831_v8, 0.0  ;;  %v834_v15 = vadd.f32 %v2416_v3, %v833_v11  ;;  %v835_v16 = vpop.f32.mrb[31].mxu1  ;;  %v883_v17 = vmax.f32 %v727_v6, 0.0 }
 0x15b   : > { %v884_v18 = vmax.f32 %v730_v12, 0.0  ;;  %v910_v19 = vmax.f32 %v834_v15, 0.0 }
 0x15d   : > { %v1806_v20 = vpack.c.bf16 %v884_v18, %v883_v17  ;;  %v1871_v21 = vpack.c.bf16 %v910_v19, %v909_v14 }
 0x15e   : > { %v734_v22 = vpop.f32.mrb[32].mxu0  ;;  %v838_v23 = vpop.f32.mrb[32].mxu1 }
 0x15f   : > { %1899 = vst [vmem:[%s2423_s12 + $0x38] sm:$0xff] %v1806_v20   ;;  %1912 = vst [vmem:[%s2423_s12 + $0xa0] sm:$0xff] %v1871_v21   ;;  %v735_v24 = vadd.f32 %v2416_v3, %v734_v22  ;;  %v736_v25 = vpop.f32.mrb[33].mxu0  ;;  %v839_v26 = vadd.f32 %v2416_v3, %v838_v23  ;;  %v840_v27 = vpop.f32.mrb[33].mxu1 }
 0x160   : > { %v737_v28 = vpop.f32.mrb[34].mxu0  ;;  %v841_v29 = vpop.f32.mrb[34].mxu1 }
 0x161   : > { %v738_v30 = vadd.f32 %v2416_v3, %v737_v28  ;;  %v739_v31 = vpop.f32.mrb[35].mxu0  ;;  %v911_v32 = vmax.f32 %v839_v26, 0.0  ;;  %v842_v33 = vadd.f32 %v2416_v3, %v841_v29  ;;  %v843_v34 = vpop.f32.mrb[35].mxu1  ;;  %v885_v35 = vmax.f32 %v735_v24, 0.0 }
 0x163   : > { %v886_v36 = vmax.f32 %v738_v30, 0.0  ;;  %v912_v37 = vmax.f32 %v842_v33, 0.0 }
 0x165   : > { %v1811_v38 = vpack.c.bf16 %v886_v36, %v885_v35  ;;  %v1876_v39 = vpack.c.bf16 %v912_v37, %v911_v32 }
 0x166   : > { %v742_v40 = vpop.f32.mrb[36].mxu0  ;;  %v846_v41 = vpop.f32.mrb[36].mxu1 }
 0x167   : > { %1900 = vst [vmem:[%s2423_s12 + $0x40] sm:$0xff] %v1811_v38   ;;  %1913 = vst [vmem:[%s2423_s12 + $0xa8] sm:$0xff] %v1876_v39   ;;  %v743_v42 = vadd.f32 %v2416_v3, %v742_v40  ;;  %v744_v43 = vpop.f32.mrb[37].mxu0  ;;  %v847_v44 = vadd.f32 %v2416_v3, %v846_v41  ;;  %v848_v45 = vpop.f32.mrb[37].mxu1 }
 0x168   : > { %v745_v46 = vpop.f32.mrb[38].mxu0  ;;  %v849_v47 = vpop.f32.mrb[38].mxu1 }
 0x169   : > { %v746_v48 = vadd.f32 %v2416_v3, %v745_v46  ;;  %v747_v49 = vpop.f32.mrb[39].mxu0  ;;  %v913_v50 = vmax.f32 %v847_v44, 0.0  ;;  %v850_v51 = vadd.f32 %v2416_v3, %v849_v47  ;;  %v851_v52 = vpop.f32.mrb[39].mxu1  ;;  %v887_v53 = vmax.f32 %v743_v42, 0.0 }
 0x16b   : > { %v888_v54 = vmax.f32 %v746_v48, 0.0  ;;  %v914_v55 = vmax.f32 %v850_v51, 0.0 }
 0x16d   : > { %v1816_v56 = vpack.c.bf16 %v888_v54, %v887_v53  ;;  %v1881_v57 = vpack.c.bf16 %v914_v55, %v913_v50 }
 0x16e   : > { %v750_v58 = vpop.f32.mrb[40].mxu0  ;;  %v854_v59 = vpop.f32.mrb[40].mxu1 }
 0x16f   : > { %1901 = vst [vmem:[%s2423_s12 + $0x48] sm:$0xff] %v1816_v56   ;;  %1914 = vst [vmem:[%s2423_s12 + $0xb0] sm:$0xff] %v1881_v57   ;;  %v751_v60 = vadd.f32 %v2416_v3, %v750_v58  ;;  %v752_v61 = vpop.f32.mrb[41].mxu0  ;;  %v855_v62 = vadd.f32 %v2416_v3, %v854_v59  ;;  %v856_v63 = vpop.f32.mrb[41].mxu1 }
 0x170   : > { %v753_v0 = vpop.f32.mrb[42].mxu0  ;;  %v857_v1 = vpop.f32.mrb[42].mxu1 }
 0x171   : > { %v754_v2 = vadd.f32 %v2416_v3, %v753_v0  ;;  %v755_v4 = vpop.f32.mrb[43].mxu0  ;;  %v915_v5 = vmax.f32 %v855_v62, 0.0  ;;  %v858_v6 = vadd.f32 %v2416_v3, %v857_v1  ;;  %v859_v7 = vpop.f32.mrb[43].mxu1  ;;  %v889_v8 = vmax.f32 %v751_v60, 0.0 }
 0x173   : > { %v890_v9 = vmax.f32 %v754_v2, 0.0  ;;  %v916_v10 = vmax.f32 %v858_v6, 0.0 }
 0x175   : > { %v1821_v11 = vpack.c.bf16 %v890_v9, %v889_v8  ;;  %v1886_v12 = vpack.c.bf16 %v916_v10, %v915_v5 }
 0x176   : > { %v758_v13 = vpop.f32.mrb[44].mxu0  ;;  %v862_v14 = vpop.f32.mrb[44].mxu1 }
 0x177   : > { %1902 = vst [vmem:[%s2423_s12 + $0x50] sm:$0xff] %v1821_v11   ;;  %1915 = vst [vmem:[%s2423_s12 + $0xb8] sm:$0xff] %v1886_v12   ;;  %v759_v15 = vadd.f32 %v2416_v3, %v758_v13  ;;  %v760_v16 = vpop.f32.mrb[45].mxu0  ;;  %v863_v17 = vadd.f32 %v2416_v3, %v862_v14  ;;  %v864_v18 = vpop.f32.mrb[45].mxu1 }
 0x178   : > { %v761_v19 = vpop.f32.mrb[46].mxu0  ;;  %v865_v20 = vpop.f32.mrb[46].mxu1 }
 0x179   : > { %v762_v21 = vadd.f32 %v2416_v3, %v761_v19  ;;  %v763_v22 = vpop.f32.mrb[47].mxu0  ;;  %v917_v23 = vmax.f32 %v863_v17, 0.0  ;;  %v866_v24 = vadd.f32 %v2416_v3, %v865_v20  ;;  %v867_v25 = vpop.f32.mrb[47].mxu1  ;;  %v891_v26 = vmax.f32 %v759_v15, 0.0 }
 0x17b   : > { %v892_v27 = vmax.f32 %v762_v21, 0.0  ;;  %v918_v28 = vmax.f32 %v866_v24, 0.0 }
 0x17d   : > { %v1826_v29 = vpack.c.bf16 %v892_v27, %v891_v26  ;;  %v1891_v30 = vpack.c.bf16 %v918_v28, %v917_v23 }
 0x17e   : > { %v766_v31 = vpop.f32.mrb[48].mxu0 }
 0x17f   : > { %1903 = vst [vmem:[%s2423_s12 + $0x58] sm:$0xff] %v1826_v29   ;;  %1916 = vst [vmem:[%s2423_s12 + $0xc0] sm:$0xff] %v1891_v30   ;;  %v767_v32 = vadd.f32 %v2416_v3, %v766_v31  ;;  %v768_v33 = vpop.f32.mrb[49].mxu0 }
 0x180   : > { %v769_v34 = vpop.f32.mrb[50].mxu0 }
 0x181   : > { %v770_v35 = vadd.f32 %v2416_v3, %v769_v34  ;;  %v771_v36 = vpop.f32.mrb[51].mxu0  ;;  %v893_v37 = vmax.f32 %v767_v32, 0.0  ;;  %1175 = sbr.rel (!%p2269_p4) target bundleno = 487 (0x1e7), region = 36 }
 0x183   : > { %v894_v38 = vmax.f32 %v770_v35, 0.0 }
 0x185   : > { %v1831_v39 = vpack.c.bf16 %v894_v38, %v893_v37 }
 0x187   : > { %1904 = vst [vmem:[%s2423_s12 + $0x60] sm:$0xff] %v1831_v39  }
 0x188   : > { %s2674_s9 = smov (!%p1178_p8, %s1177_s9), 50 }
 0x189   : > { %s1704_s28 = sshll.u32 %s2674_s9, 6 }
 0x18a   : > { %p1707_p9 = scmp.eq.s32.totalorder %s1704_s28, 0 }
 0x18b   : > { %2131 = sdivrem.u32 (!%p1707_p9), %s2674_s9, 50 }
 0x18c   : > { %1186 = sbr.rel (%p1707_p9) target bundleno = 487 (0x1e7), region = 40 }
 0x194   : > { %s2509_s20 = spop.drf %2131 }
 0x195   : > { %p1708_p10 = scmp.le.s32.totalorder %s2509_s20, 0 }
 0x196   : > { %s2667_s15 = smov (!%p1708_p10), %s2503_s27  ;;  %s2668_s23 = smov (!%p1708_p10), %s2423_s12 }
 0x197   : > { %1537 = sbr.rel (%p1708_p10) target bundleno = 458 (0x1ca), region = 112  ;;  %s2518_s29 = smov (!%p1708_p10), 0  }
 0x198   : > { %s2520_s30 = smov (!%p1708_p10), 0  }
 0x19e LB: >> { %v1203_v3 = vld [vmem:[%s2197_s23] sm:$0xf]  ;;  %v1205_v40 = vld [vmem:[%s2197_s23 + $0x4] sm:$0xf]  ;;  %v1207_v41 = vld [vmem:[%s2197_s23 + $0x8] sm:$0xf]  ;;  %s2205_s30 = sphi %s2520_s30, %s1197_s30   ;;  %s2201_s29 = sphi %s2518_s29, %s2669_s29   ;;  %s2197_s23 = sphi %s2668_s23, %s1308_s23   ;;  %s2193_s15 = sphi %s2667_s15, %s1309_s15  }
 0x19f   : >> { %1204 = vst [vmem:[%s2193_s15] sm:$0xf] %v1203_v3  ;;  %1206 = vst [vmem:[%s2193_s15 + $0x4] sm:$0xf] %v1205_v40  ;;  %v1209_v42 = vld [vmem:[%s2197_s23 + $0xc] sm:$0xf]  ;;  %s1303_s4 = sadd.s32 1, %s2201_s29 }
 0x1a0   : >> { %1208 = vst [vmem:[%s2193_s15 + $0x8] sm:$0xf] %v1207_v41  ;;  %v1211_v43 = vld [vmem:[%s2197_s23 + $0x10] sm:$0xf]  ;;  %v1213_v44 = vld [vmem:[%s2197_s23 + $0x14] sm:$0xf]  ;;  %p1304_p11 = scmp.ge.s32.totalorder %s1303_s4, %s2509_s20 }
 0x1a1   : >> { %1210 = vst [vmem:[%s2193_s15 + $0xc] sm:$0xf] %v1209_v42  ;;  %1212 = vst [vmem:[%s2193_s15 + $0x10] sm:$0xf] %v1211_v43  ;;  %v1215_v45 = vld [vmem:[%s2197_s23 + $0x18] sm:$0xf] }
 0x1a2   : >> { %1214 = vst [vmem:[%s2193_s15 + $0x14] sm:$0xf] %v1213_v44  ;;  %v1217_v46 = vld [vmem:[%s2197_s23 + $0x1c] sm:$0xf]  ;;  %v1219_v47 = vld [vmem:[%s2197_s23 + $0x20] sm:$0xf] }
 0x1a3   : >> { %1216 = vst [vmem:[%s2193_s15 + $0x18] sm:$0xf] %v1215_v45  ;;  %1218 = vst [vmem:[%s2193_s15 + $0x1c] sm:$0xf] %v1217_v46  ;;  %v1221_v48 = vld [vmem:[%s2197_s23 + $0x24] sm:$0xf] }
 0x1a4   : >> { %1220 = vst [vmem:[%s2193_s15 + $0x20] sm:$0xf] %v1219_v47  ;;  %v1223_v49 = vld [vmem:[%s2197_s23 + $0x28] sm:$0xf]  ;;  %v1225_v50 = vld [vmem:[%s2197_s23 + $0x2c] sm:$0xf] }
 0x1a5   : >> { %1222 = vst [vmem:[%s2193_s15 + $0x24] sm:$0xf] %v1221_v48  ;;  %1224 = vst [vmem:[%s2193_s15 + $0x28] sm:$0xf] %v1223_v49  ;;  %v1227_v51 = vld [vmem:[%s2197_s23 + $0x30] sm:$0xf] }
 0x1a6   : >> { %1226 = vst [vmem:[%s2193_s15 + $0x2c] sm:$0xf] %v1225_v50  ;;  %v1229_v52 = vld [vmem:[%s2197_s23 + $0x34] sm:$0xf]  ;;  %v1231_v53 = vld [vmem:[%s2197_s23 + $0x38] sm:$0xf] }
 0x1a7   : >> { %1228 = vst [vmem:[%s2193_s15 + $0x30] sm:$0xf] %v1227_v51  ;;  %1230 = vst [vmem:[%s2193_s15 + $0x34] sm:$0xf] %v1229_v52  ;;  %v1233_v54 = vld [vmem:[%s2197_s23 + $0x3c] sm:$0xf] }
 0x1a8   : >> { %1232 = vst [vmem:[%s2193_s15 + $0x38] sm:$0xf] %v1231_v53  ;;  %v1235_v55 = vld [vmem:[%s2197_s23 + $0x40] sm:$0xf]  ;;  %v1237_v56 = vld [vmem:[%s2197_s23 + $0x44] sm:$0xf] }
 0x1a9   : >> { %1234 = vst [vmem:[%s2193_s15 + $0x3c] sm:$0xf] %v1233_v54  ;;  %1236 = vst [vmem:[%s2193_s15 + $0x40] sm:$0xf] %v1235_v55  ;;  %v1239_v57 = vld [vmem:[%s2197_s23 + $0x48] sm:$0xf] }
 0x1aa   : >> { %1238 = vst [vmem:[%s2193_s15 + $0x44] sm:$0xf] %v1237_v56  ;;  %v1241_v58 = vld [vmem:[%s2197_s23 + $0x4c] sm:$0xf]  ;;  %v1243_v59 = vld [vmem:[%s2197_s23 + $0x50] sm:$0xf] }
 0x1ab   : >> { %1240 = vst [vmem:[%s2193_s15 + $0x48] sm:$0xf] %v1239_v57  ;;  %1242 = vst [vmem:[%s2193_s15 + $0x4c] sm:$0xf] %v1241_v58  ;;  %v1245_v60 = vld [vmem:[%s2197_s23 + $0x54] sm:$0xf] }
 0x1ac   : >> { %1244 = vst [vmem:[%s2193_s15 + $0x50] sm:$0xf] %v1243_v59  ;;  %v1247_v61 = vld [vmem:[%s2197_s23 + $0x58] sm:$0xf]  ;;  %v1249_v62 = vld [vmem:[%s2197_s23 + $0x5c] sm:$0xf] }
 0x1ad   : >> { %1246 = vst [vmem:[%s2193_s15 + $0x54] sm:$0xf] %v1245_v60  ;;  %1248 = vst [vmem:[%s2193_s15 + $0x58] sm:$0xf] %v1247_v61  ;;  %v1251_v63 = vld [vmem:[%s2197_s23 + $0x60] sm:$0xf] }
 0x1ae   : >> { %1250 = vst [vmem:[%s2193_s15 + $0x5c] sm:$0xf] %v1249_v62  ;;  %v1253_v0 = vld [vmem:[%s2197_s23 + $0x64] sm:$0xf]  ;;  %v1255_v1 = vld [vmem:[%s2197_s23 + $0x68] sm:$0xf] }
 0x1af   : >> { %1252 = vst [vmem:[%s2193_s15 + $0x60] sm:$0xf] %v1251_v63  ;;  %1254 = vst [vmem:[%s2193_s15 + $0x64] sm:$0xf] %v1253_v0  ;;  %v1257_v2 = vld [vmem:[%s2197_s23 + $0x6c] sm:$0xf] }
 0x1b0   : >> { %1256 = vst [vmem:[%s2193_s15 + $0x68] sm:$0xf] %v1255_v1  ;;  %v1259_v4 = vld [vmem:[%s2197_s23 + $0x70] sm:$0xf]  ;;  %v1261_v5 = vld [vmem:[%s2197_s23 + $0x74] sm:$0xf] }
 0x1b1   : >> { %1258 = vst [vmem:[%s2193_s15 + $0x6c] sm:$0xf] %v1257_v2  ;;  %1260 = vst [vmem:[%s2193_s15 + $0x70] sm:$0xf] %v1259_v4  ;;  %v1263_v6 = vld [vmem:[%s2197_s23 + $0x78] sm:$0xf] }
 0x1b2   : >> { %1262 = vst [vmem:[%s2193_s15 + $0x74] sm:$0xf] %v1261_v5  ;;  %v1265_v7 = vld [vmem:[%s2197_s23 + $0x7c] sm:$0xf]  ;;  %v1267_v8 = vld [vmem:[%s2197_s23 + $0x80] sm:$0xf] }
 0x1b3   : >> { %1264 = vst [vmem:[%s2193_s15 + $0x78] sm:$0xf] %v1263_v6  ;;  %1266 = vst [vmem:[%s2193_s15 + $0x7c] sm:$0xf] %v1265_v7  ;;  %v1269_v9 = vld [vmem:[%s2197_s23 + $0x84] sm:$0xf] }
 0x1b4   : >> { %1268 = vst [vmem:[%s2193_s15 + $0x80] sm:$0xf] %v1267_v8  ;;  %v1271_v10 = vld [vmem:[%s2197_s23 + $0x88] sm:$0xf]  ;;  %v1273_v11 = vld [vmem:[%s2197_s23 + $0x8c] sm:$0xf] }
 0x1b5   : >> { %1270 = vst [vmem:[%s2193_s15 + $0x84] sm:$0xf] %v1269_v9  ;;  %1272 = vst [vmem:[%s2193_s15 + $0x88] sm:$0xf] %v1271_v10  ;;  %v1275_v12 = vld [vmem:[%s2197_s23 + $0x90] sm:$0xf] }
 0x1b6   : >> { %1274 = vst [vmem:[%s2193_s15 + $0x8c] sm:$0xf] %v1273_v11  ;;  %v1277_v13 = vld [vmem:[%s2197_s23 + $0x94] sm:$0xf]  ;;  %v1279_v14 = vld [vmem:[%s2197_s23 + $0x98] sm:$0xf] }
 0x1b7   : >> { %1276 = vst [vmem:[%s2193_s15 + $0x90] sm:$0xf] %v1275_v12  ;;  %1278 = vst [vmem:[%s2193_s15 + $0x94] sm:$0xf] %v1277_v13  ;;  %v1281_v15 = vld [vmem:[%s2197_s23 + $0x9c] sm:$0xf] }
 0x1b8   : >> { %1280 = vst [vmem:[%s2193_s15 + $0x98] sm:$0xf] %v1279_v14  ;;  %v1283_v16 = vld [vmem:[%s2197_s23 + $0xa0] sm:$0xf]  ;;  %v1285_v17 = vld [vmem:[%s2197_s23 + $0xa4] sm:$0xf] }
 0x1b9   : >> { %1282 = vst [vmem:[%s2193_s15 + $0x9c] sm:$0xf] %v1281_v15  ;;  %1284 = vst [vmem:[%s2193_s15 + $0xa0] sm:$0xf] %v1283_v16  ;;  %v1287_v18 = vld [vmem:[%s2197_s23 + $0xa8] sm:$0xf] }
 0x1ba   : >> { %1286 = vst [vmem:[%s2193_s15 + $0xa4] sm:$0xf] %v1285_v17  ;;  %v1289_v19 = vld [vmem:[%s2197_s23 + $0xac] sm:$0xf]  ;;  %v1291_v20 = vld [vmem:[%s2197_s23 + $0xb0] sm:$0xf] }
 0x1bb   : >> { %1288 = vst [vmem:[%s2193_s15 + $0xa8] sm:$0xf] %v1287_v18  ;;  %1290 = vst [vmem:[%s2193_s15 + $0xac] sm:$0xf] %v1289_v19  ;;  %v1293_v21 = vld [vmem:[%s2197_s23 + $0xb4] sm:$0xf] }
 0x1bc   : >> { %1292 = vst [vmem:[%s2193_s15 + $0xb0] sm:$0xf] %v1291_v20  ;;  %v1295_v22 = vld [vmem:[%s2197_s23 + $0xb8] sm:$0xf]  ;;  %v1297_v23 = vld [vmem:[%s2197_s23 + $0xbc] sm:$0xf] }
 0x1bd   : >> { %1294 = vst [vmem:[%s2193_s15 + $0xb4] sm:$0xf] %v1293_v21  ;;  %1296 = vst [vmem:[%s2193_s15 + $0xb8] sm:$0xf] %v1295_v22  ;;  %v1299_v24 = vld [vmem:[%s2197_s23 + $0xc0] sm:$0xf] }
 0x1be   : >> { %1298 = vst [vmem:[%s2193_s15 + $0xbc] sm:$0xf] %v1297_v23  ;;  %v1301_v25 = vld [vmem:[%s2197_s23 + $0xc4] sm:$0xf]  ;;  %1300 = vst [vmem:[%s2193_s15 + $0xc0] sm:$0xf] %v1299_v24 }
 0x1bf   : >> { %1302 = vst [vmem:[%s2193_s15 + $0xc4] sm:$0xf] %v1301_v25  ;;  %s2676_s4 = smov (%p1304_p11, %s1303_s4), 0  ;;  %s1197_s30 = sadd.s32 1, %s2205_s30  }
 0x1c0   : >> { %s1306_s5 = smul.u32 200, %s2676_s4  ;;  %p1196_p12 = scmp.ge.s32.totalorder %s1197_s30, %s2509_s20 }
 0x1c1   : >> { %s2669_s29 = smov %s2676_s4 }
 0x1c2   : >> { %s1308_s23 = scalar_lea.vmem %s2423_s12, %s1306_s5 [#allocation2]   ;;  %s1309_s15 = scalar_lea.vmem %s2503_s27, %s1306_s5  }
 0x1c3   : > { %1199 = sbr.rel (!%p1196_p12) target bundleno = 414 (0x19e), region = 118 }
 0x1ca PF: > { %2133 = sdivrem.u32 %s2674_s9, 50 }
 0x1cb   : > { %s1709_s6 = smul.u32 200, %s2509_s20 }
 0x1cd   : > { %s1314_s7 = scalar_lea.vmem %s2423_s12, %s1709_s6 [#allocation2]   ;;  %s1316_s8 = scalar_lea.vmem %s2503_s27, %s1709_s6  }
 0x1d3   : > { %s2134_s10 = spop.drf %2133 }
 0x1d4   : > { %p1711_p13 = scmp.le.s32.totalorder %s2134_s10, 0 }
 0x1d5   : > { %s2207_s11 = smov (!%p1711_p13), %s1316_s8   ;;  %s2211_s14 = smov (!%p1711_p13), %s1314_s7  }
 0x1d6   : > { %1551 = sbr.rel (%p1711_p13) target bundleno = 487 (0x1e7), region = 123  ;;  %s2215_s17 = smov (!%p1711_p13), 0  }
 0x1d7   : > { %s2219_s18 = smov (!%p1711_p13), 0  }
 0x1dd LB: >> { %v1326_v26 = vld [vmem:[%s2213_s14] sm:$0xf]  ;;  %s1328_s21 = sadd.s32 1, %s2217_s17  ;;  %s1320_s18 = sadd.s32 1, %s2221_s18   ;;  %s2221_s18 = sphi %s2219_s18, %s1320_s18   ;;  %s2217_s17 = sphi %s2215_s17, %s2216_s17   ;;  %s2213_s14 = sphi %s2211_s14, %s1333_s14   ;;  %s2209_s11 = sphi %s2207_s11, %s1334_s11  }
 0x1de   : >> { %1327 = vst [vmem:[%s2209_s11] sm:$0xf] %v1326_v26  ;;  %p1329_p0 = scmp.ge.s32.totalorder %s1328_s21, %s2134_s10  ;;  %p1319_p1 = scmp.ge.s32.totalorder %s1320_s18, %s2134_s10 }
 0x1e0   : >> { %s2678_s21 = smov (%p1329_p0, %s1328_s21), 0  ;;  %1322 = sbr.rel (!%p1319_p1) target bundleno = 477 (0x1dd), region = 129 }
 0x1e1   : >> { %s1712_s22 = sshll.u32 %s2678_s21, 2  ;;  %s2216_s17 = smov %s2678_s21  }
 0x1e2   : >> { %s1333_s14 = scalar_lea.vmem %s1314_s7, %s1712_s22 [#allocation2]   ;;  %s1334_s11 = scalar_lea.vmem %s1316_s8, %s1712_s22  }
 0x1e7 PF: > { %p10_p2 = scmp.ge.s32.totalorder %s2259_s16, 6   ;;  %s2670_s12 = smov %s2185_s13 }
 0x1e8   : > { %s2671_s13 = smov %s2267_s19  ;;  %s2672_s14 = smov %s2259_s16 }
 0x1e9   :  { %12 = sbr.rel (!%p10_p2) target bundleno = 2 (0x2), region = 140 }

// kernel: _lambda_.14
= control target key start
LH: loop header
LB: loop body
LE: loop exit
PB: predicated region body
PF: predicated region fallthrough
CT: control target
= control target key end

     0   :  { %s1478_s12 = smov 0   ;;  %s1480_s13 = smov 0   ;;  %s1761_s0 = inlined_call_operand.vmem [shape: bf16[392,128], index: 0, kind: input, shape index: {}]   ;;  %s1762_s1 = inlined_call_operand.vmem [shape: bf16[128,128], index: 1, kind: input, shape index: {}]   ;;  %s1763_s2 = inlined_call_operand.vmem [shape: f32[1,128], index: 2, kind: input, shape index: {}]   ;;  %s1764_s3 = inlined_call_operand.vmem [shape: bf16[392,128], index: 3, kind: output, shape index: {}]  }
   0x1   :  { %s1482_s14 = smov 0  }
   0x2 LB: > { %s1491_s15 = sadd.s32 4294967295, %s1422_s14   ;;  %s1493_s16 = sadd.s32 1, %s1422_s14   ;;  %s1422_s14 = sphi %s1482_s14, %s1771_s14   ;;  %s1418_s13 = sphi %s1480_s13, %s1770_s13   ;;  %s1414_s12 = sphi %s1478_s12, %s1769_s12  }
   0x3   : > { %s85_s17 = ssub.s32 %s1422_s14, %s1493_s16  ;;  %s88_s18 = sadd.s32 1, %s1418_s13 }
   0x4   : > { %p86_p0 = scmp.eq.s32.totalorder %s85_s17, 0  ;;  %p98_p1 = scmp.ne.s32.totalorder %s1418_s13, %s1414_s12 }
   0x5   : > { %p99_p2 = scmp.eq.s32.totalorder %s1491_s15, 1  ;;  %p980_p3 = scmp.ge.s32.totalorder %s1422_s14, 1 }
   0x6   : > { %s1501_s19 = scalar_select %p86_p0, %s1418_s13, %s88_s18  }
   0x7   : > { %p1503_p4 = por %p99_p2, %p98_p1  ;;  %p146_p5 = scmp.lt.s32.totalorder %s1422_s14, 3 }
   0x9   : > { %p147_p6 = pnand %p980_p3, %p146_p5 }
   0xa   : > { %v1343_v0 = vld [vmem:[%s1762_s1] sm:$0xff] (!%p147_p6)   ;;  %v1456_v1 = vmov (!%p147_p6), 0.0   ;;  %v1344_v2 = vld [vmem:[%s1762_s1 + $0x8] sm:$0xff] (!%p147_p6)   ;;  %s1516_s25 = smul.u32 (!%p147_p6), 26, %s1491_s15  ;;  %vm1457_vm0 = vmmov (!%p147_p6), 0   ;;  %v1345_v3 = vld [vmem:[%s1762_s1 + $0x10] sm:$0xff] (!%p147_p6)  }
   0xb   : > { %150 = sbr.rel (%p147_p6) target bundleno = 391 (0x187), region = 32  ;;  %1167 = vmatprep.subr.bf16.mxu0 (!%p147_p6), %v1456_v1  ;;  %1235 = vmatprep.subr.bf16.mxu1 (!%p147_p6), %v1456_v1  ;;  %v1346_v4 = vld [vmem:[%s1762_s1 + $0x18] sm:$0xff] (!%p147_p6)   ;;  %v1347_v5 = vld [vmem:[%s1762_s1 + $0x20] sm:$0xff] (!%p147_p6)   ;;  %v1348_v6 = vld [vmem:[%s1762_s1 + $0x28] sm:$0xff] (!%p147_p6)   ;;  %s170_s24 = sand.u32 (!%p147_p6), 1, %s1414_s12  }
   0xc   : > { %1168 = vmatpush3.bf16.msra.mxu0 (!%p147_p6), %v1343_v0  ;;  %1243 = vmatpush3.bf16.msra.mxu1 (!%p147_p6), %v1343_v0  ;;  %p178_p7 = scmp.lt.s32.totalorder (!%p147_p6), %s1516_s25, 48  ;;  %v1349_v7 = vld [vmem:[%s1762_s1 + $0x30] sm:$0xff] (!%p147_p6)   ;;  %v1350_v8 = vld [vmem:[%s1762_s1 + $0x38] sm:$0xff] (!%p147_p6)   ;;  %v1599_v22 = vld [vmem:[%s1763_s2] ss:$0 sm:$0xff] (!%p147_p6)  ;;  %s1251_s26 = smul.u32 (!%p147_p6), 104, %s170_s24 }
   0xd   : > { %1169 = vmatprep.subr.bf16.mxu0 (!%p147_p6), %v1456_v1  ;;  %1236 = vmatprep.subr.bf16.mxu1 (!%p147_p6), %v1456_v1 }
   0xe   : > { %1183 = vmatprep.mubr.msk.bf16.mxu0 (!%p147_p6), %vm1457_vm0, %v1456_v1  ;;  %1211 = vmatprep.mubr.msk.bf16.mxu1 (!%p147_p6), %vm1457_vm0, %v1456_v1  ;;  %s1606_s12 = scalar_lea.vmem (!%p147_p6), [#allocation2], %s1251_s26  }
  0x10   : > { %1170 = vmatpush3.bf16.msra.mxu0 (!%p147_p6), %v1344_v2  ;;  %1244 = vmatpush3.bf16.msra.mxu1 (!%p147_p6), %v1344_v2 }
  0x11   : > { %1171 = vmatprep.subr.bf16.mxu0 (!%p147_p6), %v1456_v1  ;;  %1237 = vmatprep.subr.bf16.mxu1 (!%p147_p6), %v1456_v1 }
  0x12   : > { %s179_s28 = scalar_select %p178_p7, %s1516_s25, 48 }
  0x13   : > { %s669_s27 = ssub.s32 (%p1503_p4), 49, %s1516_s25 }
  0x14   : > { %s981_s29 = sshll.u32 %s179_s28, 2  ;;  %1172 = vmatpush3.bf16.msra.mxu0 %v1345_v3  ;;  %1245 = vmatpush3.bf16.msra.mxu1 %v1345_v3  ;;  %s1068_s28 = smul.u32 (%p1503_p4), 104, %s1491_s15 }
  0x15   : > { %s1534_s5 = scalar_lea.vmem %s1761_s0, %s981_s29  ;;  %1173 = vmatprep.subr.bf16.mxu0 %v1456_v1  ;;  %1238 = vmatprep.subr.bf16.mxu1 %v1456_v1  ;;  %p670_p8 = scmp.lt.s32.totalorder (%p1503_p4), %s669_s27, 26 }
  0x16   : > { %v1351_v9 = vld [vmem:[%s1534_s5] sm:$0xff]   ;;  %v1352_v10 = vld [vmem:[%s1534_s5 + $0x38] sm:$0xff]   ;;  %v1353_v11 = vld [vmem:[%s1534_s5 + $0x8] sm:$0xff]   ;;  %s1650_s4 = scalar_lea.vmem (%p1503_p4), %s1764_s3, %s1068_s28  }
  0x17   : > { %v1354_v12 = vld [vmem:[%s1534_s5 + $0x40] sm:$0xff]   ;;  %v1355_v13 = vld [vmem:[%s1534_s5 + $0x10] sm:$0xff]   ;;  %v1356_v14 = vld [vmem:[%s1534_s5 + $0x48] sm:$0xff]  }
  0x18   : > { %1174 = vmatpush3.bf16.msra.mxu0 %v1346_v4  ;;  %1246 = vmatpush3.bf16.msra.mxu1 %v1346_v4  ;;  %v1357_v15 = vld [vmem:[%s1534_s5 + $0x18] sm:$0xff]   ;;  %v1358_v16 = vld [vmem:[%s1534_s5 + $0x50] sm:$0xff]   ;;  %v1359_v17 = vld [vmem:[%s1534_s5 + $0x20] sm:$0xff]  }
  0x19   : > { %1175 = vmatprep.subr.bf16.mxu0 %v1456_v1  ;;  %1239 = vmatprep.subr.bf16.mxu1 %v1456_v1  ;;  %v1360_v18 = vld [vmem:[%s1534_s5 + $0x58] sm:$0xff]   ;;  %v1361_v19 = vld [vmem:[%s1534_s5 + $0x28] sm:$0xff]   ;;  %v1362_v20 = vld [vmem:[%s1534_s5 + $0x60] sm:$0xff]  }
  0x1a   : > { %v1363_v21 = vld [vmem:[%s1534_s5 + $0x30] sm:$0xff]  }
  0x1c   : > { %1176 = vmatpush3.bf16.msra.mxu0 %v1347_v5  ;;  %1247 = vmatpush3.bf16.msra.mxu1 %v1347_v5 }
  0x1d   : > { %1177 = vmatprep.subr.bf16.mxu0 %v1456_v1  ;;  %1240 = vmatprep.subr.bf16.mxu1 %v1456_v1 }
  0x20   : > { %1178 = vmatpush3.bf16.msra.mxu0 %v1348_v6  ;;  %1248 = vmatpush3.bf16.msra.mxu1 %v1348_v6 }
  0x21   : > { %1179 = vmatprep.subr.bf16.mxu0 %v1456_v1  ;;  %1241 = vmatprep.subr.bf16.mxu1 %v1456_v1 }
  0x24   : > { %1180 = vmatpush3.bf16.msra.mxu0 %v1349_v7  ;;  %1249 = vmatpush3.bf16.msra.mxu1 %v1349_v7 }
  0x25   : > { %1181 = vmatprep.subr.bf16.mxu0 %v1456_v1  ;;  %1242 = vmatprep.subr.bf16.mxu1 %v1456_v1 }
  0x28   : > { %1182 = vmatpush3.bf16.msra.mxu0 %v1350_v8  ;;  %1250 = vmatpush3.bf16.msra.mxu1 %v1350_v8 }
  0x2b   : > { %1184 = vmatmul.mubr.bf16.vlgmr.msra.gmra.mrb[0].mxu0 %v1351_v9  ;;  %1212 = vmatmul.mubr.bf16.vlgmr.msra.gmra.mrb[0].mxu1 %v1352_v10 }
  0x2c   : > { %1187 = vmatprep.mubr.msk.bf16.mxu0 %vm1457_vm0, %v1456_v1  ;;  %1215 = vmatprep.mubr.msk.bf16.mxu1 %vm1457_vm0, %v1456_v1 }
  0x33   : > { %1188 = vmatmul.mubr.bf16.gmra.mrb[4].mxu0 %v1353_v11  ;;  %1216 = vmatmul.mubr.bf16.gmra.mrb[4].mxu1 %v1354_v12 }
  0x34   : > { %1191 = vmatprep.mubr.msk.bf16.mxu0 %vm1457_vm0, %v1456_v1  ;;  %1219 = vmatprep.mubr.msk.bf16.mxu1 %vm1457_vm0, %v1456_v1 }
  0x3b   : > { %1192 = vmatmul.mubr.bf16.gmra.mrb[8].mxu0 %v1355_v13  ;;  %1220 = vmatmul.mubr.bf16.gmra.mrb[8].mxu1 %v1356_v14 }
  0x3c   : > { %1195 = vmatprep.mubr.msk.bf16.mxu0 %vm1457_vm0, %v1456_v1  ;;  %1223 = vmatprep.mubr.msk.bf16.mxu1 %vm1457_vm0, %v1456_v1 }
  0x43   : > { %1196 = vmatmul.mubr.bf16.gmra.mrb[12].mxu0 %v1357_v15  ;;  %1224 = vmatmul.mubr.bf16.gmra.mrb[12].mxu1 %v1358_v16 }
  0x44   : > { %1199 = vmatprep.mubr.msk.bf16.mxu0 %vm1457_vm0, %v1456_v1  ;;  %1227 = vmatprep.mubr.msk.bf16.mxu1 %vm1457_vm0, %v1456_v1 }
  0x4b   : > { %1200 = vmatmul.mubr.bf16.gmra.mrb[16].mxu0 %v1359_v17  ;;  %1228 = vmatmul.mubr.bf16.gmra.mrb[16].mxu1 %v1360_v18 }
  0x4c   : > { %1203 = vmatprep.mubr.msk.bf16.mxu0 %vm1457_vm0, %v1456_v1  ;;  %1231 = vmatprep.mubr.msk.bf16.mxu1 %vm1457_vm0, %v1456_v1 }
  0x53   : > { %1204 = vmatmul.mubr.bf16.gmra.mrb[20].mxu0 %v1361_v19  ;;  %1232 = vmatmul.mubr.bf16.gmra.mrb[20].mxu1 %v1362_v20 }
  0x54   : > { %1207 = vmatprep.mubr.msk.bf16.mxu0 %vm1457_vm0, %v1456_v1 }
  0x5b   : > { %1208 = vmatmul.mubr.bf16.gmra.mrb[24].mxu0 %v1363_v21 }
  0xfe   : > { %v402_v23 = vpop.f32.mrb[0].mxu0  ;;  %v458_v24 = vpop.f32.mrb[0].mxu1 }
  0xff   : > { %v403_v25 = vadd.f32 %v1599_v22, %v402_v23  ;;  %v1185_v26 = vpop.f32.mrb[1].mxu0  ;;  %v459_v27 = vadd.f32 %v1599_v22, %v458_v24  ;;  %v1213_v28 = vpop.f32.mrb[1].mxu1 }
 0x100   : > { %v405_v29 = vpop.f32.mrb[2].mxu0  ;;  %v461_v30 = vpop.f32.mrb[2].mxu1 }
 0x101   : > { %v406_v31 = vadd.f32 %v1599_v22, %v405_v29  ;;  %v1186_v32 = vpop.f32.mrb[3].mxu0  ;;  %v519_v33 = vmax.f32 %v459_v27, 0.0  ;;  %v462_v34 = vadd.f32 %v1599_v22, %v461_v30  ;;  %v1214_v35 = vpop.f32.mrb[3].mxu1  ;;  %v505_v36 = vmax.f32 %v403_v25, 0.0 }
 0x103   : > { %v506_v37 = vmax.f32 %v406_v31, 0.0  ;;  %v520_v38 = vmax.f32 %v462_v34, 0.0 }
 0x105   : > { %v1072_v39 = vpack.c.bf16 %v506_v37, %v505_v36  ;;  %v1107_v40 = vpack.c.bf16 %v520_v38, %v519_v33 }
 0x106   : > { %v410_v41 = vpop.f32.mrb[4].mxu0  ;;  %v466_v42 = vpop.f32.mrb[4].mxu1 }
 0x107   : > { %1073 = vst [vmem:[%s1606_s12] sm:$0xff] %v1072_v39   ;;  %1140 = vst [vmem:[%s1606_s12 + $0x38] sm:$0xff] %v1107_v40   ;;  %v411_v43 = vadd.f32 %v1599_v22, %v410_v41  ;;  %v1189_v44 = vpop.f32.mrb[5].mxu0  ;;  %v467_v45 = vadd.f32 %v1599_v22, %v466_v42  ;;  %v1217_v46 = vpop.f32.mrb[5].mxu1 }
 0x108   : > { %v413_v47 = vpop.f32.mrb[6].mxu0  ;;  %v469_v48 = vpop.f32.mrb[6].mxu1 }
 0x109   : > { %v414_v49 = vadd.f32 %v1599_v22, %v413_v47  ;;  %v1190_v50 = vpop.f32.mrb[7].mxu0  ;;  %v521_v51 = vmax.f32 %v467_v45, 0.0  ;;  %v470_v52 = vadd.f32 %v1599_v22, %v469_v48  ;;  %v1218_v53 = vpop.f32.mrb[7].mxu1  ;;  %v507_v54 = vmax.f32 %v411_v43, 0.0 }
 0x10b   : > { %v508_v55 = vmax.f32 %v414_v49, 0.0  ;;  %v522_v56 = vmax.f32 %v470_v52, 0.0 }
 0x10d   : > { %v1077_v57 = vpack.c.bf16 %v508_v55, %v507_v54  ;;  %v1112_v58 = vpack.c.bf16 %v522_v56, %v521_v51 }
 0x10e   : > { %v418_v59 = vpop.f32.mrb[8].mxu0  ;;  %v474_v60 = vpop.f32.mrb[8].mxu1 }
 0x10f   : > { %1134 = vst [vmem:[%s1606_s12 + $0x8] sm:$0xff] %v1077_v57   ;;  %1141 = vst [vmem:[%s1606_s12 + $0x40] sm:$0xff] %v1112_v58   ;;  %v419_v61 = vadd.f32 %v1599_v22, %v418_v59  ;;  %v1193_v62 = vpop.f32.mrb[9].mxu0  ;;  %v475_v63 = vadd.f32 %v1599_v22, %v474_v60  ;;  %v1221_v0 = vpop.f32.mrb[9].mxu1 }
 0x110   : > { %v421_v1 = vpop.f32.mrb[10].mxu0  ;;  %v477_v2 = vpop.f32.mrb[10].mxu1 }
 0x111   : > { %v422_v3 = vadd.f32 %v1599_v22, %v421_v1  ;;  %v1194_v4 = vpop.f32.mrb[11].mxu0  ;;  %v523_v5 = vmax.f32 %v475_v63, 0.0  ;;  %v478_v6 = vadd.f32 %v1599_v22, %v477_v2  ;;  %v1222_v7 = vpop.f32.mrb[11].mxu1  ;;  %v509_v8 = vmax.f32 %v419_v61, 0.0 }
 0x113   : > { %v510_v9 = vmax.f32 %v422_v3, 0.0  ;;  %v524_v10 = vmax.f32 %v478_v6, 0.0 }
 0x115   : > { %v1082_v11 = vpack.c.bf16 %v510_v9, %v509_v8  ;;  %v1117_v12 = vpack.c.bf16 %v524_v10, %v523_v5 }
 0x116   : > { %v426_v13 = vpop.f32.mrb[12].mxu0  ;;  %v482_v14 = vpop.f32.mrb[12].mxu1 }
 0x117   : > { %1135 = vst [vmem:[%s1606_s12 + $0x10] sm:$0xff] %v1082_v11   ;;  %1142 = vst [vmem:[%s1606_s12 + $0x48] sm:$0xff] %v1117_v12   ;;  %v427_v15 = vadd.f32 %v1599_v22, %v426_v13  ;;  %v1197_v16 = vpop.f32.mrb[13].mxu0  ;;  %v483_v17 = vadd.f32 %v1599_v22, %v482_v14  ;;  %v1225_v18 = vpop.f32.mrb[13].mxu1 }
 0x118   : > { %v429_v19 = vpop.f32.mrb[14].mxu0  ;;  %v485_v20 = vpop.f32.mrb[14].mxu1 }
 0x119   : > { %v430_v21 = vadd.f32 %v1599_v22, %v429_v19  ;;  %v1198_v23 = vpop.f32.mrb[15].mxu0  ;;  %v525_v24 = vmax.f32 %v483_v17, 0.0  ;;  %v486_v25 = vadd.f32 %v1599_v22, %v485_v20  ;;  %v1226_v26 = vpop.f32.mrb[15].mxu1  ;;  %v511_v27 = vmax.f32 %v427_v15, 0.0 }
 0x11b   : > { %v512_v28 = vmax.f32 %v430_v21, 0.0  ;;  %v526_v29 = vmax.f32 %v486_v25, 0.0 }
 0x11d   : > { %v1087_v30 = vpack.c.bf16 %v512_v28, %v511_v27  ;;  %v1122_v31 = vpack.c.bf16 %v526_v29, %v525_v24 }
 0x11e   : > { %v434_v32 = vpop.f32.mrb[16].mxu0  ;;  %v490_v33 = vpop.f32.mrb[16].mxu1 }
 0x11f   : > { %1136 = vst [vmem:[%s1606_s12 + $0x18] sm:$0xff] %v1087_v30   ;;  %1143 = vst [vmem:[%s1606_s12 + $0x50] sm:$0xff] %v1122_v31   ;;  %v435_v34 = vadd.f32 %v1599_v22, %v434_v32  ;;  %v1201_v35 = vpop.f32.mrb[17].mxu0  ;;  %v491_v36 = vadd.f32 %v1599_v22, %v490_v33  ;;  %v1229_v37 = vpop.f32.mrb[17].mxu1 }
 0x120   : > { %v437_v38 = vpop.f32.mrb[18].mxu0  ;;  %v493_v39 = vpop.f32.mrb[18].mxu1 }
 0x121   : > { %v438_v40 = vadd.f32 %v1599_v22, %v437_v38  ;;  %v1202_v41 = vpop.f32.mrb[19].mxu0  ;;  %v527_v42 = vmax.f32 %v491_v36, 0.0  ;;  %v494_v43 = vadd.f32 %v1599_v22, %v493_v39  ;;  %v1230_v44 = vpop.f32.mrb[19].mxu1  ;;  %v513_v45 = vmax.f32 %v435_v34, 0.0 }
 0x123   : > { %v514_v46 = vmax.f32 %v438_v40, 0.0  ;;  %v528_v47 = vmax.f32 %v494_v43, 0.0 }
 0x125   : > { %v1092_v48 = vpack.c.bf16 %v514_v46, %v513_v45  ;;  %v1127_v49 = vpack.c.bf16 %v528_v47, %v527_v42 }
 0x126   : > { %v442_v50 = vpop.f32.mrb[20].mxu0  ;;  %v498_v51 = vpop.f32.mrb[20].mxu1 }
 0x127   : > { %1137 = vst [vmem:[%s1606_s12 + $0x20] sm:$0xff] %v1092_v48   ;;  %1144 = vst [vmem:[%s1606_s12 + $0x58] sm:$0xff] %v1127_v49   ;;  %v443_v52 = vadd.f32 %v1599_v22, %v442_v50  ;;  %v1205_v53 = vpop.f32.mrb[21].mxu0  ;;  %v499_v54 = vadd.f32 %v1599_v22, %v498_v51  ;;  %v1233_v55 = vpop.f32.mrb[21].mxu1 }
 0x128   : > { %v445_v56 = vpop.f32.mrb[22].mxu0  ;;  %v501_v57 = vpop.f32.mrb[22].mxu1 }
 0x129   : > { %v446_v58 = vadd.f32 %v1599_v22, %v445_v56  ;;  %v1206_v59 = vpop.f32.mrb[23].mxu0  ;;  %v529_v60 = vmax.f32 %v499_v54, 0.0  ;;  %v502_v61 = vadd.f32 %v1599_v22, %v501_v57  ;;  %v1234_v62 = vpop.f32.mrb[23].mxu1  ;;  %v515_v63 = vmax.f32 %v443_v52, 0.0 }
 0x12b   : > { %v516_v0 = vmax.f32 %v446_v58, 0.0  ;;  %v530_v1 = vmax.f32 %v502_v61, 0.0 }
 0x12d   : > { %v1097_v2 = vpack.c.bf16 %v516_v0, %v515_v63  ;;  %v1132_v3 = vpack.c.bf16 %v530_v1, %v529_v60 }
 0x12e   : > { %v450_v4 = vpop.f32.mrb[24].mxu0 }
 0x12f   : > { %1138 = vst [vmem:[%s1606_s12 + $0x28] sm:$0xff] %v1097_v2   ;;  %1145 = vst [vmem:[%s1606_s12 + $0x60] sm:$0xff] %v1132_v3   ;;  %v451_v5 = vadd.f32 %v1599_v22, %v450_v4  ;;  %v1209_v6 = vpop.f32.mrb[25].mxu0 }
 0x130   : > { %v453_v7 = vpop.f32.mrb[26].mxu0 }
 0x131   : > { %v454_v8 = vadd.f32 %v1599_v22, %v453_v7  ;;  %v1210_v9 = vpop.f32.mrb[27].mxu0  ;;  %v517_v10 = vmax.f32 %v451_v5, 0.0  ;;  %667 = sbr.rel (!%p1503_p4) target bundleno = 391 (0x187), region = 36 }
 0x133   : > { %v518_v11 = vmax.f32 %v454_v8, 0.0 }
 0x135   : > { %v1102_v12 = vpack.c.bf16 %v518_v11, %v517_v10 }
 0x137   : > { %1139 = vst [vmem:[%s1606_s12 + $0x30] sm:$0xff] %v1102_v12  }
 0x138   : > { %s1773_s27 = smov (!%p670_p8, %s669_s27), 26 }
 0x139   : > { %s1030_s5 = sshll.u32 %s1773_s27, 6 }
 0x13a   : > { %p1033_p9 = scmp.eq.s32.totalorder %s1030_s5, 0 }
 0x13b   : > { %1364 = sdivrem.u32 (!%p1033_p9), %s1773_s27, 26 }
 0x13c   : > { %678 = sbr.rel (%p1033_p9) target bundleno = 391 (0x187), region = 40 }
 0x144   : > { %s1656_s20 = spop.drf %1364 }
 0x145   : > { %p1034_p10 = scmp.le.s32.totalorder %s1656_s20, 0 }
 0x146   : > { %s1766_s15 = smov (!%p1034_p10), %s1650_s4  ;;  %s1767_s25 = smov (!%p1034_p10), %s1606_s12 }
 0x147   : > { %933 = sbr.rel (%p1034_p10) target bundleno = 362 (0x16a), region = 112  ;;  %s1665_s6 = smov (!%p1034_p10), 0  }
 0x148   : > { %s1667_s7 = smov (!%p1034_p10), 0  }
 0x14e LB: >> { %v695_v22 = vld [vmem:[%s1430_s25] sm:$0xf]  ;;  %v697_v13 = vld [vmem:[%s1430_s25 + $0x4] sm:$0xf]  ;;  %v699_v14 = vld [vmem:[%s1430_s25 + $0x8] sm:$0xf]  ;;  %s1438_s7 = sphi %s1667_s7, %s689_s7   ;;  %s1434_s6 = sphi %s1665_s6, %s1768_s6   ;;  %s1430_s25 = sphi %s1767_s25, %s752_s25   ;;  %s1426_s15 = sphi %s1766_s15, %s753_s15  }
 0x14f   : >> { %696 = vst [vmem:[%s1426_s15] sm:$0xf] %v695_v22  ;;  %698 = vst [vmem:[%s1426_s15 + $0x4] sm:$0xf] %v697_v13  ;;  %v701_v15 = vld [vmem:[%s1430_s25 + $0xc] sm:$0xf]  ;;  %s747_s8 = sadd.s32 1, %s1434_s6 }
 0x150   : >> { %700 = vst [vmem:[%s1426_s15 + $0x8] sm:$0xf] %v699_v14  ;;  %v703_v16 = vld [vmem:[%s1430_s25 + $0x10] sm:$0xf]  ;;  %v705_v17 = vld [vmem:[%s1430_s25 + $0x14] sm:$0xf]  ;;  %p748_p11 = scmp.ge.s32.totalorder %s747_s8, %s1656_s20 }
 0x151   : >> { %702 = vst [vmem:[%s1426_s15 + $0xc] sm:$0xf] %v701_v15  ;;  %704 = vst [vmem:[%s1426_s15 + $0x10] sm:$0xf] %v703_v16  ;;  %v707_v18 = vld [vmem:[%s1430_s25 + $0x18] sm:$0xf] }
 0x152   : >> { %706 = vst [vmem:[%s1426_s15 + $0x14] sm:$0xf] %v705_v17  ;;  %v709_v19 = vld [vmem:[%s1430_s25 + $0x1c] sm:$0xf]  ;;  %v711_v20 = vld [vmem:[%s1430_s25 + $0x20] sm:$0xf] }
 0x153   : >> { %708 = vst [vmem:[%s1426_s15 + $0x18] sm:$0xf] %v707_v18  ;;  %710 = vst [vmem:[%s1426_s15 + $0x1c] sm:$0xf] %v709_v19  ;;  %v713_v21 = vld [vmem:[%s1430_s25 + $0x24] sm:$0xf] }
 0x154   : >> { %712 = vst [vmem:[%s1426_s15 + $0x20] sm:$0xf] %v711_v20  ;;  %v715_v23 = vld [vmem:[%s1430_s25 + $0x28] sm:$0xf]  ;;  %v717_v24 = vld [vmem:[%s1430_s25 + $0x2c] sm:$0xf] }
 0x155   : >> { %714 = vst [vmem:[%s1426_s15 + $0x24] sm:$0xf] %v713_v21  ;;  %716 = vst [vmem:[%s1426_s15 + $0x28] sm:$0xf] %v715_v23  ;;  %v719_v25 = vld [vmem:[%s1430_s25 + $0x30] sm:$0xf] }
 0x156   : >> { %718 = vst [vmem:[%s1426_s15 + $0x2c] sm:$0xf] %v717_v24  ;;  %v721_v26 = vld [vmem:[%s1430_s25 + $0x34] sm:$0xf]  ;;  %v723_v27 = vld [vmem:[%s1430_s25 + $0x38] sm:$0xf] }
 0x157   : >> { %720 = vst [vmem:[%s1426_s15 + $0x30] sm:$0xf] %v719_v25  ;;  %722 = vst [vmem:[%s1426_s15 + $0x34] sm:$0xf] %v721_v26  ;;  %v725_v28 = vld [vmem:[%s1430_s25 + $0x3c] sm:$0xf] }
 0x158   : >> { %724 = vst [vmem:[%s1426_s15 + $0x38] sm:$0xf] %v723_v27  ;;  %v727_v29 = vld [vmem:[%s1430_s25 + $0x40] sm:$0xf]  ;;  %v729_v30 = vld [vmem:[%s1430_s25 + $0x44] sm:$0xf] }
 0x159   : >> { %726 = vst [vmem:[%s1426_s15 + $0x3c] sm:$0xf] %v725_v28  ;;  %728 = vst [vmem:[%s1426_s15 + $0x40] sm:$0xf] %v727_v29  ;;  %v731_v31 = vld [vmem:[%s1430_s25 + $0x48] sm:$0xf] }
 0x15a   : >> { %730 = vst [vmem:[%s1426_s15 + $0x44] sm:$0xf] %v729_v30  ;;  %v733_v32 = vld [vmem:[%s1430_s25 + $0x4c] sm:$0xf]  ;;  %v735_v33 = vld [vmem:[%s1430_s25 + $0x50] sm:$0xf] }
 0x15b   : >> { %732 = vst [vmem:[%s1426_s15 + $0x48] sm:$0xf] %v731_v31  ;;  %734 = vst [vmem:[%s1426_s15 + $0x4c] sm:$0xf] %v733_v32  ;;  %v737_v34 = vld [vmem:[%s1430_s25 + $0x54] sm:$0xf] }
 0x15c   : >> { %736 = vst [vmem:[%s1426_s15 + $0x50] sm:$0xf] %v735_v33  ;;  %v739_v35 = vld [vmem:[%s1430_s25 + $0x58] sm:$0xf]  ;;  %v741_v36 = vld [vmem:[%s1430_s25 + $0x5c] sm:$0xf] }
 0x15d   : >> { %738 = vst [vmem:[%s1426_s15 + $0x54] sm:$0xf] %v737_v34  ;;  %740 = vst [vmem:[%s1426_s15 + $0x58] sm:$0xf] %v739_v35  ;;  %v743_v37 = vld [vmem:[%s1430_s25 + $0x60] sm:$0xf] }
 0x15e   : >> { %742 = vst [vmem:[%s1426_s15 + $0x5c] sm:$0xf] %v741_v36  ;;  %v745_v38 = vld [vmem:[%s1430_s25 + $0x64] sm:$0xf]  ;;  %744 = vst [vmem:[%s1426_s15 + $0x60] sm:$0xf] %v743_v37 }
 0x15f   : >> { %746 = vst [vmem:[%s1426_s15 + $0x64] sm:$0xf] %v745_v38  ;;  %s1775_s8 = smov (%p748_p11, %s747_s8), 0  ;;  %s689_s7 = sadd.s32 1, %s1438_s7  }
 0x160   : >> { %s750_s9 = smul.u32 104, %s1775_s8  ;;  %p688_p12 = scmp.ge.s32.totalorder %s689_s7, %s1656_s20 }
 0x161   : >> { %s1768_s6 = smov %s1775_s8 }
 0x162   : >> { %s752_s25 = scalar_lea.vmem %s1606_s12, %s750_s9 [#allocation2]   ;;  %s753_s15 = scalar_lea.vmem %s1650_s4, %s750_s9  }
 0x163   : > { %691 = sbr.rel (!%p688_p12) target bundleno = 334 (0x14e), region = 118 }
 0x16a PF: > { %1366 = sdivrem.u32 %s1773_s27, 26 }
 0x16b   : > { %s1035_s10 = smul.u32 104, %s1656_s20 }
 0x16d   : > { %s758_s11 = scalar_lea.vmem %s1606_s12, %s1035_s10 [#allocation2]   ;;  %s760_s14 = scalar_lea.vmem %s1650_s4, %s1035_s10  }
 0x173   : > { %s1367_s17 = spop.drf %1366 }
 0x174   : > { %p1037_p13 = scmp.le.s32.totalorder %s1367_s17, 0 }
 0x175   : > { %s1440_s18 = smov (!%p1037_p13), %s760_s14   ;;  %s1444_s21 = smov (!%p1037_p13), %s758_s11  }
 0x176   : > { %947 = sbr.rel (%p1037_p13) target bundleno = 391 (0x187), region = 123  ;;  %s1448_s22 = smov (!%p1037_p13), 0  }
 0x177   : > { %s1452_s23 = smov (!%p1037_p13), 0  }
 0x17d LB: >> { %v770_v39 = vld [vmem:[%s1446_s21] sm:$0xf]  ;;  %s772_s24 = sadd.s32 1, %s1450_s22  ;;  %s764_s23 = sadd.s32 1, %s1454_s23   ;;  %s1454_s23 = sphi %s1452_s23, %s764_s23   ;;  %s1450_s22 = sphi %s1448_s22, %s1449_s22   ;;  %s1446_s21 = sphi %s1444_s21, %s777_s21   ;;  %s1442_s18 = sphi %s1440_s18, %s778_s18  }
 0x17e   : >> { %771 = vst [vmem:[%s1442_s18] sm:$0xf] %v770_v39  ;;  %p773_p0 = scmp.ge.s32.totalorder %s772_s24, %s1367_s17  ;;  %p763_p1 = scmp.ge.s32.totalorder %s764_s23, %s1367_s17 }
 0x180   : >> { %s1777_s24 = smov (%p773_p0, %s772_s24), 0  ;;  %766 = sbr.rel (!%p763_p1) target bundleno = 381 (0x17d), region = 129 }
 0x181   : >> { %s1038_s26 = sshll.u32 %s1777_s24, 2  ;;  %s1449_s22 = smov %s1777_s24  }
 0x182   : >> { %s777_s21 = scalar_lea.vmem %s758_s11, %s1038_s26 [#allocation2]   ;;  %s778_s18 = scalar_lea.vmem %s760_s14, %s1038_s26  }
 0x187 PF: > { %p10_p2 = scmp.ge.s32.totalorder %s1493_s16, 4   ;;  %s1769_s12 = smov %s1418_s13 }
 0x188   : > { %s1770_s13 = smov %s1501_s19  ;;  %s1771_s14 = smov %s1493_s16 }
 0x189   :  { %12 = sbr.rel (!%p10_p2) target bundleno = 2 (0x2), region = 140 }

// kernel: _lambda_.16
= control target key start
LH: loop header
LB: loop body
LE: loop exit
PB: predicated region body
PF: predicated region fallthrough
CT: control target
= control target key end

     0   :  { %vm248_vm0 = vsmask.f32 7424  ;;  %vm1164_vm1 = vcmask 1046528   ;;  %s3644_s1 = inlined_call_operand.vmem [shape: bf16[3,128,128], index: 1, kind: input, shape index: {}]   ;;  %s3645_s0 = inlined_call_operand.vmem [shape: bf16[450,128], index: 0, kind: input, shape index: {}]   ;;  %s3646_s2 = inlined_call_operand.vmem [shape: f32[1,128], index: 2, kind: input, shape index: {}]   ;;  %s3647_s3 = inlined_call_operand.vmem [shape: bf16[448,128], index: 3, kind: output, shape index: {}]  }
   0x1   :  { %v2832_v0 = vld [vmem:[%s3644_s1 + $0x40] sm:$0xff]   ;;  %v2834_v2 = vld [vmem:[%s3644_s1 + $0x48] sm:$0xff]   ;;  %v2836_v4 = vld [vmem:[%s3644_s1 + $0x50] sm:$0xff]  }
   0x2   :  { %v2912_v1 = vld [vmem:[%s3644_s1] sm:$0xff]   ;;  %2488 = vmatprep.subr.bf16.mxu1 %v2832_v0  ;;  %v2921_v3 = vld [vmem:[%s3644_s1 + $0x8] sm:$0xff]   ;;  %v2931_v5 = vld [vmem:[%s3644_s1 + $0x10] sm:$0xff]  }
   0x3   :  { %2560 = vmatprep.subr.bf16.mxu0 %v2912_v1  ;;  %2489 = vmatpush3.bf16.msra.mxu1 %v2832_v0  ;;  %v2838_v6 = vld [vmem:[%s3644_s1 + $0x58] sm:$0xff]   ;;  %v2840_v8 = vld [vmem:[%s3644_s1 + $0x60] sm:$0xff]   ;;  %v2842_v10 = vld [vmem:[%s3644_s1 + $0x68] sm:$0xff]  }
   0x4   :  { %2561 = vmatpush3.bf16.msra.mxu0 %v2912_v1  ;;  %2490 = vmatprep.subr.bf16.mxu1 %v2834_v2  ;;  %v2941_v7 = vld [vmem:[%s3644_s1 + $0x18] sm:$0xff]   ;;  %v2951_v9 = vld [vmem:[%s3644_s1 + $0x20] sm:$0xff]   ;;  %v2959_v11 = vld [vmem:[%s3644_s1 + $0x28] sm:$0xff]  }
   0x5   :  { %2562 = vmatprep.subr.bf16.mxu0 %v2921_v3  ;;  %v15_v12 = vld [vmem:[%s3645_s0] sm:$0xf]  ;;  %v2968_v13 = vld [vmem:[%s3645_s0 + $0x4] sm:$0xf]  ;;  %v2975_v15 = vld [vmem:[%s3645_s0 + $0x8] sm:$0xff]  }
   0x6   :  { %v2030_v14 = vcombine.low %v15_v12, %v2968_v13  ;;  %v257_v18 = vshll.u32 %v2975_v15, 16  ;;  %v2981_v19 = vld [vmem:[%s3645_s0 + $0x10] sm:$0xff]   ;;  %v2996_v24 = vld [vmem:[%s3645_s0 + $0x18] sm:$0xff]   ;;  %v261_v27 = vshrl.u32 %v2975_v15, 16  ;;  %v3016_v33 = vld [vmem:[%s3645_s0 + $0x20] sm:$0xff]  }
   0x7   :  { %2491 = vmatpush3.bf16.msra.mxu1 %v2834_v2  ;;  %v2844_v20 = vld [vmem:[%s3644_s1 + $0x70] sm:$0xff]   ;;  %v2846_v25 = vld [vmem:[%s3644_s1 + $0x78] sm:$0xff]   ;;  %v265_v28 = vshll.u32 %v2981_v19, 16  ;;  %v269_v31 = vshrl.u32 %v2981_v19, 16  ;;  %v273_v32 = vshll.u32 %v2996_v24, 16  ;;  %v3022_v36 = vld [vmem:[%s3645_s0 + $0x28] sm:$0xff]  }
   0x8   :  { %2563 = vmatpush3.bf16.msra.mxu0 %v2921_v3  ;;  %2492 = vmatprep.subr.bf16.mxu1 %v2836_v4  ;;  %v250_v16 = vshrl.u32 %v2030_v14, 16  ;;  %v252_v17 = vshll.u32 %v2030_v14, 16  ;;  %v2991_v21 = vld [vmem:[%s3644_s1 + $0x30] sm:$0xff]   ;;  %v259_v23 = vrot.slane %v257_v18, 1  ;;  %v3008_v29 = vld [vmem:[%s3644_s1 + $0x38] sm:$0xff]   ;;  %v2851_v37 = vld [vmem:[%s3644_s1 + $0x80] sm:$0xff]  }
   0x9   :  { %2564 = vmatprep.subr.bf16.mxu0 %v2931_v5  ;;  %2576 = vmatprep.mubr.bf16.mxu0 %v2030_v14  ;;  %v267_v35 = vrot.slane %v265_v28, 1  ;;  %v275_v39 = vrot.slane %v273_v32, 1  ;;  %v281_v40 = vshll.u32 %v3016_v33, 16  ;;  %v277_v42 = vshrl.u32 %v2996_v24, 16  ;;  %v2853_v43 = vld [vmem:[%s3644_s1 + $0x88] sm:$0xff]   ;;  %v3042_v47 = vld [vmem:[%s3645_s0 + $0x30] sm:$0xff]  }
   0xa   :  { %v254_v22 = vrot.slane %v252_v17, 1  ;;  %v263_v34 = vor.u32 %v261_v27, %v259_v23  ;;  %v285_v44 = vshrl.u32 %v3016_v33, 16  ;;  %v289_v45 = vshll.u32 %v3022_v36, 16  ;;  %v3047_v49 = vld [vmem:[%s3645_s0 + $0x38] sm:$0xff]   ;;  %v3052_v50 = vld [vmem:[%s3645_s0 + $0x40] sm:$0xff]   ;;  %v2855_v52 = vld [vmem:[%s3644_s1 + $0x90] sm:$0xff]  }
   0xb   :  { %2493 = vmatpush3.bf16.msra.mxu1 %v2836_v4  ;;  %v271_v38 = vor.u32 %v269_v31, %v267_v35  ;;  %v283_v48 = vrot.slane %v281_v40, 1  ;;  %v279_v51 = vor.u32 %v277_v42, %v275_v39  ;;  %v3062_v55 = vld [vmem:[%s3645_s0 + $0x48] sm:$0xff]   ;;  %v297_v56 = vshll.u32 %v3042_v47, 16  ;;  %v3069_v57 = vld [vmem:[%s3645_s0 + $0x50] sm:$0xff]   ;;  %v2858_v2 = vld [vmem:[%s3644_s1 + $0x98] sm:$0xff]  }
   0xc   :  { %2565 = vmatpush3.bf16.msra.mxu0 %v2931_v5  ;;  %2494 = vmatprep.subr.bf16.mxu1 %v2838_v6  ;;  %v255_v26 = vor.u32 %v254_v22, %v250_v16  ;;  %v268_v41 = vsel %vm248_vm0, %v263_v34, %v267_v35  ;;  %v291_v54 = vrot.slane %v289_v45, 1  ;;  %v293_v58 = vshrl.u32 %v3022_v36, 16  ;;  %v2861_v14 = vld [vmem:[%s3644_s1 + $0xa0] sm:$0xff]   ;;  %v3113_v27 = vld [vmem:[%s3645_s0 + $0x88] sm:$0xff]   ;;  %v3118_v28 = vld [vmem:[%s3645_s0 + $0x58] sm:$0xff]  }
   0xd   :  { %2566 = vmatprep.subr.bf16.mxu0 %v2941_v7  ;;  %v276_v46 = vsel %vm248_vm0, %v271_v38, %v275_v39  ;;  %v287_v53 = vor.u32 %v285_v44, %v283_v48  ;;  %v284_v59 = vsel %vm248_vm0, %v279_v51, %v283_v48  ;;  %v305_v60 = vshll.u32 %v3047_v49, 16  ;;  %v3127_v31 = vld [vmem:[%s3645_s0 + $0x90] sm:$0xff]   ;;  %v2864_v34 = vld [vmem:[%s3644_s1 + $0xa8] sm:$0xff]   ;;  %v3136_v35 = vld [vmem:[%s3645_s0 + $0x60] sm:$0xff]  }
   0xe   :  { %v260_v30 = vsel %vm248_vm0, %v255_v26, %v259_v23  ;;  %v313_v61 = vshll.u32 %v3052_v50, 16  ;;  %v301_v63 = vshrl.u32 %v3042_v47, 16  ;;  %v321_v0 = vshll.u32 %v3062_v55, 16  ;;  %v3154_v51 = vld [vmem:[%s3645_s0 + $0xa0] sm:$0xff]  }
   0xf   :  { %2495 = vmatpush3.bf16.msra.mxu1 %v2838_v6  ;;  %2504 = vmatprep.mubr.bf16.mxu1 %v260_v30  ;;  %v292_v62 = vsel %vm248_vm0, %v287_v53, %v291_v54  ;;  %v295_v4 = vor.u32 %v293_v58, %v291_v54  ;;  %v309_v6 = vshrl.u32 %v3047_v49, 16  ;;  %v317_v16 = vshrl.u32 %v3052_v50, 16  ;;  %v2867_v58 = vld [vmem:[%s3644_s1 + $0xb0] sm:$0xff]  }
  0x10   :  { %2567 = vmatpush3.bf16.msra.mxu0 %v2941_v7  ;;  %2496 = vmatprep.subr.bf16.mxu1 %v2840_v8  ;;  %v315_v12 = vrot.slane %v313_v61, 1  ;;  %v325_v17 = vshrl.u32 %v3062_v55, 16  ;;  %v385_v42 = vshll.u32 %v3113_v27, 16  ;;  %v393_v48 = vshll.u32 %v3127_v31, 16 }
  0x11   :  { %2568 = vmatprep.subr.bf16.mxu0 %v2951_v9  ;;  %v397_v54 = vshrl.u32 %v3127_v31, 16 }
  0x12   :  { %v319_v44 = vor.u32 %v317_v16, %v315_v12  ;;  %v387_v53 = vrot.slane %v385_v42, 1  ;;  %v395_v61 = vrot.slane %v393_v48, 1  ;;  %v3230_v48 = vld [vmem:[%s3645_s0 + $0xc8] sm:$0xff]  }
  0x13   :  { %2497 = vmatpush3.bf16.msra.mxu1 %v2840_v8  ;;  %v3089_v8 = vld [vmem:[%s3645_s0 + $0x78] sm:$0xff]   ;;  %3652 = vst [vmem:[#allocation2_spill] sm:$0xff] %v3230_v48 }
  0x14   :  { %2569 = vmatpush3.bf16.msra.mxu0 %v2951_v9  ;;  %2498 = vmatprep.subr.bf16.mxu1 %v2842_v10  ;;  %v369_v22 = vshll.u32 %v3089_v8, 16  ;;  %v373_v26 = vshrl.u32 %v3089_v8, 16 }
  0x15   :  { %2570 = vmatprep.subr.bf16.mxu0 %v2959_v11 }
  0x16   :  { %v3122_v30 = vrot.slane %v369_v22, 1  ;;  %v413_v22 = vshrl.u32 %v3154_v51, 16 }
  0x17   :  { %2499 = vmatpush3.bf16.msra.mxu1 %v2842_v10  ;;  %v307_v10 = vrot.slane %v305_v60, 1 }
  0x18   :  { %2571 = vmatpush3.bf16.msra.mxu0 %v2959_v11  ;;  %2500 = vmatprep.subr.bf16.mxu1 %v2844_v20 }
  0x19   :  { %2572 = vmatprep.subr.bf16.mxu0 %v2991_v21  ;;  %v311_v40 = vor.u32 %v309_v6, %v307_v10 }
  0x1b   :  { %2501 = vmatpush3.bf16.msra.mxu1 %v2844_v20  ;;  %v3098_v20 = vrot.slane %v321_v0, 1 }
  0x1c   :  { %2573 = vmatpush3.bf16.msra.mxu0 %v2991_v21  ;;  %2502 = vmatprep.subr.bf16.mxu1 %v2846_v25 }
  0x1d   :  { %2574 = vmatprep.subr.bf16.mxu0 %v3008_v29 }
  0x1f   :  { %2503 = vmatpush3.bf16.msra.mxu1 %v2846_v25  ;;  %v3107_v25 = vld [vmem:[%s3645_s0 + $0x80] sm:$0xff]  }
  0x20   :  { %2575 = vmatpush3.bf16.msra.mxu0 %v3008_v29  ;;  %2704 = vmatprep.subr.bf16.mxu1 %v2912_v1  ;;  %v381_v38 = vshrl.u32 %v3107_v25, 16 }
  0x21   :  { %2632 = vmatprep.subr.bf16.mxu0 %v2851_v37 }
  0x22   :  { %2505 = vmatmul.mubr.bf16.vlgmr.msra.gmra.mrb[0].mxu1 %v268_v41  ;;  %v375_v41 = vor.u32 %v373_v26, %v3122_v30  ;;  %v3201_v26 = vld [vmem:[%s3645_s0 + $0x68] sm:$0xff]  }
  0x23   :  { %2577 = vmatmul.mubr.bf16.vlgmr.msra.gmra.mrb[0].mxu0 %v2975_v15  ;;  %2712 = vmatpush3.bf16.msra.mxu1 %v2912_v1  ;;  %v299_v1 = vrot.slane %v297_v56, 1  ;;  %v341_v56 = vshrl.u32 %v3118_v28, 16 }
  0x24   :  { %2633 = vmatpush3.bf16.msra.mxu0 %v2851_v37  ;;  %2508 = vmatprep.mubr.bf16.mxu1 %v276_v46  ;;  %v377_v37 = vshll.u32 %v3107_v25, 16  ;;  %v389_v46 = vshrl.u32 %v3113_v27, 16 }
  0x25   :  { %2580 = vmatprep.mubr.bf16.mxu0 %v2981_v19  ;;  %2634 = vmatprep.subr.bf16.mxu0 %v2853_v43  ;;  %v303_v18 = vor.u32 %v301_v63, %v299_v1  ;;  %v300_v32 = vsel %vm248_vm0, %v295_v4, %v299_v1  ;;  %v345_v4 = vshll.u32 %v3136_v35, 16 }
  0x26   :  { %2705 = vmatprep.subr.bf16.mxu1 %v2921_v3  ;;  %v379_v45 = vrot.slane %v377_v37, 1  ;;  %v391_v63 = vor.u32 %v389_v46, %v387_v53 }
  0x27   :  { %2713 = vmatpush3.bf16.msra.mxu1 %v2921_v3  ;;  %v329_v3 = vshll.u32 %v3069_v57, 16  ;;  %v308_v39 = vsel %vm248_vm0, %v303_v18, %v307_v10  ;;  %v399_v10 = vor.u32 %v397_v54, %v395_v61 }
  0x28   :  { %2635 = vmatpush3.bf16.msra.mxu0 %v2853_v43  ;;  %2706 = vmatprep.subr.bf16.mxu1 %v2931_v5  ;;  %v3146_v43 = vld [vmem:[%s3645_s0 + $0x98] sm:$0xff]   ;;  %v383_v60 = vor.u32 %v381_v38, %v379_v45  ;;  %v3189_v16 = vsel %vm248_vm0, %v391_v63, %v395_v61  ;;  %v347_v63 = vrot.slane %v345_v4, 1 }
  0x29   :  { %2636 = vmatprep.subr.bf16.mxu0 %v2855_v52  ;;  %v3102_v23 = vrot.slane %v329_v3, 1  ;;  %v405_v1 = vshrl.u32 %v3146_v43, 16  ;;  %v3179_v3 = vld [vmem:[%s3645_s0 + $0xb0] sm:$0xff]  }
  0x2a   :  { %2509 = vmatmul.mubr.bf16.gmra.mrb[4].mxu1 %v284_v59  ;;  %v3166_v59 = vsel %vm248_vm0, %v375_v41, %v379_v45  ;;  %v3184_v6 = vsel %vm248_vm0, %v383_v60, %v387_v53  ;;  %v425_v42 = vshll.u32 %v3179_v3, 16  ;;  %v3218_v45 = vld [vmem:[%s3645_s0 + $0xc0] sm:$0xff]  }
  0x2b   :  { %2581 = vmatmul.mubr.bf16.gmra.mrb[4].mxu0 %v2996_v24  ;;  %2512 = vmatprep.mubr.bf16.mxu1 %v292_v62  ;;  %v316_v62 = vsel %vm248_vm0, %v311_v40, %v315_v12  ;;  %v409_v12 = vshll.u32 %v3154_v51, 16  ;;  %v2870_v40 = vld [vmem:[%s3644_s1 + $0xb8] sm:$0xff]   ;;  %v445_v4 = vshrl.u32 %v3218_v45, 16 }
  0x2c   :  { %2584 = vmatprep.mubr.bf16.mxu0 %v3016_v33  ;;  %2637 = vmatpush3.bf16.msra.mxu0 %v2855_v52  ;;  %v337_v52 = vshll.u32 %v3118_v28, 16  ;;  %v427_v54 = vrot.slane %v425_v42, 1  ;;  %v453_v42 = vshrl.u32 %v3230_v48, 16 }
  0x2d   :  { %2638 = vmatprep.subr.bf16.mxu0 %v2858_v2  ;;  %2714 = vmatpush3.bf16.msra.mxu1 %v2931_v5  ;;  %v333_v5 = vshrl.u32 %v3069_v57, 16  ;;  %v411_v37 = vrot.slane %v409_v12, 1  ;;  %v353_v12 = vshll.u32 %v3201_v26, 16 }
  0x2e   :  { %2707 = vmatprep.subr.bf16.mxu1 %v2941_v7  ;;  %v339_v53 = vrot.slane %v337_v52, 1  ;;  %v3245_v52 = vld [vmem:[%s3645_s0 + $0xd0] sm:$0xff]  }
  0x2f   :  { %v335_v46 = vor.u32 %v333_v5, %v3102_v23  ;;  %v429_v5 = vshrl.u32 %v3179_v3, 16  ;;  %3653 = vst [vmem:[#allocation3_spill] sm:$0xff] %v3245_v52 }
  0x30   :  { %2639 = vmatpush3.bf16.msra.mxu0 %v2858_v2  ;;  %v3174_v2 = vld [vmem:[%s3645_s0 + $0xa8] sm:$0xff]  }
  0x31   :  { %2640 = vmatprep.subr.bf16.mxu0 %v2861_v14  ;;  %2715 = vmatpush3.bf16.msra.mxu1 %v2941_v7  ;;  %v401_v7 = vshll.u32 %v3146_v43, 16  ;;  %v417_v38 = vshll.u32 %v3174_v2, 16  ;;  %v421_v41 = vshrl.u32 %v3174_v2, 16 }
  0x32   :  { %2513 = vmatmul.mubr.bf16.gmra.mrb[8].mxu1 %v300_v32  ;;  %2708 = vmatprep.subr.bf16.mxu1 %v2951_v9 }
  0x33   :  { %2585 = vmatmul.mubr.bf16.gmra.mrb[8].mxu0 %v3022_v36  ;;  %2516 = vmatprep.mubr.bf16.mxu1 %v308_v39  ;;  %v403_v0 = vrot.slane %v401_v7, 1  ;;  %v324_v39 = vsel %vm248_vm0, %v319_v44, %v3098_v20  ;;  %v419_v44 = vrot.slane %v417_v38, 1 }
  0x34   :  { %2588 = vmatprep.mubr.bf16.mxu0 %v3042_v47  ;;  %2641 = vmatpush3.bf16.msra.mxu0 %v2861_v14  ;;  %v327_v14 = vor.u32 %v325_v17, %v3098_v20  ;;  %v349_v17 = vshrl.u32 %v3136_v35, 16 }
  0x35   :  { %2642 = vmatprep.subr.bf16.mxu0 %v2864_v34  ;;  %2716 = vmatpush3.bf16.msra.mxu1 %v2951_v9  ;;  %v407_v18 = vor.u32 %v405_v1, %v403_v0  ;;  %v3196_v9 = vld [vmem:[%s3645_s0 + $0xb8] sm:$0xff]   ;;  %v3205_v32 = vsel %vm248_vm0, %v399_v10, %v403_v0  ;;  %v423_v61 = vor.u32 %v421_v41, %v419_v44  ;;  %v3251_v0 = vld [vmem:[%s3645_s0 + $0x70] sm:$0xff]   ;;  %v441_v10 = vshll.u32 %v3218_v45, 16 }
  0x36   :  { %2709 = vmatprep.subr.bf16.mxu1 %v2959_v11  ;;  %v433_v7 = vshll.u32 %v3196_v9, 16 }
  0x37   :  { %v3225_v20 = vsel %vm248_vm0, %v407_v18, %v411_v37  ;;  %v3264_v18 = vld [vmem:[%s3645_s0 + $0xd8] sm:$0xff]  }
  0x38   :  { %2643 = vmatpush3.bf16.msra.mxu0 %v2864_v34  ;;  %v415_v34 = vor.u32 %v413_v22, %v411_v37  ;;  %v435_v1 = vrot.slane %v433_v7, 1  ;;  %3654 = vst [vmem:[#allocation4_spill] sm:$0xff] %v3264_v18  ;;  %v340_v22 = vsel %vm248_vm0, %v335_v46, %v339_v53  ;;  %v3278_v46 = vld [vmem:[%s3645_s0 + $0xe0] ss:$0 sps:$4 sm:$0x11]   ;;  %v461_v7 = vshrl.u32 %v3245_v52, 16 }
  0x39   :  { %2644 = vmatprep.subr.bf16.mxu0 %v2867_v58  ;;  %2717 = vmatpush3.bf16.msra.mxu1 %v2959_v11  ;;  %v332_v11 = vsel %vm248_vm0, %v327_v14, %v3102_v23  ;;  %v431_v23 = vor.u32 %v429_v5, %v427_v54  ;;  %v3256_v14 = vsel %vm248_vm0, %v423_v61, %v427_v54 }
  0x3a   :  { %2517 = vmatmul.mubr.bf16.gmra.mrb[12].mxu1 %v316_v62  ;;  %2710 = vmatprep.subr.bf16.mxu1 %v2991_v21  ;;  %v3239_v60 = vsel %vm248_vm0, %v415_v34, %v419_v44  ;;  %v437_v62 = vshrl.u32 %v3196_v9, 16  ;;  %v457_v34 = vshll.u32 %v3245_v52, 16  ;;  %v361_v44 = vshll.u32 %v3251_v0, 16 }
  0x3b   :  { %2589 = vmatmul.mubr.bf16.gmra.mrb[12].mxu0 %v3047_v49  ;;  %2520 = vmatprep.mubr.bf16.mxu1 %v324_v39  ;;  %v3268_v37 = vsel %vm248_vm0, %v431_v23, %v435_v1  ;;  %v443_v39 = vrot.slane %v441_v10, 1  ;;  %v351_v23 = vor.u32 %v349_v17, %v347_v63  ;;  %v469_v10 = vshrl.u32 %v3264_v18, 16 }
  0x3c   :  { %2592 = vmatprep.mubr.bf16.mxu0 %v3052_v50  ;;  %2645 = vmatpush3.bf16.msra.mxu0 %v2867_v58  ;;  %v449_v58 = vshll.u32 %v3230_v48, 16  ;;  %v439_v38 = vor.u32 %v437_v62, %v435_v1  ;;  %v459_v61 = vrot.slane %v457_v34, 1  ;;  %v465_v62 = vshll.u32 %v3264_v18, 16 }
  0x3d   :  { %2646 = vmatprep.subr.bf16.mxu0 %v2870_v40  ;;  %2718 = vmatpush3.bf16.msra.mxu1 %v2991_v21  ;;  %v343_v21 = vor.u32 %v341_v56, %v339_v53  ;;  %v447_v5 = vor.u32 %v445_v4, %v443_v39  ;;  %v357_v56 = vshrl.u32 %v3201_v26, 16  ;;  %v355_v1 = vrot.slane %v353_v12, 1  ;;  %v1143_v4 = vld [vmem:[%s3645_s0] sm:$0xe] }
  0x3e   :  { %2711 = vmatprep.subr.bf16.mxu1 %v3008_v29  ;;  %v451_v41 = vrot.slane %v449_v58, 1  ;;  %v3282_v54 = vsel %vm248_vm0, %v439_v38, %v443_v39  ;;  %v467_v58 = vrot.slane %v465_v62, 1  ;;  %v473_v17 = vshll.u32 %v3278_v46, 16 }
  0x3f   :  { %v348_v12 = vsel %vm248_vm0, %v343_v21, %v347_v63  ;;  %v363_v38 = vrot.slane %v361_v44, 1  ;;  %v365_v39 = vshrl.u32 %v3251_v0, 16  ;;  %v1200_v62 = vrot.slane %v3127_v31, 1 }
  0x40   :  { %2647 = vmatpush3.bf16.msra.mxu0 %v2870_v40  ;;  %v455_v53 = vor.u32 %v453_v42, %v451_v41  ;;  %v3291_v40 = vsel %vm248_vm0, %v447_v5, %v451_v41  ;;  %v471_v42 = vor.u32 %v469_v10, %v467_v58  ;;  %v475_v34 = vrot.slane %v473_v17, 1 }
  0x41   :  { %2719 = vmatpush3.bf16.msra.mxu1 %v3008_v29  ;;  %v1198_v5 = vrot.slane %v3113_v27, 1  ;;  %v1202_v44 = vrot.slane %v3146_v43, 1  ;;  %v1204_v10 = vrot.slane %v3154_v51, 1  ;;  %v1214_v17 = vrot.slane %v3230_v48, 1 }
  0x42   :  { %2521 = vmatmul.mubr.bf16.gmra.mrb[16].mxu1 %v332_v11  ;;  %v3299_v29 = vsel %vm248_vm0, %v455_v53, %v459_v61  ;;  %v463_v11 = vor.u32 %v461_v7, %v459_v61  ;;  %v356_v7 = vsel %vm248_vm0, %v351_v23, %v355_v1  ;;  %v359_v53 = vor.u32 %v357_v56, %v355_v1 }
  0x43   :  { %2593 = vmatmul.mubr.bf16.gmra.mrb[16].mxu0 %v3062_v55  ;;  %2524 = vmatprep.mubr.bf16.mxu1 %v340_v22  ;;  %v3648_v22 = vrot.slane %v3107_v25, 1  ;;  %v2091_v61 = vcombine.low %v1143_v4, %v2968_v13  ;;  %v3314_v63 = vsel %vm248_vm0, %v471_v42, %v475_v34  ;;  %v1206_v56 = vrot.slane %v3174_v2, 1 }
  0x44   :  { %2596 = vmatprep.mubr.bf16.mxu0 %v3069_v57  ;;  %v3307_v41 = vsel %vm248_vm0, %v463_v11, %v467_v58  ;;  %v3324_v11 = vsel %vm1164_vm1, %v1198_v5, %v1200_v62  ;;  %v1208_v13 = vrot.slane %v3179_v3, 1  ;;  %v1210_v23 = vrot.slane %v3196_v9, 1 }
  0x45   :  { %v3319_v21 = vsel %vm1164_vm1, %v3648_v22, %v1198_v5  ;;  %v3330_v1 = vsel %vm1164_vm1, %v1200_v62, %v1202_v44  ;;  %v3333_v4 = vsel %vm1164_vm1, %v1202_v44, %v1204_v10  ;;  %v1212_v58 = vrot.slane %v3218_v45, 1 }
  0x46   :  { %v3338_v42 = vsel %vm1164_vm1, %v1204_v10, %v1206_v56  ;;  %v3341_v34 = vsel %vm1164_vm1, %v1206_v56, %v1208_v13  ;;  %v3344_v5 = vsel %vm1164_vm1, %v1208_v13, %v1210_v23  ;;  %v1216_v62 = vrot.slane %v3245_v52, 1 }
  0x47   :  { %v3349_v44 = vsel %vm1164_vm1, %v1210_v23, %v1212_v58  ;;  %v3352_v22 = vsel %vm1164_vm1, %v1212_v58, %v1214_v17  ;;  %v1220_v10 = vrot.slane %v3278_v46, 1  ;;  %v367_v56 = vor.u32 %v365_v39, %v363_v38 }
  0x48   :  { %v3358_v13 = vsel %vm1164_vm1, %v1214_v17, %v1216_v62  ;;  %v1165_v52 = vrot.slane %v2091_v61, 1  ;;  %v1166_v48 = vrot.slane %v2975_v15, 1  ;;  %v364_v58 = vsel %vm248_vm0, %v359_v53, %v363_v38 }
  0x49   :  { %v372_v46 = vsel %vm248_vm0, %v367_v56, %v3122_v30  ;;  %v1168_v15 = vrot.slane %v2981_v19, 1  ;;  %v1170_v39 = vrot.slane %v2996_v24, 1  ;;  %v1172_v30 = vrot.slane %v3016_v33, 1 }
  0x4a   :  { %2525 = vmatmul.mubr.bf16.gmra.mrb[20].mxu1 %v348_v12  ;;  %v1218_v12 = vrot.slane %v3264_v18, 1  ;;  %v1167_v18 = vsel %vm1164_vm1, %v1165_v52, %v1166_v48  ;;  %v1174_v52 = vrot.slane %v3022_v36, 1  ;;  %v1176_v24 = vrot.slane %v3042_v47, 1 }
  0x4b   :  { %2597 = vmatmul.mubr.bf16.gmra.mrb[20].mxu0 %v3118_v28  ;;  %2528 = vmatprep.mubr.bf16.mxu1 %v356_v7  ;;  %v1169_v61 = vsel %vm1164_vm1, %v1166_v48, %v1168_v15  ;;  %v1171_v17 = vsel %vm1164_vm1, %v1168_v15, %v1170_v39  ;;  %v1180_v36 = vrot.slane %v3052_v50, 1 }
  0x4c   :  { %2600 = vmatprep.mubr.bf16.mxu0 %v3136_v35  ;;  %v3362_v7 = vsel %vm1164_vm1, %v1216_v62, %v1218_v12  ;;  %v3365_v23 = vsel %vm1164_vm1, %v1218_v12, %v1220_v10  ;;  %v1175_v19 = vsel %vm1164_vm1, %v1172_v30, %v1174_v52 }
  0x52   :  { %2529 = vmatmul.mubr.bf16.gmra.mrb[24].mxu1 %v364_v58  ;;  %v3483_v58 = vld [vmem:[%s3646_s2] ss:$0 sm:$0xff] }
  0x53   :  { %2601 = vmatmul.mubr.bf16.gmra.mrb[24].mxu0 %v3201_v26  ;;  %2532 = vmatprep.mubr.bf16.mxu1 %v372_v46 }
  0x54   :  { %2648 = vmatprep.mubr.bf16.mxu0 %v1167_v18  ;;  %v1173_v18 = vsel %vm1164_vm1, %v1170_v39, %v1172_v30 }
  0x5a   :  { %2533 = vmatmul.mubr.bf16.gmra.mrb[28].mxu1 %v3166_v59  ;;  %v1178_v59 = vrot.slane %v3047_v49, 1  ;;  %v1184_v49 = vrot.slane %v3069_v57, 1 }
  0x5b   :  { %2649 = vmatmul.mubr.bf16.vlgmr.msra.gmra.mrb[0].mxu0 %v1169_v61  ;;  %2536 = vmatprep.mubr.bf16.mxu1 %v3184_v6  ;;  %v1177_v6 = vsel %vm1164_vm1, %v1174_v52, %v1176_v24 }
  0x5c   :  { %2652 = vmatprep.mubr.bf16.mxu0 %v1171_v17  ;;  %v1179_v33 = vsel %vm1164_vm1, %v1176_v24, %v1178_v59 }
  0x62   :  { %2537 = vmatmul.mubr.bf16.gmra.mrb[32].mxu1 %v3189_v16  ;;  %v1182_v16 = vrot.slane %v3062_v55, 1  ;;  %v1188_v55 = vrot.slane %v3136_v35, 1 }
  0x63   :  { %2653 = vmatmul.mubr.bf16.gmra.mrb[4].mxu0 %v1173_v18  ;;  %2540 = vmatprep.mubr.bf16.mxu1 %v3205_v32  ;;  %v1181_v32 = vsel %vm1164_vm1, %v1178_v59, %v1180_v36 }
  0x64   :  { %2656 = vmatprep.mubr.bf16.mxu0 %v1175_v19  ;;  %v1183_v47 = vsel %vm1164_vm1, %v1180_v36, %v1182_v16  ;;  %v1185_v48 = vsel %vm1164_vm1, %v1182_v16, %v1184_v49 }
  0x6a   :  { %2541 = vmatmul.mubr.bf16.gmra.mrb[36].mxu1 %v3225_v20  ;;  %v1186_v20 = vrot.slane %v3118_v28, 1  ;;  %v1192_v28 = vrot.slane %v3251_v0, 1 }
  0x6b   :  { %2657 = vmatmul.mubr.bf16.gmra.mrb[8].mxu0 %v1177_v6  ;;  %2544 = vmatprep.mubr.bf16.mxu1 %v3239_v60  ;;  %v1190_v60 = vrot.slane %v3201_v26, 1  ;;  %v3655_v26 = vrot.slane %v3107_v25, 1 }
  0x6c   :  { %2660 = vmatprep.mubr.bf16.mxu0 %v1179_v33  ;;  %v1187_v50 = vsel %vm1164_vm1, %v1184_v49, %v1186_v20 }
  0x6d   :  { %v1191_v57 = vsel %vm1164_vm1, %v1188_v55, %v1190_v60 }
  0x72   :  { %2545 = vmatmul.mubr.bf16.gmra.mrb[40].mxu1 %v3256_v14  ;;  %v1189_v14 = vsel %vm1164_vm1, %v1186_v20, %v1188_v55 }
  0x73   :  { %2661 = vmatmul.mubr.bf16.gmra.mrb[12].mxu0 %v1181_v32  ;;  %2548 = vmatprep.mubr.bf16.mxu1 %v3268_v37  ;;  %v1194_v37 = vrot.slane %v3089_v8, 1 }
  0x74   :  { %2664 = vmatprep.mubr.bf16.mxu0 %v1183_v47 }
  0x75   :  { %v1195_v35 = vsel %vm1164_vm1, %v1192_v28, %v1194_v37 }
  0x7a   :  { %2549 = vmatmul.mubr.bf16.gmra.mrb[44].mxu1 %v3282_v54  ;;  %v1193_v54 = vsel %vm1164_vm1, %v1190_v60, %v1192_v28 }
  0x7b   :  { %2665 = vmatmul.mubr.bf16.gmra.mrb[16].mxu0 %v1185_v48  ;;  %2552 = vmatprep.mubr.bf16.mxu1 %v3291_v40  ;;  %v1197_v40 = vsel %vm1164_vm1, %v1194_v37, %v3655_v26 }
  0x7c   :  { %2668 = vmatprep.mubr.bf16.mxu0 %v1187_v50 }
  0x82   :  { %2553 = vmatmul.mubr.bf16.gmra.mrb[48].mxu1 %v3299_v29 }
  0x83   :  { %2669 = vmatmul.mubr.bf16.gmra.mrb[20].mxu0 %v1189_v14  ;;  %2556 = vmatprep.mubr.bf16.mxu1 %v3307_v41 }
  0x84   :  { %2672 = vmatprep.mubr.bf16.mxu0 %v1191_v57 }
  0x8a   :  { %2557 = vmatmul.mubr.bf16.gmra.mrb[52].mxu1 %v3314_v63 }
  0x8b   :  { %2673 = vmatmul.mubr.bf16.gmra.mrb[24].mxu0 %v1193_v54  ;;  %2604 = vmatprep.mubr.bf16.mxu1 %v3251_v0 }
  0x8c   :  { %2676 = vmatprep.mubr.bf16.mxu0 %v1195_v35 }
  0x92   :  { %2605 = vmatmul.mubr.bf16.vlgmr.msra.gmra.mrb[28].mxu1 %v3089_v8  ;;  %v3656_v8 = vld [vmem:[#allocation2_spill] sm:$0xff] }
  0x93   :  { %2677 = vmatmul.mubr.bf16.gmra.mrb[28].mxu0 %v1197_v40  ;;  %2608 = vmatprep.mubr.bf16.mxu1 %v3107_v25  ;;  %v3657_v25 = vld [vmem:[#allocation3_spill] sm:$0xff] }
  0x94   :  { %2680 = vmatprep.mubr.bf16.mxu0 %v3319_v21 }
  0x9a   :  { %2609 = vmatmul.mubr.bf16.gmra.mrb[32].mxu1 %v3113_v27  ;;  %v3658_v27 = vld [vmem:[#allocation4_spill] sm:$0xff] }
  0x9b   :  { %2681 = vmatmul.mubr.bf16.gmra.mrb[32].mxu0 %v3324_v11  ;;  %2612 = vmatprep.mubr.bf16.mxu1 %v3127_v31 }
  0x9c   :  { %2684 = vmatprep.mubr.bf16.mxu0 %v3330_v1 }
  0xa2   :  { %2613 = vmatmul.mubr.bf16.gmra.mrb[36].mxu1 %v3146_v43 }
  0xa3   :  { %2685 = vmatmul.mubr.bf16.gmra.mrb[36].mxu0 %v3333_v4  ;;  %2616 = vmatprep.mubr.bf16.mxu1 %v3154_v51 }
  0xa4   :  { %2688 = vmatprep.mubr.bf16.mxu0 %v3338_v42 }
  0xaa   :  { %2617 = vmatmul.mubr.bf16.gmra.mrb[40].mxu1 %v3174_v2 }
  0xab   :  { %2689 = vmatmul.mubr.bf16.gmra.mrb[40].mxu0 %v3341_v34  ;;  %2620 = vmatprep.mubr.bf16.mxu1 %v3179_v3 }
  0xac   :  { %2692 = vmatprep.mubr.bf16.mxu0 %v3344_v5 }
  0xb2   :  { %2621 = vmatmul.mubr.bf16.gmra.mrb[44].mxu1 %v3196_v9 }
  0xb3   :  { %2693 = vmatmul.mubr.bf16.gmra.mrb[44].mxu0 %v3349_v44  ;;  %2624 = vmatprep.mubr.bf16.mxu1 %v3218_v45 }
  0xb4   :  { %2696 = vmatprep.mubr.bf16.mxu0 %v3352_v22 }
  0xba   :  { %2625 = vmatmul.mubr.bf16.gmra.mrb[48].mxu1 %v3656_v8 }
  0xbb   :  { %2697 = vmatmul.mubr.bf16.gmra.mrb[48].mxu0 %v3358_v13  ;;  %2628 = vmatprep.mubr.bf16.mxu1 %v3657_v25 }
  0xbc   :  { %2700 = vmatprep.mubr.bf16.mxu0 %v3362_v7 }
  0xc2   :  { %2629 = vmatmul.mubr.bf16.gmra.mrb[52].mxu1 %v3658_v27 }
  0xc3   :  { %2701 = vmatmul.mubr.bf16.gmra.mrb[52].mxu0 %v3365_v23 }
  0xf5   :  { %v2506_v31 = vpop.f32.mrb[0].mxu1 }
  0xf6   :  { %v587_v43 = vpop.f32.mrb[1].mxu1 }
  0xf7   :  { %v2507_v51 = vpop.f32.mrb[2].mxu1 }
  0xf8   :  { %v590_v2 = vpop.f32.mrb[3].mxu1 }
  0xfd   :  { %v2510_v3 = vpop.f32.mrb[4].mxu1 }
  0xfe   :  { %v603_v9 = vpop.f32.mrb[5].mxu1 }
  0xff   :  { %v2511_v45 = vpop.f32.mrb[6].mxu1 }
 0x100   :  { %v606_v0 = vpop.f32.mrb[7].mxu1 }
 0x105   :  { %v2514_v29 = vpop.f32.mrb[8].mxu1 }
 0x106   :  { %v3442_v38 = vpop.f32.mrb[9].mxu1 }
 0x107   :  { %v3444_v22 = vpop.f32.mrb[10].mxu1 }
 0x108   :  { %v3446_v41 = vpop.f32.mrb[11].mxu1 }
 0x10d   :  { %v3448_v53 = vpop.f32.mrb[12].mxu1 }
 0x10e   :  { %v3450_v63 = vpop.f32.mrb[13].mxu1 }
 0x10f   :  { %v3452_v21 = vpop.f32.mrb[14].mxu1 }
 0x110   :  { %v3454_v11 = vpop.f32.mrb[15].mxu1 }
 0x115   :  { %v3456_v1 = vpop.f32.mrb[16].mxu1 }
 0x116   :  { %v3458_v4 = vpop.f32.mrb[17].mxu1 }
 0x117   :  { %v3460_v42 = vpop.f32.mrb[18].mxu1 }
 0x118   :  { %v3462_v34 = vpop.f32.mrb[19].mxu1 }
 0x11d   :  { %v3464_v5 = vpop.f32.mrb[20].mxu1 }
 0x11e   :  { %v3466_v62 = vpop.f32.mrb[21].mxu1 }
 0x11f   :  { %v3468_v44 = vpop.f32.mrb[22].mxu1 }
 0x120   :  { %v3470_v12 = vpop.f32.mrb[23].mxu1 }
 0x125   :  { %v3472_v10 = vpop.f32.mrb[24].mxu1 }
 0x126   :  { %v3474_v56 = vpop.f32.mrb[25].mxu1 }
 0x127   :  { %v3476_v13 = vpop.f32.mrb[26].mxu1 }
 0x128   :  { %v3478_v7 = vpop.f32.mrb[27].mxu1 }
 0x12e   :  { %v2650_v23 = vpop.f32.mrb[0].mxu0 }
 0x12f   :  { %v2720_v46 = vadd.f32 %v2650_v23, %v2506_v31  ;;  %v1332_v15 = vpop.f32.mrb[1].mxu0 }
 0x130   :  { %v2721_v39 = vadd.f32 %v1332_v15, %v587_v43  ;;  %v2651_v61 = vpop.f32.mrb[2].mxu0 }
 0x131   :  { %v1620_v17 = vadd.f32 %v2720_v46, %v3483_v58  ;;  %v2722_v30 = vadd.f32 %v2651_v61, %v2507_v51  ;;  %v1335_v52 = vpop.f32.mrb[3].mxu0 }
 0x132   :  { %v1618_v18 = vadd.f32 %v2721_v39, %v3483_v58  ;;  %v2723_v19 = vadd.f32 %v1335_v52, %v590_v2 }
 0x133   :  { %v1621_v24 = vadd.f32 %v2722_v30, %v3483_v58  ;;  %v1676_v6 = vmax.f32 %v1620_v17, 0.0 }
 0x134   :  { %v1619_v59 = vadd.f32 %v2723_v19, %v3483_v58  ;;  %v1674_v36 = vmax.f32 %v1618_v18, 0.0 }
 0x135   :  { %v1677_v33 = vmax.f32 %v1621_v24, 0.0 }
 0x136   :  { %v1675_v16 = vmax.f32 %v1619_v59, 0.0  ;;  %v2654_v32 = vpop.f32.mrb[4].mxu0 }
 0x137   :  { %v2221_v47 = vpack.c.bf16 %v1677_v33, %v1676_v6  ;;  %v2724_v49 = vadd.f32 %v2654_v32, %v2510_v3  ;;  %v1348_v20 = vpop.f32.mrb[5].mxu0 }
 0x138   :  { %v2216_v48 = vpack.c.bf16 %v1675_v16, %v1674_v36  ;;  %v2725_v50 = vadd.f32 %v1348_v20, %v603_v9  ;;  %v2655_v55 = vpop.f32.mrb[6].mxu0 }
 0x139   :  { %2353 = vst [vmem:[%s3647_s3 + $0x8] sm:$0xff] %v2221_v47   ;;  %v1624_v60 = vadd.f32 %v2724_v49, %v3483_v58  ;;  %v2726_v14 = vadd.f32 %v2655_v55, %v2511_v45  ;;  %v1351_v57 = vpop.f32.mrb[7].mxu0 }
 0x13a   :  { %2217 = vst [vmem:[%s3647_s3] sm:$0xff] %v2216_v48   ;;  %v1622_v28 = vadd.f32 %v2725_v50, %v3483_v58  ;;  %v2727_v37 = vadd.f32 %v1351_v57, %v606_v0 }
 0x13b   :  { %v1625_v54 = vadd.f32 %v2726_v14, %v3483_v58  ;;  %v1680_v26 = vmax.f32 %v1624_v60, 0.0 }
 0x13c   :  { %v1623_v35 = vadd.f32 %v2727_v37, %v3483_v58  ;;  %v1678_v8 = vmax.f32 %v1622_v28, 0.0 }
 0x13d   :  { %v1681_v40 = vmax.f32 %v1625_v54, 0.0 }
 0x13e   :  { %v1679_v25 = vmax.f32 %v1623_v35, 0.0  ;;  %v2658_v27 = vpop.f32.mrb[8].mxu0 }
 0x13f   :  { %v2231_v31 = vpack.c.bf16 %v1681_v40, %v1680_v26  ;;  %v2728_v43 = vadd.f32 %v2658_v27, %v2514_v29  ;;  %v1364_v51 = vpop.f32.mrb[9].mxu0 }
 0x140   :  { %v2226_v2 = vpack.c.bf16 %v1679_v25, %v1678_v8  ;;  %v2729_v3 = vadd.f32 %v1364_v51, %v3442_v38  ;;  %v2659_v9 = vpop.f32.mrb[10].mxu0 }
 0x141   :  { %2355 = vst [vmem:[%s3647_s3 + $0x18] sm:$0xff] %v2231_v31   ;;  %v1628_v45 = vadd.f32 %v2728_v43, %v3483_v58  ;;  %v2730_v0 = vadd.f32 %v2659_v9, %v3444_v22  ;;  %v1367_v23 = vpop.f32.mrb[11].mxu0 }
 0x142   :  { %2354 = vst [vmem:[%s3647_s3 + $0x10] sm:$0xff] %v2226_v2   ;;  %v1626_v29 = vadd.f32 %v2729_v3, %v3483_v58  ;;  %v2731_v46 = vadd.f32 %v1367_v23, %v3446_v41 }
 0x143   :  { %v1629_v38 = vadd.f32 %v2730_v0, %v3483_v58  ;;  %v1684_v39 = vmax.f32 %v1628_v45, 0.0 }
 0x144   :  { %v1627_v15 = vadd.f32 %v2731_v46, %v3483_v58  ;;  %v1682_v17 = vmax.f32 %v1626_v29, 0.0 }
 0x145   :  { %v1685_v61 = vmax.f32 %v1629_v38, 0.0 }
 0x146   :  { %v1683_v30 = vmax.f32 %v1627_v15, 0.0  ;;  %v2662_v52 = vpop.f32.mrb[12].mxu0 }
 0x147   :  { %v2241_v18 = vpack.c.bf16 %v1685_v61, %v1684_v39  ;;  %v2732_v22 = vadd.f32 %v2662_v52, %v3448_v53  ;;  %v1380_v19 = vpop.f32.mrb[13].mxu0 }
 0x148   :  { %v2236_v24 = vpack.c.bf16 %v1683_v30, %v1682_v17  ;;  %v2733_v59 = vadd.f32 %v1380_v19, %v3450_v63  ;;  %v2663_v6 = vpop.f32.mrb[14].mxu0 }
 0x149   :  { %2357 = vst [vmem:[%s3647_s3 + $0x28] sm:$0xff] %v2241_v18   ;;  %v1632_v41 = vadd.f32 %v2732_v22, %v3483_v58  ;;  %v2734_v33 = vadd.f32 %v2663_v6, %v3452_v21  ;;  %v1383_v36 = vpop.f32.mrb[15].mxu0 }
 0x14a   :  { %2356 = vst [vmem:[%s3647_s3 + $0x20] sm:$0xff] %v2236_v24   ;;  %v1630_v53 = vadd.f32 %v2733_v59, %v3483_v58  ;;  %v2735_v16 = vadd.f32 %v1383_v36, %v3454_v11 }
 0x14b   :  { %v1633_v63 = vadd.f32 %v2734_v33, %v3483_v58  ;;  %v1688_v47 = vmax.f32 %v1632_v41, 0.0 }
 0x14c   :  { %v1631_v32 = vadd.f32 %v2735_v16, %v3483_v58  ;;  %v1686_v20 = vmax.f32 %v1630_v53, 0.0 }
 0x14d   :  { %v1689_v49 = vmax.f32 %v1633_v63, 0.0 }
 0x14e   :  { %v1687_v48 = vmax.f32 %v1631_v32, 0.0  ;;  %v2666_v50 = vpop.f32.mrb[16].mxu0 }
 0x14f   :  { %v2251_v55 = vpack.c.bf16 %v1689_v49, %v1688_v47  ;;  %v2736_v21 = vadd.f32 %v2666_v50, %v3456_v1  ;;  %v1396_v60 = vpop.f32.mrb[17].mxu0 }
 0x150   :  { %v2246_v14 = vpack.c.bf16 %v1687_v48, %v1686_v20  ;;  %v2737_v57 = vadd.f32 %v1396_v60, %v3458_v4  ;;  %v2667_v28 = vpop.f32.mrb[18].mxu0 }
 0x151   :  { %2359 = vst [vmem:[%s3647_s3 + $0x38] sm:$0xff] %v2251_v55   ;;  %v1636_v11 = vadd.f32 %v2736_v21, %v3483_v58  ;;  %v2738_v37 = vadd.f32 %v2667_v28, %v3460_v42  ;;  %v1399_v54 = vpop.f32.mrb[19].mxu0 }
 0x152   :  { %2358 = vst [vmem:[%s3647_s3 + $0x30] sm:$0xff] %v2246_v14   ;;  %v1634_v1 = vadd.f32 %v2737_v57, %v3483_v58  ;;  %v2739_v35 = vadd.f32 %v1399_v54, %v3462_v34 }
 0x153   :  { %v1637_v4 = vadd.f32 %v2738_v37, %v3483_v58  ;;  %v1692_v40 = vmax.f32 %v1636_v11, 0.0 }
 0x154   :  { %v1635_v26 = vadd.f32 %v2739_v35, %v3483_v58  ;;  %v1690_v25 = vmax.f32 %v1634_v1, 0.0 }
 0x155   :  { %v1693_v8 = vmax.f32 %v1637_v4, 0.0 }
 0x156   :  { %v1691_v27 = vmax.f32 %v1635_v26, 0.0  ;;  %v2670_v31 = vpop.f32.mrb[20].mxu0 }
 0x157   :  { %v2261_v43 = vpack.c.bf16 %v1693_v8, %v1692_v40  ;;  %v2740_v42 = vadd.f32 %v2670_v31, %v3464_v5  ;;  %v1412_v51 = vpop.f32.mrb[21].mxu0 }
 0x158   :  { %v2256_v2 = vpack.c.bf16 %v1691_v27, %v1690_v25  ;;  %v2741_v3 = vadd.f32 %v1412_v51, %v3466_v62  ;;  %v2671_v9 = vpop.f32.mrb[22].mxu0 }
 0x159   :  { %2361 = vst [vmem:[%s3647_s3 + $0x48] sm:$0xff] %v2261_v43   ;;  %v1640_v34 = vadd.f32 %v2740_v42, %v3483_v58  ;;  %v2742_v45 = vadd.f32 %v2671_v9, %v3468_v44  ;;  %v1415_v0 = vpop.f32.mrb[23].mxu0 }
 0x15a   :  { %2360 = vst [vmem:[%s3647_s3 + $0x40] sm:$0xff] %v2256_v2   ;;  %v1638_v5 = vadd.f32 %v2741_v3, %v3483_v58  ;;  %v2743_v23 = vadd.f32 %v1415_v0, %v3470_v12 }
 0x15b   :  { %v1641_v62 = vadd.f32 %v2742_v45, %v3483_v58  ;;  %v1696_v46 = vmax.f32 %v1640_v34, 0.0 }
 0x15c   :  { %v1639_v29 = vadd.f32 %v2743_v23, %v3483_v58  ;;  %v1694_v15 = vmax.f32 %v1638_v5, 0.0 }
 0x15d   :  { %v1697_v38 = vmax.f32 %v1641_v62, 0.0 }
 0x15e   :  { %v1695_v39 = vmax.f32 %v1639_v29, 0.0  ;;  %v2674_v61 = vpop.f32.mrb[24].mxu0 }
 0x15f   :  { %v2271_v17 = vpack.c.bf16 %v1697_v38, %v1696_v46  ;;  %v2744_v44 = vadd.f32 %v2674_v61, %v3472_v10  ;;  %v1428_v30 = vpop.f32.mrb[25].mxu0 }
 0x160   :  { %v2266_v52 = vpack.c.bf16 %v1695_v39, %v1694_v15  ;;  %v2745_v18 = vadd.f32 %v1428_v30, %v3474_v56  ;;  %v2675_v22 = vpop.f32.mrb[26].mxu0 }
 0x161   :  { %2363 = vst [vmem:[%s3647_s3 + $0x58] sm:$0xff] %v2271_v17   ;;  %v1644_v12 = vadd.f32 %v2744_v44, %v3483_v58  ;;  %v2746_v19 = vadd.f32 %v2675_v22, %v3476_v13  ;;  %v1431_v24 = vpop.f32.mrb[27].mxu0 }
 0x162   :  { %2362 = vst [vmem:[%s3647_s3 + $0x50] sm:$0xff] %v2266_v52   ;;  %v1642_v10 = vadd.f32 %v2745_v18, %v3483_v58  ;;  %v2747_v59 = vadd.f32 %v1431_v24, %v3478_v7 }
 0x163   :  { %v1645_v56 = vadd.f32 %v2746_v19, %v3483_v58  ;;  %v1700_v41 = vmax.f32 %v1644_v12, 0.0 }
 0x164   :  { %v1643_v6 = vadd.f32 %v2747_v59, %v3483_v58  ;;  %v1698_v53 = vmax.f32 %v1642_v10, 0.0 }
 0x165   :  { %v1701_v33 = vmax.f32 %v1645_v56, 0.0  ;;  %v2606_v36 = vpop.f32.mrb[28].mxu1 }
 0x166   :  { %v1699_v16 = vmax.f32 %v1643_v6, 0.0  ;;  %v2678_v63 = vpop.f32.mrb[28].mxu0  ;;  %v1032_v13 = vpop.f32.mrb[29].mxu1 }
 0x167   :  { %v2281_v32 = vpack.c.bf16 %v1701_v33, %v1700_v41  ;;  %v2748_v47 = vadd.f32 %v2678_v63, %v2606_v36  ;;  %v1444_v49 = vpop.f32.mrb[29].mxu0  ;;  %v2607_v20 = vpop.f32.mrb[30].mxu1 }
 0x168   :  { %v2276_v48 = vpack.c.bf16 %v1699_v16, %v1698_v53  ;;  %v2749_v50 = vadd.f32 %v1444_v49, %v1032_v13  ;;  %v2679_v55 = vpop.f32.mrb[30].mxu0  ;;  %v1035_v21 = vpop.f32.mrb[31].mxu1 }
 0x169   :  { %2365 = vst [vmem:[%s3647_s3 + $0x68] sm:$0xff] %v2281_v32   ;;  %v1648_v7 = vadd.f32 %v2748_v47, %v3483_v58  ;;  %v2750_v60 = vadd.f32 %v2679_v55, %v2607_v20  ;;  %v1447_v14 = vpop.f32.mrb[31].mxu0 }
 0x16a   :  { %2364 = vst [vmem:[%s3647_s3 + $0x60] sm:$0xff] %v2276_v48   ;;  %v1646_v57 = vadd.f32 %v2749_v50, %v3483_v58  ;;  %v2751_v28 = vadd.f32 %v1447_v14, %v1035_v21 }
 0x16b   :  { %v1649_v11 = vadd.f32 %v2750_v60, %v3483_v58  ;;  %v1704_v54 = vmax.f32 %v1648_v7, 0.0 }
 0x16c   :  { %v1647_v37 = vadd.f32 %v2751_v28, %v3483_v58  ;;  %v1702_v4 = vmax.f32 %v1646_v57, 0.0 }
 0x16d   :  { %v1705_v1 = vmax.f32 %v1649_v11, 0.0  ;;  %v2610_v35 = vpop.f32.mrb[32].mxu1 }
 0x16e   :  { %v1703_v26 = vmax.f32 %v1647_v37, 0.0  ;;  %v2682_v40 = vpop.f32.mrb[32].mxu0  ;;  %v1048_v8 = vpop.f32.mrb[33].mxu1 }
 0x16f   :  { %v2291_v25 = vpack.c.bf16 %v1705_v1, %v1704_v54  ;;  %v2752_v27 = vadd.f32 %v2682_v40, %v2610_v35  ;;  %v1460_v31 = vpop.f32.mrb[33].mxu0  ;;  %v2611_v43 = vpop.f32.mrb[34].mxu1 }
 0x170   :  { %v2286_v42 = vpack.c.bf16 %v1703_v26, %v1702_v4  ;;  %v2753_v51 = vadd.f32 %v1460_v31, %v1048_v8  ;;  %v2683_v2 = vpop.f32.mrb[34].mxu0  ;;  %v1051_v3 = vpop.f32.mrb[35].mxu1 }
 0x171   :  { %2367 = vst [vmem:[%s3647_s3 + $0x78] sm:$0xff] %v2291_v25   ;;  %v1652_v9 = vadd.f32 %v2752_v27, %v3483_v58  ;;  %v2754_v34 = vadd.f32 %v2683_v2, %v2611_v43  ;;  %v1463_v45 = vpop.f32.mrb[35].mxu0 }
 0x172   :  { %2366 = vst [vmem:[%s3647_s3 + $0x70] sm:$0xff] %v2286_v42   ;;  %v1650_v0 = vadd.f32 %v2753_v51, %v3483_v58  ;;  %v2755_v5 = vadd.f32 %v1463_v45, %v1051_v3 }
 0x173   :  { %v1653_v23 = vadd.f32 %v2754_v34, %v3483_v58  ;;  %v1708_v29 = vmax.f32 %v1652_v9, 0.0 }
 0x174   :  { %v1651_v62 = vadd.f32 %v2755_v5, %v3483_v58  ;;  %v1706_v15 = vmax.f32 %v1650_v0, 0.0 }
 0x175   :  { %v1709_v46 = vmax.f32 %v1653_v23, 0.0  ;;  %v2614_v38 = vpop.f32.mrb[36].mxu1 }
 0x176   :  { %v1707_v39 = vmax.f32 %v1651_v62, 0.0  ;;  %v2686_v61 = vpop.f32.mrb[36].mxu0  ;;  %v1064_v17 = vpop.f32.mrb[37].mxu1 }
 0x177   :  { %v2301_v44 = vpack.c.bf16 %v1709_v46, %v1708_v29  ;;  %v2756_v30 = vadd.f32 %v2686_v61, %v2614_v38  ;;  %v1476_v52 = vpop.f32.mrb[37].mxu0  ;;  %v2615_v18 = vpop.f32.mrb[38].mxu1 }
 0x178   :  { %v2296_v22 = vpack.c.bf16 %v1707_v39, %v1706_v15  ;;  %v2757_v12 = vadd.f32 %v1476_v52, %v1064_v17  ;;  %v2687_v19 = vpop.f32.mrb[38].mxu0  ;;  %v1067_v24 = vpop.f32.mrb[39].mxu1 }
 0x179   :  { %2369 = vst [vmem:[%s3647_s3 + $0x88] sm:$0xff] %v2301_v44   ;;  %v1656_v10 = vadd.f32 %v2756_v30, %v3483_v58  ;;  %v2758_v59 = vadd.f32 %v2687_v19, %v2615_v18  ;;  %v1479_v56 = vpop.f32.mrb[39].mxu0 }
 0x17a   :  { %2368 = vst [vmem:[%s3647_s3 + $0x80] sm:$0xff] %v2296_v22   ;;  %v1654_v6 = vadd.f32 %v2757_v12, %v3483_v58  ;;  %v2759_v41 = vadd.f32 %v1479_v56, %v1067_v24 }
 0x17b   :  { %v1657_v33 = vadd.f32 %v2758_v59, %v3483_v58  ;;  %v1712_v53 = vmax.f32 %v1656_v10, 0.0 }
 0x17c   :  { %v1655_v36 = vadd.f32 %v2759_v41, %v3483_v58  ;;  %v1710_v13 = vmax.f32 %v1654_v6, 0.0 }
 0x17d   :  { %v1713_v16 = vmax.f32 %v1657_v33, 0.0  ;;  %v2618_v63 = vpop.f32.mrb[40].mxu1 }
 0x17e   :  { %v1711_v32 = vmax.f32 %v1655_v36, 0.0  ;;  %v2690_v47 = vpop.f32.mrb[40].mxu0  ;;  %v1080_v49 = vpop.f32.mrb[41].mxu1 }
 0x17f   :  { %v2311_v20 = vpack.c.bf16 %v1713_v16, %v1712_v53  ;;  %v2760_v48 = vadd.f32 %v2690_v47, %v2618_v63  ;;  %v1492_v50 = vpop.f32.mrb[41].mxu0  ;;  %v2619_v55 = vpop.f32.mrb[42].mxu1 }
 0x180   :  { %v2306_v21 = vpack.c.bf16 %v1711_v32, %v1710_v13  ;;  %v2761_v7 = vadd.f32 %v1492_v50, %v1080_v49  ;;  %v2691_v60 = vpop.f32.mrb[42].mxu0  ;;  %v1083_v14 = vpop.f32.mrb[43].mxu1 }
 0x181   :  { %2371 = vst [vmem:[%s3647_s3 + $0x98] sm:$0xff] %v2311_v20   ;;  %v1660_v57 = vadd.f32 %v2760_v48, %v3483_v58  ;;  %v2762_v28 = vadd.f32 %v2691_v60, %v2619_v55  ;;  %v1495_v11 = vpop.f32.mrb[43].mxu0 }
 0x182   :  { %2370 = vst [vmem:[%s3647_s3 + $0x90] sm:$0xff] %v2306_v21   ;;  %v1658_v37 = vadd.f32 %v2761_v7, %v3483_v58  ;;  %v2763_v54 = vadd.f32 %v1495_v11, %v1083_v14 }
 0x183   :  { %v1661_v1 = vadd.f32 %v2762_v28, %v3483_v58  ;;  %v1716_v4 = vmax.f32 %v1660_v57, 0.0 }
 0x184   :  { %v1659_v35 = vadd.f32 %v2763_v54, %v3483_v58  ;;  %v1714_v8 = vmax.f32 %v1658_v37, 0.0 }
 0x185   :  { %v1717_v26 = vmax.f32 %v1661_v1, 0.0  ;;  %v2622_v40 = vpop.f32.mrb[44].mxu1 }
 0x186   :  { %v1715_v25 = vmax.f32 %v1659_v35, 0.0  ;;  %v2694_v27 = vpop.f32.mrb[44].mxu0  ;;  %v1096_v31 = vpop.f32.mrb[45].mxu1 }
 0x187   :  { %v2321_v43 = vpack.c.bf16 %v1717_v26, %v1716_v4  ;;  %v2764_v42 = vadd.f32 %v2694_v27, %v2622_v40  ;;  %v1508_v51 = vpop.f32.mrb[45].mxu0  ;;  %v2623_v2 = vpop.f32.mrb[46].mxu1 }
 0x188   :  { %v2316_v3 = vpack.c.bf16 %v1715_v25, %v1714_v8  ;;  %v2765_v9 = vadd.f32 %v1508_v51, %v1096_v31  ;;  %v2695_v34 = vpop.f32.mrb[46].mxu0  ;;  %v1099_v45 = vpop.f32.mrb[47].mxu1 }
 0x189   :  { %2373 = vst [vmem:[%s3647_s3 + $0xa8] sm:$0xff] %v2321_v43   ;;  %v1664_v0 = vadd.f32 %v2764_v42, %v3483_v58  ;;  %v2766_v5 = vadd.f32 %v2695_v34, %v2623_v2  ;;  %v1511_v23 = vpop.f32.mrb[47].mxu0 }
 0x18a   :  { %2372 = vst [vmem:[%s3647_s3 + $0xa0] sm:$0xff] %v2316_v3   ;;  %v1662_v62 = vadd.f32 %v2765_v9, %v3483_v58  ;;  %v2767_v29 = vadd.f32 %v1511_v23, %v1099_v45 }
 0x18b   :  { %v1665_v46 = vadd.f32 %v2766_v5, %v3483_v58  ;;  %v1720_v15 = vmax.f32 %v1664_v0, 0.0 }
 0x18c   :  { %v1663_v38 = vadd.f32 %v2767_v29, %v3483_v58  ;;  %v1718_v17 = vmax.f32 %v1662_v62, 0.0 }
 0x18d   :  { %v1721_v39 = vmax.f32 %v1665_v46, 0.0  ;;  %v2626_v61 = vpop.f32.mrb[48].mxu1 }
 0x18e   :  { %v1719_v44 = vmax.f32 %v1663_v38, 0.0  ;;  %v2698_v30 = vpop.f32.mrb[48].mxu0  ;;  %v1112_v52 = vpop.f32.mrb[49].mxu1 }
 0x18f   :  { %v2331_v18 = vpack.c.bf16 %v1721_v39, %v1720_v15  ;;  %v2768_v22 = vadd.f32 %v2698_v30, %v2626_v61  ;;  %v1524_v12 = vpop.f32.mrb[49].mxu0  ;;  %v2627_v19 = vpop.f32.mrb[50].mxu1 }
 0x190   :  { %v2326_v24 = vpack.c.bf16 %v1719_v44, %v1718_v17  ;;  %v2769_v10 = vadd.f32 %v1524_v12, %v1112_v52  ;;  %v2699_v59 = vpop.f32.mrb[50].mxu0  ;;  %v1115_v56 = vpop.f32.mrb[51].mxu1 }
 0x191   :  { %2375 = vst [vmem:[%s3647_s3 + $0xb8] sm:$0xff] %v2331_v18   ;;  %v1668_v6 = vadd.f32 %v2768_v22, %v3483_v58  ;;  %v2770_v41 = vadd.f32 %v2699_v59, %v2627_v19  ;;  %v1527_v33 = vpop.f32.mrb[51].mxu0 }
 0x192   :  { %2374 = vst [vmem:[%s3647_s3 + $0xb0] sm:$0xff] %v2326_v24   ;;  %v1666_v36 = vadd.f32 %v2769_v10, %v3483_v58  ;;  %v2771_v53 = vadd.f32 %v1527_v33, %v1115_v56 }
 0x193   :  { %v1669_v16 = vadd.f32 %v2770_v41, %v3483_v58  ;;  %v1724_v13 = vmax.f32 %v1668_v6, 0.0 }
 0x194   :  { %v1667_v63 = vadd.f32 %v2771_v53, %v3483_v58  ;;  %v1722_v49 = vmax.f32 %v1666_v36, 0.0 }
 0x195   :  { %v1725_v32 = vmax.f32 %v1669_v16, 0.0  ;;  %v2630_v47 = vpop.f32.mrb[52].mxu1 }
 0x196   :  { %v1723_v20 = vmax.f32 %v1667_v63, 0.0  ;;  %v2702_v48 = vpop.f32.mrb[52].mxu0  ;;  %v1128_v50 = vpop.f32.mrb[53].mxu1 }
 0x197   :  { %v2341_v55 = vpack.c.bf16 %v1725_v32, %v1724_v13  ;;  %v2772_v21 = vadd.f32 %v2702_v48, %v2630_v47  ;;  %v1540_v7 = vpop.f32.mrb[53].mxu0  ;;  %v2631_v60 = vpop.f32.mrb[54].mxu1 }
 0x198   :  { %v2336_v14 = vpack.c.bf16 %v1723_v20, %v1722_v49  ;;  %v2773_v57 = vadd.f32 %v1540_v7, %v1128_v50  ;;  %v2703_v28 = vpop.f32.mrb[54].mxu0  ;;  %v1131_v11 = vpop.f32.mrb[55].mxu1 }
 0x199   :  { %2377 = vst [vmem:[%s3647_s3 + $0xc8] sm:$0xff] %v2341_v55   ;;  %v1672_v37 = vadd.f32 %v2772_v21, %v3483_v58  ;;  %v2774_v54 = vadd.f32 %v2703_v28, %v2631_v60  ;;  %v1543_v1 = vpop.f32.mrb[55].mxu0 }
 0x19a   :  { %2376 = vst [vmem:[%s3647_s3 + $0xc0] sm:$0xff] %v2336_v14   ;;  %v1670_v35 = vadd.f32 %v2773_v57, %v3483_v58  ;;  %v2775_v4 = vadd.f32 %v1543_v1, %v1131_v11 }
 0x19b   :  { %v1673_v26 = vadd.f32 %v2774_v54, %v3483_v58  ;;  %v1728_v8 = vmax.f32 %v1672_v37, 0.0 }
 0x19c   :  { %v1671_v40 = vadd.f32 %v2775_v4, %v3483_v58  ;;  %v1726_v27 = vmax.f32 %v1670_v35, 0.0 }
 0x19d   :  { %v1729_v25 = vmax.f32 %v1673_v26, 0.0 }
 0x19e   :  { %v1727_v31 = vmax.f32 %v1671_v40, 0.0 }
 0x19f   :  { %v2351_v43 = vpack.c.bf16 %v1729_v25, %v1728_v8 }
 0x1a0   :  { %v2346_v42 = vpack.c.bf16 %v1727_v31, %v1726_v27 }
 0x1a1   :  { %2379 = vst [vmem:[%s3647_s3 + $0xd8] sm:$0xff] %v2351_v43  }
 0x1a2   :  { %2378 = vst [vmem:[%s3647_s3 + $0xd0] sm:$0xff] %v2346_v42  }

// kernel: _lambda_.18
= control target key start
LH: loop header
LB: loop body
LE: loop exit
PB: predicated region body
PF: predicated region fallthrough
CT: control target
= control target key end

     0   :  { %s1707_s15 = smov 0   ;;  %s1709_s16 = smov 0   ;;  %s2015_s0 = inlined_call_operand.vmem [shape: bf16[392,128], index: 0, kind: input, shape index: {}]   ;;  %s2016_s1 = inlined_call_operand.vmem [shape: bf16[128,128], index: 1, kind: input, shape index: {}]   ;;  %s2017_s2 = inlined_call_operand.vmem [shape: f32[1,128], index: 2, kind: input, shape index: {}]   ;;  %s2018_s3 = inlined_call_operand.vmem [shape: bf16[392,128], index: 3, kind: input, shape index: {}]   ;;  %s2019_s4 = inlined_call_operand.vmem [shape: bf16[392,128], index: 4, kind: output, shape index: {}]  }
   0x1   :  { %s1711_s17 = smov 0  }
   0x2 LB: > { %s1720_s18 = sadd.s32 4294967295, %s1646_s17   ;;  %s1722_s19 = sadd.s32 1, %s1646_s17   ;;  %s1646_s17 = sphi %s1711_s17, %s2026_s17   ;;  %s1642_s16 = sphi %s1709_s16, %s2025_s16   ;;  %s1638_s15 = sphi %s1707_s15, %s2024_s15  }
   0x3   : > { %s112_s20 = ssub.s32 %s1646_s17, %s1722_s19  ;;  %s115_s21 = sadd.s32 1, %s1642_s16 }
   0x4   : > { %p113_p0 = scmp.eq.s32.totalorder %s112_s20, 0  ;;  %p125_p1 = scmp.ne.s32.totalorder %s1642_s16, %s1638_s15 }
   0x5   : > { %p126_p2 = scmp.eq.s32.totalorder %s1720_s18, 1  ;;  %p1139_p3 = scmp.ge.s32.totalorder %s1646_s17, 1 }
   0x6   : > { %s1730_s22 = scalar_select %p113_p0, %s1642_s16, %s115_s21  }
   0x7   : > { %p1732_p4 = por %p126_p2, %p125_p1  ;;  %p190_p5 = scmp.lt.s32.totalorder %s1646_s17, 3 }
   0x9   : > { %p191_p6 = pnand %p1139_p3, %p190_p5 }
   0xa   : > { %v1567_v0 = vld [vmem:[%s2016_s1] sm:$0xff] (!%p191_p6)   ;;  %v1680_v1 = vmov (!%p191_p6), 0.0   ;;  %v1568_v2 = vld [vmem:[%s2016_s1 + $0x8] sm:$0xff] (!%p191_p6)   ;;  %s1745_s28 = smul.u32 (!%p191_p6), 26, %s1720_s18  ;;  %vm1681_vm0 = vmmov (!%p191_p6), 0   ;;  %v1569_v3 = vld [vmem:[%s2016_s1 + $0x10] sm:$0xff] (!%p191_p6)  }
   0xb   : > { %194 = sbr.rel (%p191_p6) target bundleno = 393 (0x189), region = 36  ;;  %1391 = vmatprep.subr.bf16.mxu0 (!%p191_p6), %v1680_v1  ;;  %1459 = vmatprep.subr.bf16.mxu1 (!%p191_p6), %v1680_v1  ;;  %v1570_v4 = vld [vmem:[%s2016_s1 + $0x18] sm:$0xff] (!%p191_p6)   ;;  %v1571_v5 = vld [vmem:[%s2016_s1 + $0x20] sm:$0xff] (!%p191_p6)   ;;  %v1572_v6 = vld [vmem:[%s2016_s1 + $0x28] sm:$0xff] (!%p191_p6)  }
   0xc   : > { %1392 = vmatpush3.bf16.msra.mxu0 (!%p191_p6), %v1567_v0  ;;  %1467 = vmatpush3.bf16.msra.mxu1 (!%p191_p6), %v1567_v0  ;;  %p233_p7 = scmp.lt.s32.totalorder (!%p191_p6), %s1745_s28, 48  ;;  %v1573_v7 = vld [vmem:[%s2016_s1 + $0x30] sm:$0xff] (!%p191_p6)   ;;  %v1574_v8 = vld [vmem:[%s2016_s1 + $0x38] sm:$0xff] (!%p191_p6)   ;;  %v1842_v24 = vld [vmem:[%s2017_s2] ss:$0 sm:$0xff] (!%p191_p6) }
   0xd   : > { %1393 = vmatprep.subr.bf16.mxu0 (!%p191_p6), %v1680_v1  ;;  %1460 = vmatprep.subr.bf16.mxu1 (!%p191_p6), %v1680_v1 }
   0xe   : > { %1407 = vmatprep.mubr.msk.bf16.mxu0 (!%p191_p6), %vm1681_vm0, %v1680_v1  ;;  %1435 = vmatprep.mubr.msk.bf16.mxu1 (!%p191_p6), %vm1681_vm0, %v1680_v1 }
  0x10   : > { %1394 = vmatpush3.bf16.msra.mxu0 (!%p191_p6), %v1568_v2  ;;  %1468 = vmatpush3.bf16.msra.mxu1 (!%p191_p6), %v1568_v2 }
  0x11   : > { %1395 = vmatprep.subr.bf16.mxu0 (!%p191_p6), %v1680_v1  ;;  %1461 = vmatprep.subr.bf16.mxu1 (!%p191_p6), %v1680_v1 }
  0x12   : > { %s1758_s5 = scalar_select %p233_p7, %s1745_s28, 48 }
  0x13   : > { %s816_s8 = ssub.s32 (%p1732_p4), 49, %s1745_s28 }
  0x14   : > { %s1140_s6 = sshll.u32 %s1758_s5, 2  ;;  %1396 = vmatpush3.bf16.msra.mxu0 %v1569_v3  ;;  %1469 = vmatpush3.bf16.msra.mxu1 %v1569_v3  ;;  %s225_s5 = sand.u32 1, %s1638_s15  }
  0x15   : > { %s1768_s9 = scalar_lea.vmem %s2015_s0, %s1140_s6  ;;  %1397 = vmatprep.subr.bf16.mxu0 %v1680_v1  ;;  %1462 = vmatprep.subr.bf16.mxu1 %v1680_v1  ;;  %s1835_s29 = scalar_lea.vmem %s2018_s3, %s1140_s6 }
  0x16   : > { %v1575_v9 = vld [vmem:[%s1768_s9] sm:$0xff]   ;;  %v1576_v10 = vld [vmem:[%s1768_s9 + $0x38] sm:$0xff]   ;;  %v1577_v11 = vld [vmem:[%s1768_s9 + $0x8] sm:$0xff]   ;;  %s1475_s6 = smul.u32 104, %s225_s5  ;;  %p817_p8 = scmp.lt.s32.totalorder (%p1732_p4), %s816_s8, 26 }
  0x17   : > { %v1578_v12 = vld [vmem:[%s1768_s9 + $0x40] sm:$0xff]   ;;  %v1579_v13 = vld [vmem:[%s1768_s9 + $0x10] sm:$0xff]   ;;  %v1580_v14 = vld [vmem:[%s1768_s9 + $0x48] sm:$0xff]  }
  0x18   : > { %1398 = vmatpush3.bf16.msra.mxu0 %v1570_v4  ;;  %1470 = vmatpush3.bf16.msra.mxu1 %v1570_v4  ;;  %v1581_v15 = vld [vmem:[%s1768_s9 + $0x18] sm:$0xff]   ;;  %v1582_v16 = vld [vmem:[%s1768_s9 + $0x50] sm:$0xff]   ;;  %v1583_v17 = vld [vmem:[%s1768_s9 + $0x20] sm:$0xff]   ;;  %s1853_s15 = scalar_lea.vmem [#allocation2], %s1475_s6  }
  0x19   : > { %1399 = vmatprep.subr.bf16.mxu0 %v1680_v1  ;;  %1463 = vmatprep.subr.bf16.mxu1 %v1680_v1  ;;  %v1584_v18 = vld [vmem:[%s1768_s9 + $0x58] sm:$0xff]   ;;  %v1585_v19 = vld [vmem:[%s1768_s9 + $0x28] sm:$0xff]   ;;  %v1586_v20 = vld [vmem:[%s1768_s9 + $0x60] sm:$0xff]  }
  0x1a   : > { %v1587_v21 = vld [vmem:[%s1768_s9 + $0x30] sm:$0xff]   ;;  %v1230_v22 = vld [vmem:[%s1835_s29] sm:$0xff]   ;;  %v1352_v23 = vld [vmem:[%s1835_s29 + $0x38] sm:$0xff]   ;;  %s1228_s9 = smul.u32 (%p1732_p4), 104, %s1720_s18 }
  0x1b   : > { %v1231_v25 = vunpack.c.l.bf16 %v1230_v22  ;;  %v1259_v26 = vunpack.c.l.bf16 %v1352_v23  ;;  %v1232_v31 = vunpack.c.h.bf16 %v1230_v22  ;;  %v1260_v34 = vunpack.c.h.bf16 %v1352_v23  ;;  %v1346_v42 = vld [vmem:[%s1835_s29 + $0x8] sm:$0xff]   ;;  %v1353_v44 = vld [vmem:[%s1835_s29 + $0x40] sm:$0xff]  }
  0x1c   : > { %1400 = vmatpush3.bf16.msra.mxu0 %v1571_v5  ;;  %1471 = vmatpush3.bf16.msra.mxu1 %v1571_v5  ;;  %v1235_v48 = vunpack.c.l.bf16 %v1346_v42  ;;  %v1263_v52 = vunpack.c.l.bf16 %v1353_v44  ;;  %v1236_v54 = vunpack.c.h.bf16 %v1346_v42  ;;  %v1264_v56 = vunpack.c.h.bf16 %v1353_v44  ;;  %s1904_s12 = scalar_lea.vmem (%p1732_p4), %s2019_s4, %s1228_s9  }
  0x1d   : > { %1401 = vmatprep.subr.bf16.mxu0 %v1680_v1  ;;  %1464 = vmatprep.subr.bf16.mxu1 %v1680_v1 }
  0x20   : > { %1402 = vmatpush3.bf16.msra.mxu0 %v1572_v6  ;;  %1472 = vmatpush3.bf16.msra.mxu1 %v1572_v6  ;;  %v1347_v6 = vld [vmem:[%s1835_s29 + $0x10] sm:$0xff]  }
  0x21   : > { %1403 = vmatprep.subr.bf16.mxu0 %v1680_v1  ;;  %1465 = vmatprep.subr.bf16.mxu1 %v1680_v1 }
  0x24   : > { %1404 = vmatpush3.bf16.msra.mxu0 %v1573_v7  ;;  %1473 = vmatpush3.bf16.msra.mxu1 %v1573_v7 }
  0x25   : > { %1405 = vmatprep.subr.bf16.mxu0 %v1680_v1  ;;  %1466 = vmatprep.subr.bf16.mxu1 %v1680_v1 }
  0x28   : > { %1406 = vmatpush3.bf16.msra.mxu0 %v1574_v8  ;;  %1474 = vmatpush3.bf16.msra.mxu1 %v1574_v8  ;;  %v1354_v8 = vld [vmem:[%s1835_s29 + $0x48] sm:$0xff]  }
  0x2b   : > { %1408 = vmatmul.mubr.bf16.vlgmr.msra.gmra.mrb[0].mxu0 %v1575_v9  ;;  %1436 = vmatmul.mubr.bf16.vlgmr.msra.gmra.mrb[0].mxu1 %v1576_v10 }
  0x2c   : > { %1411 = vmatprep.mubr.msk.bf16.mxu0 %vm1681_vm0, %v1680_v1  ;;  %1439 = vmatprep.mubr.msk.bf16.mxu1 %vm1681_vm0, %v1680_v1 }
  0x33   : > { %1412 = vmatmul.mubr.bf16.gmra.mrb[4].mxu0 %v1577_v11  ;;  %1440 = vmatmul.mubr.bf16.gmra.mrb[4].mxu1 %v1578_v12  ;;  %v1239_v12 = vunpack.c.l.bf16 %v1347_v6 }
  0x34   : > { %1415 = vmatprep.mubr.msk.bf16.mxu0 %vm1681_vm0, %v1680_v1  ;;  %1443 = vmatprep.mubr.msk.bf16.mxu1 %vm1681_vm0, %v1680_v1 }
  0x3b   : > { %1416 = vmatmul.mubr.bf16.gmra.mrb[8].mxu0 %v1579_v13  ;;  %1444 = vmatmul.mubr.bf16.gmra.mrb[8].mxu1 %v1580_v14 }
  0x3c   : > { %1419 = vmatprep.mubr.msk.bf16.mxu0 %vm1681_vm0, %v1680_v1  ;;  %1447 = vmatprep.mubr.msk.bf16.mxu1 %vm1681_vm0, %v1680_v1 }
  0x43   : > { %1420 = vmatmul.mubr.bf16.gmra.mrb[12].mxu0 %v1581_v15  ;;  %1448 = vmatmul.mubr.bf16.gmra.mrb[12].mxu1 %v1582_v16  ;;  %v1267_v16 = vunpack.c.l.bf16 %v1354_v8 }
  0x44   : > { %1423 = vmatprep.mubr.msk.bf16.mxu0 %vm1681_vm0, %v1680_v1  ;;  %1451 = vmatprep.mubr.msk.bf16.mxu1 %vm1681_vm0, %v1680_v1 }
  0x4b   : > { %1424 = vmatmul.mubr.bf16.gmra.mrb[16].mxu0 %v1583_v17  ;;  %1452 = vmatmul.mubr.bf16.gmra.mrb[16].mxu1 %v1584_v18  ;;  %v1240_v18 = vunpack.c.h.bf16 %v1347_v6 }
  0x4c   : > { %1427 = vmatprep.mubr.msk.bf16.mxu0 %vm1681_vm0, %v1680_v1  ;;  %1455 = vmatprep.mubr.msk.bf16.mxu1 %vm1681_vm0, %v1680_v1 }
  0x53   : > { %1428 = vmatmul.mubr.bf16.gmra.mrb[20].mxu0 %v1585_v19  ;;  %1456 = vmatmul.mubr.bf16.gmra.mrb[20].mxu1 %v1586_v20  ;;  %v1268_v20 = vunpack.c.h.bf16 %v1354_v8 }
  0x54   : > { %1431 = vmatprep.mubr.msk.bf16.mxu0 %vm1681_vm0, %v1680_v1 }
  0x5b   : > { %1432 = vmatmul.mubr.bf16.gmra.mrb[24].mxu0 %v1587_v21 }
  0xfe   : > { %v471_v27 = vpop.f32.mrb[0].mxu0  ;;  %v527_v28 = vpop.f32.mrb[0].mxu1 }
  0xff   : > { %v472_v29 = vadd.f32 %v1842_v24, %v471_v27  ;;  %v1409_v30 = vpop.f32.mrb[1].mxu0  ;;  %v528_v32 = vadd.f32 %v1842_v24, %v527_v28  ;;  %v1437_v33 = vpop.f32.mrb[1].mxu1 }
 0x100   : > { %v474_v35 = vpop.f32.mrb[2].mxu0  ;;  %v530_v36 = vpop.f32.mrb[2].mxu1 }
 0x101   : > { %v626_v37 = vadd.f32 %v1231_v25, %v472_v29  ;;  %v475_v38 = vadd.f32 %v1842_v24, %v474_v35  ;;  %v1410_v39 = vpop.f32.mrb[3].mxu0  ;;  %v640_v40 = vadd.f32 %v1259_v26, %v528_v32  ;;  %v531_v41 = vadd.f32 %v1842_v24, %v530_v36  ;;  %v1438_v43 = vpop.f32.mrb[3].mxu1  ;;  %v1348_v35 = vld [vmem:[%s1835_s29 + $0x18] sm:$0xff]  }
 0x103   : > { %v627_v45 = vadd.f32 %v1232_v31, %v475_v38  ;;  %v666_v46 = vmax.f32 %v640_v40, 0.0  ;;  %v641_v47 = vadd.f32 %v1260_v34, %v531_v41  ;;  %v652_v49 = vmax.f32 %v626_v37, 0.0  ;;  %v1355_v37 = vld [vmem:[%s1835_s29 + $0x50] sm:$0xff]  }
 0x104   : > { %v1243_v41 = vunpack.c.l.bf16 %v1348_v35 }
 0x105   : > { %v653_v50 = vmax.f32 %v627_v45, 0.0  ;;  %v667_v51 = vmax.f32 %v641_v47, 0.0  ;;  %v1271_v45 = vunpack.c.l.bf16 %v1355_v37  ;;  %v1244_v47 = vunpack.c.h.bf16 %v1348_v35 }
 0x106   : > { %v479_v53 = vpop.f32.mrb[4].mxu0  ;;  %v535_v55 = vpop.f32.mrb[4].mxu1 }
 0x107   : > { %v1284_v57 = vpack.c.bf16 %v653_v50, %v652_v49  ;;  %v1319_v58 = vpack.c.bf16 %v667_v51, %v666_v46  ;;  %v480_v59 = vadd.f32 %v1842_v24, %v479_v53  ;;  %v1413_v60 = vpop.f32.mrb[5].mxu0  ;;  %v536_v61 = vadd.f32 %v1842_v24, %v535_v55  ;;  %v1441_v62 = vpop.f32.mrb[5].mxu1 }
 0x108   : > { %v482_v63 = vpop.f32.mrb[6].mxu0  ;;  %v538_v0 = vpop.f32.mrb[6].mxu1  ;;  %v1272_v49 = vunpack.c.h.bf16 %v1355_v37 }
 0x109   : > { %1285 = vst [vmem:[%s1853_s15] sm:$0xff] %v1284_v57   ;;  %1364 = vst [vmem:[%s1853_s15 + $0x38] sm:$0xff] %v1319_v58   ;;  %v628_v1 = vadd.f32 %v1235_v48, %v480_v59  ;;  %v483_v2 = vadd.f32 %v1842_v24, %v482_v63  ;;  %v1414_v3 = vpop.f32.mrb[7].mxu0  ;;  %v642_v4 = vadd.f32 %v1263_v52, %v536_v61  ;;  %v1442_v7 = vpop.f32.mrb[7].mxu1  ;;  %v1349_v63 = vld [vmem:[%s1835_s29 + $0x20] sm:$0xff]  }
 0x10a   : > { %v539_v5 = vadd.f32 %v1842_v24, %v538_v0 }
 0x10b   : > { %v629_v9 = vadd.f32 %v1236_v54, %v483_v2  ;;  %v668_v10 = vmax.f32 %v642_v4, 0.0  ;;  %v654_v13 = vmax.f32 %v628_v1, 0.0  ;;  %v1356_v1 = vld [vmem:[%s1835_s29 + $0x58] sm:$0xff]  }
 0x10c   : > { %v643_v11 = vadd.f32 %v1264_v56, %v539_v5  ;;  %v1247_v5 = vunpack.c.l.bf16 %v1349_v63 }
 0x10d   : > { %v655_v14 = vmax.f32 %v629_v9, 0.0  ;;  %v1275_v9 = vunpack.c.l.bf16 %v1356_v1 }
 0x10e   : > { %v669_v15 = vmax.f32 %v643_v11, 0.0  ;;  %v487_v17 = vpop.f32.mrb[8].mxu0  ;;  %v543_v19 = vpop.f32.mrb[8].mxu1  ;;  %v1248_v11 = vunpack.c.h.bf16 %v1349_v63 }
 0x10f   : > { %v1289_v21 = vpack.c.bf16 %v655_v14, %v654_v13  ;;  %v488_v23 = vadd.f32 %v1842_v24, %v487_v17  ;;  %v1417_v25 = vpop.f32.mrb[9].mxu0  ;;  %v544_v26 = vadd.f32 %v1842_v24, %v543_v19  ;;  %v1445_v27 = vpop.f32.mrb[9].mxu1  ;;  %v1276_v13 = vunpack.c.h.bf16 %v1356_v1 }
 0x110   : > { %v1324_v22 = vpack.c.bf16 %v669_v15, %v668_v10  ;;  %v490_v28 = vpop.f32.mrb[10].mxu0  ;;  %v546_v29 = vpop.f32.mrb[10].mxu1 }
 0x111   : > { %1358 = vst [vmem:[%s1853_s15 + $0x8] sm:$0xff] %v1289_v21   ;;  %v630_v30 = vadd.f32 %v1239_v12, %v488_v23  ;;  %v491_v31 = vadd.f32 %v1842_v24, %v490_v28  ;;  %v1418_v32 = vpop.f32.mrb[11].mxu0  ;;  %v644_v33 = vadd.f32 %v1267_v16, %v544_v26  ;;  %v547_v34 = vadd.f32 %v1842_v24, %v546_v29  ;;  %v1446_v36 = vpop.f32.mrb[11].mxu1  ;;  %v1350_v28 = vld [vmem:[%s1835_s29 + $0x28] sm:$0xff]  }
 0x112   : > { %1365 = vst [vmem:[%s1853_s15 + $0x40] sm:$0xff] %v1324_v22  }
 0x113   : > { %v631_v38 = vadd.f32 %v1240_v18, %v491_v31  ;;  %v670_v39 = vmax.f32 %v644_v33, 0.0  ;;  %v645_v40 = vadd.f32 %v1268_v20, %v547_v34  ;;  %v656_v42 = vmax.f32 %v630_v30, 0.0  ;;  %v1357_v30 = vld [vmem:[%s1835_s29 + $0x60] sm:$0xff]  }
 0x114   : > { %v1251_v34 = vunpack.c.l.bf16 %v1350_v28 }
 0x115   : > { %v657_v43 = vmax.f32 %v631_v38, 0.0  ;;  %v671_v44 = vmax.f32 %v645_v40, 0.0  ;;  %v1279_v38 = vunpack.c.l.bf16 %v1357_v30  ;;  %v1252_v40 = vunpack.c.h.bf16 %v1350_v28 }
 0x116   : > { %v495_v46 = vpop.f32.mrb[12].mxu0  ;;  %v551_v48 = vpop.f32.mrb[12].mxu1 }
 0x117   : > { %v1294_v50 = vpack.c.bf16 %v657_v43, %v656_v42  ;;  %v1329_v51 = vpack.c.bf16 %v671_v44, %v670_v39  ;;  %v496_v52 = vadd.f32 %v1842_v24, %v495_v46  ;;  %v1421_v53 = vpop.f32.mrb[13].mxu0  ;;  %v552_v54 = vadd.f32 %v1842_v24, %v551_v48  ;;  %v1449_v55 = vpop.f32.mrb[13].mxu1 }
 0x118   : > { %v498_v56 = vpop.f32.mrb[14].mxu0  ;;  %v554_v57 = vpop.f32.mrb[14].mxu1  ;;  %v1280_v42 = vunpack.c.h.bf16 %v1357_v30 }
 0x119   : > { %1359 = vst [vmem:[%s1853_s15 + $0x10] sm:$0xff] %v1294_v50   ;;  %1366 = vst [vmem:[%s1853_s15 + $0x48] sm:$0xff] %v1329_v51   ;;  %v632_v58 = vadd.f32 %v1243_v41, %v496_v52  ;;  %v499_v59 = vadd.f32 %v1842_v24, %v498_v56  ;;  %v1422_v60 = vpop.f32.mrb[15].mxu0  ;;  %v646_v61 = vadd.f32 %v1271_v45, %v552_v54  ;;  %v1450_v0 = vpop.f32.mrb[15].mxu1 }
 0x11a   : > { %v555_v62 = vadd.f32 %v1842_v24, %v554_v57  ;;  %v1351_v57 = vld [vmem:[%s1835_s29 + $0x30] sm:$0xff]  }
 0x11b   : > { %v633_v2 = vadd.f32 %v1244_v47, %v499_v59  ;;  %v672_v3 = vmax.f32 %v646_v61, 0.0  ;;  %v658_v6 = vmax.f32 %v632_v58, 0.0  ;;  %v1255_v0 = vunpack.c.l.bf16 %v1351_v57 }
 0x11c   : > { %v647_v4 = vadd.f32 %v1272_v49, %v555_v62 }
 0x11d   : > { %v659_v7 = vmax.f32 %v633_v2, 0.0 }
 0x11e   : > { %v673_v8 = vmax.f32 %v647_v4, 0.0  ;;  %v503_v10 = vpop.f32.mrb[16].mxu0  ;;  %v559_v12 = vpop.f32.mrb[16].mxu1 }
 0x11f   : > { %v1299_v14 = vpack.c.bf16 %v659_v7, %v658_v6  ;;  %v504_v16 = vadd.f32 %v1842_v24, %v503_v10  ;;  %v1425_v17 = vpop.f32.mrb[17].mxu0  ;;  %v560_v18 = vadd.f32 %v1842_v24, %v559_v12  ;;  %v1453_v19 = vpop.f32.mrb[17].mxu1  ;;  %v1256_v6 = vunpack.c.h.bf16 %v1351_v57 }
 0x120   : > { %v1334_v15 = vpack.c.bf16 %v673_v8, %v672_v3  ;;  %v506_v20 = vpop.f32.mrb[18].mxu0  ;;  %v562_v21 = vpop.f32.mrb[18].mxu1 }
 0x121   : > { %1360 = vst [vmem:[%s1853_s15 + $0x18] sm:$0xff] %v1299_v14   ;;  %v634_v22 = vadd.f32 %v1247_v5, %v504_v16  ;;  %v507_v23 = vadd.f32 %v1842_v24, %v506_v20  ;;  %v1426_v25 = vpop.f32.mrb[19].mxu0  ;;  %v648_v26 = vadd.f32 %v1275_v9, %v560_v18  ;;  %v563_v27 = vadd.f32 %v1842_v24, %v562_v21  ;;  %v1454_v29 = vpop.f32.mrb[19].mxu1 }
 0x122   : > { %1367 = vst [vmem:[%s1853_s15 + $0x50] sm:$0xff] %v1334_v15  }
 0x123   : > { %v635_v31 = vadd.f32 %v1248_v11, %v507_v23  ;;  %v674_v32 = vmax.f32 %v648_v26, 0.0  ;;  %v649_v33 = vadd.f32 %v1276_v13, %v563_v27  ;;  %v660_v35 = vmax.f32 %v634_v22, 0.0 }
 0x125   : > { %v661_v36 = vmax.f32 %v635_v31, 0.0  ;;  %v675_v37 = vmax.f32 %v649_v33, 0.0 }
 0x126   : > { %v511_v39 = vpop.f32.mrb[20].mxu0  ;;  %v567_v41 = vpop.f32.mrb[20].mxu1 }
 0x127   : > { %v1304_v43 = vpack.c.bf16 %v661_v36, %v660_v35  ;;  %v1339_v44 = vpack.c.bf16 %v675_v37, %v674_v32  ;;  %v512_v45 = vadd.f32 %v1842_v24, %v511_v39  ;;  %v1429_v46 = vpop.f32.mrb[21].mxu0  ;;  %v568_v47 = vadd.f32 %v1842_v24, %v567_v41  ;;  %v1457_v48 = vpop.f32.mrb[21].mxu1 }
 0x128   : > { %v514_v49 = vpop.f32.mrb[22].mxu0  ;;  %v570_v50 = vpop.f32.mrb[22].mxu1 }
 0x129   : > { %1361 = vst [vmem:[%s1853_s15 + $0x20] sm:$0xff] %v1304_v43   ;;  %1368 = vst [vmem:[%s1853_s15 + $0x58] sm:$0xff] %v1339_v44   ;;  %v636_v51 = vadd.f32 %v1251_v34, %v512_v45  ;;  %v515_v52 = vadd.f32 %v1842_v24, %v514_v49  ;;  %v1430_v53 = vpop.f32.mrb[23].mxu0  ;;  %v650_v54 = vadd.f32 %v1279_v38, %v568_v47  ;;  %v1458_v56 = vpop.f32.mrb[23].mxu1 }
 0x12a   : > { %v571_v55 = vadd.f32 %v1842_v24, %v570_v50 }
 0x12b   : > { %v637_v58 = vadd.f32 %v1252_v40, %v515_v52  ;;  %v676_v59 = vmax.f32 %v650_v54, 0.0  ;;  %v662_v61 = vmax.f32 %v636_v51, 0.0 }
 0x12c   : > { %v651_v60 = vadd.f32 %v1280_v42, %v571_v55 }
 0x12d   : > { %v663_v62 = vmax.f32 %v637_v58, 0.0 }
 0x12e   : > { %v677_v63 = vmax.f32 %v651_v60, 0.0  ;;  %v519_v1 = vpop.f32.mrb[24].mxu0 }
 0x12f   : > { %v1309_v2 = vpack.c.bf16 %v663_v62, %v662_v61  ;;  %v520_v4 = vadd.f32 %v1842_v24, %v519_v1  ;;  %v1433_v5 = vpop.f32.mrb[25].mxu0 }
 0x130   : > { %v1344_v3 = vpack.c.bf16 %v677_v63, %v676_v59  ;;  %v522_v7 = vpop.f32.mrb[26].mxu0 }
 0x131   : > { %1362 = vst [vmem:[%s1853_s15 + $0x28] sm:$0xff] %v1309_v2   ;;  %v638_v8 = vadd.f32 %v1255_v0, %v520_v4  ;;  %v523_v9 = vadd.f32 %v1842_v24, %v522_v7  ;;  %v1434_v10 = vpop.f32.mrb[27].mxu0 }
 0x132   : > { %1369 = vst [vmem:[%s1853_s15 + $0x60] sm:$0xff] %v1344_v3  }
 0x133   : > { %v639_v11 = vadd.f32 %v1256_v6, %v523_v9  ;;  %v664_v12 = vmax.f32 %v638_v8, 0.0  ;;  %814 = sbr.rel (!%p1732_p4) target bundleno = 393 (0x189), region = 40 }
 0x135   : > { %v665_v13 = vmax.f32 %v639_v11, 0.0 }
 0x137   : > { %v1314_v14 = vpack.c.bf16 %v665_v13, %v664_v12 }
 0x139   : > { %1363 = vst [vmem:[%s1853_s15 + $0x30] sm:$0xff] %v1314_v14  }
 0x13a   : > { %s2028_s8 = smov (!%p817_p8, %s816_s8), 26 }
 0x13b   : > { %s1190_s13 = sshll.u32 %s2028_s8, 6 }
 0x13c   : > { %p1193_p9 = scmp.eq.s32.totalorder %s1190_s13, 0 }
 0x13d   : > { %1588 = sdivrem.u32 (!%p1193_p9), %s2028_s8, 26 }
 0x13e   : > { %825 = sbr.rel (%p1193_p9) target bundleno = 393 (0x189), region = 44 }
 0x146   : > { %s1910_s23 = spop.drf %1588 }
 0x147   : > { %p1194_p10 = scmp.le.s32.totalorder %s1910_s23, 0 }
 0x148   : > { %s2021_s18 = smov (!%p1194_p10), %s1904_s12  ;;  %s2022_s28 = smov (!%p1194_p10), %s1853_s15 }
 0x149   : > { %1086 = sbr.rel (%p1194_p10) target bundleno = 364 (0x16c), region = 119  ;;  %s1919_s14 = smov (!%p1194_p10), 0  }
 0x14a   : > { %s1921_s17 = smov (!%p1194_p10), 0  }
 0x150 LB: >> { %v842_v24 = vld [vmem:[%s1654_s28] sm:$0xf]  ;;  %v844_v15 = vld [vmem:[%s1654_s28 + $0x4] sm:$0xf]  ;;  %v846_v16 = vld [vmem:[%s1654_s28 + $0x8] sm:$0xf]  ;;  %s1662_s17 = sphi %s1921_s17, %s836_s17   ;;  %s1658_s14 = sphi %s1919_s14, %s2023_s14   ;;  %s1654_s28 = sphi %s2022_s28, %s899_s28   ;;  %s1650_s18 = sphi %s2021_s18, %s900_s18  }
 0x151   : >> { %843 = vst [vmem:[%s1650_s18] sm:$0xf] %v842_v24  ;;  %845 = vst [vmem:[%s1650_s18 + $0x4] sm:$0xf] %v844_v15  ;;  %v848_v17 = vld [vmem:[%s1654_s28 + $0xc] sm:$0xf]  ;;  %s894_s20 = sadd.s32 1, %s1658_s14 }
 0x152   : >> { %847 = vst [vmem:[%s1650_s18 + $0x8] sm:$0xf] %v846_v16  ;;  %v850_v18 = vld [vmem:[%s1654_s28 + $0x10] sm:$0xf]  ;;  %v852_v19 = vld [vmem:[%s1654_s28 + $0x14] sm:$0xf]  ;;  %p895_p11 = scmp.ge.s32.totalorder %s894_s20, %s1910_s23 }
 0x153   : >> { %849 = vst [vmem:[%s1650_s18 + $0xc] sm:$0xf] %v848_v17  ;;  %851 = vst [vmem:[%s1650_s18 + $0x10] sm:$0xf] %v850_v18  ;;  %v854_v20 = vld [vmem:[%s1654_s28 + $0x18] sm:$0xf] }
 0x154   : >> { %853 = vst [vmem:[%s1650_s18 + $0x14] sm:$0xf] %v852_v19  ;;  %v856_v21 = vld [vmem:[%s1654_s28 + $0x1c] sm:$0xf]  ;;  %v858_v22 = vld [vmem:[%s1654_s28 + $0x20] sm:$0xf] }
 0x155   : >> { %855 = vst [vmem:[%s1650_s18 + $0x18] sm:$0xf] %v854_v20  ;;  %857 = vst [vmem:[%s1650_s18 + $0x1c] sm:$0xf] %v856_v21  ;;  %v860_v23 = vld [vmem:[%s1654_s28 + $0x24] sm:$0xf] }
 0x156   : >> { %859 = vst [vmem:[%s1650_s18 + $0x20] sm:$0xf] %v858_v22  ;;  %v862_v25 = vld [vmem:[%s1654_s28 + $0x28] sm:$0xf]  ;;  %v864_v26 = vld [vmem:[%s1654_s28 + $0x2c] sm:$0xf] }
 0x157   : >> { %861 = vst [vmem:[%s1650_s18 + $0x24] sm:$0xf] %v860_v23  ;;  %863 = vst [vmem:[%s1650_s18 + $0x28] sm:$0xf] %v862_v25  ;;  %v866_v27 = vld [vmem:[%s1654_s28 + $0x30] sm:$0xf] }
 0x158   : >> { %865 = vst [vmem:[%s1650_s18 + $0x2c] sm:$0xf] %v864_v26  ;;  %v868_v28 = vld [vmem:[%s1654_s28 + $0x34] sm:$0xf]  ;;  %v870_v29 = vld [vmem:[%s1654_s28 + $0x38] sm:$0xf] }
 0x159   : >> { %867 = vst [vmem:[%s1650_s18 + $0x30] sm:$0xf] %v866_v27  ;;  %869 = vst [vmem:[%s1650_s18 + $0x34] sm:$0xf] %v868_v28  ;;  %v872_v30 = vld [vmem:[%s1654_s28 + $0x3c] sm:$0xf] }
 0x15a   : >> { %871 = vst [vmem:[%s1650_s18 + $0x38] sm:$0xf] %v870_v29  ;;  %v874_v31 = vld [vmem:[%s1654_s28 + $0x40] sm:$0xf]  ;;  %v876_v32 = vld [vmem:[%s1654_s28 + $0x44] sm:$0xf] }
 0x15b   : >> { %873 = vst [vmem:[%s1650_s18 + $0x3c] sm:$0xf] %v872_v30  ;;  %875 = vst [vmem:[%s1650_s18 + $0x40] sm:$0xf] %v874_v31  ;;  %v878_v33 = vld [vmem:[%s1654_s28 + $0x48] sm:$0xf] }
 0x15c   : >> { %877 = vst [vmem:[%s1650_s18 + $0x44] sm:$0xf] %v876_v32  ;;  %v880_v34 = vld [vmem:[%s1654_s28 + $0x4c] sm:$0xf]  ;;  %v882_v35 = vld [vmem:[%s1654_s28 + $0x50] sm:$0xf] }
 0x15d   : >> { %879 = vst [vmem:[%s1650_s18 + $0x48] sm:$0xf] %v878_v33  ;;  %881 = vst [vmem:[%s1650_s18 + $0x4c] sm:$0xf] %v880_v34  ;;  %v884_v36 = vld [vmem:[%s1654_s28 + $0x54] sm:$0xf] }
 0x15e   : >> { %883 = vst [vmem:[%s1650_s18 + $0x50] sm:$0xf] %v882_v35  ;;  %v886_v37 = vld [vmem:[%s1654_s28 + $0x58] sm:$0xf]  ;;  %v888_v38 = vld [vmem:[%s1654_s28 + $0x5c] sm:$0xf] }
 0x15f   : >> { %885 = vst [vmem:[%s1650_s18 + $0x54] sm:$0xf] %v884_v36  ;;  %887 = vst [vmem:[%s1650_s18 + $0x58] sm:$0xf] %v886_v37  ;;  %v890_v39 = vld [vmem:[%s1654_s28 + $0x60] sm:$0xf] }
 0x160   : >> { %889 = vst [vmem:[%s1650_s18 + $0x5c] sm:$0xf] %v888_v38  ;;  %v892_v40 = vld [vmem:[%s1654_s28 + $0x64] sm:$0xf]  ;;  %891 = vst [vmem:[%s1650_s18 + $0x60] sm:$0xf] %v890_v39 }
 0x161   : >> { %893 = vst [vmem:[%s1650_s18 + $0x64] sm:$0xf] %v892_v40  ;;  %s2030_s20 = smov (%p895_p11, %s894_s20), 0  ;;  %s836_s17 = sadd.s32 1, %s1662_s17  }
 0x162   : >> { %s897_s21 = smul.u32 104, %s2030_s20  ;;  %p835_p12 = scmp.ge.s32.totalorder %s836_s17, %s1910_s23 }
 0x163   : >> { %s2023_s14 = smov %s2030_s20 }
 0x164   : >> { %s899_s28 = scalar_lea.vmem %s1853_s15, %s897_s21 [#allocation2]   ;;  %s900_s18 = scalar_lea.vmem %s1904_s12, %s897_s21  }
 0x165   : > { %838 = sbr.rel (!%p835_p12) target bundleno = 336 (0x150), region = 125 }
 0x16c PF: > { %1590 = sdivrem.u32 %s2028_s8, 26 }
 0x16d   : > { %s1195_s24 = smul.u32 104, %s1910_s23 }
 0x16f   : > { %s905_s25 = scalar_lea.vmem %s1853_s15, %s1195_s24 [#allocation2]   ;;  %s907_s26 = scalar_lea.vmem %s1904_s12, %s1195_s24  }
 0x175   : > { %s1591_s27 = spop.drf %1590 }
 0x176   : > { %p1197_p13 = scmp.le.s32.totalorder %s1591_s27, 0 }
 0x177   : > { %s1664_s29 = smov (!%p1197_p13), %s907_s26   ;;  %s1668_s30 = smov (!%p1197_p13), %s905_s25  }
 0x178   : > { %1100 = sbr.rel (%p1197_p13) target bundleno = 393 (0x189), region = 130  ;;  %s1672_s7 = smov (!%p1197_p13), 0  }
 0x179   : > { %s1676_s5 = smov (!%p1197_p13), 0  }
 0x17f LB: >> { %v917_v41 = vld [vmem:[%s1670_s30] sm:$0xf]  ;;  %s919_s6 = sadd.s32 1, %s1674_s7  ;;  %s911_s5 = sadd.s32 1, %s1678_s5   ;;  %s1678_s5 = sphi %s1676_s5, %s911_s5   ;;  %s1674_s7 = sphi %s1672_s7, %s1673_s7   ;;  %s1670_s30 = sphi %s1668_s30, %s924_s30   ;;  %s1666_s29 = sphi %s1664_s29, %s925_s29  }
 0x180   : >> { %918 = vst [vmem:[%s1666_s29] sm:$0xf] %v917_v41  ;;  %p920_p0 = scmp.ge.s32.totalorder %s919_s6, %s1591_s27  ;;  %p910_p1 = scmp.ge.s32.totalorder %s911_s5, %s1591_s27 }
 0x182   : >> { %s2032_s6 = smov (%p920_p0, %s919_s6), 0  ;;  %913 = sbr.rel (!%p910_p1) target bundleno = 383 (0x17f), region = 136 }
 0x183   : >> { %s1198_s15 = sshll.u32 %s2032_s6, 2  ;;  %s1673_s7 = smov %s2032_s6  }
 0x184   : >> { %s924_s30 = scalar_lea.vmem %s905_s25, %s1198_s15 [#allocation2]   ;;  %s925_s29 = scalar_lea.vmem %s907_s26, %s1198_s15  }
 0x189 PF: > { %p11_p2 = scmp.ge.s32.totalorder %s1722_s19, 4   ;;  %s2024_s15 = smov %s1642_s16 }
 0x18a   : > { %s2025_s16 = smov %s1730_s22  ;;  %s2026_s17 = smov %s1722_s19 }
 0x18b   :  { %13 = sbr.rel (!%p11_p2) target bundleno = 2 (0x2), region = 147 }

// kernel: _lambda_.20
= control target key start
LH: loop header
LB: loop body
LE: loop exit
PB: predicated region body
PF: predicated region fallthrough
CT: control target
= control target key end

     0   :  { %s990_s12 = smov 0   ;;  %s992_s13 = smov 0   ;;  %s1128_s0 = inlined_call_operand.vmem [shape: bf16[98,128], index: 0, kind: input, shape index: {}]   ;;  %s1129_s1 = inlined_call_operand.vmem [shape: bf16[128,128], index: 1, kind: input, shape index: {}]   ;;  %s1130_s2 = inlined_call_operand.vmem [shape: f32[1,128], index: 2, kind: input, shape index: {}]   ;;  %s1131_s3 = inlined_call_operand.vmem [shape: bf16[98,128], index: 3, kind: output, shape index: {}]  }
   0x1   :  { %s994_s14 = smov 0  }
   0x2 LB: > { %s1003_s15 = sadd.s32 4294967295, %s936_s14   ;;  %s1005_s16 = sadd.s32 1, %s936_s14   ;;  %s936_s14 = sphi %s994_s14, %s1138_s14   ;;  %s932_s13 = sphi %s992_s13, %s1137_s13   ;;  %s928_s12 = sphi %s990_s12, %s1136_s12  }
   0x3   : > { %s85_s17 = ssub.s32 %s936_s14, %s1005_s16  ;;  %s88_s18 = sadd.s32 1, %s932_s13 }
   0x4   : > { %p86_p0 = scmp.eq.s32.totalorder %s85_s17, 0  ;;  %p98_p1 = scmp.ne.s32.totalorder %s932_s13, %s928_s12 }
   0x5   : > { %p99_p2 = scmp.eq.s32.totalorder %s1003_s15, 1  ;;  %p654_p3 = scmp.ge.s32.totalorder %s936_s14, 1 }
   0x6   : > { %s1013_s19 = scalar_select %p86_p0, %s932_s13, %s88_s18  }
   0x7   : > { %p1015_p4 = por %p99_p2, %p98_p1  ;;  %p146_p5 = scmp.lt.s32.totalorder %s936_s14, 3 }
   0x9   : > { %p147_p6 = pnand %p654_p3, %p146_p5 }
   0xa   : > { %v870_v0 = vld [vmem:[%s1129_s1] sm:$0xff] (!%p147_p6)   ;;  %s1023_s23 = sshll.u32 (!%p147_p6), %s1003_s15, 3  ;;  %v871_v1 = vld [vmem:[%s1129_s1 + $0x8] sm:$0xff] (!%p147_p6)   ;;  %v872_v2 = vld [vmem:[%s1129_s1 + $0x10] sm:$0xff] (!%p147_p6)   ;;  %s170_s25 = sand.u32 (!%p147_p6), 1, %s928_s12  }
   0xb   : > { %150 = sbr.rel (%p147_p6) target bundleno = 319 (0x13f), region = 32  ;;  %p178_p7 = scmp.lt.s32.totalorder (!%p147_p6), %s1023_s23, 12  ;;  %742 = vmatprep.subr.bf16.mxu0 (!%p147_p6), %v870_v0  ;;  %766 = vmatprep.subr.bf16.mxu1 (!%p147_p6), %v870_v0  ;;  %v873_v3 = vld [vmem:[%s1129_s1 + $0x18] sm:$0xff] (!%p147_p6)   ;;  %v874_v6 = vld [vmem:[%s1129_s1 + $0x20] sm:$0xff] (!%p147_p6)   ;;  %v875_v7 = vld [vmem:[%s1129_s1 + $0x28] sm:$0xff] (!%p147_p6)  }
   0xc   : > { %743 = vmatpush3.bf16.msra.mxu0 (!%p147_p6), %v870_v0  ;;  %774 = vmatpush3.bf16.msra.mxu1 (!%p147_p6), %v870_v0  ;;  %v876_v8 = vld [vmem:[%s1129_s1 + $0x30] sm:$0xff] (!%p147_p6)   ;;  %v877_v9 = vld [vmem:[%s1129_s1 + $0x38] sm:$0xff] (!%p147_p6)   ;;  %v658_v12 = vld [vmem:[%s1130_s2] ss:$0 sm:$0xff] (!%p147_p6) }
   0xd   : > { %744 = vmatprep.subr.bf16.mxu0 (!%p147_p6), %v871_v1  ;;  %767 = vmatprep.subr.bf16.mxu1 (!%p147_p6), %v871_v1 }
  0x10   : > { %745 = vmatpush3.bf16.msra.mxu0 (!%p147_p6), %v871_v1  ;;  %775 = vmatpush3.bf16.msra.mxu1 (!%p147_p6), %v871_v1 }
  0x11   : > { %746 = vmatprep.subr.bf16.mxu0 (!%p147_p6), %v872_v2  ;;  %768 = vmatprep.subr.bf16.mxu1 (!%p147_p6), %v872_v2 }
  0x12   : > { %s179_s26 = scalar_select %p178_p7, %s1023_s23, 12 }
  0x13   : > { %s417_s27 = ssub.s32 (%p1015_p4), 13, %s1023_s23  ;;  %s704_s28 = sshll.u32 (%p1015_p4), %s1003_s15, 5 }
  0x14   : > { %s657_s29 = sshll.u32 %s179_s26, 2  ;;  %747 = vmatpush3.bf16.msra.mxu0 %v872_v2  ;;  %776 = vmatpush3.bf16.msra.mxu1 %v872_v2  ;;  %s655_s26 = sshll.u32 %s170_s25, 5 }
  0x15   : > { %s1036_s5 = scalar_lea.vmem %s1128_s0, %s657_s29  ;;  %748 = vmatprep.subr.bf16.mxu0 %v873_v3  ;;  %769 = vmatprep.subr.bf16.mxu1 %v873_v3  ;;  %s1061_s12 = scalar_lea.vmem [#allocation2], %s655_s26  }
  0x16   : > { %v878_v4 = vld [vmem:[%s1036_s5] sm:$0xff]   ;;  %v879_v5 = vld [vmem:[%s1036_s5 + $0x10] sm:$0xff]   ;;  %v880_v10 = vld [vmem:[%s1036_s5 + $0x8] sm:$0xff]   ;;  %p418_p8 = scmp.lt.s32.totalorder (%p1015_p4), %s417_s27, 8  ;;  %s1074_s4 = scalar_lea.vmem (%p1015_p4), %s1131_s3, %s704_s28  }
  0x17   : > { %758 = vmatprep.mubr.bf16.mxu0 %v878_v4  ;;  %762 = vmatprep.mubr.bf16.mxu1 %v879_v5  ;;  %v881_v11 = vld [vmem:[%s1036_s5 + $0x18] sm:$0xff]  }
  0x18   : > { %749 = vmatpush3.bf16.msra.mxu0 %v873_v3  ;;  %777 = vmatpush3.bf16.msra.mxu1 %v873_v3 }
  0x19   : > { %750 = vmatprep.subr.bf16.mxu0 %v874_v6  ;;  %770 = vmatprep.subr.bf16.mxu1 %v874_v6 }
  0x1c   : > { %751 = vmatpush3.bf16.msra.mxu0 %v874_v6  ;;  %778 = vmatpush3.bf16.msra.mxu1 %v874_v6 }
  0x1d   : > { %752 = vmatprep.subr.bf16.mxu0 %v875_v7  ;;  %771 = vmatprep.subr.bf16.mxu1 %v875_v7 }
  0x20   : > { %753 = vmatpush3.bf16.msra.mxu0 %v875_v7  ;;  %779 = vmatpush3.bf16.msra.mxu1 %v875_v7 }
  0x21   : > { %754 = vmatprep.subr.bf16.mxu0 %v876_v8  ;;  %772 = vmatprep.subr.bf16.mxu1 %v876_v8 }
  0x24   : > { %755 = vmatpush3.bf16.msra.mxu0 %v876_v8  ;;  %780 = vmatpush3.bf16.msra.mxu1 %v876_v8 }
  0x25   : > { %756 = vmatprep.subr.bf16.mxu0 %v877_v9  ;;  %773 = vmatprep.subr.bf16.mxu1 %v877_v9 }
  0x28   : > { %757 = vmatpush3.bf16.msra.mxu0 %v877_v9  ;;  %781 = vmatpush3.bf16.msra.mxu1 %v877_v9 }
  0x2b   : > { %759 = vmatmul.mubr.bf16.vlgmr.msra.gmra.mrb[0].mxu0 %v880_v10  ;;  %763 = vmatmul.mubr.bf16.vlgmr.msra.gmra.mrb[0].mxu1 %v881_v11 }
  0xfe   : > { %v760_v13 = vpop.f32.mrb[0].mxu0  ;;  %v764_v14 = vpop.f32.mrb[0].mxu1 }
  0xff   : > { %v339_v15 = vadd.f32 %v760_v13, %v658_v12  ;;  %v355_v16 = vadd.f32 %v764_v14, %v658_v12  ;;  %v330_v17 = vpop.f32.mrb[1].mxu0  ;;  %v346_v18 = vpop.f32.mrb[1].mxu1 }
 0x100   : > { %v331_v19 = vadd.f32 %v658_v12, %v330_v17  ;;  %v347_v20 = vadd.f32 %v658_v12, %v346_v18  ;;  %v761_v21 = vpop.f32.mrb[2].mxu0  ;;  %v765_v22 = vpop.f32.mrb[2].mxu1 }
 0x101   : > { %v342_v23 = vadd.f32 %v761_v21, %v658_v12  ;;  %v358_v24 = vadd.f32 %v765_v22, %v658_v12  ;;  %v333_v25 = vpop.f32.mrb[3].mxu0  ;;  %v349_v26 = vpop.f32.mrb[3].mxu1  ;;  %v363_v29 = vmax.f32 %v339_v15, 0.0  ;;  %v367_v30 = vmax.f32 %v355_v16, 0.0 }
 0x102   : > { %v334_v27 = vadd.f32 %v658_v12, %v333_v25  ;;  %v350_v28 = vadd.f32 %v658_v12, %v349_v26  ;;  %v361_v33 = vmax.f32 %v331_v19, 0.0  ;;  %v365_v34 = vmax.f32 %v347_v20, 0.0  ;;  %415 = sbr.rel (!%p1015_p4) target bundleno = 319 (0x13f), region = 36 }
 0x103   : > { %v364_v31 = vmax.f32 %v342_v23, 0.0  ;;  %v368_v32 = vmax.f32 %v358_v24, 0.0 }
 0x104   : > { %v362_v35 = vmax.f32 %v334_v27, 0.0  ;;  %v366_v36 = vmax.f32 %v350_v28, 0.0 }
 0x105   : > { %v715_v37 = vpack.c.bf16 %v364_v31, %v363_v29  ;;  %v725_v38 = vpack.c.bf16 %v368_v32, %v367_v30 }
 0x106   : > { %v710_v39 = vpack.c.bf16 %v362_v35, %v361_v33  ;;  %v720_v40 = vpack.c.bf16 %v366_v36, %v365_v34 }
 0x107   : > { %727 = vst [vmem:[%s1061_s12 + $0x8] sm:$0xff] %v715_v37   ;;  %729 = vst [vmem:[%s1061_s12 + $0x18] sm:$0xff] %v725_v38  }
 0x108   : > { %711 = vst [vmem:[%s1061_s12] sm:$0xff] %v710_v39   ;;  %728 = vst [vmem:[%s1061_s12 + $0x10] sm:$0xff] %v720_v40  }
 0x109   : > { %s1140_s27 = smov (!%p418_p8, %s417_s27), 8 }
 0x10a   : > { %s681_s5 = sshll.u32 %s1140_s27, 6 }
 0x10b   : > { %p684_p9 = scmp.eq.s32.totalorder %s681_s5, 0 }
 0x10c   : > { %s1080_s6 = sshrl.u32 (!%p684_p9), %s1140_s27, 3 }
 0x10d   : > { %426 = sbr.rel (%p684_p9) target bundleno = 319 (0x13f), region = 40  ;;  %p685_p10 = scmp.le.s32.totalorder (!%p684_p9), %s1080_s6, 0 }
 0x114   : > { %607 = sbr.rel (%p685_p10) target bundleno = 298 (0x12a), region = 112  ;;  %s1133_s15 = smov (!%p685_p10), %s1074_s4 }
 0x115   : > { %s1134_s20 = smov (!%p685_p10), %s1061_s12  ;;  %s1089_s23 = smov (!%p685_p10), 0  }
 0x116   : > { %s1091_s7 = smov (!%p685_p10), 0  }
 0x11b LB: >> { %v442_v41 = vld [vmem:[%s944_s20] sm:$0xf]  ;;  %v444_v42 = vld [vmem:[%s944_s20 + $0x4] sm:$0xf]  ;;  %v446_v43 = vld [vmem:[%s944_s20 + $0x8] sm:$0xf]  ;;  %s952_s7 = sphi %s1091_s7, %s436_s7   ;;  %s948_s23 = sphi %s1089_s23, %s1135_s23   ;;  %s944_s20 = sphi %s1134_s20, %s463_s20   ;;  %s940_s15 = sphi %s1133_s15, %s464_s15  }
 0x11c   : >> { %443 = vst [vmem:[%s940_s15] sm:$0xf] %v442_v41  ;;  %445 = vst [vmem:[%s940_s15 + $0x4] sm:$0xf] %v444_v42  ;;  %v448_v44 = vld [vmem:[%s944_s20 + $0xc] sm:$0xf]  ;;  %s458_s8 = sadd.s32 1, %s948_s23 }
 0x11d   : >> { %447 = vst [vmem:[%s940_s15 + $0x8] sm:$0xf] %v446_v43  ;;  %v450_v45 = vld [vmem:[%s944_s20 + $0x10] sm:$0xf]  ;;  %v452_v46 = vld [vmem:[%s944_s20 + $0x14] sm:$0xf]  ;;  %p459_p11 = scmp.ge.s32.totalorder %s458_s8, %s1080_s6 }
 0x11e   : >> { %449 = vst [vmem:[%s940_s15 + $0xc] sm:$0xf] %v448_v44  ;;  %451 = vst [vmem:[%s940_s15 + $0x10] sm:$0xf] %v450_v45  ;;  %v454_v47 = vld [vmem:[%s944_s20 + $0x18] sm:$0xf] }
 0x11f   : >> { %453 = vst [vmem:[%s940_s15 + $0x14] sm:$0xf] %v452_v46  ;;  %v456_v48 = vld [vmem:[%s944_s20 + $0x1c] sm:$0xf]  ;;  %455 = vst [vmem:[%s940_s15 + $0x18] sm:$0xf] %v454_v47 }
 0x120   : >> { %457 = vst [vmem:[%s940_s15 + $0x1c] sm:$0xf] %v456_v48  ;;  %s1142_s8 = smov (%p459_p11, %s458_s8), 0  ;;  %s436_s7 = sadd.s32 1, %s952_s7  }
 0x121   : >> { %s686_s9 = sshll.u32 %s1142_s8, 5  ;;  %p435_p12 = scmp.ge.s32.totalorder %s436_s7, %s1080_s6 }
 0x122   : >> { %s463_s20 = scalar_lea.vmem %s1061_s12, %s686_s9 [#allocation2]   ;;  %s464_s15 = scalar_lea.vmem %s1074_s4, %s686_s9  }
 0x123   : >> { %s1135_s23 = smov %s1142_s8  ;;  %438 = sbr.rel (!%p435_p12) target bundleno = 283 (0x11b), region = 118 }
 0x12a PF: > { %s1110_s10 = sand.u32 7, %s1140_s27   ;;  %s705_s11 = sshll.u32 %s1080_s6, 5 }
 0x12b   : > { %s469_s14 = scalar_lea.vmem %s1061_s12, %s705_s11 [#allocation2]   ;;  %s471_s17 = scalar_lea.vmem %s1074_s4, %s705_s11  }
 0x12c   : > { %p691_p13 = scmp.le.s32.totalorder %s1110_s10, 0 }
 0x12d   : > { %s954_s18 = smov (!%p691_p13), %s471_s17   ;;  %s958_s21 = smov (!%p691_p13), %s469_s14  }
 0x12e   : > { %621 = sbr.rel (%p691_p13) target bundleno = 319 (0x13f), region = 123  ;;  %s962_s22 = smov (!%p691_p13), 0  }
 0x12f   : > { %s966_s24 = smov (!%p691_p13), 0  }
 0x135 LB: >> { %v481_v49 = vld [vmem:[%s960_s21] sm:$0xf]  ;;  %s483_s25 = sadd.s32 1, %s964_s22  ;;  %s475_s24 = sadd.s32 1, %s968_s24   ;;  %s968_s24 = sphi %s966_s24, %s475_s24   ;;  %s964_s22 = sphi %s962_s22, %s963_s22   ;;  %s960_s21 = sphi %s958_s21, %s488_s21   ;;  %s956_s18 = sphi %s954_s18, %s489_s18  }
 0x136   : >> { %482 = vst [vmem:[%s956_s18] sm:$0xf] %v481_v49  ;;  %p484_p0 = scmp.ge.s32.totalorder %s483_s25, %s1110_s10  ;;  %p474_p1 = scmp.ge.s32.totalorder %s475_s24, %s1110_s10 }
 0x138   : >> { %s1144_s25 = smov (%p484_p0, %s483_s25), 0  ;;  %477 = sbr.rel (!%p474_p1) target bundleno = 309 (0x135), region = 129 }
 0x139   : >> { %s692_s26 = sshll.u32 %s1144_s25, 2  ;;  %s963_s22 = smov %s1144_s25  }
 0x13a   : >> { %s488_s21 = scalar_lea.vmem %s469_s14, %s692_s26 [#allocation2]   ;;  %s489_s18 = scalar_lea.vmem %s471_s17, %s692_s26  }
 0x13f PF: > { %p10_p2 = scmp.ge.s32.totalorder %s1005_s16, 4   ;;  %s1136_s12 = smov %s932_s13 }
 0x140   : > { %s1137_s13 = smov %s1013_s19  ;;  %s1138_s14 = smov %s1005_s16 }
 0x141   :  { %12 = sbr.rel (!%p10_p2) target bundleno = 2 (0x2), region = 140 }

// kernel: _lambda_.17
= control target key start
LH: loop header
LB: loop body
LE: loop exit
PB: predicated region body
PF: predicated region fallthrough
CT: control target
= control target key end

     0   :  { %vm250_vm0 = vcmask 1044480   ;;  %vm1223_vm1 = vcmask 1045504   ;;  %s4061_s1 = inlined_call_operand.vmem [shape: bf16[3,128,128], index: 1, kind: input, shape index: {}]   ;;  %s4062_s0 = inlined_call_operand.vmem [shape: bf16[476,128], index: 0, kind: input, shape index: {}]   ;;  %s4063_s2 = inlined_call_operand.vmem [shape: f32[1,128], index: 2, kind: input, shape index: {}]   ;;  %s4064_s3 = inlined_call_operand.vmem [shape: bf16[448,128], index: 3, kind: output, shape index: {}]  }
   0x1   :  { %v2947_v0 = vld [vmem:[%s4061_s1 + $0x40] sm:$0xff]   ;;  %v2949_v2 = vld [vmem:[%s4061_s1 + $0x48] sm:$0xff]   ;;  %v2951_v4 = vld [vmem:[%s4061_s1 + $0x50] sm:$0xff]  }
   0x2   :  { %v3083_v1 = vld [vmem:[%s4061_s1] sm:$0xff]   ;;  %2603 = vmatprep.subr.bf16.mxu1 %v2947_v0  ;;  %v3092_v3 = vld [vmem:[%s4061_s1 + $0x8] sm:$0xff]   ;;  %v3102_v5 = vld [vmem:[%s4061_s1 + $0x10] sm:$0xff]  }
   0x3   :  { %2675 = vmatprep.subr.bf16.mxu0 %v3083_v1  ;;  %2604 = vmatpush3.bf16.msra.mxu1 %v2947_v0  ;;  %v2953_v6 = vld [vmem:[%s4061_s1 + $0x58] sm:$0xff]   ;;  %v2955_v8 = vld [vmem:[%s4061_s1 + $0x60] sm:$0xff]   ;;  %v2957_v10 = vld [vmem:[%s4061_s1 + $0x68] sm:$0xff]  }
   0x4   :  { %2676 = vmatpush3.bf16.msra.mxu0 %v3083_v1  ;;  %2605 = vmatprep.subr.bf16.mxu1 %v2949_v2  ;;  %v3112_v7 = vld [vmem:[%s4061_s1 + $0x18] sm:$0xff]   ;;  %v3122_v9 = vld [vmem:[%s4061_s1 + $0x20] sm:$0xff]   ;;  %v3130_v11 = vld [vmem:[%s4061_s1 + $0x28] sm:$0xff]  }
   0x5   :  { %2677 = vmatprep.subr.bf16.mxu0 %v3092_v3  ;;  %v17_v12 = vld [vmem:[%s4062_s0 + $0x8] sm:$0xf]  ;;  %v18_v13 = vld [vmem:[%s4062_s0 + $0xc] sm:$0xf]  ;;  %v3142_v14 = vld [vmem:[%s4062_s0 + $0x10] sm:$0xf] }
   0x6   :  { %v87_v15 = vld [vmem:[%s4062_s0 + $0x4] sm:$0x8]  ;;  %v2090_v16 = vcombine.low %v18_v13, %v3142_v14  ;;  %v20_v19 = vld [vmem:[%s4062_s0 + $0x14] sm:$0xf]  ;;  %v3158_v20 = vld [vmem:[%s4062_s0 + $0x18] sm:$0xf]  ;;  %v2127_v40 = vcombine.low %v17_v12, %v18_v13 }
   0x7   :  { %2606 = vmatpush3.bf16.msra.mxu1 %v2949_v2  ;;  %v2089_v17 = vcombine.low %v87_v15, %v17_v12  ;;  %v2965_v18 = vld [vmem:[%s4062_s0] sm:$0xff]   ;;  %v2959_v22 = vld [vmem:[%s4061_s1 + $0x70] sm:$0xff]   ;;  %v2091_v26 = vcombine.low %v20_v19, %v3158_v20  ;;  %v3175_v27 = vld [vmem:[%s4062_s0 + $0x1c] sm:$0xf]  ;;  %v2128_v44 = vcombine.low %v3142_v14, %v20_v19 }
   0x8   :  { %2678 = vmatpush3.bf16.msra.mxu0 %v3092_v3  ;;  %2607 = vmatprep.subr.bf16.mxu1 %v2951_v4  ;;  %v252_v21 = vrot.slane %v2090_v16, 3  ;;  %v3168_v24 = vld [vmem:[%s4061_s1 + $0x30] sm:$0xff]   ;;  %v3180_v28 = vld [vmem:[%s4062_s0 + $0x20] sm:$0xf]  ;;  %v2961_v29 = vld [vmem:[%s4061_s1 + $0x78] sm:$0xff]   ;;  %v2129_v59 = vcombine.low %v3158_v20, %v3175_v27 }
   0x9   :  { %2679 = vmatprep.subr.bf16.mxu0 %v3102_v5  ;;  %v251_v23 = vrot.slane %v2089_v17, 3  ;;  %2691 = vmatprep.mubr.bf16.mxu0 %v2965_v18  ;;  %v3190_v30 = vld [vmem:[%s4061_s1 + $0x38] sm:$0xff]   ;;  %v2092_v31 = vcombine.low %v3175_v27, %v3180_v28  ;;  %v254_v32 = vrot.slane %v2091_v26, 3  ;;  %v3197_v33 = vld [vmem:[%s4062_s0 + $0x24] sm:$0xf]  ;;  %v2971_v45 = vld [vmem:[%s4061_s1 + $0x88] sm:$0xff]  }
   0xa   :  { %v3202_v34 = vld [vmem:[%s4062_s0 + $0x28] sm:$0xf]  ;;  %v3208_v35 = vld [vmem:[%s4062_s0 + $0x2c] sm:$0xf]  ;;  %v3213_v36 = vld [vmem:[%s4062_s0 + $0x30] sm:$0xf]  ;;  %v2130_v60 = vcombine.low %v3180_v28, %v3197_v33 }
   0xb   :  { %2608 = vmatpush3.bf16.msra.mxu1 %v2951_v4  ;;  %v253_v25 = vsel %vm250_vm0, %v251_v23, %v252_v21  ;;  %v2968_v37 = vld [vmem:[%s4061_s1 + $0x80] sm:$0xff]   ;;  %v256_v38 = vrot.slane %v2092_v31, 3  ;;  %v255_v39 = vsel %vm250_vm0, %v252_v21, %v254_v32  ;;  %v2093_v41 = vcombine.low %v3197_v33, %v3202_v34  ;;  %v3234_v46 = vld [vmem:[%s4062_s0 + $0x34] sm:$0xf]  ;;  %v3239_v47 = vld [vmem:[%s4062_s0 + $0x38] sm:$0xf] }
   0xc   :  { %2680 = vmatpush3.bf16.msra.mxu0 %v3102_v5  ;;  %2609 = vmatprep.subr.bf16.mxu1 %v2953_v6  ;;  %v2094_v42 = vcombine.low %v3208_v35, %v3213_v36  ;;  %v2974_v49 = vld [vmem:[%s4061_s1 + $0x90] sm:$0xff]   ;;  %v3250_v51 = vld [vmem:[%s4062_s0 + $0x3c] sm:$0xf]  ;;  %v3255_v52 = vld [vmem:[%s4062_s0 + $0x78] sm:$0xf]  ;;  %v2095_v61 = vcombine.low %v3234_v46, %v3239_v47 }
   0xd   :  { %2681 = vmatprep.subr.bf16.mxu0 %v3112_v7  ;;  %2619 = vmatprep.mubr.bf16.mxu1 %v253_v25  ;;  %v257_v43 = vsel %vm250_vm0, %v254_v32, %v256_v38  ;;  %v258_v48 = vrot.slane %v2093_v41, 3  ;;  %v3260_v53 = vld [vmem:[%s4062_s0 + $0x7c] sm:$0xf]  ;;  %v3265_v54 = vld [vmem:[%s4062_s0 + $0x80] sm:$0xf] }
   0xe   :  { %v3245_v50 = vrot.slane %v2094_v42, 3  ;;  %v3270_v55 = vld [vmem:[%s4062_s0 + $0x40] sm:$0xf]  ;;  %v2104_v56 = vcombine.low %v3260_v53, %v3265_v54  ;;  %v3288_v62 = vld [vmem:[%s4062_s0 + $0x84] sm:$0xf]  ;;  %v262_v19 = vrot.slane %v2095_v61, 3 }
   0xf   :  { %2610 = vmatpush3.bf16.msra.mxu1 %v2953_v6  ;;  %v259_v58 = vsel %vm250_vm0, %v256_v38, %v258_v48  ;;  %v2096_v0 = vcombine.low %v3250_v51, %v3270_v55  ;;  %v3308_v4 = vld [vmem:[%s4062_s0 + $0x44] sm:$0xf]  ;;  %v3313_v6 = vld [vmem:[%s4062_s0 + $0x48] sm:$0xf]  ;;  %v3322_v12 = vld [vmem:[%s4062_s0 + $0x8c] sm:$0xf] }
  0x10   :  { %2682 = vmatpush3.bf16.msra.mxu0 %v3112_v7  ;;  %2611 = vmatprep.subr.bf16.mxu1 %v2955_v8  ;;  %v261_v63 = vsel %vm250_vm0, %v258_v48, %v3245_v50  ;;  %v3327_v13 = vld [vmem:[%s4062_s0 + $0x90] sm:$0xf]  ;;  %v3332_v14 = vld [vmem:[%s4062_s0 + $0x4c] sm:$0xf]  ;;  %v3344_v17 = vld [vmem:[%s4062_s0 + $0x94] sm:$0xf] }
  0x11   :  { %2683 = vmatprep.subr.bf16.mxu0 %v3122_v9  ;;  %v3337_v15 = vld [vmem:[%s4062_s0 + $0x50] sm:$0xf]  ;;  %v2106_v16 = vcombine.low %v3322_v12, %v3327_v13  ;;  %v2984_v20 = vld [vmem:[%s4061_s1 + $0xa0] sm:$0xff]   ;;  %v3358_v25 = vrot.slane %v2096_v0, 3  ;;  %v3365_v28 = vld [vmem:[%s4062_s0 + $0x9c] sm:$0xf] }
  0x12   :  { %v3377_v32 = vld [vmem:[%s4062_s0 + $0xa0] sm:$0xf]  ;;  %v3392_v38 = vld [vmem:[%s4062_s0 + $0xa4] sm:$0xf]  ;;  %v2098_v41 = vcombine.low %v3332_v14, %v3337_v15  ;;  %v3414_v48 = vld [vmem:[%s4062_s0 + $0x54] sm:$0xf] }
  0x13   :  { %2612 = vmatpush3.bf16.msra.mxu1 %v2955_v8  ;;  %v3315_v8 = vrot.slane %v2104_v56, 3  ;;  %v284_v26 = vrot.slane %v2106_v16, 3  ;;  %v3461_v16 = vld [vmem:[%s4062_s0 + $0x5c] sm:$0xf]  ;;  %v3546_v33 = vld [vmem:[%s4062_s0 + $0xcc] sm:$0xf] }
  0x14   :  { %2684 = vmatpush3.bf16.msra.mxu0 %v3122_v9  ;;  %2613 = vmatprep.subr.bf16.mxu1 %v2957_v10  ;;  %4076 = vst [vmem:[#allocation5_spill] sm:$0xff] %v3546_v33  ;;  %v3595_v23 = vld [vmem:[%s4062_s0 + $0xdc] sm:$0xf] }
  0x15   :  { %2685 = vmatprep.subr.bf16.mxu0 %v3130_v11  ;;  %4079 = vst [vmem:[#allocation8_spill] sm:$0xff] %v3595_v23 }
  0x17   :  { %2614 = vmatpush3.bf16.msra.mxu1 %v2957_v10 }
  0x18   :  { %2686 = vmatpush3.bf16.msra.mxu0 %v3130_v11  ;;  %2615 = vmatprep.subr.bf16.mxu1 %v2959_v22 }
  0x19   :  { %2687 = vmatprep.subr.bf16.mxu0 %v3168_v24 }
  0x1b   :  { %2616 = vmatpush3.bf16.msra.mxu1 %v2959_v22  ;;  %v3354_v22 = vld [vmem:[%s4062_s0 + $0x98] sm:$0xf] }
  0x1c   :  { %2688 = vmatpush3.bf16.msra.mxu0 %v3168_v24  ;;  %2617 = vmatprep.subr.bf16.mxu1 %v2961_v29  ;;  %v2107_v27 = vcombine.low %v3344_v17, %v3354_v22 }
  0x1d   :  { %2689 = vmatprep.subr.bf16.mxu0 %v3190_v30 }
  0x1f   :  { %2618 = vmatpush3.bf16.msra.mxu1 %v2961_v29  ;;  %v2131_v29 = vcombine.low %v3202_v34, %v3208_v35  ;;  %v2108_v35 = vcombine.low %v3365_v28, %v3377_v32 }
  0x20   :  { %2690 = vmatpush3.bf16.msra.mxu0 %v3190_v30  ;;  %2819 = vmatprep.subr.bf16.mxu1 %v3083_v1 }
  0x21   :  { %2747 = vmatprep.subr.bf16.mxu0 %v2968_v37  ;;  %v288_v56 = vrot.slane %v2108_v35, 3  ;;  %v3490_v35 = vld [vmem:[%s4062_s0 + $0x64] sm:$0xf] }
  0x22   :  { %2620 = vmatmul.mubr.bf16.vlgmr.msra.gmra.mrb[0].mxu1 %v255_v39  ;;  %v3397_v39 = vld [vmem:[%s4062_s0 + $0xa8] sm:$0xf] }
  0x23   :  { %2692 = vmatmul.mubr.bf16.vlgmr.msra.gmra.mrb[0].mxu0 %v2127_v40  ;;  %2827 = vmatpush3.bf16.msra.mxu1 %v3083_v1  ;;  %v3298_v1 = vld [vmem:[%s4062_s0 + $0x88] sm:$0xf]  ;;  %v263_v40 = vsel %vm250_vm0, %v3245_v50, %v262_v19  ;;  %v2109_v42 = vcombine.low %v3392_v38, %v3397_v39 }
  0x24   :  { %2748 = vmatpush3.bf16.msra.mxu0 %v2968_v37  ;;  %2623 = vmatprep.mubr.bf16.mxu1 %v257_v43  ;;  %v2105_v10 = vcombine.low %v3288_v62, %v3298_v1  ;;  %v2097_v37 = vcombine.low %v3308_v4, %v3313_v6 }
  0x25   :  { %2695 = vmatprep.mubr.bf16.mxu0 %v2128_v44  ;;  %2749 = vmatprep.subr.bf16.mxu0 %v2971_v45  ;;  %v265_v44 = vsel %vm250_vm0, %v262_v19, %v3358_v25 }
  0x26   :  { %2820 = vmatprep.subr.bf16.mxu1 %v3092_v3  ;;  %v282_v21 = vrot.slane %v2105_v10, 3  ;;  %v3456_v10 = vrot.slane %v2098_v41, 3  ;;  %v2994_v41 = vld [vmem:[%s4061_s1 + $0xb0] sm:$0xff]  }
  0x27   :  { %2828 = vmatpush3.bf16.msra.mxu1 %v3092_v3  ;;  %v2979_v3 = vld [vmem:[%s4061_s1 + $0x98] sm:$0xff]  }
  0x28   :  { %2750 = vmatpush3.bf16.msra.mxu0 %v2971_v45  ;;  %2821 = vmatprep.subr.bf16.mxu1 %v3102_v5  ;;  %v3372_v31 = vsel %vm250_vm0, %v3315_v8, %v282_v21  ;;  %v3385_v34 = vsel %vm250_vm0, %v282_v21, %v284_v26  ;;  %v2132_v45 = vcombine.low %v3213_v36, %v3234_v46  ;;  %v3432_v36 = vld [vmem:[%s4062_s0 + $0xb0] sm:$0xf]  ;;  %v2989_v46 = vld [vmem:[%s4061_s1 + $0xa8] sm:$0xff]  }
  0x29   :  { %2751 = vmatprep.subr.bf16.mxu0 %v2974_v49 }
  0x2a   :  { %2624 = vmatmul.mubr.bf16.gmra.mrb[4].mxu1 %v259_v58  ;;  %v3427_v58 = vld [vmem:[%s4062_s0 + $0xac] sm:$0xf] }
  0x2b   :  { %2696 = vmatmul.mubr.bf16.gmra.mrb[4].mxu0 %v2129_v59  ;;  %2627 = vmatprep.mubr.bf16.mxu1 %v261_v63  ;;  %v290_v59 = vrot.slane %v2109_v42, 3  ;;  %v266_v63 = vrot.slane %v2097_v37, 3  ;;  %v3481_v37 = vld [vmem:[%s4062_s0 + $0xc0] sm:$0xf] }
  0x2c   :  { %2699 = vmatprep.mubr.bf16.mxu0 %v2130_v60  ;;  %2752 = vmatpush3.bf16.msra.mxu0 %v2974_v49  ;;  %v3419_v49 = vld [vmem:[%s4062_s0 + $0x58] sm:$0xf]  ;;  %v2110_v60 = vcombine.low %v3427_v58, %v3432_v36 }
  0x2d   :  { %2753 = vmatprep.subr.bf16.mxu0 %v2979_v3  ;;  %2829 = vmatpush3.bf16.msra.mxu1 %v3102_v5  ;;  %v286_v5 = vrot.slane %v2107_v27, 3  ;;  %v3464_v19 = vsel %vm250_vm0, %v288_v56, %v290_v59  ;;  %v3471_v27 = vld [vmem:[%s4062_s0 + $0x60] sm:$0xf] }
  0x2e   :  { %2822 = vmatprep.subr.bf16.mxu1 %v3112_v7  ;;  %v292_v21 = vrot.slane %v2110_v60, 3  ;;  %v2134_v60 = vcombine.low %v3270_v55, %v3308_v4  ;;  %v267_v55 = vsel %vm250_vm0, %v3358_v25, %v266_v63  ;;  %v2999_v4 = vld [vmem:[%s4061_s1 + $0xb8] sm:$0xff]   ;;  %v2100_v25 = vcombine.low %v3461_v16, %v3471_v27 }
  0x2f   :  { %v3422_v50 = vsel %vm250_vm0, %v284_v26, %v286_v5  ;;  %v3444_v0 = vsel %vm250_vm0, %v286_v5, %v288_v56  ;;  %v2133_v56 = vcombine.low %v3239_v47, %v3250_v51  ;;  %v3513_v5 = vld [vmem:[%s4062_s0 + $0x6c] sm:$0xf]  ;;  %v3529_v47 = vld [vmem:[%s4062_s0 + $0xc8] sm:$0xf]  ;;  %v269_v51 = vsel %vm250_vm0, %v266_v63, %v3456_v10 }
  0x30   :  { %2754 = vmatpush3.bf16.msra.mxu0 %v2979_v3  ;;  %v3449_v3 = vld [vmem:[%s4062_s0 + $0xb4] sm:$0xf]  ;;  %v3502_v42 = vsel %vm250_vm0, %v290_v59, %v292_v21  ;;  %v3524_v59 = vld [vmem:[%s4062_s0 + $0xc4] sm:$0xf]  ;;  %4075 = vst [vmem:[#allocation4_spill] sm:$0xff] %v3529_v47 }
  0x31   :  { %2755 = vmatprep.subr.bf16.mxu0 %v2984_v20  ;;  %2830 = vmatpush3.bf16.msra.mxu1 %v3112_v7  ;;  %v3454_v7 = vld [vmem:[%s4062_s0 + $0xb8] sm:$0xf]  ;;  %4074 = vst [vmem:[#allocation3_spill] sm:$0xff] %v3524_v59  ;;  %v2113_v43 = vcombine.low %v3524_v59, %v3529_v47 }
  0x32   :  { %2628 = vmatmul.mubr.bf16.gmra.mrb[8].mxu1 %v263_v40  ;;  %2823 = vmatprep.subr.bf16.mxu1 %v3122_v9  ;;  %v2111_v26 = vcombine.low %v3449_v3, %v3454_v7  ;;  %v3495_v40 = vld [vmem:[%s4062_s0 + $0x68] sm:$0xf] }
  0x33   :  { %2700 = vmatmul.mubr.bf16.gmra.mrb[8].mxu0 %v2131_v29  ;;  %2631 = vmatprep.mubr.bf16.mxu1 %v265_v44  ;;  %v3476_v29 = vld [vmem:[%s4062_s0 + $0xbc] sm:$0xf]  ;;  %v298_v2 = vrot.slane %v2113_v43, 3  ;;  %v2101_v63 = vcombine.low %v3490_v35, %v3495_v40 }
  0x34   :  { %2703 = vmatprep.mubr.bf16.mxu0 %v2132_v45  ;;  %2756 = vmatpush3.bf16.msra.mxu0 %v2984_v20  ;;  %4073 = vst [vmem:[#allocation2_spill] sm:$0xff] %v3476_v29  ;;  %v2099_v20 = vcombine.low %v3414_v48, %v3419_v49  ;;  %v294_v44 = vrot.slane %v2111_v26, 3  ;;  %v2112_v45 = vcombine.low %v3476_v29, %v3481_v37  ;;  %v3575_v29 = vld [vmem:[%s4062_s0 + $0xd4] sm:$0xf] }
  0x35   :  { %2757 = vmatprep.subr.bf16.mxu0 %v2989_v46  ;;  %2831 = vmatpush3.bf16.msra.mxu1 %v3122_v9  ;;  %v3518_v9 = vld [vmem:[%s4062_s0 + $0x70] sm:$0xf]  ;;  %4077 = vst [vmem:[#allocation6_spill] sm:$0xff] %v3575_v29 }
  0x36   :  { %2824 = vmatprep.subr.bf16.mxu1 %v3130_v11  ;;  %v3539_v26 = vsel %vm250_vm0, %v292_v21, %v294_v44  ;;  %v296_v61 = vrot.slane %v2112_v45, 3  ;;  %v3555_v21 = vld [vmem:[%s4062_s0 + $0x74] sm:$0xf]  ;;  %v3560_v45 = vld [vmem:[%s4062_s0 + $0xd0] sm:$0xf]  ;;  %v2102_v43 = vcombine.low %v3513_v5, %v3518_v9 }
  0x37   :  { %v2114_v57 = vcombine.low %v3546_v33, %v3560_v45  ;;  %v2103_v47 = vcombine.low %v3555_v21, %v3255_v52 }
  0x38   :  { %2758 = vmatpush3.bf16.msra.mxu0 %v2989_v46  ;;  %v270_v46 = vrot.slane %v2099_v20, 3  ;;  %v3568_v18 = vsel %vm250_vm0, %v294_v44, %v296_v61  ;;  %v3588_v20 = vsel %vm250_vm0, %v296_v61, %v298_v2 }
  0x39   :  { %2759 = vmatprep.subr.bf16.mxu0 %v2994_v41  ;;  %2832 = vmatpush3.bf16.msra.mxu1 %v3130_v11  ;;  %v3583_v11 = vld [vmem:[%s4062_s0 + $0xd8] sm:$0xf]  ;;  %v300_v44 = vrot.slane %v2114_v57, 3  ;;  %v274_v57 = vrot.slane %v2101_v63, 3  ;;  %v278_v63 = vrot.slane %v2103_v47, 3 }
  0x3a   :  { %2632 = vmatmul.mubr.bf16.gmra.mrb[12].mxu1 %v267_v55  ;;  %2825 = vmatprep.subr.bf16.mxu1 %v3168_v24  ;;  %4078 = vst [vmem:[#allocation7_spill] sm:$0xff] %v3583_v11  ;;  %v2115_v55 = vcombine.low %v3575_v29, %v3583_v11  ;;  %v271_v61 = vsel %vm250_vm0, %v3456_v10, %v270_v46  ;;  %v3633_v10 = vld [vmem:[%s4062_s0 + $0x8c] sm:$0xff]   ;;  %v3050_v11 = vld [vmem:[%s4062_s0 + $0xd4] sm:$0xff]  }
  0x3b   :  { %2704 = vmatmul.mubr.bf16.gmra.mrb[12].mxu0 %v2133_v56  ;;  %2635 = vmatprep.mubr.bf16.mxu1 %v269_v51  ;;  %v88_v56 = vld [vmem:[%s4062_s0 + $0xe0] sm:$0xf]  ;;  %v272_v51 = vrot.slane %v2100_v25, 3  ;;  %v3609_v59 = vsel %vm250_vm0, %v298_v2, %v300_v44 }
  0x3c   :  { %2707 = vmatprep.mubr.bf16.mxu0 %v2134_v60  ;;  %2760 = vmatpush3.bf16.msra.mxu0 %v2994_v41  ;;  %v2116_v33 = vcombine.low %v3595_v23, %v88_v56  ;;  %v302_v60 = vrot.slane %v2115_v55, 3  ;;  %v2135_v41 = vcombine.low %v3313_v6, %v3332_v14  ;;  %v3028_v56 = vld [vmem:[%s4062_s0 + $0xe4] ss:$0 sps:$4 sm:$0x77]   ;;  %v3619_v23 = vrot.slane %v2102_v43, 3 }
  0x3d   :  { %2761 = vmatprep.subr.bf16.mxu0 %v2999_v4  ;;  %2833 = vmatpush3.bf16.msra.mxu1 %v3168_v24  ;;  %v273_v2 = vsel %vm250_vm0, %v270_v46, %v272_v51  ;;  %v2136_v6 = vcombine.low %v3337_v15, %v3414_v48  ;;  %v3034_v46 = vld [vmem:[%s4062_s0 + $0x94] sm:$0xff]   ;;  %v4070_v48 = vrot.slane %v3633_v10, 2 }
  0x3e   :  { %2826 = vmatprep.subr.bf16.mxu1 %v3190_v30  ;;  %v304_v25 = vrot.slane %v2116_v33, 3  ;;  %v3622_v24 = vsel %vm250_vm0, %v300_v44, %v302_v60  ;;  %v306_v33 = vrot.slane %v3028_v56, 3  ;;  %v1257_v43 = vrot.slane %v3034_v46, 2  ;;  %v3040_v44 = vld [vmem:[%s4062_s0 + $0xac] sm:$0xff]   ;;  %v3044_v56 = vld [vmem:[%s4062_s0 + $0xbc] sm:$0xff]   ;;  %v3003_v46 = vld [vmem:[%s4062_s0 + $0x14] sm:$0xff]  }
  0x40   :  { %2762 = vmatpush3.bf16.msra.mxu0 %v2999_v4  ;;  %v3628_v14 = vsel %vm250_vm0, %v302_v60, %v304_v25  ;;  %v3640_v15 = vsel %vm250_vm0, %v304_v25, %v306_v33  ;;  %v3036_v4 = vld [vmem:[%s4062_s0 + $0x9c] sm:$0xff]   ;;  %v3655_v55 = vsel %vm1223_vm1, %v4070_v48, %v1257_v43  ;;  %v3042_v60 = vld [vmem:[%s4062_s0 + $0xb4] sm:$0xff]   ;;  %v1263_v25 = vrot.slane %v3040_v44, 2  ;;  %v3002_v33 = vld [vmem:[%s4062_s0 + $0xc] sm:$0xfc]  }
  0x41   :  { %2834 = vmatpush3.bf16.msra.mxu1 %v3190_v30  ;;  %v3038_v30 = vld [vmem:[%s4062_s0 + $0xa4] sm:$0xff]   ;;  %v1259_v47 = vrot.slane %v3036_v4, 2  ;;  %v1267_v44 = vrot.slane %v3044_v56, 2 }
  0x42   :  { %2636 = vmatmul.mubr.bf16.gmra.mrb[16].mxu1 %v271_v61  ;;  %v1261_v61 = vrot.slane %v3038_v30, 2  ;;  %v3046_v30 = vld [vmem:[%s4062_s0 + $0xc4] sm:$0xff]  }
  0x43   :  { %2708 = vmatmul.mubr.bf16.gmra.mrb[16].mxu0 %v2135_v41  ;;  %2639 = vmatprep.mubr.bf16.mxu1 %v273_v2  ;;  %v3661_v41 = vsel %vm1223_vm1, %v1257_v43, %v1259_v47  ;;  %v275_v2 = vsel %vm250_vm0, %v272_v51, %v274_v57  ;;  %v1265_v43 = vrot.slane %v3042_v60, 2  ;;  %v277_v51 = vsel %vm250_vm0, %v274_v57, %v3619_v23  ;;  %v3054_v56 = vld [vmem:[%s4062_s0 + $0xe4] sm:$0xff]  }
  0x44   :  { %2711 = vmatprep.mubr.bf16.mxu0 %v2136_v6  ;;  %v2137_v6 = vcombine.low %v3419_v49, %v3461_v16  ;;  %v3676_v4 = vsel %vm1223_vm1, %v1259_v47, %v1261_v61  ;;  %v2138_v49 = vcombine.low %v3471_v27, %v3490_v35  ;;  %v3686_v16 = vsel %vm1223_vm1, %v1261_v61, %v1263_v25  ;;  %v3048_v47 = vld [vmem:[%s4062_s0 + $0xcc] sm:$0xff]   ;;  %v3052_v35 = vld [vmem:[%s4062_s0 + $0xdc] sm:$0xff]  }
  0x45   :  { %v3692_v60 = vsel %vm1223_vm1, %v1263_v25, %v1265_v43  ;;  %v1269_v48 = vrot.slane %v3046_v30, 2  ;;  %v3698_v57 = vsel %vm1223_vm1, %v1265_v43, %v1267_v44  ;;  %v1271_v27 = vrot.slane %v3048_v47, 2  ;;  %v3056_v30 = vld [vmem:[%s4062_s0 + $0xec] ss:$0 sps:$4 sm:$0x33]  }
  0x46   :  { %v1273_v25 = vrot.slane %v3050_v11, 2  ;;  %v1275_v43 = vrot.slane %v3052_v35, 2  ;;  %v1224_v47 = vrot.slane %v3002_v33, 2  ;;  %v1279_v29 = vrot.slane %v3056_v30, 2 }
  0x47   :  { %v3704_v61 = vsel %vm1223_vm1, %v1267_v44, %v1269_v48  ;;  %v1277_v44 = vrot.slane %v3054_v56, 2  ;;  %v281_v33 = vsel %vm250_vm0, %v278_v63, %v3315_v8  ;;  %v3011_v56 = vld [vmem:[%s4062_s0 + $0x34] sm:$0xff]  }
  0x48   :  { %v3719_v11 = vsel %vm1223_vm1, %v1273_v25, %v1275_v43  ;;  %v1233_v30 = vrot.slane %v3011_v56, 2 }
  0x49   :  { %v3726_v35 = vsel %vm1223_vm1, %v1275_v43, %v1277_v44 }
  0x4a   :  { %2640 = vmatmul.mubr.bf16.gmra.mrb[20].mxu1 %v275_v2  ;;  %v3710_v2 = vsel %vm1223_vm1, %v1269_v48, %v1271_v27  ;;  %v2139_v48 = vcombine.low %v3495_v40, %v3513_v5 }
  0x4b   :  { %2712 = vmatmul.mubr.bf16.gmra.mrb[20].mxu0 %v2137_v6  ;;  %2643 = vmatprep.mubr.bf16.mxu1 %v277_v51  ;;  %v1225_v6 = vrot.slane %v3003_v46, 2  ;;  %v3716_v51 = vsel %vm1223_vm1, %v1271_v27, %v1273_v25  ;;  %v3005_v46 = vld [vmem:[%s4062_s0 + $0x1c] sm:$0xff]   ;;  %v3734_v27 = vsel %vm1223_vm1, %v1277_v44, %v1279_v29 }
  0x4c   :  { %2715 = vmatprep.mubr.bf16.mxu0 %v2138_v49  ;;  %v279_v49 = vsel %vm250_vm0, %v3619_v23, %v278_v63  ;;  %v3007_v23 = vld [vmem:[%s4062_s0 + $0x24] sm:$0xff]   ;;  %v1227_v5 = vrot.slane %v3005_v46, 2  ;;  %v3009_v63 = vld [vmem:[%s4062_s0 + $0x2c] sm:$0xff]  }
  0x4d   :  { %v1226_v25 = vsel %vm1223_vm1, %v1224_v47, %v1225_v6  ;;  %v1229_v40 = vrot.slane %v3007_v23, 2  ;;  %v1231_v43 = vrot.slane %v3009_v63, 2 }
  0x4e   :  { %v1228_v8 = vsel %vm1223_vm1, %v1225_v6, %v1227_v5  ;;  %v3013_v6 = vld [vmem:[%s4062_s0 + $0x3c] sm:$0xff]  }
  0x4f   :  { %v1230_v29 = vsel %vm1223_vm1, %v1227_v5, %v1229_v40  ;;  %v1232_v47 = vsel %vm1223_vm1, %v1229_v40, %v1231_v43  ;;  %v1234_v44 = vsel %vm1223_vm1, %v1231_v43, %v1233_v30  ;;  %v3021_v5 = vld [vmem:[%s4062_s0 + $0x5c] sm:$0xff]   ;;  %v3027_v43 = vld [vmem:[%s4062_s0 + $0x74] sm:$0xff]  }
  0x52   :  { %2644 = vmatmul.mubr.bf16.gmra.mrb[24].mxu1 %v279_v49  ;;  %v3015_v49 = vld [vmem:[%s4062_s0 + $0x44] sm:$0xff]  }
  0x53   :  { %2716 = vmatmul.mubr.bf16.gmra.mrb[24].mxu0 %v2139_v48  ;;  %2647 = vmatprep.mubr.bf16.mxu1 %v281_v33  ;;  %v3017_v33 = vld [vmem:[%s4062_s0 + $0x4c] sm:$0xff]  }
  0x54   :  { %2763 = vmatprep.mubr.bf16.mxu0 %v1226_v25  ;;  %v3019_v25 = vld [vmem:[%s4062_s0 + $0x54] sm:$0xff]  }
  0x5a   :  { %2648 = vmatmul.mubr.bf16.gmra.mrb[28].mxu1 %v3372_v31  ;;  %v1235_v31 = vrot.slane %v3013_v6, 2 }
  0x5b   :  { %2764 = vmatmul.mubr.bf16.vlgmr.msra.gmra.mrb[0].mxu0 %v1228_v8  ;;  %2651 = vmatprep.mubr.bf16.mxu1 %v3385_v34  ;;  %v1237_v34 = vrot.slane %v3015_v49, 2  ;;  %v3023_v8 = vld [vmem:[%s4062_s0 + $0x64] sm:$0xff]   ;;  %v2140_v49 = vcombine.low %v3518_v9, %v3555_v21  ;;  %v4082_v9 = vcombine.low %v3265_v54, %v3288_v62  ;;  %v4083_v21 = vcombine.low %v3298_v1, %v3322_v12 }
  0x5c   :  { %2767 = vmatprep.mubr.bf16.mxu0 %v1230_v29  ;;  %v1236_v48 = vsel %vm1223_vm1, %v1233_v30, %v1235_v31  ;;  %v3025_v29 = vld [vmem:[%s4062_s0 + $0x6c] sm:$0xff]   ;;  %v4087_v54 = vcombine.low %v3397_v39, %v3427_v58  ;;  %v4088_v62 = vcombine.low %v3432_v36, %v3449_v3  ;;  %v4089_v1 = vld [vmem:[#allocation2_spill] sm:$0xff] }
  0x5d   :  { %v1238_v46 = vsel %vm1223_vm1, %v1235_v31, %v1237_v34  ;;  %v4090_v12 = vcombine.low %v3454_v7, %v4089_v1  ;;  %v4098_v58 = vld [vmem:[#allocation7_spill] sm:$0xff]  ;;  %v4099_v36 = vld [vmem:[#allocation8_spill] sm:$0xff] }
  0x5e   :  { %v4100_v3 = vcombine.low %v4098_v58, %v4099_v36 }
  0x62   :  { %2652 = vmatmul.mubr.bf16.gmra.mrb[32].mxu1 %v3422_v50  ;;  %v1239_v50 = vrot.slane %v3017_v33, 2 }
  0x63   :  { %2768 = vmatmul.mubr.bf16.gmra.mrb[4].mxu0 %v1232_v47  ;;  %2655 = vmatprep.mubr.bf16.mxu1 %v3444_v0  ;;  %v1241_v0 = vrot.slane %v3019_v25, 2  ;;  %v3029_v47 = vld [vmem:[%s4062_s0 + $0x7c] sm:$0xff]  }
  0x64   :  { %2771 = vmatprep.mubr.bf16.mxu0 %v1234_v44  ;;  %v1240_v23 = vsel %vm1223_vm1, %v1237_v34, %v1239_v50  ;;  %v3031_v44 = vld [vmem:[%s4062_s0 + $0x84] sm:$0xff]  }
  0x65   :  { %v1242_v40 = vsel %vm1223_vm1, %v1239_v50, %v1241_v0 }
  0x6a   :  { %2656 = vmatmul.mubr.bf16.gmra.mrb[36].mxu1 %v3464_v19  ;;  %v1243_v19 = vrot.slane %v3021_v5, 2 }
  0x6b   :  { %2772 = vmatmul.mubr.bf16.gmra.mrb[8].mxu0 %v1236_v48  ;;  %2659 = vmatprep.mubr.bf16.mxu1 %v3502_v42  ;;  %v1245_v42 = vrot.slane %v3023_v8, 2 }
  0x6c   :  { %2775 = vmatprep.mubr.bf16.mxu0 %v1238_v46  ;;  %v1244_v63 = vsel %vm1223_vm1, %v1241_v0, %v1243_v19 }
  0x6d   :  { %v1246_v56 = vsel %vm1223_vm1, %v1243_v19, %v1245_v42 }
  0x72   :  { %2660 = vmatmul.mubr.bf16.gmra.mrb[40].mxu1 %v3539_v26  ;;  %v1249_v26 = vrot.slane %v3027_v43, 2 }
  0x73   :  { %2776 = vmatmul.mubr.bf16.gmra.mrb[12].mxu0 %v1240_v23  ;;  %2663 = vmatprep.mubr.bf16.mxu1 %v3568_v18  ;;  %v1247_v18 = vrot.slane %v3025_v29, 2 }
  0x74   :  { %2779 = vmatprep.mubr.bf16.mxu0 %v1242_v40 }
  0x75   :  { %v1248_v30 = vsel %vm1223_vm1, %v1245_v42, %v1247_v18  ;;  %v1250_v6 = vsel %vm1223_vm1, %v1247_v18, %v1249_v26 }
  0x7a   :  { %2664 = vmatmul.mubr.bf16.gmra.mrb[44].mxu1 %v3588_v20  ;;  %v1253_v20 = vrot.slane %v3031_v44, 2 }
  0x7b   :  { %2780 = vmatmul.mubr.bf16.gmra.mrb[16].mxu0 %v1244_v63  ;;  %2667 = vmatprep.mubr.bf16.mxu1 %v3609_v59  ;;  %v1251_v59 = vrot.slane %v3029_v47, 2 }
  0x7c   :  { %2783 = vmatprep.mubr.bf16.mxu0 %v1246_v56  ;;  %v3900_v56 = vld [vmem:[%s4063_s2] ss:$0 sm:$0xff] }
  0x7d   :  { %v1252_v31 = vsel %vm1223_vm1, %v1249_v26, %v1251_v59  ;;  %v1254_v34 = vsel %vm1223_vm1, %v1251_v59, %v1253_v20 }
  0x82   :  { %2668 = vmatmul.mubr.bf16.gmra.mrb[48].mxu1 %v3622_v24  ;;  %v4080_v24 = vrot.slane %v3633_v10, 2  ;;  %v4084_v10 = vcombine.low %v3327_v13, %v3344_v17  ;;  %v4091_v13 = vld [vmem:[#allocation3_spill] sm:$0xff] }
  0x83   :  { %2784 = vmatmul.mubr.bf16.gmra.mrb[20].mxu0 %v1248_v30  ;;  %2671 = vmatprep.mubr.bf16.mxu1 %v3628_v14  ;;  %v4081_v14 = vcombine.low %v3255_v52, %v3260_v53  ;;  %v4085_v52 = vcombine.low %v3354_v22, %v3365_v28  ;;  %v4086_v53 = vcombine.low %v3377_v32, %v3392_v38  ;;  %v4093_v22 = vld [vmem:[#allocation4_spill] sm:$0xff]  ;;  %v4094_v28 = vld [vmem:[#allocation5_spill] sm:$0xff]  ;;  %v4096_v38 = vld [vmem:[#allocation6_spill] sm:$0xff] }
  0x84   :  { %2787 = vmatprep.mubr.bf16.mxu0 %v1250_v6  ;;  %v1256_v48 = vsel %vm1223_vm1, %v1253_v20, %v4080_v24  ;;  %v4092_v17 = vcombine.low %v3481_v37, %v4091_v13  ;;  %v4095_v32 = vcombine.low %v4093_v22, %v4094_v28  ;;  %v4097_v39 = vcombine.low %v3560_v45, %v4096_v38 }
  0x8a   :  { %2672 = vmatmul.mubr.bf16.gmra.mrb[52].mxu1 %v3640_v15 }
  0x8b   :  { %2788 = vmatmul.mubr.bf16.gmra.mrb[24].mxu0 %v1252_v31  ;;  %2719 = vmatprep.mubr.bf16.mxu1 %v2140_v49 }
  0x8c   :  { %2791 = vmatprep.mubr.bf16.mxu0 %v1254_v34 }
  0x92   :  { %2720 = vmatmul.mubr.bf16.vlgmr.msra.gmra.mrb[28].mxu1 %v4081_v14 }
  0x93   :  { %2792 = vmatmul.mubr.bf16.gmra.mrb[28].mxu0 %v1256_v48  ;;  %2723 = vmatprep.mubr.bf16.mxu1 %v4082_v9 }
  0x94   :  { %2795 = vmatprep.mubr.bf16.mxu0 %v3655_v55 }
  0x9a   :  { %2724 = vmatmul.mubr.bf16.gmra.mrb[32].mxu1 %v4083_v21 }
  0x9b   :  { %2796 = vmatmul.mubr.bf16.gmra.mrb[32].mxu0 %v3661_v41  ;;  %2727 = vmatprep.mubr.bf16.mxu1 %v4084_v10 }
  0x9c   :  { %2799 = vmatprep.mubr.bf16.mxu0 %v3676_v4 }
  0xa2   :  { %2728 = vmatmul.mubr.bf16.gmra.mrb[36].mxu1 %v4085_v52 }
  0xa3   :  { %2800 = vmatmul.mubr.bf16.gmra.mrb[36].mxu0 %v3686_v16  ;;  %2731 = vmatprep.mubr.bf16.mxu1 %v4086_v53 }
  0xa4   :  { %2803 = vmatprep.mubr.bf16.mxu0 %v3692_v60 }
  0xaa   :  { %2732 = vmatmul.mubr.bf16.gmra.mrb[40].mxu1 %v4087_v54 }
  0xab   :  { %2804 = vmatmul.mubr.bf16.gmra.mrb[40].mxu0 %v3698_v57  ;;  %2735 = vmatprep.mubr.bf16.mxu1 %v4088_v62 }
  0xac   :  { %2807 = vmatprep.mubr.bf16.mxu0 %v3704_v61 }
  0xb2   :  { %2736 = vmatmul.mubr.bf16.gmra.mrb[44].mxu1 %v4090_v12 }
  0xb3   :  { %2808 = vmatmul.mubr.bf16.gmra.mrb[44].mxu0 %v3710_v2  ;;  %2739 = vmatprep.mubr.bf16.mxu1 %v4092_v17 }
  0xb4   :  { %2811 = vmatprep.mubr.bf16.mxu0 %v3716_v51 }
  0xba   :  { %2740 = vmatmul.mubr.bf16.gmra.mrb[48].mxu1 %v4095_v32 }
  0xbb   :  { %2812 = vmatmul.mubr.bf16.gmra.mrb[48].mxu0 %v3719_v11  ;;  %2743 = vmatprep.mubr.bf16.mxu1 %v4097_v39 }
  0xbc   :  { %2815 = vmatprep.mubr.bf16.mxu0 %v3726_v35 }
  0xc2   :  { %2744 = vmatmul.mubr.bf16.gmra.mrb[52].mxu1 %v4100_v3 }
  0xc3   :  { %2816 = vmatmul.mubr.bf16.gmra.mrb[52].mxu0 %v3734_v27 }
  0xf5   :  { %v2621_v7 = vpop.f32.mrb[0].mxu1 }
  0xf6   :  { %v418_v37 = vpop.f32.mrb[1].mxu1 }
  0xf7   :  { %v2622_v15 = vpop.f32.mrb[2].mxu1 }
  0xf8   :  { %v421_v55 = vpop.f32.mrb[3].mxu1 }
  0xfd   :  { %v2625_v41 = vpop.f32.mrb[4].mxu1 }
  0xfe   :  { %v434_v4 = vpop.f32.mrb[5].mxu1 }
  0xff   :  { %v2626_v16 = vpop.f32.mrb[6].mxu1 }
 0x100   :  { %v437_v60 = vpop.f32.mrb[7].mxu1 }
 0x105   :  { %v2629_v57 = vpop.f32.mrb[8].mxu1 }
 0x106   :  { %v3859_v61 = vpop.f32.mrb[9].mxu1 }
 0x107   :  { %v3861_v45 = vpop.f32.mrb[10].mxu1 }
 0x108   :  { %v3863_v2 = vpop.f32.mrb[11].mxu1 }
 0x10d   :  { %v3865_v51 = vpop.f32.mrb[12].mxu1 }
 0x10e   :  { %v3867_v11 = vpop.f32.mrb[13].mxu1 }
 0x10f   :  { %v3869_v35 = vpop.f32.mrb[14].mxu1 }
 0x110   :  { %v3871_v27 = vpop.f32.mrb[15].mxu1 }
 0x115   :  { %v3873_v33 = vpop.f32.mrb[16].mxu1 }
 0x116   :  { %v3875_v46 = vpop.f32.mrb[17].mxu1 }
 0x117   :  { %v3877_v25 = vpop.f32.mrb[18].mxu1 }
 0x118   :  { %v3879_v50 = vpop.f32.mrb[19].mxu1 }
 0x11d   :  { %v3881_v0 = vpop.f32.mrb[20].mxu1 }
 0x11e   :  { %v3883_v23 = vpop.f32.mrb[21].mxu1 }
 0x11f   :  { %v3885_v5 = vpop.f32.mrb[22].mxu1 }
 0x120   :  { %v3887_v40 = vpop.f32.mrb[23].mxu1 }
 0x125   :  { %v3889_v8 = vpop.f32.mrb[24].mxu1 }
 0x126   :  { %v3891_v19 = vpop.f32.mrb[25].mxu1 }
 0x127   :  { %v3893_v42 = vpop.f32.mrb[26].mxu1 }
 0x128   :  { %v3895_v63 = vpop.f32.mrb[27].mxu1 }
 0x12e   :  { %v2765_v29 = vpop.f32.mrb[0].mxu0 }
 0x12f   :  { %v2835_v43 = vadd.f32 %v2765_v29, %v2621_v7  ;;  %v1391_v18 = vpop.f32.mrb[1].mxu0 }
 0x130   :  { %v2836_v26 = vadd.f32 %v1391_v18, %v418_v37  ;;  %v2766_v30 = vpop.f32.mrb[2].mxu0 }
 0x131   :  { %v1679_v47 = vadd.f32 %v2835_v43, %v3900_v56  ;;  %v2837_v6 = vadd.f32 %v2766_v30, %v2622_v15  ;;  %v1394_v44 = vpop.f32.mrb[3].mxu0 }
 0x132   :  { %v1677_v59 = vadd.f32 %v2836_v26, %v3900_v56  ;;  %v2838_v20 = vadd.f32 %v1394_v44, %v421_v55 }
 0x133   :  { %v1680_v49 = vadd.f32 %v2837_v6, %v3900_v56  ;;  %v1735_v34 = vmax.f32 %v1679_v47, 0.0 }
 0x134   :  { %v1678_v31 = vadd.f32 %v2838_v20, %v3900_v56  ;;  %v1733_v48 = vmax.f32 %v1677_v59, 0.0 }
 0x135   :  { %v1736_v24 = vmax.f32 %v1680_v49, 0.0 }
 0x136   :  { %v1734_v14 = vmax.f32 %v1678_v31, 0.0  ;;  %v2769_v9 = vpop.f32.mrb[4].mxu0 }
 0x137   :  { %v2336_v21 = vpack.c.bf16 %v1736_v24, %v1735_v34  ;;  %v2839_v10 = vadd.f32 %v2769_v9, %v2625_v41  ;;  %v1407_v52 = vpop.f32.mrb[5].mxu0 }
 0x138   :  { %v2331_v53 = vpack.c.bf16 %v1734_v14, %v1733_v48  ;;  %v2840_v54 = vadd.f32 %v1407_v52, %v434_v4  ;;  %v2770_v62 = vpop.f32.mrb[6].mxu0 }
 0x139   :  { %2468 = vst [vmem:[%s4064_s3 + $0x8] sm:$0xff] %v2336_v21   ;;  %v1683_v1 = vadd.f32 %v2839_v10, %v3900_v56  ;;  %v2841_v12 = vadd.f32 %v2770_v62, %v2626_v16  ;;  %v1410_v13 = vpop.f32.mrb[7].mxu0 }
 0x13a   :  { %2332 = vst [vmem:[%s4064_s3] sm:$0xff] %v2331_v53   ;;  %v1681_v17 = vadd.f32 %v2840_v54, %v3900_v56  ;;  %v2842_v22 = vadd.f32 %v1410_v13, %v437_v60 }
 0x13b   :  { %v1684_v28 = vadd.f32 %v2841_v12, %v3900_v56  ;;  %v1739_v38 = vmax.f32 %v1683_v1, 0.0 }
 0x13c   :  { %v1682_v32 = vadd.f32 %v2842_v22, %v3900_v56  ;;  %v1737_v58 = vmax.f32 %v1681_v17, 0.0 }
 0x13d   :  { %v1740_v39 = vmax.f32 %v1684_v28, 0.0 }
 0x13e   :  { %v1738_v36 = vmax.f32 %v1682_v32, 0.0  ;;  %v2773_v3 = vpop.f32.mrb[8].mxu0 }
 0x13f   :  { %v2346_v7 = vpack.c.bf16 %v1740_v39, %v1739_v38  ;;  %v2843_v37 = vadd.f32 %v2773_v3, %v2629_v57  ;;  %v1423_v15 = vpop.f32.mrb[9].mxu0 }
 0x140   :  { %v2341_v55 = vpack.c.bf16 %v1738_v36, %v1737_v58  ;;  %v2844_v41 = vadd.f32 %v1423_v15, %v3859_v61  ;;  %v2774_v4 = vpop.f32.mrb[10].mxu0 }
 0x141   :  { %2470 = vst [vmem:[%s4064_s3 + $0x18] sm:$0xff] %v2346_v7   ;;  %v1687_v16 = vadd.f32 %v2843_v37, %v3900_v56  ;;  %v2845_v60 = vadd.f32 %v2774_v4, %v3861_v45  ;;  %v1426_v29 = vpop.f32.mrb[11].mxu0 }
 0x142   :  { %2469 = vst [vmem:[%s4064_s3 + $0x10] sm:$0xff] %v2341_v55   ;;  %v1685_v57 = vadd.f32 %v2844_v41, %v3900_v56  ;;  %v2846_v43 = vadd.f32 %v1426_v29, %v3863_v2 }
 0x143   :  { %v1688_v61 = vadd.f32 %v2845_v60, %v3900_v56  ;;  %v1743_v26 = vmax.f32 %v1687_v16, 0.0 }
 0x144   :  { %v1686_v18 = vadd.f32 %v2846_v43, %v3900_v56  ;;  %v1741_v47 = vmax.f32 %v1685_v57, 0.0 }
 0x145   :  { %v1744_v30 = vmax.f32 %v1688_v61, 0.0 }
 0x146   :  { %v1742_v6 = vmax.f32 %v1686_v18, 0.0  ;;  %v2777_v44 = vpop.f32.mrb[12].mxu0 }
 0x147   :  { %v2356_v59 = vpack.c.bf16 %v1744_v30, %v1743_v26  ;;  %v2847_v45 = vadd.f32 %v2777_v44, %v3865_v51  ;;  %v1439_v20 = vpop.f32.mrb[13].mxu0 }
 0x148   :  { %v2351_v49 = vpack.c.bf16 %v1742_v6, %v1741_v47  ;;  %v2848_v31 = vadd.f32 %v1439_v20, %v3867_v11  ;;  %v2778_v34 = vpop.f32.mrb[14].mxu0 }
 0x149   :  { %2472 = vst [vmem:[%s4064_s3 + $0x28] sm:$0xff] %v2356_v59   ;;  %v1691_v2 = vadd.f32 %v2847_v45, %v3900_v56  ;;  %v2849_v24 = vadd.f32 %v2778_v34, %v3869_v35  ;;  %v1442_v48 = vpop.f32.mrb[15].mxu0 }
 0x14a   :  { %2471 = vst [vmem:[%s4064_s3 + $0x20] sm:$0xff] %v2351_v49   ;;  %v1689_v51 = vadd.f32 %v2848_v31, %v3900_v56  ;;  %v2850_v14 = vadd.f32 %v1442_v48, %v3871_v27 }
 0x14b   :  { %v1692_v11 = vadd.f32 %v2849_v24, %v3900_v56  ;;  %v1747_v21 = vmax.f32 %v1691_v2, 0.0 }
 0x14c   :  { %v1690_v9 = vadd.f32 %v2850_v14, %v3900_v56  ;;  %v1745_v52 = vmax.f32 %v1689_v51, 0.0 }
 0x14d   :  { %v1748_v10 = vmax.f32 %v1692_v11, 0.0 }
 0x14e   :  { %v1746_v53 = vmax.f32 %v1690_v9, 0.0  ;;  %v2781_v54 = vpop.f32.mrb[16].mxu0 }
 0x14f   :  { %v2366_v62 = vpack.c.bf16 %v1748_v10, %v1747_v21  ;;  %v2851_v35 = vadd.f32 %v2781_v54, %v3873_v33  ;;  %v1455_v1 = vpop.f32.mrb[17].mxu0 }
 0x150   :  { %v2361_v12 = vpack.c.bf16 %v1746_v53, %v1745_v52  ;;  %v2852_v13 = vadd.f32 %v1455_v1, %v3875_v46  ;;  %v2782_v17 = vpop.f32.mrb[18].mxu0 }
 0x151   :  { %2474 = vst [vmem:[%s4064_s3 + $0x38] sm:$0xff] %v2366_v62   ;;  %v1695_v27 = vadd.f32 %v2851_v35, %v3900_v56  ;;  %v2853_v22 = vadd.f32 %v2782_v17, %v3877_v25  ;;  %v1458_v28 = vpop.f32.mrb[19].mxu0 }
 0x152   :  { %2473 = vst [vmem:[%s4064_s3 + $0x30] sm:$0xff] %v2361_v12   ;;  %v1693_v33 = vadd.f32 %v2852_v13, %v3900_v56  ;;  %v2854_v32 = vadd.f32 %v1458_v28, %v3879_v50 }
 0x153   :  { %v1696_v46 = vadd.f32 %v2853_v22, %v3900_v56  ;;  %v1751_v39 = vmax.f32 %v1695_v27, 0.0 }
 0x154   :  { %v1694_v38 = vadd.f32 %v2854_v32, %v3900_v56  ;;  %v1749_v36 = vmax.f32 %v1693_v33, 0.0 }
 0x155   :  { %v1752_v58 = vmax.f32 %v1696_v46, 0.0 }
 0x156   :  { %v1750_v3 = vmax.f32 %v1694_v38, 0.0  ;;  %v2785_v7 = vpop.f32.mrb[20].mxu0 }
 0x157   :  { %v2376_v37 = vpack.c.bf16 %v1752_v58, %v1751_v39  ;;  %v2855_v25 = vadd.f32 %v2785_v7, %v3881_v0  ;;  %v1471_v15 = vpop.f32.mrb[21].mxu0 }
 0x158   :  { %v2371_v55 = vpack.c.bf16 %v1750_v3, %v1749_v36  ;;  %v2856_v41 = vadd.f32 %v1471_v15, %v3883_v23  ;;  %v2786_v4 = vpop.f32.mrb[22].mxu0 }
 0x159   :  { %2476 = vst [vmem:[%s4064_s3 + $0x48] sm:$0xff] %v2376_v37   ;;  %v1699_v50 = vadd.f32 %v2855_v25, %v3900_v56  ;;  %v2857_v16 = vadd.f32 %v2786_v4, %v3885_v5  ;;  %v1474_v60 = vpop.f32.mrb[23].mxu0 }
 0x15a   :  { %2475 = vst [vmem:[%s4064_s3 + $0x40] sm:$0xff] %v2371_v55   ;;  %v1697_v0 = vadd.f32 %v2856_v41, %v3900_v56  ;;  %v2858_v29 = vadd.f32 %v1474_v60, %v3887_v40 }
 0x15b   :  { %v1700_v23 = vadd.f32 %v2857_v16, %v3900_v56  ;;  %v1755_v43 = vmax.f32 %v1699_v50, 0.0 }
 0x15c   :  { %v1698_v57 = vadd.f32 %v2858_v29, %v3900_v56  ;;  %v1753_v18 = vmax.f32 %v1697_v0, 0.0 }
 0x15d   :  { %v1756_v61 = vmax.f32 %v1700_v23, 0.0 }
 0x15e   :  { %v1754_v26 = vmax.f32 %v1698_v57, 0.0  ;;  %v2789_v30 = vpop.f32.mrb[24].mxu0 }
 0x15f   :  { %v2386_v47 = vpack.c.bf16 %v1756_v61, %v1755_v43  ;;  %v2859_v5 = vadd.f32 %v2789_v30, %v3889_v8  ;;  %v1487_v6 = vpop.f32.mrb[25].mxu0 }
 0x160   :  { %v2381_v44 = vpack.c.bf16 %v1754_v26, %v1753_v18  ;;  %v2860_v59 = vadd.f32 %v1487_v6, %v3891_v19  ;;  %v2790_v45 = vpop.f32.mrb[26].mxu0 }
 0x161   :  { %2478 = vst [vmem:[%s4064_s3 + $0x58] sm:$0xff] %v2386_v47   ;;  %v1703_v40 = vadd.f32 %v2859_v5, %v3900_v56  ;;  %v2861_v20 = vadd.f32 %v2790_v45, %v3893_v42  ;;  %v1490_v49 = vpop.f32.mrb[27].mxu0 }
 0x162   :  { %2477 = vst [vmem:[%s4064_s3 + $0x50] sm:$0xff] %v2381_v44   ;;  %v1701_v8 = vadd.f32 %v2860_v59, %v3900_v56  ;;  %v2862_v31 = vadd.f32 %v1490_v49, %v3895_v63 }
 0x163   :  { %v1704_v19 = vadd.f32 %v2861_v20, %v3900_v56  ;;  %v1759_v2 = vmax.f32 %v1703_v40, 0.0 }
 0x164   :  { %v1702_v34 = vadd.f32 %v2862_v31, %v3900_v56  ;;  %v1757_v51 = vmax.f32 %v1701_v8, 0.0 }
 0x165   :  { %v1760_v24 = vmax.f32 %v1704_v19, 0.0  ;;  %v2721_v48 = vpop.f32.mrb[28].mxu1 }
 0x166   :  { %v1758_v14 = vmax.f32 %v1702_v34, 0.0  ;;  %v2793_v11 = vpop.f32.mrb[28].mxu0  ;;  %v895_v42 = vpop.f32.mrb[29].mxu1 }
 0x167   :  { %v2396_v9 = vpack.c.bf16 %v1760_v24, %v1759_v2  ;;  %v2863_v21 = vadd.f32 %v2793_v11, %v2721_v48  ;;  %v1503_v10 = vpop.f32.mrb[29].mxu0  ;;  %v2722_v52 = vpop.f32.mrb[30].mxu1 }
 0x168   :  { %v2391_v53 = vpack.c.bf16 %v1758_v14, %v1757_v51  ;;  %v2864_v54 = vadd.f32 %v1503_v10, %v895_v42  ;;  %v2794_v62 = vpop.f32.mrb[30].mxu0  ;;  %v898_v35 = vpop.f32.mrb[31].mxu1 }
 0x169   :  { %2480 = vst [vmem:[%s4064_s3 + $0x68] sm:$0xff] %v2396_v9   ;;  %v1707_v63 = vadd.f32 %v2863_v21, %v3900_v56  ;;  %v2865_v1 = vadd.f32 %v2794_v62, %v2722_v52  ;;  %v1506_v12 = vpop.f32.mrb[31].mxu0 }
 0x16a   :  { %2479 = vst [vmem:[%s4064_s3 + $0x60] sm:$0xff] %v2391_v53   ;;  %v1705_v13 = vadd.f32 %v2864_v54, %v3900_v56  ;;  %v2866_v17 = vadd.f32 %v1506_v12, %v898_v35 }
 0x16b   :  { %v1708_v27 = vadd.f32 %v2865_v1, %v3900_v56  ;;  %v1763_v28 = vmax.f32 %v1707_v63, 0.0 }
 0x16c   :  { %v1706_v22 = vadd.f32 %v2866_v17, %v3900_v56  ;;  %v1761_v46 = vmax.f32 %v1705_v13, 0.0 }
 0x16d   :  { %v1764_v33 = vmax.f32 %v1708_v27, 0.0  ;;  %v2725_v32 = vpop.f32.mrb[32].mxu1 }
 0x16e   :  { %v1762_v38 = vmax.f32 %v1706_v22, 0.0  ;;  %v2797_v39 = vpop.f32.mrb[32].mxu0  ;;  %v911_v58 = vpop.f32.mrb[33].mxu1 }
 0x16f   :  { %v2406_v36 = vpack.c.bf16 %v1764_v33, %v1763_v28  ;;  %v2867_v3 = vadd.f32 %v2797_v39, %v2725_v32  ;;  %v1519_v7 = vpop.f32.mrb[33].mxu0  ;;  %v2726_v37 = vpop.f32.mrb[34].mxu1 }
 0x170   :  { %v2401_v25 = vpack.c.bf16 %v1762_v38, %v1761_v46  ;;  %v2868_v15 = vadd.f32 %v1519_v7, %v911_v58  ;;  %v2798_v55 = vpop.f32.mrb[34].mxu0  ;;  %v914_v41 = vpop.f32.mrb[35].mxu1 }
 0x171   :  { %2482 = vst [vmem:[%s4064_s3 + $0x78] sm:$0xff] %v2406_v36   ;;  %v1711_v4 = vadd.f32 %v2867_v3, %v3900_v56  ;;  %v2869_v50 = vadd.f32 %v2798_v55, %v2726_v37  ;;  %v1522_v16 = vpop.f32.mrb[35].mxu0 }
 0x172   :  { %2481 = vst [vmem:[%s4064_s3 + $0x70] sm:$0xff] %v2401_v25   ;;  %v1709_v60 = vadd.f32 %v2868_v15, %v3900_v56  ;;  %v2870_v0 = vadd.f32 %v1522_v16, %v914_v41 }
 0x173   :  { %v1712_v29 = vadd.f32 %v2869_v50, %v3900_v56  ;;  %v1767_v57 = vmax.f32 %v1711_v4, 0.0 }
 0x174   :  { %v1710_v23 = vadd.f32 %v2870_v0, %v3900_v56  ;;  %v1765_v18 = vmax.f32 %v1709_v60, 0.0 }
 0x175   :  { %v1768_v43 = vmax.f32 %v1712_v29, 0.0  ;;  %v2729_v61 = vpop.f32.mrb[36].mxu1 }
 0x176   :  { %v1766_v26 = vmax.f32 %v1710_v23, 0.0  ;;  %v2801_v30 = vpop.f32.mrb[36].mxu0  ;;  %v927_v47 = vpop.f32.mrb[37].mxu1 }
 0x177   :  { %v2416_v5 = vpack.c.bf16 %v1768_v43, %v1767_v57  ;;  %v2871_v6 = vadd.f32 %v2801_v30, %v2729_v61  ;;  %v1535_v44 = vpop.f32.mrb[37].mxu0  ;;  %v2730_v59 = vpop.f32.mrb[38].mxu1 }
 0x178   :  { %v2411_v45 = vpack.c.bf16 %v1766_v26, %v1765_v18  ;;  %v2872_v40 = vadd.f32 %v1535_v44, %v927_v47  ;;  %v2802_v20 = vpop.f32.mrb[38].mxu0  ;;  %v930_v49 = vpop.f32.mrb[39].mxu1 }
 0x179   :  { %2484 = vst [vmem:[%s4064_s3 + $0x88] sm:$0xff] %v2416_v5   ;;  %v1715_v8 = vadd.f32 %v2871_v6, %v3900_v56  ;;  %v2873_v31 = vadd.f32 %v2802_v20, %v2730_v59  ;;  %v1538_v19 = vpop.f32.mrb[39].mxu0 }
 0x17a   :  { %2483 = vst [vmem:[%s4064_s3 + $0x80] sm:$0xff] %v2411_v45   ;;  %v1713_v34 = vadd.f32 %v2872_v40, %v3900_v56  ;;  %v2874_v2 = vadd.f32 %v1538_v19, %v930_v49 }
 0x17b   :  { %v1716_v24 = vadd.f32 %v2873_v31, %v3900_v56  ;;  %v1771_v51 = vmax.f32 %v1715_v8, 0.0 }
 0x17c   :  { %v1714_v48 = vadd.f32 %v2874_v2, %v3900_v56  ;;  %v1769_v42 = vmax.f32 %v1713_v34, 0.0 }
 0x17d   :  { %v1772_v14 = vmax.f32 %v1716_v24, 0.0  ;;  %v2733_v11 = vpop.f32.mrb[40].mxu1 }
 0x17e   :  { %v1770_v9 = vmax.f32 %v1714_v48, 0.0  ;;  %v2805_v21 = vpop.f32.mrb[40].mxu0  ;;  %v943_v10 = vpop.f32.mrb[41].mxu1 }
 0x17f   :  { %v2426_v52 = vpack.c.bf16 %v1772_v14, %v1771_v51  ;;  %v2875_v53 = vadd.f32 %v2805_v21, %v2733_v11  ;;  %v1551_v54 = vpop.f32.mrb[41].mxu0  ;;  %v2734_v62 = vpop.f32.mrb[42].mxu1 }
 0x180   :  { %v2421_v35 = vpack.c.bf16 %v1770_v9, %v1769_v42  ;;  %v2876_v63 = vadd.f32 %v1551_v54, %v943_v10  ;;  %v2806_v1 = vpop.f32.mrb[42].mxu0  ;;  %v946_v12 = vpop.f32.mrb[43].mxu1 }
 0x181   :  { %2486 = vst [vmem:[%s4064_s3 + $0x98] sm:$0xff] %v2426_v52   ;;  %v1719_v13 = vadd.f32 %v2875_v53, %v3900_v56  ;;  %v2877_v17 = vadd.f32 %v2806_v1, %v2734_v62  ;;  %v1554_v27 = vpop.f32.mrb[43].mxu0 }
 0x182   :  { %2485 = vst [vmem:[%s4064_s3 + $0x90] sm:$0xff] %v2421_v35   ;;  %v1717_v22 = vadd.f32 %v2876_v63, %v3900_v56  ;;  %v2878_v28 = vadd.f32 %v1554_v27, %v946_v12 }
 0x183   :  { %v1720_v33 = vadd.f32 %v2877_v17, %v3900_v56  ;;  %v1775_v46 = vmax.f32 %v1719_v13, 0.0 }
 0x184   :  { %v1718_v32 = vadd.f32 %v2878_v28, %v3900_v56  ;;  %v1773_v58 = vmax.f32 %v1717_v22, 0.0 }
 0x185   :  { %v1776_v38 = vmax.f32 %v1720_v33, 0.0  ;;  %v2737_v39 = vpop.f32.mrb[44].mxu1 }
 0x186   :  { %v1774_v36 = vmax.f32 %v1718_v32, 0.0  ;;  %v2809_v3 = vpop.f32.mrb[44].mxu0  ;;  %v959_v7 = vpop.f32.mrb[45].mxu1 }
 0x187   :  { %v2436_v37 = vpack.c.bf16 %v1776_v38, %v1775_v46  ;;  %v2879_v25 = vadd.f32 %v2809_v3, %v2737_v39  ;;  %v1567_v15 = vpop.f32.mrb[45].mxu0  ;;  %v2738_v55 = vpop.f32.mrb[46].mxu1 }
 0x188   :  { %v2431_v41 = vpack.c.bf16 %v1774_v36, %v1773_v58  ;;  %v2880_v4 = vadd.f32 %v1567_v15, %v959_v7  ;;  %v2810_v50 = vpop.f32.mrb[46].mxu0  ;;  %v962_v16 = vpop.f32.mrb[47].mxu1 }
 0x189   :  { %2488 = vst [vmem:[%s4064_s3 + $0xa8] sm:$0xff] %v2436_v37   ;;  %v1723_v60 = vadd.f32 %v2879_v25, %v3900_v56  ;;  %v2881_v0 = vadd.f32 %v2810_v50, %v2738_v55  ;;  %v1570_v29 = vpop.f32.mrb[47].mxu0 }
 0x18a   :  { %2487 = vst [vmem:[%s4064_s3 + $0xa0] sm:$0xff] %v2431_v41   ;;  %v1721_v23 = vadd.f32 %v2880_v4, %v3900_v56  ;;  %v2882_v57 = vadd.f32 %v1570_v29, %v962_v16 }
 0x18b   :  { %v1724_v43 = vadd.f32 %v2881_v0, %v3900_v56  ;;  %v1779_v18 = vmax.f32 %v1723_v60, 0.0 }
 0x18c   :  { %v1722_v61 = vadd.f32 %v2882_v57, %v3900_v56  ;;  %v1777_v47 = vmax.f32 %v1721_v23, 0.0 }
 0x18d   :  { %v1780_v26 = vmax.f32 %v1724_v43, 0.0  ;;  %v2741_v30 = vpop.f32.mrb[48].mxu1 }
 0x18e   :  { %v1778_v5 = vmax.f32 %v1722_v61, 0.0  ;;  %v2813_v6 = vpop.f32.mrb[48].mxu0  ;;  %v975_v44 = vpop.f32.mrb[49].mxu1 }
 0x18f   :  { %v2446_v59 = vpack.c.bf16 %v1780_v26, %v1779_v18  ;;  %v2883_v45 = vadd.f32 %v2813_v6, %v2741_v30  ;;  %v1583_v40 = vpop.f32.mrb[49].mxu0  ;;  %v2742_v20 = vpop.f32.mrb[50].mxu1 }
 0x190   :  { %v2441_v49 = vpack.c.bf16 %v1778_v5, %v1777_v47  ;;  %v2884_v8 = vadd.f32 %v1583_v40, %v975_v44  ;;  %v2814_v31 = vpop.f32.mrb[50].mxu0  ;;  %v978_v19 = vpop.f32.mrb[51].mxu1 }
 0x191   :  { %2490 = vst [vmem:[%s4064_s3 + $0xb8] sm:$0xff] %v2446_v59   ;;  %v1727_v34 = vadd.f32 %v2883_v45, %v3900_v56  ;;  %v2885_v2 = vadd.f32 %v2814_v31, %v2742_v20  ;;  %v1586_v24 = vpop.f32.mrb[51].mxu0 }
 0x192   :  { %2489 = vst [vmem:[%s4064_s3 + $0xb0] sm:$0xff] %v2441_v49   ;;  %v1725_v48 = vadd.f32 %v2884_v8, %v3900_v56  ;;  %v2886_v51 = vadd.f32 %v1586_v24, %v978_v19 }
 0x193   :  { %v1728_v14 = vadd.f32 %v2885_v2, %v3900_v56  ;;  %v1783_v42 = vmax.f32 %v1727_v34, 0.0 }
 0x194   :  { %v1726_v11 = vadd.f32 %v2886_v51, %v3900_v56  ;;  %v1781_v10 = vmax.f32 %v1725_v48, 0.0 }
 0x195   :  { %v1784_v9 = vmax.f32 %v1728_v14, 0.0  ;;  %v2745_v21 = vpop.f32.mrb[52].mxu1 }
 0x196   :  { %v1782_v52 = vmax.f32 %v1726_v11, 0.0  ;;  %v2817_v53 = vpop.f32.mrb[52].mxu0  ;;  %v991_v54 = vpop.f32.mrb[53].mxu1 }
 0x197   :  { %v2456_v62 = vpack.c.bf16 %v1784_v9, %v1783_v42  ;;  %v2887_v35 = vadd.f32 %v2817_v53, %v2745_v21  ;;  %v1599_v63 = vpop.f32.mrb[53].mxu0  ;;  %v2746_v1 = vpop.f32.mrb[54].mxu1 }
 0x198   :  { %v2451_v12 = vpack.c.bf16 %v1782_v52, %v1781_v10  ;;  %v2888_v13 = vadd.f32 %v1599_v63, %v991_v54  ;;  %v2818_v17 = vpop.f32.mrb[54].mxu0  ;;  %v994_v27 = vpop.f32.mrb[55].mxu1 }
 0x199   :  { %2492 = vst [vmem:[%s4064_s3 + $0xc8] sm:$0xff] %v2456_v62   ;;  %v1731_v22 = vadd.f32 %v2887_v35, %v3900_v56  ;;  %v2889_v28 = vadd.f32 %v2818_v17, %v2746_v1  ;;  %v1602_v33 = vpop.f32.mrb[55].mxu0 }
 0x19a   :  { %2491 = vst [vmem:[%s4064_s3 + $0xc0] sm:$0xff] %v2451_v12   ;;  %v1729_v32 = vadd.f32 %v2888_v13, %v3900_v56  ;;  %v2890_v46 = vadd.f32 %v1602_v33, %v994_v27 }
 0x19b   :  { %v1732_v38 = vadd.f32 %v2889_v28, %v3900_v56  ;;  %v1787_v58 = vmax.f32 %v1731_v22, 0.0 }
 0x19c   :  { %v1730_v39 = vadd.f32 %v2890_v46, %v3900_v56  ;;  %v1785_v3 = vmax.f32 %v1729_v32, 0.0 }
 0x19d   :  { %v1788_v36 = vmax.f32 %v1732_v38, 0.0 }
 0x19e   :  { %v1786_v7 = vmax.f32 %v1730_v39, 0.0 }
 0x19f   :  { %v2466_v37 = vpack.c.bf16 %v1788_v36, %v1787_v58 }
 0x1a0   :  { %v2461_v25 = vpack.c.bf16 %v1786_v7, %v1785_v3 }
 0x1a1   :  { %2494 = vst [vmem:[%s4064_s3 + $0xd8] sm:$0xff] %v2466_v37  }
 0x1a2   :  { %2493 = vst [vmem:[%s4064_s3 + $0xd0] sm:$0xff] %v2461_v25  }

// kernel: _lambda_.24
= control target key start
LH: loop header
LB: loop body
LE: loop exit
PB: predicated region body
PF: predicated region fallthrough
CT: control target
= control target key end

     0   :  { %s1121_s15 = smov 0   ;;  %s1123_s16 = smov 0   ;;  %s1269_s0 = inlined_call_operand.vmem [shape: bf16[98,128], index: 0, kind: input, shape index: {}]   ;;  %s1270_s1 = inlined_call_operand.vmem [shape: bf16[128,128], index: 1, kind: input, shape index: {}]   ;;  %s1271_s2 = inlined_call_operand.vmem [shape: f32[1,128], index: 2, kind: input, shape index: {}]   ;;  %s1272_s3 = inlined_call_operand.vmem [shape: bf16[98,128], index: 3, kind: input, shape index: {}]   ;;  %s1273_s4 = inlined_call_operand.vmem [shape: bf16[98,128], index: 4, kind: output, shape index: {}]  }
   0x1   :  { %s1125_s17 = smov 0  }
   0x2 LB: > { %s1134_s18 = sadd.s32 4294967295, %s1062_s17   ;;  %s1136_s19 = sadd.s32 1, %s1062_s17   ;;  %s1062_s17 = sphi %s1125_s17, %s1280_s17   ;;  %s1058_s16 = sphi %s1123_s16, %s1279_s16   ;;  %s1054_s15 = sphi %s1121_s15, %s1278_s15  }
   0x3   : > { %s112_s20 = ssub.s32 %s1062_s17, %s1136_s19  ;;  %s115_s21 = sadd.s32 1, %s1058_s16 }
   0x4   : > { %p113_p0 = scmp.eq.s32.totalorder %s112_s20, 0  ;;  %p125_p1 = scmp.ne.s32.totalorder %s1058_s16, %s1054_s15 }
   0x5   : > { %p126_p2 = scmp.eq.s32.totalorder %s1134_s18, 1  ;;  %p759_p3 = scmp.ge.s32.totalorder %s1062_s17, 1 }
   0x6   : > { %s1144_s22 = scalar_select %p113_p0, %s1058_s16, %s115_s21  }
   0x7   : > { %p1146_p4 = por %p126_p2, %p125_p1  ;;  %p190_p5 = scmp.lt.s32.totalorder %s1062_s17, 3 }
   0x9   : > { %p191_p6 = pnand %p759_p3, %p190_p5 }
   0xa   : > { %v996_v0 = vld [vmem:[%s1270_s1] sm:$0xff] (!%p191_p6)   ;;  %s1154_s26 = sshll.u32 (!%p191_p6), %s1134_s18, 3  ;;  %v997_v1 = vld [vmem:[%s1270_s1 + $0x8] sm:$0xff] (!%p191_p6)   ;;  %v998_v2 = vld [vmem:[%s1270_s1 + $0x10] sm:$0xff] (!%p191_p6)  }
   0xb   : > { %194 = sbr.rel (%p191_p6) target bundleno = 321 (0x141), region = 36  ;;  %p233_p7 = scmp.lt.s32.totalorder (!%p191_p6), %s1154_s26, 12  ;;  %868 = vmatprep.subr.bf16.mxu0 (!%p191_p6), %v996_v0  ;;  %892 = vmatprep.subr.bf16.mxu1 (!%p191_p6), %v996_v0  ;;  %v999_v3 = vld [vmem:[%s1270_s1 + $0x18] sm:$0xff] (!%p191_p6)   ;;  %v1000_v6 = vld [vmem:[%s1270_s1 + $0x20] sm:$0xff] (!%p191_p6)   ;;  %v1001_v7 = vld [vmem:[%s1270_s1 + $0x28] sm:$0xff] (!%p191_p6)  }
   0xc   : > { %869 = vmatpush3.bf16.msra.mxu0 (!%p191_p6), %v996_v0  ;;  %900 = vmatpush3.bf16.msra.mxu1 (!%p191_p6), %v996_v0  ;;  %v1002_v8 = vld [vmem:[%s1270_s1 + $0x30] sm:$0xff] (!%p191_p6)   ;;  %v1003_v9 = vld [vmem:[%s1270_s1 + $0x38] sm:$0xff] (!%p191_p6)   ;;  %v765_v16 = vld [vmem:[%s1271_s2] ss:$0 sm:$0xff] (!%p191_p6) }
   0xd   : > { %870 = vmatprep.subr.bf16.mxu0 (!%p191_p6), %v997_v1  ;;  %893 = vmatprep.subr.bf16.mxu1 (!%p191_p6), %v997_v1 }
  0x10   : > { %871 = vmatpush3.bf16.msra.mxu0 (!%p191_p6), %v997_v1  ;;  %901 = vmatpush3.bf16.msra.mxu1 (!%p191_p6), %v997_v1 }
  0x11   : > { %872 = vmatprep.subr.bf16.mxu0 (!%p191_p6), %v998_v2  ;;  %894 = vmatprep.subr.bf16.mxu1 (!%p191_p6), %v998_v2 }
  0x12   : > { %s1161_s29 = scalar_select %p233_p7, %s1154_s26, 12 }
  0x13   : > { %s510_s8 = ssub.s32 (%p1146_p4), 13, %s1154_s26 }
  0x14   : > { %s762_s6 = sshll.u32 %s1161_s29, 2  ;;  %873 = vmatpush3.bf16.msra.mxu0 %v998_v2  ;;  %902 = vmatpush3.bf16.msra.mxu1 %v998_v2  ;;  %s225_s29 = sand.u32 1, %s1054_s15  }
  0x15   : > { %s1172_s9 = scalar_lea.vmem %s1269_s0, %s762_s6  ;;  %874 = vmatprep.subr.bf16.mxu0 %v999_v3  ;;  %895 = vmatprep.subr.bf16.mxu1 %v999_v3  ;;  %s250_s30 = scalar_lea.vmem %s1272_s3, %s762_s6 }
  0x16   : > { %v1004_v4 = vld [vmem:[%s1172_s9] sm:$0xff]   ;;  %v1005_v5 = vld [vmem:[%s1172_s9 + $0x10] sm:$0xff]   ;;  %v1006_v10 = vld [vmem:[%s1172_s9 + $0x8] sm:$0xff]   ;;  %s760_s6 = sshll.u32 %s225_s29, 5  ;;  %p511_p8 = scmp.lt.s32.totalorder (%p1146_p4), %s510_s8, 8 }
  0x17   : > { %884 = vmatprep.mubr.bf16.mxu0 %v1004_v4  ;;  %888 = vmatprep.mubr.bf16.mxu1 %v1005_v5  ;;  %v1007_v11 = vld [vmem:[%s1172_s9 + $0x18] sm:$0xff]   ;;  %v850_v12 = vld [vmem:[%s250_s30 + $0x8] sm:$0xff]   ;;  %v815_v14 = vld [vmem:[%s250_s30] sm:$0xff]   ;;  %s1202_s15 = scalar_lea.vmem [#allocation2], %s760_s6   ;;  %s811_s9 = sshll.u32 (%p1146_p4), %s1134_s18, 5 }
  0x18   : > { %875 = vmatpush3.bf16.msra.mxu0 %v999_v3  ;;  %903 = vmatpush3.bf16.msra.mxu1 %v999_v3  ;;  %v852_v13 = vld [vmem:[%s250_s30 + $0x18] sm:$0xff]   ;;  %v851_v15 = vld [vmem:[%s250_s30 + $0x10] sm:$0xff]   ;;  %v820_v17 = vunpack.c.l.bf16 %v850_v12  ;;  %v816_v21 = vunpack.c.l.bf16 %v815_v14  ;;  %v821_v27 = vunpack.c.h.bf16 %v850_v12  ;;  %v817_v33 = vunpack.c.h.bf16 %v815_v14  ;;  %s1215_s12 = scalar_lea.vmem (%p1146_p4), %s1273_s4, %s811_s9  }
  0x19   : > { %876 = vmatprep.subr.bf16.mxu0 %v1000_v6  ;;  %896 = vmatprep.subr.bf16.mxu1 %v1000_v6  ;;  %v828_v18 = vunpack.c.l.bf16 %v852_v13  ;;  %v824_v22 = vunpack.c.l.bf16 %v851_v15  ;;  %v829_v28 = vunpack.c.h.bf16 %v852_v13  ;;  %v825_v34 = vunpack.c.h.bf16 %v851_v15 }
  0x1c   : > { %877 = vmatpush3.bf16.msra.mxu0 %v1000_v6  ;;  %904 = vmatpush3.bf16.msra.mxu1 %v1000_v6 }
  0x1d   : > { %878 = vmatprep.subr.bf16.mxu0 %v1001_v7  ;;  %897 = vmatprep.subr.bf16.mxu1 %v1001_v7 }
  0x20   : > { %879 = vmatpush3.bf16.msra.mxu0 %v1001_v7  ;;  %905 = vmatpush3.bf16.msra.mxu1 %v1001_v7 }
  0x21   : > { %880 = vmatprep.subr.bf16.mxu0 %v1002_v8  ;;  %898 = vmatprep.subr.bf16.mxu1 %v1002_v8 }
  0x24   : > { %881 = vmatpush3.bf16.msra.mxu0 %v1002_v8  ;;  %906 = vmatpush3.bf16.msra.mxu1 %v1002_v8 }
  0x25   : > { %882 = vmatprep.subr.bf16.mxu0 %v1003_v9  ;;  %899 = vmatprep.subr.bf16.mxu1 %v1003_v9 }
  0x28   : > { %883 = vmatpush3.bf16.msra.mxu0 %v1003_v9  ;;  %907 = vmatpush3.bf16.msra.mxu1 %v1003_v9 }
  0x2b   : > { %885 = vmatmul.mubr.bf16.vlgmr.msra.gmra.mrb[0].mxu0 %v1006_v10  ;;  %889 = vmatmul.mubr.bf16.vlgmr.msra.gmra.mrb[0].mxu1 %v1007_v11 }
  0xfe   : > { %v886_v19 = vpop.f32.mrb[0].mxu0  ;;  %v890_v20 = vpop.f32.mrb[0].mxu1 }
  0xff   : > { %v408_v23 = vadd.f32 %v886_v19, %v765_v16  ;;  %v424_v24 = vadd.f32 %v890_v20, %v765_v16  ;;  %v399_v25 = vpop.f32.mrb[1].mxu0  ;;  %v415_v26 = vpop.f32.mrb[1].mxu1 }
 0x100   : > { %v400_v29 = vadd.f32 %v765_v16, %v399_v25  ;;  %v416_v30 = vadd.f32 %v765_v16, %v415_v26  ;;  %v887_v31 = vpop.f32.mrb[2].mxu0  ;;  %v891_v32 = vpop.f32.mrb[2].mxu1 }
 0x101   : > { %v448_v35 = vadd.f32 %v820_v17, %v408_v23  ;;  %v452_v36 = vadd.f32 %v828_v18, %v424_v24  ;;  %v411_v37 = vadd.f32 %v887_v31, %v765_v16  ;;  %v427_v38 = vadd.f32 %v891_v32, %v765_v16  ;;  %v402_v39 = vpop.f32.mrb[3].mxu0  ;;  %v418_v40 = vpop.f32.mrb[3].mxu1 }
 0x102   : > { %v446_v41 = vadd.f32 %v816_v21, %v400_v29  ;;  %v450_v42 = vadd.f32 %v824_v22, %v416_v30  ;;  %v403_v43 = vadd.f32 %v765_v16, %v402_v39  ;;  %v419_v44 = vadd.f32 %v765_v16, %v418_v40 }
 0x103   : > { %v449_v45 = vadd.f32 %v821_v27, %v411_v37  ;;  %v453_v46 = vadd.f32 %v829_v28, %v427_v38  ;;  %v456_v49 = vmax.f32 %v448_v35, 0.0  ;;  %v460_v50 = vmax.f32 %v452_v36, 0.0 }
 0x104   : > { %v447_v47 = vadd.f32 %v817_v33, %v403_v43  ;;  %v451_v48 = vadd.f32 %v825_v34, %v419_v44  ;;  %v454_v53 = vmax.f32 %v446_v41, 0.0  ;;  %v458_v54 = vmax.f32 %v450_v42, 0.0  ;;  %508 = sbr.rel (!%p1146_p4) target bundleno = 321 (0x141), region = 40 }
 0x105   : > { %v457_v51 = vmax.f32 %v449_v45, 0.0  ;;  %v461_v52 = vmax.f32 %v453_v46, 0.0 }
 0x106   : > { %v455_v55 = vmax.f32 %v447_v47, 0.0  ;;  %v459_v56 = vmax.f32 %v451_v48, 0.0 }
 0x107   : > { %v838_v57 = vpack.c.bf16 %v457_v51, %v456_v49  ;;  %v848_v58 = vpack.c.bf16 %v461_v52, %v460_v50 }
 0x108   : > { %v833_v59 = vpack.c.bf16 %v455_v55, %v454_v53  ;;  %v843_v60 = vpack.c.bf16 %v459_v56, %v458_v54 }
 0x109   : > { %853 = vst [vmem:[%s1202_s15 + $0x8] sm:$0xff] %v838_v57   ;;  %855 = vst [vmem:[%s1202_s15 + $0x18] sm:$0xff] %v848_v58  }
 0x10a   : > { %834 = vst [vmem:[%s1202_s15] sm:$0xff] %v833_v59   ;;  %854 = vst [vmem:[%s1202_s15 + $0x10] sm:$0xff] %v843_v60  }
 0x10b   : > { %s1282_s8 = smov (!%p511_p8, %s510_s8), 8 }
 0x10c   : > { %s788_s13 = sshll.u32 %s1282_s8, 6 }
 0x10d   : > { %p791_p9 = scmp.eq.s32.totalorder %s788_s13, 0 }
 0x10e   : > { %s1221_s14 = sshrl.u32 (!%p791_p9), %s1282_s8, 3 }
 0x10f   : > { %519 = sbr.rel (%p791_p9) target bundleno = 321 (0x141), region = 44  ;;  %p792_p10 = scmp.le.s32.totalorder (!%p791_p9), %s1221_s14, 0 }
 0x116   : > { %706 = sbr.rel (%p792_p10) target bundleno = 300 (0x12c), region = 119  ;;  %s1275_s18 = smov (!%p792_p10), %s1215_s12 }
 0x117   : > { %s1276_s23 = smov (!%p792_p10), %s1202_s15  ;;  %s1230_s26 = smov (!%p792_p10), 0  }
 0x118   : > { %s1232_s17 = smov (!%p792_p10), 0  }
 0x11d LB: >> { %v535_v61 = vld [vmem:[%s1070_s23] sm:$0xf]  ;;  %v537_v62 = vld [vmem:[%s1070_s23 + $0x4] sm:$0xf]  ;;  %v539_v63 = vld [vmem:[%s1070_s23 + $0x8] sm:$0xf]  ;;  %s1078_s17 = sphi %s1232_s17, %s529_s17   ;;  %s1074_s26 = sphi %s1230_s26, %s1277_s26   ;;  %s1070_s23 = sphi %s1276_s23, %s556_s23   ;;  %s1066_s18 = sphi %s1275_s18, %s557_s18  }
 0x11e   : >> { %536 = vst [vmem:[%s1066_s18] sm:$0xf] %v535_v61  ;;  %538 = vst [vmem:[%s1066_s18 + $0x4] sm:$0xf] %v537_v62  ;;  %v541_v0 = vld [vmem:[%s1070_s23 + $0xc] sm:$0xf]  ;;  %s551_s20 = sadd.s32 1, %s1074_s26 }
 0x11f   : >> { %540 = vst [vmem:[%s1066_s18 + $0x8] sm:$0xf] %v539_v63  ;;  %v543_v1 = vld [vmem:[%s1070_s23 + $0x10] sm:$0xf]  ;;  %v545_v2 = vld [vmem:[%s1070_s23 + $0x14] sm:$0xf]  ;;  %p552_p11 = scmp.ge.s32.totalorder %s551_s20, %s1221_s14 }
 0x120   : >> { %542 = vst [vmem:[%s1066_s18 + $0xc] sm:$0xf] %v541_v0  ;;  %544 = vst [vmem:[%s1066_s18 + $0x10] sm:$0xf] %v543_v1  ;;  %v547_v3 = vld [vmem:[%s1070_s23 + $0x18] sm:$0xf] }
 0x121   : >> { %546 = vst [vmem:[%s1066_s18 + $0x14] sm:$0xf] %v545_v2  ;;  %v549_v4 = vld [vmem:[%s1070_s23 + $0x1c] sm:$0xf]  ;;  %548 = vst [vmem:[%s1066_s18 + $0x18] sm:$0xf] %v547_v3 }
 0x122   : >> { %550 = vst [vmem:[%s1066_s18 + $0x1c] sm:$0xf] %v549_v4  ;;  %s1284_s20 = smov (%p552_p11, %s551_s20), 0  ;;  %s529_s17 = sadd.s32 1, %s1078_s17  }
 0x123   : >> { %s793_s21 = sshll.u32 %s1284_s20, 5  ;;  %p528_p12 = scmp.ge.s32.totalorder %s529_s17, %s1221_s14 }
 0x124   : >> { %s556_s23 = scalar_lea.vmem %s1202_s15, %s793_s21 [#allocation2]   ;;  %s557_s18 = scalar_lea.vmem %s1215_s12, %s793_s21  }
 0x125   : >> { %s1277_s26 = smov %s1284_s20  ;;  %531 = sbr.rel (!%p528_p12) target bundleno = 285 (0x11d), region = 125 }
 0x12c PF: > { %s1251_s24 = sand.u32 7, %s1282_s8   ;;  %s812_s25 = sshll.u32 %s1221_s14, 5 }
 0x12d   : > { %s562_s27 = scalar_lea.vmem %s1202_s15, %s812_s25 [#allocation2]   ;;  %s564_s28 = scalar_lea.vmem %s1215_s12, %s812_s25  }
 0x12e   : > { %p798_p13 = scmp.le.s32.totalorder %s1251_s24, 0 }
 0x12f   : > { %s1080_s30 = smov (!%p798_p13), %s564_s28   ;;  %s1084_s5 = smov (!%p798_p13), %s562_s27  }
 0x130   : > { %720 = sbr.rel (%p798_p13) target bundleno = 321 (0x141), region = 130  ;;  %s1088_s7 = smov (!%p798_p13), 0  }
 0x131   : > { %s1092_s29 = smov (!%p798_p13), 0  }
 0x137 LB: >> { %v574_v5 = vld [vmem:[%s1086_s5] sm:$0xf]  ;;  %s576_s6 = sadd.s32 1, %s1090_s7  ;;  %s568_s29 = sadd.s32 1, %s1094_s29   ;;  %s1094_s29 = sphi %s1092_s29, %s568_s29   ;;  %s1090_s7 = sphi %s1088_s7, %s1089_s7   ;;  %s1086_s5 = sphi %s1084_s5, %s581_s5   ;;  %s1082_s30 = sphi %s1080_s30, %s582_s30  }
 0x138   : >> { %575 = vst [vmem:[%s1082_s30] sm:$0xf] %v574_v5  ;;  %p577_p0 = scmp.ge.s32.totalorder %s576_s6, %s1251_s24  ;;  %p567_p1 = scmp.ge.s32.totalorder %s568_s29, %s1251_s24 }
 0x13a   : >> { %s1286_s6 = smov (%p577_p0, %s576_s6), 0  ;;  %570 = sbr.rel (!%p567_p1) target bundleno = 311 (0x137), region = 136 }
 0x13b   : >> { %s799_s15 = sshll.u32 %s1286_s6, 2  ;;  %s1089_s7 = smov %s1286_s6  }
 0x13c   : >> { %s581_s5 = scalar_lea.vmem %s562_s27, %s799_s15 [#allocation2]   ;;  %s582_s30 = scalar_lea.vmem %s564_s28, %s799_s15  }
 0x141 PF: > { %p11_p2 = scmp.ge.s32.totalorder %s1136_s19, 4   ;;  %s1278_s15 = smov %s1058_s16 }
 0x142   : > { %s1279_s16 = smov %s1144_s22  ;;  %s1280_s17 = smov %s1136_s19 }
 0x143   :  { %13 = sbr.rel (!%p11_p2) target bundleno = 2 (0x2), region = 147 }

// kernel: _lambda_.23
= control target key start
LH: loop header
LB: loop body
LE: loop exit
PB: predicated region body
PF: predicated region fallthrough
CT: control target
= control target key end

     0   :  { %vm110_vm0 = vsmask.f32 4352  ;;  %vm580_vm1 = vcmask 1044480   ;;  %s1544_s1 = inlined_call_operand.vmem [shape: bf16[3,128,128], index: 1, kind: input, shape index: {}]   ;;  %s1545_s0 = inlined_call_operand.vmem [shape: bf16[140,128], index: 0, kind: input, shape index: {}]   ;;  %s1546_s2 = inlined_call_operand.vmem [shape: f32[1,128], index: 2, kind: input, shape index: {}]   ;;  %s1547_s3 = inlined_call_operand.vmem [shape: bf16[126,128], index: 3, kind: output, shape index: {}]  }
   0x1   :  { %v1232_v0 = vld [vmem:[%s1544_s1 + $0x40] sm:$0xff]   ;;  %v1234_v2 = vld [vmem:[%s1544_s1 + $0x48] sm:$0xff]   ;;  %v1236_v4 = vld [vmem:[%s1544_s1 + $0x50] sm:$0xff]  }
   0x2   :  { %v1233_v1 = vld [vmem:[%s1544_s1] sm:$0xff]   ;;  %1088 = vmatprep.subr.bf16.mxu1 %v1232_v0  ;;  %v1235_v3 = vld [vmem:[%s1544_s1 + $0x8] sm:$0xff]   ;;  %v1237_v5 = vld [vmem:[%s1544_s1 + $0x10] sm:$0xff]  }
   0x3   :  { %1120 = vmatprep.subr.bf16.mxu0 %v1233_v1  ;;  %1089 = vmatpush3.bf16.msra.mxu1 %v1232_v0  ;;  %v1238_v6 = vld [vmem:[%s1544_s1 + $0x58] sm:$0xff]   ;;  %v1240_v8 = vld [vmem:[%s1544_s1 + $0x60] sm:$0xff]   ;;  %v1242_v10 = vld [vmem:[%s1544_s1 + $0x68] sm:$0xff]  }
   0x4   :  { %1121 = vmatpush3.bf16.msra.mxu0 %v1233_v1  ;;  %1090 = vmatprep.subr.bf16.mxu1 %v1234_v2  ;;  %v1239_v7 = vld [vmem:[%s1544_s1 + $0x18] sm:$0xff]   ;;  %v1241_v9 = vld [vmem:[%s1544_s1 + $0x20] sm:$0xff]   ;;  %v1243_v11 = vld [vmem:[%s1544_s1 + $0x28] sm:$0xff]  }
   0x5   :  { %1122 = vmatprep.subr.bf16.mxu0 %v1235_v3  ;;  %v16_v12 = vld [vmem:[%s1545_s0 + $0x4] sm:$0xf]  ;;  %v47_v13 = vld [vmem:[%s1545_s0] sm:$0x8]  ;;  %v1341_v14 = vld [vmem:[%s1545_s0 + $0x8] sm:$0xff]  }
   0x6   :  { %v15_v15 = vld [vmem:[%s1545_s0] sm:$0xf]  ;;  %v906_v16 = vcombine.low %v47_v13, %v16_v12  ;;  %v1349_v18 = vld [vmem:[%s1545_s0 + $0x10] sm:$0xff]   ;;  %v120_v19 = vshrl.u32 %v1341_v14, 16  ;;  %v123_v20 = vshll.u32 %v1341_v14, 16  ;;  %v1246_v29 = vld [vmem:[%s1544_s1 + $0x78] sm:$0xff]  }
   0x7   :  { %1091 = vmatpush3.bf16.msra.mxu1 %v1234_v2  ;;  %v923_v17 = vcombine.low %v15_v15, %v16_v12  ;;  %v1244_v21 = vld [vmem:[%s1544_s1 + $0x70] sm:$0xff]   ;;  %v129_v25 = vshrl.u32 %v1349_v18, 16  ;;  %v132_v26 = vshll.u32 %v1349_v18, 16  ;;  %v1367_v35 = vld [vmem:[%s1545_s0 + $0x18] sm:$0xff]   ;;  %v1372_v37 = vld [vmem:[%s1545_s0 + $0x20] sm:$0xff]  }
   0x8   :  { %1123 = vmatpush3.bf16.msra.mxu0 %v1235_v3  ;;  %1092 = vmatprep.subr.bf16.mxu1 %v1236_v4  ;;  %v1245_v22 = vld [vmem:[%s1544_s1 + $0x30] sm:$0xff]   ;;  %v112_v23 = vshrl.u32 %v906_v16, 16  ;;  %v115_v24 = vshll.u32 %v906_v16, 16  ;;  %v122_v27 = vrot.slane %v120_v19, 3  ;;  %v125_v28 = vrot.slane %v123_v20, 4  ;;  %v1247_v38 = vld [vmem:[%s1544_s1 + $0x38] sm:$0xff]  }
   0x9   :  { %1124 = vmatprep.subr.bf16.mxu0 %v1237_v5  ;;  %1136 = vmatprep.mubr.bf16.mxu0 %v923_v17  ;;  %v131_v32 = vrot.slane %v129_v25, 3  ;;  %v134_v34 = vrot.slane %v132_v26, 4  ;;  %v138_v39 = vshrl.u32 %v1367_v35, 16  ;;  %v141_v40 = vshll.u32 %v1367_v35, 16  ;;  %v1252_v47 = vld [vmem:[%s1544_s1 + $0x80] sm:$0xff]   ;;  %v1388_v48 = vld [vmem:[%s1545_s0 + $0x28] sm:$0xff]  }
   0xa   :  { %v114_v30 = vrot.slane %v112_v23, 3  ;;  %v117_v31 = vrot.slane %v115_v24, 4  ;;  %v126_v33 = vor.u32 %v125_v28, %v122_v27  ;;  %v147_v42 = vshrl.u32 %v1372_v37, 16  ;;  %v1396_v55 = vld [vmem:[%s1545_s0 + $0x30] sm:$0xff]   ;;  %v1401_v56 = vld [vmem:[%s1545_s0 + $0x38] sm:$0xf] }
   0xb   :  { %1093 = vmatpush3.bf16.msra.mxu1 %v1236_v4  ;;  %v150_v43 = vshll.u32 %v1372_v37, 16  ;;  %v135_v44 = vor.u32 %v134_v34, %v131_v32  ;;  %v140_v45 = vrot.slane %v138_v39, 3  ;;  %v143_v46 = vrot.slane %v141_v40, 4  ;;  %v1253_v57 = vld [vmem:[%s1544_s1 + $0x88] sm:$0xff]   ;;  %v48_v58 = vld [vmem:[%s1545_s0 + $0x3c] sm:$0xf] }
   0xc   :  { %1125 = vmatpush3.bf16.msra.mxu0 %v1237_v5  ;;  %1094 = vmatprep.subr.bf16.mxu1 %v1238_v6  ;;  %v118_v36 = vor.u32 %v117_v31, %v114_v30  ;;  %v149_v50 = vrot.slane %v147_v42, 3  ;;  %v156_v51 = vshrl.u32 %v1388_v48, 16  ;;  %v159_v52 = vshll.u32 %v1388_v48, 16  ;;  %v1256_v2 = vld [vmem:[%s1544_s1 + $0x90] sm:$0xff]   ;;  %v1260_v17 = vld [vmem:[%s1544_s1 + $0xa0] sm:$0xff]  }
   0xd   :  { %1126 = vmatprep.subr.bf16.mxu0 %v1239_v7  ;;  %v144_v49 = vor.u32 %v143_v46, %v140_v45  ;;  %v136_v53 = vsel %vm110_vm0, %v126_v33, %v135_v44  ;;  %v152_v54 = vrot.slane %v150_v43, 4  ;;  %v913_v62 = vcombine.low %v1401_v56, %v48_v58  ;;  %v1263_v3 = vld [vmem:[%s1545_s0 + $0x40] ss:$0 sps:$4 sm:$0x77]   ;;  %v1267_v24 = vld [vmem:[%s1545_s0 + $0x4] sm:$0xf8]  }
   0xe   :  { %v127_v41 = vsel %vm110_vm0, %v118_v36, %v126_v33  ;;  %v158_v60 = vrot.slane %v156_v51, 3  ;;  %v161_v61 = vrot.slane %v159_v52, 4  ;;  %v165_v0 = vshrl.u32 %v1396_v55, 16  ;;  %v1268_v25 = vld [vmem:[%s1545_s0 + $0xc] sm:$0xff]   ;;  %v1269_v27 = vld [vmem:[%s1545_s0 + $0x24] sm:$0xff]   ;;  %v1271_v39 = vld [vmem:[%s1545_s0 + $0x14] sm:$0xff]  }
   0xf   :  { %1095 = vmatpush3.bf16.msra.mxu1 %v1238_v6  ;;  %1104 = vmatprep.mubr.bf16.mxu1 %v127_v41  ;;  %v145_v59 = vsel %vm110_vm0, %v135_v44, %v144_v49  ;;  %v153_v63 = vor.u32 %v152_v54, %v149_v50  ;;  %v168_v1 = vshll.u32 %v1396_v55, 16  ;;  %v174_v5 = vshrl.u32 %v913_v62, 16  ;;  %v1270_v28 = vld [vmem:[%s1545_s0 + $0x2c] sm:$0xff]   ;;  %v1274_v40 = vld [vmem:[%s1545_s0 + $0x3c] sm:$0xff]  }
  0x10   :  { %1127 = vmatpush3.bf16.msra.mxu0 %v1239_v7  ;;  %1096 = vmatprep.subr.bf16.mxu1 %v1240_v8  ;;  %v162_v4 = vor.u32 %v161_v61, %v158_v60  ;;  %v177_v6 = vshll.u32 %v913_v62, 16  ;;  %v183_v15 = vshrl.u32 %v1263_v3, 16  ;;  %v186_v16 = vshll.u32 %v1263_v3, 16  ;;  %v1265_v30 = vld [vmem:[%s1544_s1 + $0xb0] sm:$0xff]   ;;  %v1273_v41 = vld [vmem:[%s1545_s0 + $0x1c] sm:$0xff]  }
  0x11   :  { %1128 = vmatprep.subr.bf16.mxu0 %v1241_v9  ;;  %v154_v7 = vsel %vm110_vm0, %v144_v49, %v153_v63  ;;  %v176_v12 = vrot.slane %v174_v5, 3  ;;  %v581_v31 = vrot.slane %v1267_v24, 3  ;;  %v582_v32 = vrot.slane %v1268_v25, 3  ;;  %v1275_v49 = vld [vmem:[%s1545_s0 + $0x44] ss:$0 sps:$4 sm:$0x33]  }
  0x12   :  { %v179_v13 = vrot.slane %v177_v6, 4  ;;  %v185_v20 = vrot.slane %v183_v15, 3  ;;  %v590_v36 = vrot.slane %v1270_v28, 3  ;;  %v584_v45 = vrot.slane %v1271_v39, 3  ;;  %v1495_v24 = vld [vmem:[%s1546_s2] ss:$0 sm:$0xff] }
  0x13   :  { %1097 = vmatpush3.bf16.msra.mxu1 %v1240_v8  ;;  %v167_v8 = vrot.slane %v165_v0, 3  ;;  %v583_v42 = vsel %vm580_vm1, %v581_v31, %v582_v32  ;;  %v594_v46 = vrot.slane %v1274_v40, 3 }
  0x14   :  { %1129 = vmatpush3.bf16.msra.mxu0 %v1241_v9  ;;  %1098 = vmatprep.subr.bf16.mxu1 %v1242_v10  ;;  %v170_v9 = vrot.slane %v168_v1, 4  ;;  %v585_v50 = vsel %vm580_vm1, %v582_v32, %v584_v45 }
  0x15   :  { %1130 = vmatprep.subr.bf16.mxu0 %v1243_v11 }
  0x17   :  { %1099 = vmatpush3.bf16.msra.mxu1 %v1242_v10  ;;  %v1257_v10 = vld [vmem:[%s1544_s1 + $0x98] sm:$0xff]  }
  0x18   :  { %1131 = vmatpush3.bf16.msra.mxu0 %v1243_v11  ;;  %1100 = vmatprep.subr.bf16.mxu1 %v1244_v21  ;;  %v163_v11 = vsel %vm110_vm0, %v153_v63, %v162_v4 }
  0x19   :  { %1132 = vmatprep.subr.bf16.mxu0 %v1245_v22 }
  0x1b   :  { %1101 = vmatpush3.bf16.msra.mxu1 %v1244_v21  ;;  %v188_v21 = vrot.slane %v186_v16, 4 }
  0x1c   :  { %1133 = vmatpush3.bf16.msra.mxu0 %v1245_v22  ;;  %1102 = vmatprep.subr.bf16.mxu1 %v1246_v29  ;;  %v1261_v22 = vld [vmem:[%s1544_s1 + $0xa8] sm:$0xff]  }
  0x1d   :  { %1134 = vmatprep.subr.bf16.mxu0 %v1247_v38  ;;  %v189_v26 = vor.u32 %v188_v21, %v185_v20 }
  0x1f   :  { %1103 = vmatpush3.bf16.msra.mxu1 %v1246_v29  ;;  %v30_v29 = vld [vmem:[%s1545_s0 + $0x3c] sm:$0x7] }
  0x20   :  { %1135 = vmatpush3.bf16.msra.mxu0 %v1247_v38  ;;  %1184 = vmatprep.subr.bf16.mxu1 %v1252_v47  ;;  %v924_v34 = vcombine.low %v1401_v56, %v30_v29  ;;  %v1266_v38 = vld [vmem:[%s1544_s1 + $0xb8] sm:$0xff]  }
  0x21   :  { %1152 = vmatprep.subr.bf16.mxu0 %v1252_v47 }
  0x22   :  { %1105 = vmatmul.mubr.bf16.vlgmr.msra.gmra.mrb[0].mxu1 %v136_v53  ;;  %v596_v53 = vrot.slane %v1275_v49, 3 }
  0x23   :  { %1137 = vmatmul.mubr.bf16.vlgmr.msra.gmra.mrb[0].mxu0 %v1341_v14  ;;  %1192 = vmatpush3.bf16.msra.mxu1 %v1252_v47  ;;  %v171_v14 = vor.u32 %v170_v9, %v167_v8 }
  0x24   :  { %1153 = vmatpush3.bf16.msra.mxu0 %v1252_v47  ;;  %1185 = vmatprep.subr.bf16.mxu1 %v1253_v57  ;;  %v586_v47 = vrot.slane %v1273_v41, 3  ;;  %v597_v54 = vsel %vm580_vm1, %v594_v46, %v596_v53 }
  0x25   :  { %1154 = vmatprep.subr.bf16.mxu0 %v1253_v57  ;;  %1108 = vmatprep.mubr.bf16.mxu1 %v145_v59  ;;  %v172_v19 = vsel %vm110_vm0, %v162_v4, %v171_v14 }
  0x26   :  { %1140 = vmatprep.mubr.bf16.mxu0 %v1349_v18  ;;  %v180_v18 = vor.u32 %v179_v13, %v176_v12  ;;  %v587_v52 = vsel %vm580_vm1, %v584_v45, %v586_v47 }
  0x27   :  { %1193 = vmatpush3.bf16.msra.mxu1 %v1253_v57 }
  0x28   :  { %1155 = vmatpush3.bf16.msra.mxu0 %v1253_v57  ;;  %1186 = vmatprep.subr.bf16.mxu1 %v1256_v2  ;;  %v181_v23 = vsel %vm110_vm0, %v171_v14, %v180_v18  ;;  %v190_v33 = vsel %vm110_vm0, %v180_v18, %v189_v26 }
  0x29   :  { %1156 = vmatprep.subr.bf16.mxu0 %v1256_v2 }
  0x2a   :  { %1109 = vmatmul.mubr.bf16.gmra.mrb[4].mxu1 %v154_v7 }
  0x2b   :  { %1141 = vmatmul.mubr.bf16.gmra.mrb[4].mxu0 %v1367_v35  ;;  %1194 = vmatpush3.bf16.msra.mxu1 %v1256_v2  ;;  %v588_v35 = vrot.slane %v1269_v27, 3 }
  0x2c   :  { %1157 = vmatpush3.bf16.msra.mxu0 %v1256_v2  ;;  %1187 = vmatprep.subr.bf16.mxu1 %v1257_v10 }
  0x2d   :  { %1158 = vmatprep.subr.bf16.mxu0 %v1257_v10  ;;  %1112 = vmatprep.mubr.bf16.mxu1 %v163_v11  ;;  %v591_v43 = vsel %vm580_vm1, %v588_v35, %v590_v36 }
  0x2e   :  { %1144 = vmatprep.mubr.bf16.mxu0 %v1372_v37  ;;  %v1272_v37 = vld [vmem:[%s1545_s0 + $0x34] sm:$0xff]  }
  0x2f   :  { %1195 = vmatpush3.bf16.msra.mxu1 %v1257_v10  ;;  %v592_v44 = vrot.slane %v1272_v37, 3 }
  0x30   :  { %1159 = vmatpush3.bf16.msra.mxu0 %v1257_v10  ;;  %1188 = vmatprep.subr.bf16.mxu1 %v1260_v17 }
  0x31   :  { %1160 = vmatprep.subr.bf16.mxu0 %v1260_v17  ;;  %v595_v51 = vsel %vm580_vm1, %v592_v44, %v594_v46 }
  0x32   :  { %1113 = vmatmul.mubr.bf16.gmra.mrb[8].mxu1 %v172_v19 }
  0x33   :  { %1145 = vmatmul.mubr.bf16.gmra.mrb[8].mxu0 %v1388_v48  ;;  %1196 = vmatpush3.bf16.msra.mxu1 %v1260_v17  ;;  %v593_v48 = vsel %vm580_vm1, %v590_v36, %v592_v44 }
  0x34   :  { %1161 = vmatpush3.bf16.msra.mxu0 %v1260_v17  ;;  %1189 = vmatprep.subr.bf16.mxu1 %v1261_v22 }
  0x35   :  { %1162 = vmatprep.subr.bf16.mxu0 %v1261_v22  ;;  %1116 = vmatprep.mubr.bf16.mxu1 %v181_v23 }
  0x36   :  { %1148 = vmatprep.mubr.bf16.mxu0 %v1396_v55  ;;  %v589_v55 = vsel %vm580_vm1, %v586_v47, %v588_v35 }
  0x37   :  { %1197 = vmatpush3.bf16.msra.mxu1 %v1261_v22 }
  0x38   :  { %1163 = vmatpush3.bf16.msra.mxu0 %v1261_v22  ;;  %1190 = vmatprep.subr.bf16.mxu1 %v1265_v30 }
  0x39   :  { %1164 = vmatprep.subr.bf16.mxu0 %v1265_v30 }
  0x3a   :  { %1117 = vmatmul.mubr.bf16.gmra.mrb[12].mxu1 %v190_v33 }
  0x3b   :  { %1149 = vmatmul.mubr.bf16.gmra.mrb[12].mxu0 %v924_v34  ;;  %1198 = vmatpush3.bf16.msra.mxu1 %v1265_v30 }
  0x3c   :  { %1165 = vmatpush3.bf16.msra.mxu0 %v1265_v30  ;;  %1191 = vmatprep.subr.bf16.mxu1 %v1266_v38 }
  0x3d   :  { %1166 = vmatprep.subr.bf16.mxu0 %v1266_v38  ;;  %1168 = vmatprep.mubr.bf16.mxu0 %v583_v42 }
  0x3e   :  { %1176 = vmatprep.mubr.bf16.mxu1 %v591_v43 }
  0x3f   :  { %1199 = vmatpush3.bf16.msra.mxu1 %v1266_v38 }
  0x40   :  { %1167 = vmatpush3.bf16.msra.mxu0 %v1266_v38 }
  0x42   :  { %1177 = vmatmul.mubr.bf16.vlgmr.msra.gmra.mrb[16].mxu1 %v593_v48 }
  0x43   :  { %1169 = vmatmul.mubr.bf16.vlgmr.msra.gmra.mrb[0].mxu0 %v585_v50  ;;  %1180 = vmatprep.mubr.bf16.mxu1 %v595_v51 }
  0x44   :  { %1172 = vmatprep.mubr.bf16.mxu0 %v587_v52 }
  0x4a   :  { %1181 = vmatmul.mubr.bf16.gmra.mrb[20].mxu1 %v597_v54 }
  0x4b   :  { %1173 = vmatmul.mubr.bf16.gmra.mrb[4].mxu0 %v589_v55 }
  0xf5   :  { %v1106_v56 = vpop.f32.mrb[0].mxu1 }
  0xf6   :  { %v281_v57 = vpop.f32.mrb[1].mxu1 }
  0xf7   :  { %v1107_v58 = vpop.f32.mrb[2].mxu1 }
  0xf8   :  { %v284_v59 = vpop.f32.mrb[3].mxu1 }
  0xfd   :  { %v1484_v60 = vpop.f32.mrb[4].mxu1 }
  0xfe   :  { %v1486_v61 = vpop.f32.mrb[5].mxu1 }
  0xff   :  { %v1488_v62 = vpop.f32.mrb[6].mxu1 }
 0x100   :  { %v1490_v63 = vpop.f32.mrb[7].mxu1 }
 0x105   :  { %v1114_v0 = vpop.f32.mrb[8].mxu1 }
 0x106   :  { %v1146_v1 = vpop.f32.mrb[8].mxu0  ;;  %v313_v2 = vpop.f32.mrb[9].mxu1 }
 0x107   :  { %v481_v3 = vadd.f32 %v1146_v1, %v1114_v0  ;;  %v472_v4 = vpop.f32.mrb[9].mxu0  ;;  %v1115_v5 = vpop.f32.mrb[10].mxu1 }
 0x108   :  { %v473_v6 = vadd.f32 %v472_v4, %v313_v2  ;;  %v1147_v7 = vpop.f32.mrb[10].mxu0  ;;  %v316_v8 = vpop.f32.mrb[11].mxu1 }
 0x109   :  { %v484_v9 = vadd.f32 %v1147_v7, %v1115_v5  ;;  %v475_v10 = vpop.f32.mrb[11].mxu0 }
 0x10a   :  { %v476_v11 = vadd.f32 %v475_v10, %v316_v8 }
 0x10d   :  { %v1118_v12 = vpop.f32.mrb[12].mxu1 }
 0x10e   :  { %v1150_v13 = vpop.f32.mrb[12].mxu0  ;;  %v329_v14 = vpop.f32.mrb[13].mxu1 }
 0x10f   :  { %v497_v15 = vadd.f32 %v1150_v13, %v1118_v12  ;;  %v488_v16 = vpop.f32.mrb[13].mxu0  ;;  %v1119_v17 = vpop.f32.mrb[14].mxu1 }
 0x110   :  { %v489_v18 = vadd.f32 %v488_v16, %v329_v14  ;;  %v1151_v19 = vpop.f32.mrb[14].mxu0  ;;  %v332_v20 = vpop.f32.mrb[15].mxu1 }
 0x111   :  { %v500_v21 = vadd.f32 %v1151_v19, %v1119_v17  ;;  %v491_v22 = vpop.f32.mrb[15].mxu0 }
 0x112   :  { %v492_v23 = vadd.f32 %v491_v22, %v332_v20 }
 0x115   :  { %v1178_v25 = vpop.f32.mrb[16].mxu1 }
 0x116   :  { %v1170_v26 = vpop.f32.mrb[0].mxu0  ;;  %v761_v27 = vadd.f32 %v1178_v25, %v481_v3  ;;  %v720_v28 = vpop.f32.mrb[17].mxu1 }
 0x117   :  { %v1200_v29 = vadd.f32 %v1170_v26, %v1106_v56  ;;  %v688_v30 = vpop.f32.mrb[1].mxu0  ;;  %v759_v31 = vadd.f32 %v720_v28, %v473_v6  ;;  %v1179_v32 = vpop.f32.mrb[18].mxu1 }
 0x118   :  { %v784_v33 = vadd.f32 %v1495_v24, %v761_v27  ;;  %v1201_v34 = vadd.f32 %v688_v30, %v281_v57  ;;  %v1171_v35 = vpop.f32.mrb[2].mxu0  ;;  %v762_v36 = vadd.f32 %v1179_v32, %v484_v9  ;;  %v723_v37 = vpop.f32.mrb[19].mxu1 }
 0x119   :  { %v776_v38 = vadd.f32 %v1200_v29, %v1495_v24  ;;  %v782_v39 = vadd.f32 %v1495_v24, %v759_v31  ;;  %v1202_v40 = vadd.f32 %v1171_v35, %v1107_v58  ;;  %v691_v41 = vpop.f32.mrb[3].mxu0  ;;  %v760_v42 = vadd.f32 %v723_v37, %v476_v11 }
 0x11a   :  { %v774_v43 = vadd.f32 %v1201_v34, %v1495_v24  ;;  %v785_v44 = vadd.f32 %v1495_v24, %v762_v36  ;;  %v1203_v45 = vadd.f32 %v691_v41, %v284_v59  ;;  %v800_v48 = vmax.f32 %v784_v33, 0.0 }
 0x11b   :  { %v777_v46 = vadd.f32 %v1202_v40, %v1495_v24  ;;  %v783_v47 = vadd.f32 %v1495_v24, %v760_v42  ;;  %v792_v51 = vmax.f32 %v776_v38, 0.0  ;;  %v798_v52 = vmax.f32 %v782_v39, 0.0 }
 0x11c   :  { %v801_v49 = vmax.f32 %v785_v44, 0.0  ;;  %v775_v50 = vadd.f32 %v1203_v45, %v1495_v24  ;;  %v790_v56 = vmax.f32 %v774_v43, 0.0 }
 0x11d   :  { %v793_v53 = vmax.f32 %v777_v46, 0.0  ;;  %v799_v54 = vmax.f32 %v783_v47, 0.0  ;;  %v1182_v55 = vpop.f32.mrb[20].mxu1 }
 0x11e   :  { %v1027_v57 = vpack.c.bf16 %v801_v49, %v800_v48  ;;  %v791_v58 = vmax.f32 %v775_v50, 0.0  ;;  %v1174_v0 = vpop.f32.mrb[4].mxu0  ;;  %v765_v1 = vadd.f32 %v1182_v55, %v497_v15  ;;  %v736_v2 = vpop.f32.mrb[21].mxu1 }
 0x11f   :  { %v1007_v59 = vpack.c.bf16 %v793_v53, %v792_v51  ;;  %v1022_v3 = vpack.c.bf16 %v799_v54, %v798_v52  ;;  %v1204_v4 = vadd.f32 %v1174_v0, %v1484_v60  ;;  %v704_v5 = vpop.f32.mrb[5].mxu0  ;;  %v763_v6 = vadd.f32 %v736_v2, %v489_v18  ;;  %v1183_v7 = vpop.f32.mrb[22].mxu1 }
 0x120   :  { %1038 = vst [vmem:[%s1547_s3 + $0x28] sm:$0xff] %v1027_v57   ;;  %v1002_v8 = vpack.c.bf16 %v791_v58, %v790_v56  ;;  %v788_v9 = vadd.f32 %v1495_v24, %v765_v1  ;;  %v1205_v10 = vadd.f32 %v704_v5, %v1486_v61  ;;  %v1175_v11 = vpop.f32.mrb[6].mxu0  ;;  %v766_v12 = vadd.f32 %v1183_v7, %v500_v21  ;;  %v739_v13 = vpop.f32.mrb[23].mxu1 }
 0x121   :  { %1034 = vst [vmem:[%s1547_s3 + $0x8] sm:$0xff] %v1007_v59   ;;  %1037 = vst [vmem:[%s1547_s3 + $0x20] sm:$0xff] %v1022_v3   ;;  %v780_v60 = vadd.f32 %v1204_v4, %v1495_v24  ;;  %v786_v14 = vadd.f32 %v1495_v24, %v763_v6  ;;  %v1206_v15 = vadd.f32 %v1175_v11, %v1488_v62  ;;  %v707_v16 = vpop.f32.mrb[7].mxu0 }
 0x122   :  { %v764_v17 = vadd.f32 %v739_v13, %v492_v23  ;;  %1003 = vst [vmem:[%s1547_s3] sm:$0xff] %v1002_v8   ;;  %v804_v61 = vmax.f32 %v788_v9, 0.0  ;;  %v778_v18 = vadd.f32 %v1205_v10, %v1495_v24  ;;  %v789_v19 = vadd.f32 %v1495_v24, %v766_v12 }
 0x123   :  { %v1207_v20 = vadd.f32 %v707_v16, %v1490_v63  ;;  %v781_v21 = vadd.f32 %v1206_v15, %v1495_v24  ;;  %v796_v23 = vmax.f32 %v780_v60, 0.0  ;;  %v802_v27 = vmax.f32 %v786_v14, 0.0 }
 0x124   :  { %v787_v22 = vadd.f32 %v1495_v24, %v764_v17  ;;  %v997_v25 = vpack.c.bf16 %v804_v61, %v804_v61  ;;  %v805_v26 = vmax.f32 %v789_v19, 0.0  ;;  %v794_v30 = vmax.f32 %v778_v18, 0.0 }
 0x125   :  { %v779_v62 = vadd.f32 %v1207_v20, %v1495_v24  ;;  %v797_v28 = vmax.f32 %v781_v21, 0.0 }
 0x126   :  { %v803_v29 = vmax.f32 %v787_v22, 0.0  ;;  %884 = vst [vmem:[%s1547_s3 + $0x38] sm:$0xf] %v997_v25  ;;  %v998_v31 = vpack.c.bf16 %v805_v26, %v805_v26 }
 0x127   :  { %v795_v32 = vmax.f32 %v779_v62, 0.0  ;;  %v1017_v63 = vpack.c.bf16 %v797_v28, %v796_v23 }
 0x128   :  { %v1032_v33 = vpack.c.bf16 %v803_v29, %v802_v27  ;;  %885 = vst [vmem:[%s1547_s3 + $0x3c] sm:$0x7] %v998_v31 }
 0x129   :  { %v1012_v34 = vpack.c.bf16 %v795_v32, %v794_v30  ;;  %1036 = vst [vmem:[%s1547_s3 + $0x18] sm:$0xff] %v1017_v63  }
 0x12a   :  { %1039 = vst [vmem:[%s1547_s3 + $0x30] sm:$0xff] %v1032_v33  }
 0x12b   :  { %1035 = vst [vmem:[%s1547_s3 + $0x10] sm:$0xff] %v1012_v34  }

// kernel: _lambda_.22
= control target key start
LH: loop header
LB: loop body
LE: loop exit
PB: predicated region body
PF: predicated region fallthrough
CT: control target
= control target key end

     0   :  { %vm105_vm0 = vsmask.f32 7424  ;;  %vm499_vm1 = vcmask 1046528   ;;  %s1424_s1 = inlined_call_operand.vmem [shape: bf16[3,128,128], index: 1, kind: input, shape index: {}]   ;;  %s1425_s0 = inlined_call_operand.vmem [shape: bf16[128,128], index: 0, kind: input, shape index: {}]   ;;  %s1426_s2 = inlined_call_operand.vmem [shape: f32[1,128], index: 2, kind: input, shape index: {}]   ;;  %s1427_s3 = inlined_call_operand.vmem [shape: bf16[126,128], index: 3, kind: output, shape index: {}]  }
   0x1   :  { %v1139_v0 = vld [vmem:[%s1424_s1 + $0x40] sm:$0xff]   ;;  %v1141_v2 = vld [vmem:[%s1424_s1 + $0x48] sm:$0xff]   ;;  %v1143_v4 = vld [vmem:[%s1424_s1 + $0x50] sm:$0xff]  }
   0x2   :  { %v1140_v1 = vld [vmem:[%s1424_s1] sm:$0xff]   ;;  %995 = vmatprep.subr.bf16.mxu1 %v1139_v0  ;;  %v1142_v3 = vld [vmem:[%s1424_s1 + $0x8] sm:$0xff]   ;;  %v1144_v5 = vld [vmem:[%s1424_s1 + $0x10] sm:$0xff]  }
   0x3   :  { %1027 = vmatprep.subr.bf16.mxu0 %v1140_v1  ;;  %996 = vmatpush3.bf16.msra.mxu1 %v1139_v0  ;;  %v1145_v6 = vld [vmem:[%s1424_s1 + $0x58] sm:$0xff]   ;;  %v1147_v8 = vld [vmem:[%s1424_s1 + $0x60] sm:$0xff]   ;;  %v1149_v10 = vld [vmem:[%s1424_s1 + $0x68] sm:$0xff]  }
   0x4   :  { %1028 = vmatpush3.bf16.msra.mxu0 %v1140_v1  ;;  %997 = vmatprep.subr.bf16.mxu1 %v1141_v2  ;;  %v1146_v7 = vld [vmem:[%s1424_s1 + $0x18] sm:$0xff]   ;;  %v1148_v9 = vld [vmem:[%s1424_s1 + $0x20] sm:$0xff]   ;;  %v1150_v11 = vld [vmem:[%s1424_s1 + $0x28] sm:$0xff]  }
   0x5   :  { %1029 = vmatprep.subr.bf16.mxu0 %v1142_v3  ;;  %v15_v12 = vld [vmem:[%s1425_s0] sm:$0xf]  ;;  %v1235_v13 = vld [vmem:[%s1425_s0 + $0x4] sm:$0xf]  ;;  %v1241_v15 = vld [vmem:[%s1425_s0 + $0x8] sm:$0xff]  }
   0x6   :  { %v823_v14 = vcombine.low %v15_v12, %v1235_v13  ;;  %v114_v18 = vshll.u32 %v1241_v15, 16  ;;  %v1247_v19 = vld [vmem:[%s1425_s0 + $0x10] sm:$0xff]   ;;  %v1258_v24 = vld [vmem:[%s1425_s0 + $0x18] sm:$0xff]   ;;  %v118_v27 = vshrl.u32 %v1241_v15, 16  ;;  %v1274_v35 = vld [vmem:[%s1425_s0 + $0x20] sm:$0xff]  }
   0x7   :  { %998 = vmatpush3.bf16.msra.mxu1 %v1141_v2  ;;  %v1151_v20 = vld [vmem:[%s1424_s1 + $0x70] sm:$0xff]   ;;  %v1153_v25 = vld [vmem:[%s1424_s1 + $0x78] sm:$0xff]   ;;  %v122_v28 = vshll.u32 %v1247_v19, 16  ;;  %v126_v31 = vshrl.u32 %v1247_v19, 16  ;;  %v130_v32 = vshll.u32 %v1258_v24, 16  ;;  %v1158_v36 = vld [vmem:[%s1424_s1 + $0x80] sm:$0xff]  }
   0x8   :  { %1030 = vmatpush3.bf16.msra.mxu0 %v1142_v3  ;;  %999 = vmatprep.subr.bf16.mxu1 %v1143_v4  ;;  %v107_v16 = vshrl.u32 %v823_v14, 16  ;;  %v109_v17 = vshll.u32 %v823_v14, 16  ;;  %v1152_v21 = vld [vmem:[%s1424_s1 + $0x30] sm:$0xff]   ;;  %v116_v23 = vrot.slane %v114_v18, 1  ;;  %v1154_v29 = vld [vmem:[%s1424_s1 + $0x38] sm:$0xff]   ;;  %v1282_v39 = vld [vmem:[%s1425_s0 + $0x28] sm:$0xff]  }
   0x9   :  { %1031 = vmatprep.subr.bf16.mxu0 %v1144_v5  ;;  %1043 = vmatprep.mubr.bf16.mxu0 %v823_v14  ;;  %v124_v34 = vrot.slane %v122_v28, 1  ;;  %v132_v38 = vrot.slane %v130_v32, 1  ;;  %v1159_v41 = vld [vmem:[%s1424_s1 + $0x88] sm:$0xff]   ;;  %v134_v42 = vshrl.u32 %v1258_v24, 16  ;;  %v138_v43 = vshll.u32 %v1274_v35, 16  ;;  %v1297_v49 = vld [vmem:[%s1425_s0 + $0x30] sm:$0xff]  }
   0xa   :  { %v111_v22 = vrot.slane %v109_v17, 1  ;;  %v120_v33 = vor.u32 %v118_v27, %v116_v23  ;;  %v142_v45 = vshrl.u32 %v1274_v35, 16  ;;  %v146_v46 = vshll.u32 %v1282_v39, 16  ;;  %v1302_v50 = vld [vmem:[%s1425_s0 + $0x38] sm:$0xf]  ;;  %v1162_v52 = vld [vmem:[%s1424_s1 + $0x90] sm:$0xff]  }
   0xb   :  { %1000 = vmatpush3.bf16.msra.mxu1 %v1143_v4  ;;  %v128_v37 = vor.u32 %v126_v31, %v124_v34  ;;  %v136_v47 = vor.u32 %v134_v42, %v132_v38  ;;  %v140_v48 = vrot.slane %v138_v43, 1  ;;  %v47_v51 = vld [vmem:[%s1425_s0 + $0x3c] sm:$0xf]  ;;  %v150_v57 = vshrl.u32 %v1282_v39, 16  ;;  %v1166_v1 = vld [vmem:[%s1424_s1 + $0xa0] sm:$0xff]  }
   0xc   :  { %1032 = vmatpush3.bf16.msra.mxu0 %v1144_v5  ;;  %1001 = vmatprep.subr.bf16.mxu1 %v1145_v6  ;;  %v112_v26 = vor.u32 %v111_v22, %v107_v16  ;;  %v125_v40 = vsel %vm105_vm0, %v120_v33, %v124_v34  ;;  %v148_v54 = vrot.slane %v146_v46, 1  ;;  %v1312_v55 = vcombine.low %v1302_v50, %v47_v51  ;;  %v1163_v59 = vld [vmem:[%s1424_s1 + $0x98] sm:$0xff]   ;;  %v478_v5 = vld [vmem:[%s1425_s0] sm:$0xe] }
   0xd   :  { %1033 = vmatprep.subr.bf16.mxu0 %v1146_v7  ;;  %v133_v44 = vsel %vm105_vm0, %v128_v37, %v132_v38  ;;  %v144_v53 = vor.u32 %v142_v45, %v140_v48  ;;  %v141_v56 = vsel %vm105_vm0, %v136_v47, %v140_v48  ;;  %v154_v58 = vshll.u32 %v1297_v49, 16 }
   0xe   :  { %v117_v30 = vsel %vm105_vm0, %v112_v26, %v116_v23  ;;  %v158_v61 = vshrl.u32 %v1297_v49, 16  ;;  %v162_v62 = vshll.u32 %v1312_v55, 16  ;;  %v152_v63 = vor.u32 %v150_v57, %v148_v54 }
   0xf   :  { %1002 = vmatpush3.bf16.msra.mxu1 %v1145_v6  ;;  %1011 = vmatprep.mubr.bf16.mxu1 %v117_v30  ;;  %v149_v60 = vsel %vm105_vm0, %v144_v53, %v148_v54  ;;  %v156_v0 = vrot.slane %v154_v58, 1  ;;  %v1167_v6 = vld [vmem:[%s1424_s1 + $0xa8] sm:$0xff]   ;;  %v507_v17 = vrot.slane %v1274_v35, 1  ;;  %v509_v18 = vrot.slane %v1282_v39, 1 }
  0x10   :  { %1034 = vmatpush3.bf16.msra.mxu0 %v1146_v7  ;;  %1003 = vmatprep.subr.bf16.mxu1 %v1147_v8  ;;  %v164_v3 = vrot.slane %v162_v62, 1  ;;  %v511_v22 = vrot.slane %v1297_v49, 1  ;;  %v503_v23 = vrot.slane %v1247_v19, 1  ;;  %v505_v26 = vrot.slane %v1258_v24, 1  ;;  %v1375_v62 = vld [vmem:[%s1426_s2] ss:$0 sm:$0xff] }
  0x11   :  { %1035 = vmatprep.subr.bf16.mxu0 %v1148_v9  ;;  %v160_v2 = vor.u32 %v158_v61, %v156_v0  ;;  %v157_v4 = vsel %vm105_vm0, %v152_v63, %v156_v0 }
  0x12   :  { %v512_v27 = vsel %vm499_vm1, %v509_v18, %v511_v22  ;;  %v506_v30 = vsel %vm499_vm1, %v503_v23, %v505_v26 }
  0x13   :  { %1004 = vmatpush3.bf16.msra.mxu1 %v1147_v8  ;;  %v165_v7 = vsel %vm105_vm0, %v160_v2, %v164_v3  ;;  %v166_v8 = vshrl.u32 %v1312_v55, 16 }
  0x14   :  { %1036 = vmatpush3.bf16.msra.mxu0 %v1148_v9  ;;  %1005 = vmatprep.subr.bf16.mxu1 %v1149_v10  ;;  %v864_v9 = vcombine.low %v478_v5, %v1235_v13  ;;  %v501_v13 = vrot.slane %v1241_v15, 1 }
  0x15   :  { %1037 = vmatprep.subr.bf16.mxu0 %v1150_v11  ;;  %v168_v12 = vor.u32 %v166_v8, %v164_v3 }
  0x16   :  { %v500_v14 = vrot.slane %v864_v9, 1  ;;  %v504_v28 = vsel %vm499_vm1, %v501_v13, %v503_v23 }
  0x17   :  { %1006 = vmatpush3.bf16.msra.mxu1 %v1149_v10  ;;  %v30_v10 = vld [vmem:[%s1425_s0 + $0x3c] sm:$0x7] }
  0x18   :  { %1038 = vmatpush3.bf16.msra.mxu0 %v1150_v11  ;;  %1007 = vmatprep.subr.bf16.mxu1 %v1151_v20  ;;  %v1170_v11 = vld [vmem:[%s1424_s1 + $0xb0] sm:$0xff]   ;;  %v839_v16 = vcombine.low %v1302_v50, %v30_v10 }
  0x19   :  { %1039 = vmatprep.subr.bf16.mxu0 %v1152_v21 }
  0x1b   :  { %1008 = vmatpush3.bf16.msra.mxu1 %v1151_v20  ;;  %v1171_v20 = vld [vmem:[%s1424_s1 + $0xb8] sm:$0xff]  }
  0x1c   :  { %1040 = vmatpush3.bf16.msra.mxu0 %v1152_v21  ;;  %1009 = vmatprep.subr.bf16.mxu1 %v1153_v25  ;;  %v502_v21 = vsel %vm499_vm1, %v500_v14, %v501_v13 }
  0x1d   :  { %1041 = vmatprep.subr.bf16.mxu0 %v1154_v29 }
  0x1f   :  { %1010 = vmatpush3.bf16.msra.mxu1 %v1153_v25  ;;  %v513_v25 = vrot.slane %v1312_v55, 1 }
  0x20   :  { %1042 = vmatpush3.bf16.msra.mxu0 %v1154_v29  ;;  %1091 = vmatprep.subr.bf16.mxu1 %v1158_v36 }
  0x21   :  { %1059 = vmatprep.subr.bf16.mxu0 %v1158_v36  ;;  %v514_v29 = vsel %vm499_vm1, %v511_v22, %v513_v25 }
  0x22   :  { %1012 = vmatmul.mubr.bf16.vlgmr.msra.gmra.mrb[0].mxu1 %v125_v40 }
  0x23   :  { %1044 = vmatmul.mubr.bf16.vlgmr.msra.gmra.mrb[0].mxu0 %v1241_v15  ;;  %1099 = vmatpush3.bf16.msra.mxu1 %v1158_v36  ;;  %v510_v15 = vsel %vm499_vm1, %v507_v17, %v509_v18 }
  0x24   :  { %1060 = vmatpush3.bf16.msra.mxu0 %v1158_v36  ;;  %1092 = vmatprep.subr.bf16.mxu1 %v1159_v41 }
  0x25   :  { %1061 = vmatprep.subr.bf16.mxu0 %v1159_v41  ;;  %1015 = vmatprep.mubr.bf16.mxu1 %v133_v44 }
  0x26   :  { %1047 = vmatprep.mubr.bf16.mxu0 %v1247_v19  ;;  %v508_v19 = vsel %vm499_vm1, %v505_v26, %v507_v17 }
  0x27   :  { %1100 = vmatpush3.bf16.msra.mxu1 %v1159_v41 }
  0x28   :  { %1062 = vmatpush3.bf16.msra.mxu0 %v1159_v41  ;;  %1093 = vmatprep.subr.bf16.mxu1 %v1162_v52 }
  0x29   :  { %1063 = vmatprep.subr.bf16.mxu0 %v1162_v52 }
  0x2a   :  { %1016 = vmatmul.mubr.bf16.gmra.mrb[4].mxu1 %v141_v56 }
  0x2b   :  { %1048 = vmatmul.mubr.bf16.gmra.mrb[4].mxu0 %v1258_v24  ;;  %1101 = vmatpush3.bf16.msra.mxu1 %v1162_v52 }
  0x2c   :  { %1064 = vmatpush3.bf16.msra.mxu0 %v1162_v52  ;;  %1094 = vmatprep.subr.bf16.mxu1 %v1163_v59 }
  0x2d   :  { %1065 = vmatprep.subr.bf16.mxu0 %v1163_v59  ;;  %1019 = vmatprep.mubr.bf16.mxu1 %v149_v60 }
  0x2e   :  { %1051 = vmatprep.mubr.bf16.mxu0 %v1274_v35 }
  0x2f   :  { %1102 = vmatpush3.bf16.msra.mxu1 %v1163_v59 }
  0x30   :  { %1066 = vmatpush3.bf16.msra.mxu0 %v1163_v59  ;;  %1095 = vmatprep.subr.bf16.mxu1 %v1166_v1 }
  0x31   :  { %1067 = vmatprep.subr.bf16.mxu0 %v1166_v1 }
  0x32   :  { %1020 = vmatmul.mubr.bf16.gmra.mrb[8].mxu1 %v157_v4 }
  0x33   :  { %1052 = vmatmul.mubr.bf16.gmra.mrb[8].mxu0 %v1282_v39  ;;  %1103 = vmatpush3.bf16.msra.mxu1 %v1166_v1 }
  0x34   :  { %1068 = vmatpush3.bf16.msra.mxu0 %v1166_v1  ;;  %1096 = vmatprep.subr.bf16.mxu1 %v1167_v6 }
  0x35   :  { %1069 = vmatprep.subr.bf16.mxu0 %v1167_v6  ;;  %1023 = vmatprep.mubr.bf16.mxu1 %v165_v7 }
  0x36   :  { %1055 = vmatprep.mubr.bf16.mxu0 %v1297_v49 }
  0x37   :  { %1104 = vmatpush3.bf16.msra.mxu1 %v1167_v6 }
  0x38   :  { %1070 = vmatpush3.bf16.msra.mxu0 %v1167_v6  ;;  %1097 = vmatprep.subr.bf16.mxu1 %v1170_v11 }
  0x39   :  { %1071 = vmatprep.subr.bf16.mxu0 %v1170_v11 }
  0x3a   :  { %1024 = vmatmul.mubr.bf16.gmra.mrb[12].mxu1 %v168_v12 }
  0x3b   :  { %1056 = vmatmul.mubr.bf16.gmra.mrb[12].mxu0 %v839_v16  ;;  %1105 = vmatpush3.bf16.msra.mxu1 %v1170_v11 }
  0x3c   :  { %1072 = vmatpush3.bf16.msra.mxu0 %v1170_v11  ;;  %1098 = vmatprep.subr.bf16.mxu1 %v1171_v20 }
  0x3d   :  { %1073 = vmatprep.subr.bf16.mxu0 %v1171_v20  ;;  %1075 = vmatprep.mubr.bf16.mxu0 %v502_v21 }
  0x3e   :  { %1083 = vmatprep.mubr.bf16.mxu1 %v510_v15 }
  0x3f   :  { %1106 = vmatpush3.bf16.msra.mxu1 %v1171_v20 }
  0x40   :  { %1074 = vmatpush3.bf16.msra.mxu0 %v1171_v20 }
  0x42   :  { %1084 = vmatmul.mubr.bf16.vlgmr.msra.gmra.mrb[16].mxu1 %v512_v27 }
  0x43   :  { %1076 = vmatmul.mubr.bf16.vlgmr.msra.gmra.mrb[0].mxu0 %v504_v28  ;;  %1087 = vmatprep.mubr.bf16.mxu1 %v514_v29 }
  0x44   :  { %1079 = vmatprep.mubr.bf16.mxu0 %v506_v30 }
  0x4a   :  { %1088 = vmatmul.mubr.bf16.gmra.mrb[20].mxu1 %v513_v25 }
  0x4b   :  { %1080 = vmatmul.mubr.bf16.gmra.mrb[4].mxu0 %v508_v19 }
  0xf5   :  { %v1013_v24 = vpop.f32.mrb[0].mxu1 }
  0xf6   :  { %v259_v31 = vpop.f32.mrb[1].mxu1 }
  0xf7   :  { %v1014_v32 = vpop.f32.mrb[2].mxu1 }
  0xf8   :  { %v262_v33 = vpop.f32.mrb[3].mxu1 }
  0xfd   :  { %v1364_v34 = vpop.f32.mrb[4].mxu1 }
  0xfe   :  { %v1366_v35 = vpop.f32.mrb[5].mxu1 }
  0xff   :  { %v1368_v36 = vpop.f32.mrb[6].mxu1 }
 0x100   :  { %v1370_v37 = vpop.f32.mrb[7].mxu1 }
 0x105   :  { %v1021_v38 = vpop.f32.mrb[8].mxu1 }
 0x106   :  { %v1053_v39 = vpop.f32.mrb[8].mxu0  ;;  %v291_v40 = vpop.f32.mrb[9].mxu1 }
 0x107   :  { %v456_v41 = vadd.f32 %v1053_v39, %v1021_v38  ;;  %v447_v42 = vpop.f32.mrb[9].mxu0  ;;  %v1022_v43 = vpop.f32.mrb[10].mxu1 }
 0x108   :  { %v448_v44 = vadd.f32 %v447_v42, %v291_v40  ;;  %v1054_v45 = vpop.f32.mrb[10].mxu0  ;;  %v294_v46 = vpop.f32.mrb[11].mxu1 }
 0x109   :  { %v459_v47 = vadd.f32 %v1054_v45, %v1022_v43  ;;  %v450_v48 = vpop.f32.mrb[11].mxu0 }
 0x10a   :  { %v451_v49 = vadd.f32 %v450_v48, %v294_v46 }
 0x10d   :  { %v1025_v50 = vpop.f32.mrb[12].mxu1 }
 0x10e   :  { %v1057_v51 = vpop.f32.mrb[12].mxu0  ;;  %v307_v52 = vpop.f32.mrb[13].mxu1 }
 0x10f   :  { %v472_v53 = vadd.f32 %v1057_v51, %v1025_v50  ;;  %v463_v54 = vpop.f32.mrb[13].mxu0  ;;  %v1026_v55 = vpop.f32.mrb[14].mxu1 }
 0x110   :  { %v464_v56 = vadd.f32 %v463_v54, %v307_v52  ;;  %v1058_v57 = vpop.f32.mrb[14].mxu0  ;;  %v310_v58 = vpop.f32.mrb[15].mxu1 }
 0x111   :  { %v475_v59 = vadd.f32 %v1058_v57, %v1026_v55  ;;  %v466_v60 = vpop.f32.mrb[15].mxu0 }
 0x112   :  { %v467_v61 = vadd.f32 %v466_v60, %v310_v58 }
 0x115   :  { %v1085_v63 = vpop.f32.mrb[16].mxu1 }
 0x116   :  { %v1077_v0 = vpop.f32.mrb[0].mxu0  ;;  %v678_v1 = vadd.f32 %v1085_v63, %v456_v41  ;;  %v637_v2 = vpop.f32.mrb[17].mxu1 }
 0x117   :  { %v1107_v3 = vadd.f32 %v1077_v0, %v1013_v24  ;;  %v605_v4 = vpop.f32.mrb[1].mxu0  ;;  %v676_v5 = vadd.f32 %v637_v2, %v448_v44  ;;  %v1086_v6 = vpop.f32.mrb[18].mxu1 }
 0x118   :  { %v701_v7 = vadd.f32 %v1375_v62, %v678_v1  ;;  %v1108_v8 = vadd.f32 %v605_v4, %v259_v31  ;;  %v1078_v9 = vpop.f32.mrb[2].mxu0  ;;  %v679_v10 = vadd.f32 %v1086_v6, %v459_v47  ;;  %v640_v11 = vpop.f32.mrb[19].mxu1 }
 0x119   :  { %v693_v12 = vadd.f32 %v1107_v3, %v1375_v62  ;;  %v699_v14 = vadd.f32 %v1375_v62, %v676_v5  ;;  %v1109_v13 = vadd.f32 %v1078_v9, %v1014_v32  ;;  %v608_v16 = vpop.f32.mrb[3].mxu0  ;;  %v677_v17 = vadd.f32 %v640_v11, %v451_v49 }
 0x11a   :  { %v691_v18 = vadd.f32 %v1108_v8, %v1375_v62  ;;  %v702_v20 = vadd.f32 %v1375_v62, %v679_v10  ;;  %v1110_v21 = vadd.f32 %v608_v16, %v262_v33  ;;  %v717_v23 = vmax.f32 %v701_v7, 0.0 }
 0x11b   :  { %v694_v15 = vadd.f32 %v1109_v13, %v1375_v62  ;;  %v700_v22 = vadd.f32 %v1375_v62, %v677_v17  ;;  %v709_v27 = vmax.f32 %v693_v12, 0.0  ;;  %v715_v28 = vmax.f32 %v699_v14, 0.0 }
 0x11c   :  { %v718_v25 = vmax.f32 %v702_v20, 0.0  ;;  %v692_v26 = vadd.f32 %v1110_v21, %v1375_v62  ;;  %v707_v24 = vmax.f32 %v691_v18, 0.0 }
 0x11d   :  { %v710_v29 = vmax.f32 %v694_v15, 0.0  ;;  %v716_v30 = vmax.f32 %v700_v22, 0.0  ;;  %v1089_v19 = vpop.f32.mrb[20].mxu1 }
 0x11e   :  { %v934_v31 = vpack.c.bf16 %v718_v25, %v717_v23  ;;  %v708_v32 = vmax.f32 %v692_v26, 0.0  ;;  %v1081_v38 = vpop.f32.mrb[4].mxu0  ;;  %v682_v39 = vadd.f32 %v1089_v19, %v472_v53  ;;  %v653_v40 = vpop.f32.mrb[21].mxu1 }
 0x11f   :  { %v914_v33 = vpack.c.bf16 %v710_v29, %v709_v27  ;;  %v929_v41 = vpack.c.bf16 %v716_v30, %v715_v28  ;;  %v1111_v42 = vadd.f32 %v1081_v38, %v1364_v34  ;;  %v621_v43 = vpop.f32.mrb[5].mxu0  ;;  %v680_v44 = vadd.f32 %v653_v40, %v464_v56  ;;  %v1090_v45 = vpop.f32.mrb[22].mxu1 }
 0x120   :  { %945 = vst [vmem:[%s1427_s3 + $0x28] sm:$0xff] %v934_v31   ;;  %v909_v46 = vpack.c.bf16 %v708_v32, %v707_v24  ;;  %v705_v47 = vadd.f32 %v1375_v62, %v682_v39  ;;  %v1112_v48 = vadd.f32 %v621_v43, %v1366_v35  ;;  %v1082_v49 = vpop.f32.mrb[6].mxu0  ;;  %v683_v50 = vadd.f32 %v1090_v45, %v475_v59  ;;  %v656_v51 = vpop.f32.mrb[23].mxu1 }
 0x121   :  { %941 = vst [vmem:[%s1427_s3 + $0x8] sm:$0xff] %v914_v33   ;;  %944 = vst [vmem:[%s1427_s3 + $0x20] sm:$0xff] %v929_v41   ;;  %v697_v34 = vadd.f32 %v1111_v42, %v1375_v62  ;;  %v703_v52 = vadd.f32 %v1375_v62, %v680_v44  ;;  %v1113_v53 = vadd.f32 %v1082_v49, %v1368_v36  ;;  %v624_v54 = vpop.f32.mrb[7].mxu0 }
 0x122   :  { %v681_v55 = vadd.f32 %v656_v51, %v467_v61  ;;  %910 = vst [vmem:[%s1427_s3] sm:$0xff] %v909_v46   ;;  %v721_v35 = vmax.f32 %v705_v47, 0.0  ;;  %v695_v56 = vadd.f32 %v1112_v48, %v1375_v62  ;;  %v706_v57 = vadd.f32 %v1375_v62, %v683_v50 }
 0x123   :  { %v1114_v58 = vadd.f32 %v624_v54, %v1370_v37  ;;  %v698_v59 = vadd.f32 %v1113_v53, %v1375_v62  ;;  %v713_v61 = vmax.f32 %v697_v34, 0.0  ;;  %v719_v1 = vmax.f32 %v703_v52, 0.0 }
 0x124   :  { %v704_v60 = vadd.f32 %v1375_v62, %v681_v55  ;;  %v904_v63 = vpack.c.bf16 %v721_v35, %v721_v35  ;;  %v722_v0 = vmax.f32 %v706_v57, 0.0  ;;  %v711_v4 = vmax.f32 %v695_v56, 0.0 }
 0x125   :  { %v696_v36 = vadd.f32 %v1114_v58, %v1375_v62  ;;  %v714_v2 = vmax.f32 %v698_v59, 0.0 }
 0x126   :  { %v720_v3 = vmax.f32 %v704_v60, 0.0  ;;  %801 = vst [vmem:[%s1427_s3 + $0x38] sm:$0xf] %v904_v63  ;;  %v905_v5 = vpack.c.bf16 %v722_v0, %v722_v0 }
 0x127   :  { %v712_v6 = vmax.f32 %v696_v36, 0.0  ;;  %v924_v37 = vpack.c.bf16 %v714_v2, %v713_v61 }
 0x128   :  { %v939_v7 = vpack.c.bf16 %v720_v3, %v719_v1  ;;  %802 = vst [vmem:[%s1427_s3 + $0x3c] sm:$0x7] %v905_v5 }
 0x129   :  { %v919_v8 = vpack.c.bf16 %v712_v6, %v711_v4  ;;  %943 = vst [vmem:[%s1427_s3 + $0x18] sm:$0xff] %v924_v37  }
 0x12a   :  { %946 = vst [vmem:[%s1427_s3 + $0x30] sm:$0xff] %v939_v7  }
 0x12b   :  { %942 = vst [vmem:[%s1427_s3 + $0x10] sm:$0xff] %v919_v8  }

</bundles_post_ra>
